<compile_context>
chip_gen: v6e
topology: v6e:2x2x1
jax: 0.10.0
libtpu: 0.0.40
codegen_flags: <defaults>
</compile_context>

<pallas_src>
import functools
import math

import jax
import jax.numpy as jnp
from jax import lax
from jax.experimental import pallas as pl
from jax.experimental.pallas import tpu as pltpu


def fold_bn(gamma, beta, running_mean, running_var, eps=1e-5):
    """Eval-mode BatchNorm -> per-channel (scale, shift)."""
    scale = gamma / jnp.sqrt(running_var + eps)
    shift = beta - running_mean * scale
    return scale, shift


def _round_up(x, m):
    return (x + m - 1) // m * m


def _pick_rows_per_band(H, target):
    """Largest divisor of H that does not exceed `target`."""
    r = max(1, min(target, H))
    while H % r != 0:
        r -= 1
    return r


# -----------------------------------------------------------------------------
# Fused bottleneck kernel.  One grid step computes an R-row band of the output.
# Flat layout: padded image rows of WP2 columns each, flattened to
# (rows * WP2, C); every 3x3 tap is then a contiguous sublane slice.
# -----------------------------------------------------------------------------
def _bottleneck_kernel(x_ref, mask_ref, w1_ref, w2_ref, w3_ref,
                       b1_ref, b2_ref, b3_ref, o_ref,
                       *, R, W, WP2, L_MID, L_ACC, width, last_relu):
    r = pl.program_id(1)
    start = pl.multiple_of(r * (R * WP2), 8)      # R*WP2 is a multiple of 8

    # Band of the flat, spatially zero-padded bf16 input (resident per image).
    xb = x_ref[0, pl.ds(start, L_MID), :]         # (L_MID, Cin)
    mask = mask_ref[pl.ds(start, L_MID), :]       # (L_MID, 1), 1 inside image

    # ---- conv1 (1x1) + bn1 + relu -------------------------------------------
    # bn1 scale is folded into w1; bn1 shift is an explicit f32 bias.  The
    # mask re-zeroes the spatial-pad positions so conv2's halo taps see zeros.
    mid = jnp.dot(xb, w1_ref[...], preferred_element_type=jnp.float32)
    mid = jnp.maximum(mid + b1_ref[...], 0.0).astype(jnp.bfloat16) * mask

    # ---- conv2 (3x3, pad=1) + bn2 + relu --------------------------------------
    # Merge the 3 kw taps into one K=3*width contraction:
    #   mid3[p] = [mid[p], mid[p+1], mid[p+2]]   (lane concat)
    #   acc[p] += mid3[kh*WP2 + p] @ w2_ref[kh]  (kh*WP2 is 8-aligned)
    L3 = 2 * WP2 + L_ACC
    mid3 = jnp.concatenate([mid[0:L3], mid[1:1 + L3], mid[2:2 + L3]], axis=-1)

    acc = jnp.dot(mid3[0:L_ACC], w2_ref[0],
                  preferred_element_type=jnp.float32) + b2_ref[...]
    for kh in (1, 2):
        acc = acc + jnp.dot(mid3[kh * WP2:kh * WP2 + L_ACC], w2_ref[kh],
                            preferred_element_type=jnp.float32)
    h2 = jnp.maximum(acc, 0.0).astype(jnp.bfloat16)

    # ---- conv3 (1x1) + bn3 + residual (+ relu) --------------------------------
    y = jnp.dot(h2, w3_ref[...], preferred_element_type=jnp.float32)
    y = y + b3_ref[...]
    # Residual = centre-tap slice of the resident input band (Cin == Cexp).
    y = y + xb[WP2 + 1:WP2 + 1 + L_ACC, :].astype(jnp.float32)
    if last_relu:
        y = jnp.maximum(y, 0.0)
    y = y.astype(o_ref.dtype)

    # Per-row contiguous stores (i*WP2 is 8-aligned); drops the 2+ garbage
    # padded-width columns without a strided relayout of the output tile.
    for i in range(R):
        o_ref[0, i] = y[i * WP2:i * WP2 + W, :]


# -----------------------------------------------------------------------------
# NHWC entry point (preferred: no layout conversions).
# -----------------------------------------------------------------------------
def bottleneck_forward_nhwc(x_nhwc, params, *, eps=1e-5, last_relu=True,
                            rows_per_band=16, out_dtype=jnp.bfloat16):
    w1 = params["w1"]            # (Cin, width)
    w2 = params["w2"]            # (3, 3, width, width)  HWIO
    w3 = params["w3"]            # (width, Cexp)

    N, H, W, Cin = x_nhwc.shape
    width = w1.shape[1]
    Cexp = w3.shape[1]
    assert w1.shape == (Cin, width)
    assert w2.shape == (3, 3, width, width)
    assert w3.shape == (width, Cexp)
    assert Cin == Cexp, "downsample=None requires inplanes == planes*4"

    s1, b1 = fold_bn(params["bn1_gamma"], params["bn1_beta"],
                     params["bn1_mean"], params["bn1_var"], eps)
    s2, b2 = fold_bn(params["bn2_gamma"], params["bn2_beta"],
                     params["bn2_mean"], params["bn2_var"], eps)
    s3, b3 = fold_bn(params["bn3_gamma"], params["bn3_beta"],
                     params["bn3_mean"], params["bn3_var"], eps)

    # Fold BN scales into the conv weights (bf16 for the MXU); shifts are f32
    # biases.  w2 is laid out as (kh, kw*width + cin, cout) for the tap merge.
    w1_f = (w1 * s1[None, :]).astype(jnp.bfloat16)
    w2_f = (w2 * s2[None, None, None, :]).astype(jnp.bfloat16)
    w2_f = w2_f.reshape(3, 3 * width, width)
    w3_f = (w3 * s3[None, :]).astype(jnp.bfloat16)
    b1_f = b1.reshape(1, width).astype(jnp.float32)
    b2_f = b2.reshape(1, width).astype(jnp.float32)
    b3_f = b3.reshape(1, Cexp).astype(jnp.float32)

    # Flat padded geometry.  WP2 (padded row width) is a multiple of 8 so all
    # in-kernel slice starts are sublane-aligned.
    WP2 = _round_up(W + 2, 8)
    EXTRA = 8                              # slack so all slices stay in-bounds
    R = _pick_rows_per_band(H, rows_per_band)
    bands = H // R
    L_ACC = R * WP2
    L_MID = (R + 2) * WP2 + EXTRA
    LF = (H + 2) * WP2 + EXTRA

    # Flat, spatially zero-padded bf16 activations: (N, LF, Cin).
    x_pad = jnp.pad(x_nhwc, ((0, 0), (1, 1), (1, WP2 - W - 1), (0, 0)))
    x_flat = x_pad.reshape(N, (H + 2) * WP2, Cin)
    x_flat = jnp.pad(x_flat, ((0, 0), (0, EXTRA), (0, 0))).astype(jnp.bfloat16)

    # Validity mask over flat positions (1 inside the image, 0 at pads/slack).
    fi = jnp.arange(LF)
    pr = fi // WP2
    pc = fi % WP2
    mask = (((pr >= 1) & (pr <= H) & (pc >= 1) & (pc <= W))
            .astype(jnp.bfloat16).reshape(LF, 1))

    kernel = functools.partial(
        _bottleneck_kernel, R=R, W=W, WP2=WP2, L_MID=L_MID, L_ACC=L_ACC,
        width=width, last_relu=last_relu)

    flops = 2 * N * H * W * (Cin * width + 9 * width * width + width * Cexp)
    bytes_accessed = (
        x_flat.size * 2 + mask.size * 2
        + (w1_f.size + w2_f.size + w3_f.size) * 2
        + (b1_f.size + b2_f.size + b3_f.size) * 4
        + N * H * W * Cexp * jnp.dtype(out_dtype).itemsize)
    cost = pl.CostEstimate(flops=int(flops), transcendentals=0,
                           bytes_accessed=int(bytes_accessed))

    args = (x_flat, mask, w1_f, w2_f, w3_f, b1_f, b2_f, b3_f)

    def build(single_buffer_weights):
        def wspec(shape, index_map):
            # Grid-invariant operands: single-buffer to reclaim VMEM (v7x).
            if single_buffer_weights and hasattr(pl, "Buffered"):
                return pl.BlockSpec(shape, index_map,
                                    pipeline_mode=pl.Buffered(1))
            return pl.BlockSpec(shape, index_map)

        return pl.pallas_call(
            kernel,
            out_shape=jax.ShapeDtypeStruct((N, H, W, Cexp), out_dtype),
            grid_spec=pltpu.PrefetchScalarGridSpec(
                num_scalar_prefetch=0,
                grid=(N, bands),
                in_specs=[
                    # Whole flat image per batch; block index ignores the band
                    # axis -> fetched from HBM once per image (double-buffered
                    # so the next image prefetches under the last band).
                    pl.BlockSpec((1, LF, Cin), lambda n, r: (n, 0, 0)),
                    wspec((LF, 1), lambda n, r: (0, 0)),
                    wspec((Cin, width), lambda n, r: (0, 0)),
                    wspec((3, 3 * width, width), lambda n, r: (0, 0, 0)),
                    wspec((width, Cexp), lambda n, r: (0, 0)),
                    wspec((1, width), lambda n, r: (0, 0)),
                    wspec((1, width), lambda n, r: (0, 0)),
                    wspec((1, Cexp), lambda n, r: (0, 0)),
                ],
                out_specs=pl.BlockSpec((1, R, W, Cexp),
                                       lambda n, r: (n, r, 0, 0)),
            ),
            compiler_params=pltpu.CompilerParams(
                # Batch across megacore TCs; bands sequential per core so the
                # resident x block is not re-fetched.
                dimension_semantics=("parallel", "arbitrary"),
                vmem_limit_bytes=48 * 1024 * 1024),
            cost_estimate=cost,
        )

    try:
        return build(True)(*args)
    except Exception:
        # Fallback for jax versions without BlockSpec(pipeline_mode=...).
        return build(False)(*args)


# -----------------------------------------------------------------------------
# NCHW convenience wrapper (PyTorch API parity only).
# -----------------------------------------------------------------------------
def bottleneck_forward(x_nchw, params, **kwargs):
    x_nhwc = jnp.transpose(x_nchw, (0, 2, 3, 1))
    y = bottleneck_forward_nhwc(x_nhwc, params, **kwargs)
    return jnp.transpose(y, (0, 3, 1, 2))


# -----------------------------------------------------------------------------
# Pure-JAX f32 reference (module semantics, eval-mode BN) for the sanity check.
# -----------------------------------------------------------------------------
def bottleneck_ref(x_nchw, params, *, eps=1e-5, last_relu=True):
    def bn(h, g, b, m, v):
        return (h - m) / jnp.sqrt(v + eps) * g + b

    x = jnp.transpose(x_nchw, (0, 2, 3, 1)).astype(jnp.float32)
    h = jnp.einsum("nhwc,cd->nhwd", x, params["w1"])
    h = jax.nn.relu(bn(h, params["bn1_gamma"], params["bn1_beta"],
                       params["bn1_mean"], params["bn1_var"]))
    h = lax.conv_general_dilated(
        h, params["w2"], (1, 1), "SAME",
        dimension_numbers=("NHWC", "HWIO", "NHWC"))
    h = jax.nn.relu(bn(h, params["bn2_gamma"], params["bn2_beta"],
                       params["bn2_mean"], params["bn2_var"]))
    h = jnp.einsum("nhwc,cd->nhwd", h, params["w3"])
    h = bn(h, params["bn3_gamma"], params["bn3_beta"],
           params["bn3_mean"], params["bn3_var"]) + x
    if last_relu:
        h = jax.nn.relu(h)
    return jnp.transpose(h, (0, 3, 1, 2))


if __name__ == "__main__":
    # Small but lane-friendly config: inplanes == planes*4 so the residual
    # adds without a downsample (stride=1, groups=1, base_width=64).
    N, H, W = 2, 16, 16
    planes = 32
    inplanes = planes * 4            # 128
    width = planes                   # int(planes * 64/64) * 1 = 32

    key = jax.random.PRNGKey(0)
    ks = jax.random.split(key, 20)

    def bn_params(i, c):
        return {
            f"bn{i}_gamma": 1.0 + 0.1 * jax.random.normal(ks[4 * i], (c,), jnp.float32),
            f"bn{i}_beta": 0.1 * jax.random.normal(ks[4 * i + 1], (c,), jnp.float32),
            f"bn{i}_mean": 0.1 * jax.random.normal(ks[4 * i + 2], (c,), jnp.float32),
            f"bn{i}_var": jax.random.uniform(ks[4 * i + 3], (c,), jnp.float32, 0.5, 1.5),
        }

    params = {
        "w1": jax.random.normal(ks[16], (inplanes, width), jnp.float32)
              / math.sqrt(inplanes),
        "w2": jax.random.normal(ks[17], (3, 3, width, width), jnp.float32)
              / math.sqrt(9 * width),
        "w3": jax.random.normal(ks[18], (width, planes * 4), jnp.float32)
              / math.sqrt(width),
    }
    params.update(bn_params(1, width))
    params.update(bn_params(2, width))
    params.update(bn_params(3, planes * 4))

    x = jax.random.normal(ks[19], (N, inplanes, H, W), jnp.float32)

    out = jax.block_until_ready(bottleneck_forward(x, params))
    ref = bottleneck_ref(x, params)

    assert out.shape == (N, planes * 4, H, W)
    out_f32 = out.astype(jnp.float32)
    max_err = jnp.max(jnp.abs(out_f32 - ref))
    assert jnp.allclose(out_f32, ref, rtol=3e-2, atol=5e-2), (
        f"mismatch vs reference, max|diff|={max_err}")
    print("KERNEL_OK")
</pallas_src>

<mosaic_0001>
module attributes {stable_mosaic.version = 11 : i64} {
  func.func @_bottleneck_kernel(%arg0: i32, %arg1: i32, %arg2: memref<1x440x128xbf16, #tpu.memory_space<vmem>>, %arg3: memref<440x1xbf16, #tpu.memory_space<vmem>>, %arg4: memref<128x32xbf16, #tpu.memory_space<vmem>>, %arg5: memref<3x96x32xbf16, #tpu.memory_space<vmem>>, %arg6: memref<32x128xbf16, #tpu.memory_space<vmem>>, %arg7: memref<1x32xf32, #tpu.memory_space<vmem>>, %arg8: memref<1x32xf32, #tpu.memory_space<vmem>>, %arg9: memref<1x128xf32, #tpu.memory_space<vmem>>, %arg10: memref<1x16x16x128xbf16, #tpu.memory_space<vmem>>) attributes {dimension_semantics = [#tpu.dimension_semantics<parallel>, #tpu.dimension_semantics<arbitrary>], iteration_bounds = array<i64: 2, 1>, scalar_prefetch = 0 : i64, scratch_operands = 0 : i64, tpu.core_type = #tpu.core_type<tc>, window_params = [{transform_indices = @transform_0, window_bounds = array<i64: 1, 440, 128>}, {pipeline_mode = #tpu.pipeline_mode<synchronous>, transform_indices = @transform_1, window_bounds = array<i64: 440, 1>}, {pipeline_mode = #tpu.pipeline_mode<synchronous>, transform_indices = @transform_2, window_bounds = array<i64: 128, 32>}, {pipeline_mode = #tpu.pipeline_mode<synchronous>, transform_indices = @transform_3, window_bounds = array<i64: 3, 96, 32>}, {pipeline_mode = #tpu.pipeline_mode<synchronous>, transform_indices = @transform_4, window_bounds = array<i64: 32, 128>}, {pipeline_mode = #tpu.pipeline_mode<synchronous>, transform_indices = @transform_5, window_bounds = array<i64: 1, 32>}, {pipeline_mode = #tpu.pipeline_mode<synchronous>, transform_indices = @transform_6, window_bounds = array<i64: 1, 32>}, {pipeline_mode = #tpu.pipeline_mode<synchronous>, transform_indices = @transform_7, window_bounds = array<i64: 1, 128>}, {transform_indices = @transform_8, window_bounds = array<i64: 1, 16, 16, 128>}]} {
    %c384_i32 = arith.constant 384 : i32
    %0 = arith.muli %arg1, %c384_i32 : i32
    %1 = tpu.assume_multiple %0, 8 : i32
    %c0 = arith.constant 0 : index
    %2 = arith.index_cast %1 : i32 to index
    %c0_0 = arith.constant 0 : index
    %3 = vector.load %arg2[%c0, %2, %c0_0] : memref<1x440x128xbf16, #tpu.memory_space<vmem>>, vector<1x440x128xbf16>
    %4 = vector.shape_cast %3 : vector<1x440x128xbf16> to vector<440x128xbf16>
    %5 = arith.index_cast %1 : i32 to index
    %c0_1 = arith.constant 0 : index
    %6 = vector.load %arg3[%5, %c0_1] : memref<440x1xbf16, #tpu.memory_space<vmem>>, vector<440x1xbf16>
    %c0_2 = arith.constant 0 : index
    %c0_3 = arith.constant 0 : index
    %7 = vector.load %arg4[%c0_2, %c0_3] : memref<128x32xbf16, #tpu.memory_space<vmem>>, vector<128x32xbf16>
    %cst = arith.constant dense<0.000000e+00> : vector<440x32xf32>
    %8 = tpu.matmul %4, %7, %cst {dimension_numbers = #tpu.dot_dimension_numbers<[1], [0], [0], [1], [0, 0, 1, 1], [], []>} : vector<440x128xbf16>, vector<128x32xbf16>, vector<440x32xf32> -> vector<440x32xf32>
    %c0_4 = arith.constant 0 : index
    %c0_5 = arith.constant 0 : index
    %9 = vector.load %arg7[%c0_4, %c0_5] : memref<1x32xf32, #tpu.memory_space<vmem>>, vector<1x32xf32>
    %10 = vector.broadcast %9 : vector<1x32xf32> to vector<440x32xf32>
    %11 = arith.addf %8, %10 : vector<440x32xf32>
    %cst_6 = arith.constant 0.000000e+00 : f32
    %12 = vector.broadcast %cst_6 : f32 to vector<440x32xf32>
    %13 = arith.maximumf %11, %12 : vector<440x32xf32>
    %14 = arith.truncf %13 : vector<440x32xf32> to vector<440x32xbf16>
    %15 = vector.broadcast %6 : vector<440x1xbf16> to vector<440x32xbf16>
    %16 = arith.mulf %14, %15 : vector<440x32xbf16>
    %17 = vector.extract_strided_slice %16 {offsets = [0, 0], sizes = [432, 32], strides = [1, 1]} : vector<440x32xbf16> to vector<432x32xbf16>
    %18 = vector.extract_strided_slice %16 {offsets = [1, 0], sizes = [432, 32], strides = [1, 1]} : vector<440x32xbf16> to vector<432x32xbf16>
    %19 = vector.extract_strided_slice %16 {offsets = [2, 0], sizes = [432, 32], strides = [1, 1]} : vector<440x32xbf16> to vector<432x32xbf16>
    %20 = tpu.concatenate %17, %18, %19 in 1 : vector<432x32xbf16>, vector<432x32xbf16>, vector<432x32xbf16> -> vector<432x96xbf16>
    %21 = vector.extract_strided_slice %20 {offsets = [0, 0], sizes = [384, 96], strides = [1, 1]} : vector<432x96xbf16> to vector<384x96xbf16>
    %c0_7 = arith.constant 0 : index
    %c0_8 = arith.constant 0 : index
    %c0_9 = arith.constant 0 : index
    %22 = vector.load %arg5[%c0_7, %c0_8, %c0_9] : memref<3x96x32xbf16, #tpu.memory_space<vmem>>, vector<1x96x32xbf16>
    %23 = vector.shape_cast %22 : vector<1x96x32xbf16> to vector<96x32xbf16>
    %cst_10 = arith.constant dense<0.000000e+00> : vector<384x32xf32>
    %24 = tpu.matmul %21, %23, %cst_10 {dimension_numbers = #tpu.dot_dimension_numbers<[1], [0], [0], [1], [0, 0, 1, 1], [], []>} : vector<384x96xbf16>, vector<96x32xbf16>, vector<384x32xf32> -> vector<384x32xf32>
    %c0_11 = arith.constant 0 : index
    %c0_12 = arith.constant 0 : index
    %25 = vector.load %arg8[%c0_11, %c0_12] : memref<1x32xf32, #tpu.memory_space<vmem>>, vector<1x32xf32>
    %26 = vector.broadcast %25 : vector<1x32xf32> to vector<384x32xf32>
    %27 = arith.addf %24, %26 : vector<384x32xf32>
    %28 = vector.extract_strided_slice %20 {offsets = [24, 0], sizes = [384, 96], strides = [1, 1]} : vector<432x96xbf16> to vector<384x96xbf16>
    %c1 = arith.constant 1 : index
    %c0_13 = arith.constant 0 : index
    %c0_14 = arith.constant 0 : index
    %29 = vector.load %arg5[%c1, %c0_13, %c0_14] : memref<3x96x32xbf16, #tpu.memory_space<vmem>>, vector<1x96x32xbf16>
    %30 = vector.shape_cast %29 : vector<1x96x32xbf16> to vector<96x32xbf16>
    %cst_15 = arith.constant dense<0.000000e+00> : vector<384x32xf32>
    %31 = tpu.matmul %28, %30, %cst_15 {dimension_numbers = #tpu.dot_dimension_numbers<[1], [0], [0], [1], [0, 0, 1, 1], [], []>} : vector<384x96xbf16>, vector<96x32xbf16>, vector<384x32xf32> -> vector<384x32xf32>
    %32 = arith.addf %27, %31 : vector<384x32xf32>
    %33 = vector.extract_strided_slice %20 {offsets = [48, 0], sizes = [384, 96], strides = [1, 1]} : vector<432x96xbf16> to vector<384x96xbf16>
    %c2 = arith.constant 2 : index
    %c0_16 = arith.constant 0 : index
    %c0_17 = arith.constant 0 : index
    %34 = vector.load %arg5[%c2, %c0_16, %c0_17] : memref<3x96x32xbf16, #tpu.memory_space<vmem>>, vector<1x96x32xbf16>
    %35 = vector.shape_cast %34 : vector<1x96x32xbf16> to vector<96x32xbf16>
    %cst_18 = arith.constant dense<0.000000e+00> : vector<384x32xf32>
    %36 = tpu.matmul %33, %35, %cst_18 {dimension_numbers = #tpu.dot_dimension_numbers<[1], [0], [0], [1], [0, 0, 1, 1], [], []>} : vector<384x96xbf16>, vector<96x32xbf16>, vector<384x32xf32> -> vector<384x32xf32>
    %37 = arith.addf %32, %36 : vector<384x32xf32>
    %cst_19 = arith.constant 0.000000e+00 : f32
    %38 = vector.broadcast %cst_19 : f32 to vector<384x32xf32>
    %39 = arith.maximumf %37, %38 : vector<384x32xf32>
    %40 = arith.truncf %39 : vector<384x32xf32> to vector<384x32xbf16>
    %c0_20 = arith.constant 0 : index
    %c0_21 = arith.constant 0 : index
    %41 = vector.load %arg6[%c0_20, %c0_21] : memref<32x128xbf16, #tpu.memory_space<vmem>>, vector<32x128xbf16>
    %cst_22 = arith.constant dense<0.000000e+00> : vector<384x128xf32>
    %42 = tpu.matmul %40, %41, %cst_22 {dimension_numbers = #tpu.dot_dimension_numbers<[1], [0], [0], [1], [0, 0, 1, 1], [], []>} : vector<384x32xbf16>, vector<32x128xbf16>, vector<384x128xf32> -> vector<384x128xf32>
    %c0_23 = arith.constant 0 : index
    %c0_24 = arith.constant 0 : index
    %43 = vector.load %arg9[%c0_23, %c0_24] : memref<1x128xf32, #tpu.memory_space<vmem>>, vector<1x128xf32>
    %44 = vector.broadcast %43 : vector<1x128xf32> to vector<384x128xf32>
    %45 = arith.addf %42, %44 : vector<384x128xf32>
    %46 = vector.extract_strided_slice %4 {offsets = [25, 0], sizes = [384, 128], strides = [1, 1]} : vector<440x128xbf16> to vector<384x128xbf16>
    %47 = arith.extf %46 : vector<384x128xbf16> to vector<384x128xf32>
    %48 = arith.addf %45, %47 : vector<384x128xf32>
    %cst_25 = arith.constant 0.000000e+00 : f32
    %49 = vector.broadcast %cst_25 : f32 to vector<384x128xf32>
    %50 = arith.maximumf %48, %49 : vector<384x128xf32>
    %51 = arith.truncf %50 : vector<384x128xf32> to vector<384x128xbf16>
    %52 = vector.extract_strided_slice %51 {offsets = [0, 0], sizes = [16, 128], strides = [1, 1]} : vector<384x128xbf16> to vector<16x128xbf16>
    %c0_26 = arith.constant 0 : index
    %c0_27 = arith.constant 0 : index
    %c0_28 = arith.constant 0 : index
    %c0_29 = arith.constant 0 : index
    %53 = vector.load %arg10[%c0_26, %c0_27, %c0_28, %c0_29] : memref<1x16x16x128xbf16, #tpu.memory_space<vmem>>, vector<1x1x16x128xbf16>
    %54 = vector.shape_cast %53 : vector<1x1x16x128xbf16> to vector<16x128xbf16>
    %55 = vector.shape_cast %52 : vector<16x128xbf16> to vector<1x1x16x128xbf16>
    tpu.vector_store %arg10[%c0_26, %c0_27, %c0_28, %c0_29], %55 {strides = array<i32>} : memref<1x16x16x128xbf16, #tpu.memory_space<vmem>>, vector<1x1x16x128xbf16>,
    %56 = vector.extract_strided_slice %51 {offsets = [24, 0], sizes = [16, 128], strides = [1, 1]} : vector<384x128xbf16> to vector<16x128xbf16>
    %c0_30 = arith.constant 0 : index
    %c1_31 = arith.constant 1 : index
    %c0_32 = arith.constant 0 : index
    %c0_33 = arith.constant 0 : index
    %57 = vector.load %arg10[%c0_30, %c1_31, %c0_32, %c0_33] : memref<1x16x16x128xbf16, #tpu.memory_space<vmem>>, vector<1x1x16x128xbf16>
    %58 = vector.shape_cast %57 : vector<1x1x16x128xbf16> to vector<16x128xbf16>
    %59 = vector.shape_cast %56 : vector<16x128xbf16> to vector<1x1x16x128xbf16>
    tpu.vector_store %arg10[%c0_30, %c1_31, %c0_32, %c0_33], %59 {strides = array<i32>} : memref<1x16x16x128xbf16, #tpu.memory_space<vmem>>, vector<1x1x16x128xbf16>,
    %60 = vector.extract_strided_slice %51 {offsets = [48, 0], sizes = [16, 128], strides = [1, 1]} : vector<384x128xbf16> to vector<16x128xbf16>
    %c0_34 = arith.constant 0 : index
    %c2_35 = arith.constant 2 : index
    %c0_36 = arith.constant 0 : index
    %c0_37 = arith.constant 0 : index
    %61 = vector.load %arg10[%c0_34, %c2_35, %c0_36, %c0_37] : memref<1x16x16x128xbf16, #tpu.memory_space<vmem>>, vector<1x1x16x128xbf16>
    %62 = vector.shape_cast %61 : vector<1x1x16x128xbf16> to vector<16x128xbf16>
    %63 = vector.shape_cast %60 : vector<16x128xbf16> to vector<1x1x16x128xbf16>
    tpu.vector_store %arg10[%c0_34, %c2_35, %c0_36, %c0_37], %63 {strides = array<i32>} : memref<1x16x16x128xbf16, #tpu.memory_space<vmem>>, vector<1x1x16x128xbf16>,
    %64 = vector.extract_strided_slice %51 {offsets = [72, 0], sizes = [16, 128], strides = [1, 1]} : vector<384x128xbf16> to vector<16x128xbf16>
    %c0_38 = arith.constant 0 : index
    %c3 = arith.constant 3 : index
    %c0_39 = arith.constant 0 : index
    %c0_40 = arith.constant 0 : index
    %65 = vector.load %arg10[%c0_38, %c3, %c0_39, %c0_40] : memref<1x16x16x128xbf16, #tpu.memory_space<vmem>>, vector<1x1x16x128xbf16>
    %66 = vector.shape_cast %65 : vector<1x1x16x128xbf16> to vector<16x128xbf16>
    %67 = vector.shape_cast %64 : vector<16x128xbf16> to vector<1x1x16x128xbf16>
    tpu.vector_store %arg10[%c0_38, %c3, %c0_39, %c0_40], %67 {strides = array<i32>} : memref<1x16x16x128xbf16, #tpu.memory_space<vmem>>, vector<1x1x16x128xbf16>,
    %68 = vector.extract_strided_slice %51 {offsets = [96, 0], sizes = [16, 128], strides = [1, 1]} : vector<384x128xbf16> to vector<16x128xbf16>
    %c0_41 = arith.constant 0 : index
    %c4 = arith.constant 4 : index
    %c0_42 = arith.constant 0 : index
    %c0_43 = arith.constant 0 : index
    %69 = vector.load %arg10[%c0_41, %c4, %c0_42, %c0_43] : memref<1x16x16x128xbf16, #tpu.memory_space<vmem>>, vector<1x1x16x128xbf16>
    %70 = vector.shape_cast %69 : vector<1x1x16x128xbf16> to vector<16x128xbf16>
    %71 = vector.shape_cast %68 : vector<16x128xbf16> to vector<1x1x16x128xbf16>
    tpu.vector_store %arg10[%c0_41, %c4, %c0_42, %c0_43], %71 {strides = array<i32>} : memref<1x16x16x128xbf16, #tpu.memory_space<vmem>>, vector<1x1x16x128xbf16>,
    %72 = vector.extract_strided_slice %51 {offsets = [120, 0], sizes = [16, 128], strides = [1, 1]} : vector<384x128xbf16> to vector<16x128xbf16>
    %c0_44 = arith.constant 0 : index
    %c5 = arith.constant 5 : index
    %c0_45 = arith.constant 0 : index
    %c0_46 = arith.constant 0 : index
    %73 = vector.load %arg10[%c0_44, %c5, %c0_45, %c0_46] : memref<1x16x16x128xbf16, #tpu.memory_space<vmem>>, vector<1x1x16x128xbf16>
    %74 = vector.shape_cast %73 : vector<1x1x16x128xbf16> to vector<16x128xbf16>
    %75 = vector.shape_cast %72 : vector<16x128xbf16> to vector<1x1x16x128xbf16>
    tpu.vector_store %arg10[%c0_44, %c5, %c0_45, %c0_46], %75 {strides = array<i32>} : memref<1x16x16x128xbf16, #tpu.memory_space<vmem>>, vector<1x1x16x128xbf16>,
    %76 = vector.extract_strided_slice %51 {offsets = [144, 0], sizes = [16, 128], strides = [1, 1]} : vector<384x128xbf16> to vector<16x128xbf16>
    %c0_47 = arith.constant 0 : index
    %c6 = arith.constant 6 : index
    %c0_48 = arith.constant 0 : index
    %c0_49 = arith.constant 0 : index
    %77 = vector.load %arg10[%c0_47, %c6, %c0_48, %c0_49] : memref<1x16x16x128xbf16, #tpu.memory_space<vmem>>, vector<1x1x16x128xbf16>
    %78 = vector.shape_cast %77 : vector<1x1x16x128xbf16> to vector<16x128xbf16>
    %79 = vector.shape_cast %76 : vector<16x128xbf16> to vector<1x1x16x128xbf16>
    tpu.vector_store %arg10[%c0_47, %c6, %c0_48, %c0_49], %79 {strides = array<i32>} : memref<1x16x16x128xbf16, #tpu.memory_space<vmem>>, vector<1x1x16x128xbf16>,
    %80 = vector.extract_strided_slice %51 {offsets = [168, 0], sizes = [16, 128], strides = [1, 1]} : vector<384x128xbf16> to vector<16x128xbf16>
    %c0_50 = arith.constant 0 : index
    %c7 = arith.constant 7 : index
    %c0_51 = arith.constant 0 : index
    %c0_52 = arith.constant 0 : index
    %81 = vector.load %arg10[%c0_50, %c7, %c0_51, %c0_52] : memref<1x16x16x128xbf16, #tpu.memory_space<vmem>>, vector<1x1x16x128xbf16>
    %82 = vector.shape_cast %81 : vector<1x1x16x128xbf16> to vector<16x128xbf16>
    %83 = vector.shape_cast %80 : vector<16x128xbf16> to vector<1x1x16x128xbf16>
    tpu.vector_store %arg10[%c0_50, %c7, %c0_51, %c0_52], %83 {strides = array<i32>} : memref<1x16x16x128xbf16, #tpu.memory_space<vmem>>, vector<1x1x16x128xbf16>,
    %84 = vector.extract_strided_slice %51 {offsets = [192, 0], sizes = [16, 128], strides = [1, 1]} : vector<384x128xbf16> to vector<16x128xbf16>
    %c0_53 = arith.constant 0 : index
    %c8 = arith.constant 8 : index
    %c0_54 = arith.constant 0 : index
    %c0_55 = arith.constant 0 : index
    %85 = vector.load %arg10[%c0_53, %c8, %c0_54, %c0_55] : memref<1x16x16x128xbf16, #tpu.memory_space<vmem>>, vector<1x1x16x128xbf16>
    %86 = vector.shape_cast %85 : vector<1x1x16x128xbf16> to vector<16x128xbf16>
    %87 = vector.shape_cast %84 : vector<16x128xbf16> to vector<1x1x16x128xbf16>
    tpu.vector_store %arg10[%c0_53, %c8, %c0_54, %c0_55], %87 {strides = array<i32>} : memref<1x16x16x128xbf16, #tpu.memory_space<vmem>>, vector<1x1x16x128xbf16>,
    %88 = vector.extract_strided_slice %51 {offsets = [216, 0], sizes = [16, 128], strides = [1, 1]} : vector<384x128xbf16> to vector<16x128xbf16>
    %c0_56 = arith.constant 0 : index
    %c9 = arith.constant 9 : index
    %c0_57 = arith.constant 0 : index
    %c0_58 = arith.constant 0 : index
    %89 = vector.load %arg10[%c0_56, %c9, %c0_57, %c0_58] : memref<1x16x16x128xbf16, #tpu.memory_space<vmem>>, vector<1x1x16x128xbf16>
    %90 = vector.shape_cast %89 : vector<1x1x16x128xbf16> to vector<16x128xbf16>
    %91 = vector.shape_cast %88 : vector<16x128xbf16> to vector<1x1x16x128xbf16>
    tpu.vector_store %arg10[%c0_56, %c9, %c0_57, %c0_58], %91 {strides = array<i32>} : memref<1x16x16x128xbf16, #tpu.memory_space<vmem>>, vector<1x1x16x128xbf16>,
    %92 = vector.extract_strided_slice %51 {offsets = [240, 0], sizes = [16, 128], strides = [1, 1]} : vector<384x128xbf16> to vector<16x128xbf16>
    %c0_59 = arith.constant 0 : index
    %c10 = arith.constant 10 : index
    %c0_60 = arith.constant 0 : index
    %c0_61 = arith.constant 0 : index
    %93 = vector.load %arg10[%c0_59, %c10, %c0_60, %c0_61] : memref<1x16x16x128xbf16, #tpu.memory_space<vmem>>, vector<1x1x16x128xbf16>
    %94 = vector.shape_cast %93 : vector<1x1x16x128xbf16> to vector<16x128xbf16>
    %95 = vector.shape_cast %92 : vector<16x128xbf16> to vector<1x1x16x128xbf16>
    tpu.vector_store %arg10[%c0_59, %c10, %c0_60, %c0_61], %95 {strides = array<i32>} : memref<1x16x16x128xbf16, #tpu.memory_space<vmem>>, vector<1x1x16x128xbf16>,
    %96 = vector.extract_strided_slice %51 {offsets = [264, 0], sizes = [16, 128], strides = [1, 1]} : vector<384x128xbf16> to vector<16x128xbf16>
    %c0_62 = arith.constant 0 : index
    %c11 = arith.constant 11 : index
    %c0_63 = arith.constant 0 : index
    %c0_64 = arith.constant 0 : index
    %97 = vector.load %arg10[%c0_62, %c11, %c0_63, %c0_64] : memref<1x16x16x128xbf16, #tpu.memory_space<vmem>>, vector<1x1x16x128xbf16>
    %98 = vector.shape_cast %97 : vector<1x1x16x128xbf16> to vector<16x128xbf16>
    %99 = vector.shape_cast %96 : vector<16x128xbf16> to vector<1x1x16x128xbf16>
    tpu.vector_store %arg10[%c0_62, %c11, %c0_63, %c0_64], %99 {strides = array<i32>} : memref<1x16x16x128xbf16, #tpu.memory_space<vmem>>, vector<1x1x16x128xbf16>,
    %100 = vector.extract_strided_slice %51 {offsets = [288, 0], sizes = [16, 128], strides = [1, 1]} : vector<384x128xbf16> to vector<16x128xbf16>
    %c0_65 = arith.constant 0 : index
    %c12 = arith.constant 12 : index
    %c0_66 = arith.constant 0 : index
    %c0_67 = arith.constant 0 : index
    %101 = vector.load %arg10[%c0_65, %c12, %c0_66, %c0_67] : memref<1x16x16x128xbf16, #tpu.memory_space<vmem>>, vector<1x1x16x128xbf16>
    %102 = vector.shape_cast %101 : vector<1x1x16x128xbf16> to vector<16x128xbf16>
    %103 = vector.shape_cast %100 : vector<16x128xbf16> to vector<1x1x16x128xbf16>
    tpu.vector_store %arg10[%c0_65, %c12, %c0_66, %c0_67], %103 {strides = array<i32>} : memref<1x16x16x128xbf16, #tpu.memory_space<vmem>>, vector<1x1x16x128xbf16>,
    %104 = vector.extract_strided_slice %51 {offsets = [312, 0], sizes = [16, 128], strides = [1, 1]} : vector<384x128xbf16> to vector<16x128xbf16>
    %c0_68 = arith.constant 0 : index
    %c13 = arith.constant 13 : index
    %c0_69 = arith.constant 0 : index
    %c0_70 = arith.constant 0 : index
    %105 = vector.load %arg10[%c0_68, %c13, %c0_69, %c0_70] : memref<1x16x16x128xbf16, #tpu.memory_space<vmem>>, vector<1x1x16x128xbf16>
    %106 = vector.shape_cast %105 : vector<1x1x16x128xbf16> to vector<16x128xbf16>
    %107 = vector.shape_cast %104 : vector<16x128xbf16> to vector<1x1x16x128xbf16>
    tpu.vector_store %arg10[%c0_68, %c13, %c0_69, %c0_70], %107 {strides = array<i32>} : memref<1x16x16x128xbf16, #tpu.memory_space<vmem>>, vector<1x1x16x128xbf16>,
    %108 = vector.extract_strided_slice %51 {offsets = [336, 0], sizes = [16, 128], strides = [1, 1]} : vector<384x128xbf16> to vector<16x128xbf16>
    %c0_71 = arith.constant 0 : index
    %c14 = arith.constant 14 : index
    %c0_72 = arith.constant 0 : index
    %c0_73 = arith.constant 0 : index
    %109 = vector.load %arg10[%c0_71, %c14, %c0_72, %c0_73] : memref<1x16x16x128xbf16, #tpu.memory_space<vmem>>, vector<1x1x16x128xbf16>
    %110 = vector.shape_cast %109 : vector<1x1x16x128xbf16> to vector<16x128xbf16>
    %111 = vector.shape_cast %108 : vector<16x128xbf16> to vector<1x1x16x128xbf16>
    tpu.vector_store %arg10[%c0_71, %c14, %c0_72, %c0_73], %111 {strides = array<i32>} : memref<1x16x16x128xbf16, #tpu.memory_space<vmem>>, vector<1x1x16x128xbf16>,
    %112 = vector.extract_strided_slice %51 {offsets = [360, 0], sizes = [16, 128], strides = [1, 1]} : vector<384x128xbf16> to vector<16x128xbf16>
    %c0_74 = arith.constant 0 : index
    %c15 = arith.constant 15 : index
    %c0_75 = arith.constant 0 : index
    %c0_76 = arith.constant 0 : index
    %113 = vector.load %arg10[%c0_74, %c15, %c0_75, %c0_76] : memref<1x16x16x128xbf16, #tpu.memory_space<vmem>>, vector<1x1x16x128xbf16>
    %114 = vector.shape_cast %113 : vector<1x1x16x128xbf16> to vector<16x128xbf16>
    %115 = vector.shape_cast %112 : vector<16x128xbf16> to vector<1x1x16x128xbf16>
    tpu.vector_store %arg10[%c0_74, %c15, %c0_75, %c0_76], %115 {strides = array<i32>} : memref<1x16x16x128xbf16, #tpu.memory_space<vmem>>, vector<1x1x16x128xbf16>,
    return
  }
  func.func @transform_0(%arg0: i32, %arg1: i32) -> (i32, i32, i32) {
    %c0_i32 = arith.constant 0 : i32
    %c0_i32_0 = arith.constant 0 : i32
    %c0_i32_1 = arith.constant 0 : i32
    return %arg0, %c0_i32, %c0_i32_0 : i32, i32, i32
  }
  func.func @transform_1(%arg0: i32, %arg1: i32) -> (i32, i32) {
    %c0_i32 = arith.constant 0 : i32
    %c0_i32_0 = arith.constant 0 : i32
    %c0_i32_1 = arith.constant 0 : i32
    return %c0_i32, %c0_i32_0 : i32, i32
  }
  func.func @transform_2(%arg0: i32, %arg1: i32) -> (i32, i32) {
    %c0_i32 = arith.constant 0 : i32
    %c0_i32_0 = arith.constant 0 : i32
    %c0_i32_1 = arith.constant 0 : i32
    return %c0_i32, %c0_i32_0 : i32, i32
  }
  func.func @transform_3(%arg0: i32, %arg1: i32) -> (i32, i32, i32) {
    %c0_i32 = arith.constant 0 : i32
    %c0_i32_0 = arith.constant 0 : i32
    %c0_i32_1 = arith.constant 0 : i32
    %c0_i32_2 = arith.constant 0 : i32
    return %c0_i32, %c0_i32_0, %c0_i32_1 : i32, i32, i32
  }
  func.func @transform_4(%arg0: i32, %arg1: i32) -> (i32, i32) {
    %c0_i32 = arith.constant 0 : i32
    %c0_i32_0 = arith.constant 0 : i32
    %c0_i32_1 = arith.constant 0 : i32
    return %c0_i32, %c0_i32_0 : i32, i32
  }
  func.func @transform_5(%arg0: i32, %arg1: i32) -> (i32, i32) {
    %c0_i32 = arith.constant 0 : i32
    %c0_i32_0 = arith.constant 0 : i32
    %c0_i32_1 = arith.constant 0 : i32
    return %c0_i32, %c0_i32_0 : i32, i32
  }
  func.func @transform_6(%arg0: i32, %arg1: i32) -> (i32, i32) {
    %c0_i32 = arith.constant 0 : i32
    %c0_i32_0 = arith.constant 0 : i32
    %c0_i32_1 = arith.constant 0 : i32
    return %c0_i32, %c0_i32_0 : i32, i32
  }
  func.func @transform_7(%arg0: i32, %arg1: i32) -> (i32, i32) {
    %c0_i32 = arith.constant 0 : i32
    %c0_i32_0 = arith.constant 0 : i32
    %c0_i32_1 = arith.constant 0 : i32
    return %c0_i32, %c0_i32_0 : i32, i32
  }
  func.func @transform_8(%arg0: i32, %arg1: i32) -> (i32, i32, i32, i32) {
    %c0_i32 = arith.constant 0 : i32
    %c0_i32_0 = arith.constant 0 : i32
    %c0_i32_1 = arith.constant 0 : i32
    return %arg0, %arg1, %c0_i32, %c0_i32_0 : i32, i32, i32, i32
  }
}

module attributes {stable_mosaic.version = 11 : i64} {
  func.func @_bottleneck_kernel(%arg0: i32, %arg1: i32, %arg2: memref<1x440x128xbf16, #tpu.memory_space<vmem>>, %arg3: memref<440x1xbf16, #tpu.memory_space<vmem>>, %arg4: memref<128x32xbf16, #tpu.memory_space<vmem>>, %arg5: memref<3x96x32xbf16, #tpu.memory_space<vmem>>, %arg6: memref<32x128xbf16, #tpu.memory_space<vmem>>, %arg7: memref<1x32xf32, #tpu.memory_space<vmem>>, %arg8: memref<1x32xf32, #tpu.memory_space<vmem>>, %arg9: memref<1x128xf32, #tpu.memory_space<vmem>>, %arg10: memref<1x16x16x128xbf16, #tpu.memory_space<vmem>>) attributes {dimension_semantics = [#tpu.dimension_semantics<parallel>, #tpu.dimension_semantics<arbitrary>], iteration_bounds = array<i64: 2, 1>, scalar_prefetch = 0 : i64, scratch_operands = 0 : i64, tpu.core_type = #tpu.core_type<tc>, window_params = [{transform_indices = @transform_0, window_bounds = array<i64: 1, 440, 128>}, {pipeline_mode = #tpu.pipeline_mode<synchronous>, transform_indices = @transform_1, window_bounds = array<i64: 440, 1>}, {pipeline_mode = #tpu.pipeline_mode<synchronous>, transform_indices = @transform_2, window_bounds = array<i64: 128, 32>}, {pipeline_mode = #tpu.pipeline_mode<synchronous>, transform_indices = @transform_3, window_bounds = array<i64: 3, 96, 32>}, {pipeline_mode = #tpu.pipeline_mode<synchronous>, transform_indices = @transform_4, window_bounds = array<i64: 32, 128>}, {pipeline_mode = #tpu.pipeline_mode<synchronous>, transform_indices = @transform_5, window_bounds = array<i64: 1, 32>}, {pipeline_mode = #tpu.pipeline_mode<synchronous>, transform_indices = @transform_6, window_bounds = array<i64: 1, 32>}, {pipeline_mode = #tpu.pipeline_mode<synchronous>, transform_indices = @transform_7, window_bounds = array<i64: 1, 128>}, {transform_indices = @transform_8, window_bounds = array<i64: 1, 16, 16, 128>}]} {
    %c384_i32 = arith.constant 384 : i32
    %0 = arith.muli %arg1, %c384_i32 : i32
    %1 = tpu.assume_multiple %0, 8 : i32
    %c0 = arith.constant 0 : index
    %2 = arith.index_cast %1 : i32 to index
    %c0_0 = arith.constant 0 : index
    %3 = vector.load %arg2[%c0, %2, %c0_0] : memref<1x440x128xbf16, #tpu.memory_space<vmem>>, vector<1x440x128xbf16>
    %4 = vector.shape_cast %3 : vector<1x440x128xbf16> to vector<440x128xbf16>
    %5 = arith.index_cast %1 : i32 to index
    %c0_1 = arith.constant 0 : index
    %6 = vector.load %arg3[%5, %c0_1] : memref<440x1xbf16, #tpu.memory_space<vmem>>, vector<440x1xbf16>
    %c0_2 = arith.constant 0 : index
    %c0_3 = arith.constant 0 : index
    %7 = vector.load %arg4[%c0_2, %c0_3] : memref<128x32xbf16, #tpu.memory_space<vmem>>, vector<128x32xbf16>
    %cst = arith.constant dense<0.000000e+00> : vector<440x32xf32>
    %8 = tpu.matmul %4, %7, %cst {dimension_numbers = #tpu.dot_dimension_numbers<[1], [0], [0], [1], [0, 0, 1, 1], [], []>} : vector<440x128xbf16>, vector<128x32xbf16>, vector<440x32xf32> -> vector<440x32xf32>
    %c0_4 = arith.constant 0 : index
    %c0_5 = arith.constant 0 : index
    %9 = vector.load %arg7[%c0_4, %c0_5] : memref<1x32xf32, #tpu.memory_space<vmem>>, vector<1x32xf32>
    %10 = vector.broadcast %9 : vector<1x32xf32> to vector<440x32xf32>
    %11 = arith.addf %8, %10 : vector<440x32xf32>
    %cst_6 = arith.constant 0.000000e+00 : f32
    %12 = vector.broadcast %cst_6 : f32 to vector<440x32xf32>
    %13 = arith.maximumf %11, %12 : vector<440x32xf32>
    %14 = arith.truncf %13 : vector<440x32xf32> to vector<440x32xbf16>
    %15 = vector.broadcast %6 : vector<440x1xbf16> to vector<440x32xbf16>
    %16 = arith.mulf %14, %15 : vector<440x32xbf16>
    %17 = vector.extract_strided_slice %16 {offsets = [0, 0], sizes = [432, 32], strides = [1, 1]} : vector<440x32xbf16> to vector<432x32xbf16>
    %18 = vector.extract_strided_slice %16 {offsets = [1, 0], sizes = [432, 32], strides = [1, 1]} : vector<440x32xbf16> to vector<432x32xbf16>
    %19 = vector.extract_strided_slice %16 {offsets = [2, 0], sizes = [432, 32], strides = [1, 1]} : vector<440x32xbf16> to vector<432x32xbf16>
    %20 = tpu.concatenate %17, %18, %19 in 1 : vector<432x32xbf16>, vector<432x32xbf16>, vector<432x32xbf16> -> vector<432x96xbf16>
    %21 = vector.extract_strided_slice %20 {offsets = [0, 0], sizes = [384, 96], strides = [1, 1]} : vector<432x96xbf16> to vector<384x96xbf16>
    %c0_7 = arith.constant 0 : index
    %c0_8 = arith.constant 0 : index
    %c0_9 = arith.constant 0 : index
    %22 = vector.load %arg5[%c0_7, %c0_8, %c0_9] : memref<3x96x32xbf16, #tpu.memory_space<vmem>>, vector<1x96x32xbf16>
    %23 = vector.shape_cast %22 : vector<1x96x32xbf16> to vector<96x32xbf16>
    %cst_10 = arith.constant dense<0.000000e+00> : vector<384x32xf32>
    %24 = tpu.matmul %21, %23, %cst_10 {dimension_numbers = #tpu.dot_dimension_numbers<[1], [0], [0], [1], [0, 0, 1, 1], [], []>} : vector<384x96xbf16>, vector<96x32xbf16>, vector<384x32xf32> -> vector<384x32xf32>
    %c0_11 = arith.constant 0 : index
    %c0_12 = arith.constant 0 : index
    %25 = vector.load %arg8[%c0_11, %c0_12] : memref<1x32xf32, #tpu.memory_space<vmem>>, vector<1x32xf32>
    %26 = vector.broadcast %25 : vector<1x32xf32> to vector<384x32xf32>
    %27 = arith.addf %24, %26 : vector<384x32xf32>
    %28 = vector.extract_strided_slice %20 {offsets = [24, 0], sizes = [384, 96], strides = [1, 1]} : vector<432x96xbf16> to vector<384x96xbf16>
    %c1 = arith.constant 1 : index
    %c0_13 = arith.constant 0 : index
    %c0_14 = arith.constant 0 : index
    %29 = vector.load %arg5[%c1, %c0_13, %c0_14] : memref<3x96x32xbf16, #tpu.memory_space<vmem>>, vector<1x96x32xbf16>
    %30 = vector.shape_cast %29 : vector<1x96x32xbf16> to vector<96x32xbf16>
    %cst_15 = arith.constant dense<0.000000e+00> : vector<384x32xf32>
    %31 = tpu.matmul %28, %30, %cst_15 {dimension_numbers = #tpu.dot_dimension_numbers<[1], [0], [0], [1], [0, 0, 1, 1], [], []>} : vector<384x96xbf16>, vector<96x32xbf16>, vector<384x32xf32> -> vector<384x32xf32>
    %32 = arith.addf %27, %31 : vector<384x32xf32>
    %33 = vector.extract_strided_slice %20 {offsets = [48, 0], sizes = [384, 96], strides = [1, 1]} : vector<432x96xbf16> to vector<384x96xbf16>
    %c2 = arith.constant 2 : index
    %c0_16 = arith.constant 0 : index
    %c0_17 = arith.constant 0 : index
    %34 = vector.load %arg5[%c2, %c0_16, %c0_17] : memref<3x96x32xbf16, #tpu.memory_space<vmem>>, vector<1x96x32xbf16>
    %35 = vector.shape_cast %34 : vector<1x96x32xbf16> to vector<96x32xbf16>
    %cst_18 = arith.constant dense<0.000000e+00> : vector<384x32xf32>
    %36 = tpu.matmul %33, %35, %cst_18 {dimension_numbers = #tpu.dot_dimension_numbers<[1], [0], [0], [1], [0, 0, 1, 1], [], []>} : vector<384x96xbf16>, vector<96x32xbf16>, vector<384x32xf32> -> vector<384x32xf32>
    %37 = arith.addf %32, %36 : vector<384x32xf32>
    %cst_19 = arith.constant 0.000000e+00 : f32
    %38 = vector.broadcast %cst_19 : f32 to vector<384x32xf32>
    %39 = arith.maximumf %37, %38 : vector<384x32xf32>
    %40 = arith.truncf %39 : vector<384x32xf32> to vector<384x32xbf16>
    %c0_20 = arith.constant 0 : index
    %c0_21 = arith.constant 0 : index
    %41 = vector.load %arg6[%c0_20, %c0_21] : memref<32x128xbf16, #tpu.memory_space<vmem>>, vector<32x128xbf16>
    %cst_22 = arith.constant dense<0.000000e+00> : vector<384x128xf32>
    %42 = tpu.matmul %40, %41, %cst_22 {dimension_numbers = #tpu.dot_dimension_numbers<[1], [0], [0], [1], [0, 0, 1, 1], [], []>} : vector<384x32xbf16>, vector<32x128xbf16>, vector<384x128xf32> -> vector<384x128xf32>
    %c0_23 = arith.constant 0 : index
    %c0_24 = arith.constant 0 : index
    %43 = vector.load %arg9[%c0_23, %c0_24] : memref<1x128xf32, #tpu.memory_space<vmem>>, vector<1x128xf32>
    %44 = vector.broadcast %43 : vector<1x128xf32> to vector<384x128xf32>
    %45 = arith.addf %42, %44 : vector<384x128xf32>
    %46 = vector.extract_strided_slice %4 {offsets = [25, 0], sizes = [384, 128], strides = [1, 1]} : vector<440x128xbf16> to vector<384x128xbf16>
    %47 = arith.extf %46 : vector<384x128xbf16> to vector<384x128xf32>
    %48 = arith.addf %45, %47 : vector<384x128xf32>
    %cst_25 = arith.constant 0.000000e+00 : f32
    %49 = vector.broadcast %cst_25 : f32 to vector<384x128xf32>
    %50 = arith.maximumf %48, %49 : vector<384x128xf32>
    %51 = arith.truncf %50 : vector<384x128xf32> to vector<384x128xbf16>
    %52 = vector.extract_strided_slice %51 {offsets = [0, 0], sizes = [16, 128], strides = [1, 1]} : vector<384x128xbf16> to vector<16x128xbf16>
    %c0_26 = arith.constant 0 : index
    %c0_27 = arith.constant 0 : index
    %c0_28 = arith.constant 0 : index
    %c0_29 = arith.constant 0 : index
    %53 = vector.load %arg10[%c0_26, %c0_27, %c0_28, %c0_29] : memref<1x16x16x128xbf16, #tpu.memory_space<vmem>>, vector<1x1x16x128xbf16>
    %54 = vector.shape_cast %53 : vector<1x1x16x128xbf16> to vector<16x128xbf16>
    %55 = vector.shape_cast %52 : vector<16x128xbf16> to vector<1x1x16x128xbf16>
    tpu.vector_store %arg10[%c0_26, %c0_27, %c0_28, %c0_29], %55 {strides = array<i32>} : memref<1x16x16x128xbf16, #tpu.memory_space<vmem>>, vector<1x1x16x128xbf16>,
    %56 = vector.extract_strided_slice %51 {offsets = [24, 0], sizes = [16, 128], strides = [1, 1]} : vector<384x128xbf16> to vector<16x128xbf16>
    %c0_30 = arith.constant 0 : index
    %c1_31 = arith.constant 1 : index
    %c0_32 = arith.constant 0 : index
    %c0_33 = arith.constant 0 : index
    %57 = vector.load %arg10[%c0_30, %c1_31, %c0_32, %c0_33] : memref<1x16x16x128xbf16, #tpu.memory_space<vmem>>, vector<1x1x16x128xbf16>
    %58 = vector.shape_cast %57 : vector<1x1x16x128xbf16> to vector<16x128xbf16>
    %59 = vector.shape_cast %56 : vector<16x128xbf16> to vector<1x1x16x128xbf16>
    tpu.vector_store %arg10[%c0_30, %c1_31, %c0_32, %c0_33], %59 {strides = array<i32>} : memref<1x16x16x128xbf16, #tpu.memory_space<vmem>>, vector<1x1x16x128xbf16>,
    %60 = vector.extract_strided_slice %51 {offsets = [48, 0], sizes = [16, 128], strides = [1, 1]} : vector<384x128xbf16> to vector<16x128xbf16>
    %c0_34 = arith.constant 0 : index
    %c2_35 = arith.constant 2 : index
    %c0_36 = arith.constant 0 : index
    %c0_37 = arith.constant 0 : index
    %61 = vector.load %arg10[%c0_34, %c2_35, %c0_36, %c0_37] : memref<1x16x16x128xbf16, #tpu.memory_space<vmem>>, vector<1x1x16x128xbf16>
    %62 = vector.shape_cast %61 : vector<1x1x16x128xbf16> to vector<16x128xbf16>
    %63 = vector.shape_cast %60 : vector<16x128xbf16> to vector<1x1x16x128xbf16>
    tpu.vector_store %arg10[%c0_34, %c2_35, %c0_36, %c0_37], %63 {strides = array<i32>} : memref<1x16x16x128xbf16, #tpu.memory_space<vmem>>, vector<1x1x16x128xbf16>,
    %64 = vector.extract_strided_slice %51 {offsets = [72, 0], sizes = [16, 128], strides = [1, 1]} : vector<384x128xbf16> to vector<16x128xbf16>
    %c0_38 = arith.constant 0 : index
    %c3 = arith.constant 3 : index
    %c0_39 = arith.constant 0 : index
    %c0_40 = arith.constant 0 : index
    %65 = vector.load %arg10[%c0_38, %c3, %c0_39, %c0_40] : memref<1x16x16x128xbf16, #tpu.memory_space<vmem>>, vector<1x1x16x128xbf16>
    %66 = vector.shape_cast %65 : vector<1x1x16x128xbf16> to vector<16x128xbf16>
    %67 = vector.shape_cast %64 : vector<16x128xbf16> to vector<1x1x16x128xbf16>
    tpu.vector_store %arg10[%c0_38, %c3, %c0_39, %c0_40], %67 {strides = array<i32>} : memref<1x16x16x128xbf16, #tpu.memory_space<vmem>>, vector<1x1x16x128xbf16>,
    %68 = vector.extract_strided_slice %51 {offsets = [96, 0], sizes = [16, 128], strides = [1, 1]} : vector<384x128xbf16> to vector<16x128xbf16>
    %c0_41 = arith.constant 0 : index
    %c4 = arith.constant 4 : index
    %c0_42 = arith.constant 0 : index
    %c0_43 = arith.constant 0 : index
    %69 = vector.load %arg10[%c0_41, %c4, %c0_42, %c0_43] : memref<1x16x16x128xbf16, #tpu.memory_space<vmem>>, vector<1x1x16x128xbf16>
    %70 = vector.shape_cast %69 : vector<1x1x16x128xbf16> to vector<16x128xbf16>
    %71 = vector.shape_cast %68 : vector<16x128xbf16> to vector<1x1x16x128xbf16>
    tpu.vector_store %arg10[%c0_41, %c4, %c0_42, %c0_43], %71 {strides = array<i32>} : memref<1x16x16x128xbf16, #tpu.memory_space<vmem>>, vector<1x1x16x128xbf16>,
    %72 = vector.extract_strided_slice %51 {offsets = [120, 0], sizes = [16, 128], strides = [1, 1]} : vector<384x128xbf16> to vector<16x128xbf16>
    %c0_44 = arith.constant 0 : index
    %c5 = arith.constant 5 : index
    %c0_45 = arith.constant 0 : index
    %c0_46 = arith.constant 0 : index
    %73 = vector.load %arg10[%c0_44, %c5, %c0_45, %c0_46] : memref<1x16x16x128xbf16, #tpu.memory_space<vmem>>, vector<1x1x16x128xbf16>
    %74 = vector.shape_cast %73 : vector<1x1x16x128xbf16> to vector<16x128xbf16>
    %75 = vector.shape_cast %72 : vector<16x128xbf16> to vector<1x1x16x128xbf16>
    tpu.vector_store %arg10[%c0_44, %c5, %c0_45, %c0_46], %75 {strides = array<i32>} : memref<1x16x16x128xbf16, #tpu.memory_space<vmem>>, vector<1x1x16x128xbf16>,
    %76 = vector.extract_strided_slice %51 {offsets = [144, 0], sizes = [16, 128], strides = [1, 1]} : vector<384x128xbf16> to vector<16x128xbf16>
    %c0_47 = arith.constant 0 : index
    %c6 = arith.constant 6 : index
    %c0_48 = arith.constant 0 : index
    %c0_49 = arith.constant 0 : index
    %77 = vector.load %arg10[%c0_47, %c6, %c0_48, %c0_49] : memref<1x16x16x128xbf16, #tpu.memory_space<vmem>>, vector<1x1x16x128xbf16>
    %78 = vector.shape_cast %77 : vector<1x1x16x128xbf16> to vector<16x128xbf16>
    %79 = vector.shape_cast %76 : vector<16x128xbf16> to vector<1x1x16x128xbf16>
    tpu.vector_store %arg10[%c0_47, %c6, %c0_48, %c0_49], %79 {strides = array<i32>} : memref<1x16x16x128xbf16, #tpu.memory_space<vmem>>, vector<1x1x16x128xbf16>,
    %80 = vector.extract_strided_slice %51 {offsets = [168, 0], sizes = [16, 128], strides = [1, 1]} : vector<384x128xbf16> to vector<16x128xbf16>
    %c0_50 = arith.constant 0 : index
    %c7 = arith.constant 7 : index
    %c0_51 = arith.constant 0 : index
    %c0_52 = arith.constant 0 : index
    %81 = vector.load %arg10[%c0_50, %c7, %c0_51, %c0_52] : memref<1x16x16x128xbf16, #tpu.memory_space<vmem>>, vector<1x1x16x128xbf16>
    %82 = vector.shape_cast %81 : vector<1x1x16x128xbf16> to vector<16x128xbf16>
    %83 = vector.shape_cast %80 : vector<16x128xbf16> to vector<1x1x16x128xbf16>
    tpu.vector_store %arg10[%c0_50, %c7, %c0_51, %c0_52], %83 {strides = array<i32>} : memref<1x16x16x128xbf16, #tpu.memory_space<vmem>>, vector<1x1x16x128xbf16>,
    %84 = vector.extract_strided_slice %51 {offsets = [192, 0], sizes = [16, 128], strides = [1, 1]} : vector<384x128xbf16> to vector<16x128xbf16>
    %c0_53 = arith.constant 0 : index
    %c8 = arith.constant 8 : index
    %c0_54 = arith.constant 0 : index
    %c0_55 = arith.constant 0 : index
    %85 = vector.load %arg10[%c0_53, %c8, %c0_54, %c0_55] : memref<1x16x16x128xbf16, #tpu.memory_space<vmem>>, vector<1x1x16x128xbf16>
    %86 = vector.shape_cast %85 : vector<1x1x16x128xbf16> to vector<16x128xbf16>
    %87 = vector.shape_cast %84 : vector<16x128xbf16> to vector<1x1x16x128xbf16>
    tpu.vector_store %arg10[%c0_53, %c8, %c0_54, %c0_55], %87 {strides = array<i32>} : memref<1x16x16x128xbf16, #tpu.memory_space<vmem>>, vector<1x1x16x128xbf16>,
    %88 = vector.extract_strided_slice %51 {offsets = [216, 0], sizes = [16, 128], strides = [1, 1]} : vector<384x128xbf16> to vector<16x128xbf16>
    %c0_56 = arith.constant 0 : index
    %c9 = arith.constant 9 : index
    %c0_57 = arith.constant 0 : index
    %c0_58 = arith.constant 0 : index
    %89 = vector.load %arg10[%c0_56, %c9, %c0_57, %c0_58] : memref<1x16x16x128xbf16, #tpu.memory_space<vmem>>, vector<1x1x16x128xbf16>
    %90 = vector.shape_cast %89 : vector<1x1x16x128xbf16> to vector<16x128xbf16>
    %91 = vector.shape_cast %88 : vector<16x128xbf16> to vector<1x1x16x128xbf16>
    tpu.vector_store %arg10[%c0_56, %c9, %c0_57, %c0_58], %91 {strides = array<i32>} : memref<1x16x16x128xbf16, #tpu.memory_space<vmem>>, vector<1x1x16x128xbf16>,
    %92 = vector.extract_strided_slice %51 {offsets = [240, 0], sizes = [16, 128], strides = [1, 1]} : vector<384x128xbf16> to vector<16x128xbf16>
    %c0_59 = arith.constant 0 : index
    %c10 = arith.constant 10 : index
    %c0_60 = arith.constant 0 : index
    %c0_61 = arith.constant 0 : index
    %93 = vector.load %arg10[%c0_59, %c10, %c0_60, %c0_61] : memref<1x16x16x128xbf16, #tpu.memory_space<vmem>>, vector<1x1x16x128xbf16>
    %94 = vector.shape_cast %93 : vector<1x1x16x128xbf16> to vector<16x128xbf16>
    %95 = vector.shape_cast %92 : vector<16x128xbf16> to vector<1x1x16x128xbf16>
    tpu.vector_store %arg10[%c0_59, %c10, %c0_60, %c0_61], %95 {strides = array<i32>} : memref<1x16x16x128xbf16, #tpu.memory_space<vmem>>, vector<1x1x16x128xbf16>,
    %96 = vector.extract_strided_slice %51 {offsets = [264, 0], sizes = [16, 128], strides = [1, 1]} : vector<384x128xbf16> to vector<16x128xbf16>
    %c0_62 = arith.constant 0 : index
    %c11 = arith.constant 11 : index
    %c0_63 = arith.constant 0 : index
    %c0_64 = arith.constant 0 : index
    %97 = vector.load %arg10[%c0_62, %c11, %c0_63, %c0_64] : memref<1x16x16x128xbf16, #tpu.memory_space<vmem>>, vector<1x1x16x128xbf16>
    %98 = vector.shape_cast %97 : vector<1x1x16x128xbf16> to vector<16x128xbf16>
    %99 = vector.shape_cast %96 : vector<16x128xbf16> to vector<1x1x16x128xbf16>
    tpu.vector_store %arg10[%c0_62, %c11, %c0_63, %c0_64], %99 {strides = array<i32>} : memref<1x16x16x128xbf16, #tpu.memory_space<vmem>>, vector<1x1x16x128xbf16>,
    %100 = vector.extract_strided_slice %51 {offsets = [288, 0], sizes = [16, 128], strides = [1, 1]} : vector<384x128xbf16> to vector<16x128xbf16>
    %c0_65 = arith.constant 0 : index
    %c12 = arith.constant 12 : index
    %c0_66 = arith.constant 0 : index
    %c0_67 = arith.constant 0 : index
    %101 = vector.load %arg10[%c0_65, %c12, %c0_66, %c0_67] : memref<1x16x16x128xbf16, #tpu.memory_space<vmem>>, vector<1x1x16x128xbf16>
    %102 = vector.shape_cast %101 : vector<1x1x16x128xbf16> to vector<16x128xbf16>
    %103 = vector.shape_cast %100 : vector<16x128xbf16> to vector<1x1x16x128xbf16>
    tpu.vector_store %arg10[%c0_65, %c12, %c0_66, %c0_67], %103 {strides = array<i32>} : memref<1x16x16x128xbf16, #tpu.memory_space<vmem>>, vector<1x1x16x128xbf16>,
    %104 = vector.extract_strided_slice %51 {offsets = [312, 0], sizes = [16, 128], strides = [1, 1]} : vector<384x128xbf16> to vector<16x128xbf16>
    %c0_68 = arith.constant 0 : index
    %c13 = arith.constant 13 : index
    %c0_69 = arith.constant 0 : index
    %c0_70 = arith.constant 0 : index
    %105 = vector.load %arg10[%c0_68, %c13, %c0_69, %c0_70] : memref<1x16x16x128xbf16, #tpu.memory_space<vmem>>, vector<1x1x16x128xbf16>
    %106 = vector.shape_cast %105 : vector<1x1x16x128xbf16> to vector<16x128xbf16>
    %107 = vector.shape_cast %104 : vector<16x128xbf16> to vector<1x1x16x128xbf16>
    tpu.vector_store %arg10[%c0_68, %c13, %c0_69, %c0_70], %107 {strides = array<i32>} : memref<1x16x16x128xbf16, #tpu.memory_space<vmem>>, vector<1x1x16x128xbf16>,
    %108 = vector.extract_strided_slice %51 {offsets = [336, 0], sizes = [16, 128], strides = [1, 1]} : vector<384x128xbf16> to vector<16x128xbf16>
    %c0_71 = arith.constant 0 : index
    %c14 = arith.constant 14 : index
    %c0_72 = arith.constant 0 : index
    %c0_73 = arith.constant 0 : index
    %109 = vector.load %arg10[%c0_71, %c14, %c0_72, %c0_73] : memref<1x16x16x128xbf16, #tpu.memory_space<vmem>>, vector<1x1x16x128xbf16>
    %110 = vector.shape_cast %109 : vector<1x1x16x128xbf16> to vector<16x128xbf16>
    %111 = vector.shape_cast %108 : vector<16x128xbf16> to vector<1x1x16x128xbf16>
    tpu.vector_store %arg10[%c0_71, %c14, %c0_72, %c0_73], %111 {strides = array<i32>} : memref<1x16x16x128xbf16, #tpu.memory_space<vmem>>, vector<1x1x16x128xbf16>,
    %112 = vector.extract_strided_slice %51 {offsets = [360, 0], sizes = [16, 128], strides = [1, 1]} : vector<384x128xbf16> to vector<16x128xbf16>
    %c0_74 = arith.constant 0 : index
    %c15 = arith.constant 15 : index
    %c0_75 = arith.constant 0 : index
    %c0_76 = arith.constant 0 : index
    %113 = vector.load %arg10[%c0_74, %c15, %c0_75, %c0_76] : memref<1x16x16x128xbf16, #tpu.memory_space<vmem>>, vector<1x1x16x128xbf16>
    %114 = vector.shape_cast %113 : vector<1x1x16x128xbf16> to vector<16x128xbf16>
    %115 = vector.shape_cast %112 : vector<16x128xbf16> to vector<1x1x16x128xbf16>
    tpu.vector_store %arg10[%c0_74, %c15, %c0_75, %c0_76], %115 {strides = array<i32>} : memref<1x16x16x128xbf16, #tpu.memory_space<vmem>>, vector<1x1x16x128xbf16>,
    return
  }
  func.func @transform_0(%arg0: i32, %arg1: i32) -> (i32, i32, i32) {
    %c0_i32 = arith.constant 0 : i32
    %c0_i32_0 = arith.constant 0 : i32
    %c0_i32_1 = arith.constant 0 : i32
    return %arg0, %c0_i32, %c0_i32_0 : i32, i32, i32
  }
  func.func @transform_1(%arg0: i32, %arg1: i32) -> (i32, i32) {
    %c0_i32 = arith.constant 0 : i32
    %c0_i32_0 = arith.constant 0 : i32
    %c0_i32_1 = arith.constant 0 : i32
    return %c0_i32, %c0_i32_0 : i32, i32
  }
  func.func @transform_2(%arg0: i32, %arg1: i32) -> (i32, i32) {
    %c0_i32 = arith.constant 0 : i32
    %c0_i32_0 = arith.constant 0 : i32
    %c0_i32_1 = arith.constant 0 : i32
    return %c0_i32, %c0_i32_0 : i32, i32
  }
  func.func @transform_3(%arg0: i32, %arg1: i32) -> (i32, i32, i32) {
    %c0_i32 = arith.constant 0 : i32
    %c0_i32_0 = arith.constant 0 : i32
    %c0_i32_1 = arith.constant 0 : i32
    %c0_i32_2 = arith.constant 0 : i32
    return %c0_i32, %c0_i32_0, %c0_i32_1 : i32, i32, i32
  }
  func.func @transform_4(%arg0: i32, %arg1: i32) -> (i32, i32) {
    %c0_i32 = arith.constant 0 : i32
    %c0_i32_0 = arith.constant 0 : i32
    %c0_i32_1 = arith.constant 0 : i32
    return %c0_i32, %c0_i32_0 : i32, i32
  }
  func.func @transform_5(%arg0: i32, %arg1: i32) -> (i32, i32) {
    %c0_i32 = arith.constant 0 : i32
    %c0_i32_0 = arith.constant 0 : i32
    %c0_i32_1 = arith.constant 0 : i32
    return %c0_i32, %c0_i32_0 : i32, i32
  }
  func.func @transform_6(%arg0: i32, %arg1: i32) -> (i32, i32) {
    %c0_i32 = arith.constant 0 : i32
    %c0_i32_0 = arith.constant 0 : i32
    %c0_i32_1 = arith.constant 0 : i32
    return %c0_i32, %c0_i32_0 : i32, i32
  }
  func.func @transform_7(%arg0: i32, %arg1: i32) -> (i32, i32) {
    %c0_i32 = arith.constant 0 : i32
    %c0_i32_0 = arith.constant 0 : i32
    %c0_i32_1 = arith.constant 0 : i32
    return %c0_i32, %c0_i32_0 : i32, i32
  }
  func.func @transform_8(%arg0: i32, %arg1: i32) -> (i32, i32, i32, i32) {
    %c0_i32 = arith.constant 0 : i32
    %c0_i32_0 = arith.constant 0 : i32
    %c0_i32_1 = arith.constant 0 : i32
    return %arg0, %arg1, %c0_i32, %c0_i32_0 : i32, i32, i32, i32
  }
}

</mosaic_0001>

<bundles_post_ra>
// kernel: tpu_custom_call.1
= control target key start
LH: loop header
LB: loop body
LE: loop exit
PB: predicated region body
PF: predicated region fallthrough
CT: control target
= control target key end

     0   :  { %13 = vsyncpa [#allocation3], 0  ;;  %s7495_s0 = inlined_call_operand.vmem [shape: bf16[2,440,128], index: 0, kind: input, shape index: {}]   ;;  %s7496_s1 = inlined_call_operand.vmem [shape: bf16[440,1], index: 1, kind: input, shape index: {}]   ;;  %s7497_s2 = inlined_call_operand.vmem [shape: bf16[128,32], index: 2, kind: input, shape index: {}]   ;;  %s7498_s3 = inlined_call_operand.vmem [shape: bf16[3,96,32], index: 3, kind: input, shape index: {}]   ;;  %s7499_s4 = inlined_call_operand.hbm [shape: bf16[32,128], index: 4, kind: input, shape index: {}]   ;;  %s7500_s5 = inlined_call_operand.vmem [shape: f32[1,32], index: 5, kind: input, shape index: {}]   ;;  %s7501_s6 = inlined_call_operand.vmem [shape: f32[1,32], index: 6, kind: input, shape index: {}]   ;;  %s7502_s7 = inlined_call_operand.vmem [shape: f32[1,128], index: 7, kind: input, shape index: {}]   ;;  %s7503_s8 = inlined_call_operand.hbm [shape: bf16[2,16,16,128], index: 8, kind: output, shape index: {}]  }
   0x1   :  { %14 = vsyncpa [#allocation4], 0 }
   0x2   :  { %16 = vsyncpa [#allocation4 + $0x1], 0  ;;  %s5784_s27 = smov 0   ;;  %s5786_s28 = smov 0  }
   0x3   :  { %s5788_s29 = smov 0   ;;  %s5790_s30 = smov 0  }
   0x4   :  { %s5792_s9 = smov 0   ;;  %s5794_s10 = smov 0  }
   0x5 LB: > { %s4560_s11 = sadd.s32 4294967295, %s5728_s10   ;;  %s4561_s12 = sadd.s32 4294967294, %s5728_s10   ;;  %s5728_s10 = sphi %s5794_s10, %s22_s10   ;;  %s5724_s9 = sphi %s5792_s9, %s7530_s9   ;;  %s5720_s30 = sphi %s5790_s30, %s7529_s30   ;;  %s5716_s29 = sphi %s5788_s29, %s7528_s29   ;;  %s5712_s28 = sphi %s5786_s28, %s7527_s28   ;;  %s5708_s27 = sphi %s5784_s27, %s7526_s27  }
   0x6   : > { %s34_s13 = sadd.s32 1, %s5724_s9  ;;  %s216_s14 = sadd.s32 1, %s5716_s29 }
   0x7   : > { %p36_p0 = scmp.ge.s32.totalorder %s34_s13, 2  ;;  %p226_p1 = scmp.ne.s32.totalorder %s5716_s29, %s5712_s28 }
   0x8   : > { %p227_p2 = scmp.eq.s32.totalorder %s4560_s11, 1  ;;  %p232_p3 = scmp.ne.s32.totalorder %s5712_s28, %s5708_s27 }
   0x9   : > { %s7532_s13 = smov (%p36_p0, %s34_s13), 0  ;;  %p233_p5 = scmp.eq.s32.totalorder %s4561_s12, 1 }
   0xa   : > { %p5824_p4 = por %p227_p2, %p226_p1  ;;  %s211_s16 = ssub.s32 %s5724_s9, %s7532_s13 }
   0xb   : > { %p4562_p6 = scmp.ge.s32.totalorder %s5728_s10, 1  ;;  %p214_p7 = scmp.eq.s32.totalorder %s211_s16, 0 }
   0xc   : > { %p5831_p8 = por %p233_p5, %p232_p3  ;;  %p240_p9 = scmp.lt.s32.totalorder %s5728_s10, 3 }
   0xd   : > { %s5837_s18 = scalar_select %p214_p7, %s5716_s29, %s216_s14  }
   0xe   : > { %p5839_p10 = pnand %p4562_p6, %p240_p9  ;;  %p5843_p11 = scmp.eq.s32.totalorder %s4560_s11, 0 }
   0xf   : > { %s5730_s21 = smov [#allocation2]  }
  0x10   : > { %p5446_p12 = pneg %p5839_p10  ;;  %s261_s22 = sshll.u32 %s5730_s21, 4  ;;  %s262_s22 = int_to_ptr.vmem [resolvable:$true] %s261_s22 }
  0x11   : > { %s5633_s23 = scalar_lea.vmem %s262_s22, 256  ;;  %p5641_p5 = scmp.lt.s32.totalorder %s262_s22, %s262_s22 }
  0x12   : > { %p5447_p13 = pnand %p5843_p11, %p5446_p12  ;;  %p5634_p1 = scmp.ne.s32.totalorder %s262_s22, %s5633_s23 }
  0x13   : > { %p5642_p6 = scmp.lt.s32.totalorder %s5633_s23, %s5633_s23 }
  0x14   : > { %p5624_p0 = pneg %p5447_p13 }
  0x15   : > { %p5643_p7 = por %p5642_p6, %p5641_p5 }
  0x16   : > { %p5636_p2 = pnand %p5634_p1, %p5624_p0 }
  0x18   : > { %p5637_p3 = pneg %p5636_p2 }
  0x1a   : > { %p5644_p9 = pnand %p5643_p7, %p5637_p3 }
  0x1c   : > { %5647 = shalt.err (!%p5644_p9)
}
  0x1d   : > { %s5731_s24 = smov 64   ;;  %s5732_s25 = smov 4  }
  0x1e   : > { %5449 = dma.hbm_to_vmem [thread:$0]  (!%p5447_p13), %s7499_s4, 256, %s262_s22, [#allocation3], %s5731_s24, %s5731_s24, %s5732_s25  }
  0x1f   : > { %294 = sbr.rel (%p5839_p10) target bundleno = 1091 (0x443), region = 52 }
  0x24   : > { %5699 = dma.done.wait (%p5843_p11), [#allocation3], 256  }
  0x25   : > { %5701 = vsyncadd (%p5843_p11), [#allocation3], 4294967040  ;;  %v5733_v0 = vmov 0   ;;  %p328_p12 = scmp.lt.s32.totalorder %s5720_s30, 1  ;;  %v415_v1 = vld [vmem:[%s7496_s1 + $0x48] sm:$0xf] }
  0x26   : > { %5514 = vset.pattern.permute.xlu1 %v5733_v0  ;;  %5513 = vset.pattern.permute.xlu0 %v5733_v0  ;;  %v413_v2 = vld [vmem:[%s7496_s1 + $0x40] sm:$0xf]  ;;  %v5515_v3 = vld [vmem:[%s7497_s2 + $0x38] sm:$0xff]   ;;  %v416_v4 = vld [vmem:[%s7496_s1 + $0x4c] sm:$0xf]  ;;  %vm2185_vm0 = vcmask 1046528  }
  0x27   : > { %1246 = vperm.xlu1 %5514, %v415_v1   ;;  %1222 = vperm.xlu0 %5513, %v413_v2   ;;  %v414_v5 = vld [vmem:[%s7496_s1 + $0x44] sm:$0xf]  ;;  %v5516_v6 = vld [vmem:[%s7497_s2 + $0x30] sm:$0xff]   ;;  %s329_s12 = scalar_select %p328_p12, %s5720_s30, 1  ;;  %v5517_v9 = vld [vmem:[%s7497_s2 + $0x28] sm:$0xff]   ;;  %vm2295_vm2 = vcmask 261120  }
  0x28   : > { %5123 = vmatprep.subr.bf16.mxu0 %v5515_v3  ;;  %v418_v7 = vld [vmem:[%s7496_s1 + $0x54] sm:$0xf]  ;;  %v417_v8 = vld [vmem:[%s7496_s1 + $0x50] sm:$0xf]  ;;  %v420_v10 = vld [vmem:[%s7496_s1 + $0x5c] sm:$0xf] }
  0x29   : > { %5124 = vmatpush3.bf16.msra.mxu0 %v5515_v3  ;;  %s5439_s23 = smul.u32 220, %s329_s12  ;;  %v419_v11 = vld [vmem:[%s7496_s1 + $0x58] sm:$0xf]  ;;  %v5518_v12 = vld [vmem:[%s7497_s2 + $0x20] sm:$0xff]   ;;  %v424_v17 = vld [vmem:[%s7496_s1 + $0x6c] sm:$0xf] }
  0x2a   : > { %5125 = vmatprep.subr.bf16.mxu0 %v5516_v6  ;;  %v422_v13 = vld [vmem:[%s7496_s1 + $0x64] sm:$0xf]  ;;  %v421_v14 = vld [vmem:[%s7496_s1 + $0x60] sm:$0xf]  ;;  %v5519_v15 = vld [vmem:[%s7497_s2 + $0x18] sm:$0xff]   ;;  %s5735_s14 = smov 64  }
  0x2b   : > { %1258 = vperm.xlu1 %5514, %v416_v4   ;;  %1234 = vperm.xlu0 %5513, %v414_v5   ;;  %s5901_s12 = scalar_lea.vmem %s7495_s0, %s5439_s23  ;;  %v423_v18 = vld [vmem:[%s7496_s1 + $0x68] sm:$0xf]  ;;  %v5520_v19 = vld [vmem:[%s7497_s2 + $0x10] sm:$0xff]   ;;  %v428_v23 = vld [vmem:[%s7496_s1 + $0x7c] sm:$0xf]  ;;  %s5736_s16 = smov 32  }
  0x2c   : > { %v5523_v16 = vld [vmem:[%s5901_s12] sm:$0xff]   ;;  %v426_v20 = vld [vmem:[%s7496_s1 + $0x74] sm:$0xf]  ;;  %v425_v21 = vld [vmem:[%s7496_s1 + $0x70] sm:$0xf]  ;;  %vm2350_vm3 = vcmask 523264  }
  0x2d   : > { %5126 = vmatpush3.bf16.msra.mxu0 %v5516_v6  ;;  %5139 = vmatprep.mubr.bf16.mxu0 %v5523_v16  ;;  %v5521_v22 = vld [vmem:[%s7497_s2 + $0x8] sm:$0xff]   ;;  %v427_v24 = vld [vmem:[%s7496_s1 + $0x78] sm:$0xf]  ;;  %v5522_v25 = vld [vmem:[%s7497_s2] sm:$0xff]   ;;  %vm1882_vm1 = vsmask.f32 7424 }
  0x2e   : > { %5127 = vmatprep.subr.bf16.mxu0 %v5517_v9  ;;  %v342_v26 = vld [vmem:[%s5901_s12 + $0x8] sm:$0xff]   ;;  %v344_v27 = vld [vmem:[%s5901_s12 + $0x10] sm:$0xff]   ;;  %v430_v28 = vld [vmem:[%s7496_s1 + $0x84] sm:$0xf]  ;;  %vm2460_vm4 = vcmask 785408   ;;  %vm2772_vm5 = vcmask 1043456  }
  0x2f   : > { %1282 = vperm.xlu1 %5514, %v418_v7   ;;  %1270 = vperm.xlu0 %5513, %v417_v8   ;;  %v429_v29 = vld [vmem:[%s7496_s1 + $0x80] sm:$0xf]  ;;  %v432_v30 = vld [vmem:[%s7496_s1 + $0x8c] sm:$0xf]  ;;  %v431_v31 = vld [vmem:[%s7496_s1 + $0x88] sm:$0xf] }
  0x30   : > { %v398_v32 = vld [vmem:[%s7496_s1 + $0x4] sm:$0xf]  ;;  %v346_v33 = vld [vmem:[%s5901_s12 + $0x18] sm:$0xff]   ;;  %v397_v35 = vld [vmem:[%s7496_s1] sm:$0xf]  ;;  %s325_s20 = sand.u32 1, %s5712_s28  }
  0x31   : > { %5128 = vmatpush3.bf16.msra.mxu0 %v5517_v9  ;;  %v348_v34 = vld [vmem:[%s5901_s12 + $0x20] sm:$0xff]   ;;  %v400_v36 = vld [vmem:[%s7496_s1 + $0xc] sm:$0xf]  ;;  %v399_v37 = vld [vmem:[%s7496_s1 + $0x8] sm:$0xf]  ;;  %s4875_s25 = sshll.u32 %s5720_s30, 11 }
  0x32   : > { %5129 = vmatprep.subr.bf16.mxu0 %v5518_v12  ;;  %v434_v38 = vld [vmem:[%s7496_s1 + $0x94] sm:$0xf]  ;;  %v350_v39 = vld [vmem:[%s5901_s12 + $0x28] sm:$0xff]   ;;  %v433_v41 = vld [vmem:[%s7496_s1 + $0x90] sm:$0xf]  ;;  %s7448_s21 = scalar_lea.sflag [#allocation4], %s325_s20 }
  0x33   : > { %1306 = vperm.xlu1 %5514, %v420_v10   ;;  %1294 = vperm.xlu0 %5513, %v419_v11   ;;  %v352_v40 = vld [vmem:[%s5901_s12 + $0x30] sm:$0xff]   ;;  %v354_v44 = vld [vmem:[%s5901_s12 + $0x38] sm:$0xff]   ;;  %v356_v45 = vld [vmem:[%s5901_s12 + $0x40] sm:$0xff]   ;;  %s5737_s30 = smov [#allocation5]  }
  0x34   : > { %v402_v42 = vld [vmem:[%s7496_s1 + $0x14] sm:$0xf]  ;;  %v401_v43 = vld [vmem:[%s7496_s1 + $0x10] sm:$0xf]  ;;  %v436_v46 = vld [vmem:[%s7496_s1 + $0x9c] sm:$0xf] }
  0x35   : > { %5130 = vmatpush3.bf16.msra.mxu0 %v5518_v12  ;;  %v435_v47 = vld [vmem:[%s7496_s1 + $0x98] sm:$0xf]  ;;  %v404_v48 = vld [vmem:[%s7496_s1 + $0x1c] sm:$0xf]  ;;  %v358_v50 = vld [vmem:[%s5901_s12 + $0x48] sm:$0xff]   ;;  %s5652_s22 = sshll.u32 %s5737_s30, 4  ;;  %s5653_s22 = int_to_ptr.vmem [resolvable:$false] %s5652_s22 }
  0x36   : > { %5131 = vmatprep.subr.bf16.mxu0 %v5519_v15  ;;  %v403_v49 = vld [vmem:[%s7496_s1 + $0x18] sm:$0xf]  ;;  %v360_v51 = vld [vmem:[%s5901_s12 + $0x50] sm:$0xff]   ;;  %v438_v52 = vld [vmem:[%s7496_s1 + $0xa4] sm:$0xf] }
  0x37   : > { %1330 = vperm.xlu1 %5514, %v422_v13   ;;  %1318 = vperm.xlu0 %5513, %v421_v14   ;;  %v437_v53 = vld [vmem:[%s7496_s1 + $0xa0] sm:$0xf]  ;;  %v406_v54 = vld [vmem:[%s7496_s1 + $0x24] sm:$0xf]  ;;  %v362_v56 = vld [vmem:[%s5901_s12 + $0x58] sm:$0xff]  }
  0x38   : > { %v405_v55 = vld [vmem:[%s7496_s1 + $0x20] sm:$0xf]  ;;  %v440_v58 = vld [vmem:[%s7496_s1 + $0xac] sm:$0xf]  ;;  %v439_v59 = vld [vmem:[%s7496_s1 + $0xa8] sm:$0xf] }
  0x39   : > { %5132 = vmatpush3.bf16.msra.mxu0 %v5519_v15  ;;  %v364_v57 = vld [vmem:[%s5901_s12 + $0x60] sm:$0xff]   ;;  %v408_v60 = vld [vmem:[%s7496_s1 + $0x2c] sm:$0xf]  ;;  %v407_v61 = vld [vmem:[%s7496_s1 + $0x28] sm:$0xf] }
  0x3a   : > { %5133 = vmatprep.subr.bf16.mxu0 %v5520_v19  ;;  %v366_v62 = vld [vmem:[%s5901_s12 + $0x68] sm:$0xff]   ;;  %v368_v63 = vld [vmem:[%s5901_s12 + $0x70] sm:$0xff]   ;;  %v370_v4 = vld [vmem:[%s5901_s12 + $0x78] sm:$0xff]  }
  0x3b   : > { %1354 = vperm.xlu1 %5514, %v424_v17   ;;  %1342 = vperm.xlu0 %5513, %v423_v18   ;;  %v442_v0 = vld [vmem:[%s7496_s1 + $0xb4] sm:$0xf]  ;;  %v441_v1 = vld [vmem:[%s7496_s1 + $0xb0] sm:$0xf]  ;;  %v372_v5 = vld [vmem:[%s5901_s12 + $0x80] sm:$0xff]  }
  0x3c   : > { %v410_v2 = vld [vmem:[%s7496_s1 + $0x34] sm:$0xf]  ;;  %v409_v3 = vld [vmem:[%s7496_s1 + $0x30] sm:$0xf]  ;;  %v444_v6 = vld [vmem:[%s7496_s1 + $0xbc] sm:$0xf] }
  0x3d   : > { %5134 = vmatpush3.bf16.msra.mxu0 %v5520_v19  ;;  %v443_v7 = vld [vmem:[%s7496_s1 + $0xb8] sm:$0xf]  ;;  %v412_v8 = vld [vmem:[%s7496_s1 + $0x3c] sm:$0xf]  ;;  %v374_v10 = vld [vmem:[%s5901_s12 + $0x88] sm:$0xff]  }
  0x3e   : > { %5135 = vmatprep.subr.bf16.mxu0 %v5521_v22  ;;  %v411_v9 = vld [vmem:[%s7496_s1 + $0x38] sm:$0xf]  ;;  %v376_v11 = vld [vmem:[%s5901_s12 + $0x90] sm:$0xff]   ;;  %v446_v12 = vld [vmem:[%s7496_s1 + $0xc4] sm:$0xf] }
  0x3f   : > { %1378 = vperm.xlu1 %5514, %v426_v20   ;;  %1366 = vperm.xlu0 %5513, %v425_v21   ;;  %v445_v13 = vld [vmem:[%s7496_s1 + $0xc0] sm:$0xf]  ;;  %v378_v14 = vld [vmem:[%s5901_s12 + $0x98] sm:$0xff]   ;;  %v382_v16 = vld [vmem:[%s5901_s12 + $0xa8] sm:$0xff]  }
  0x40   : > { %v380_v15 = vld [vmem:[%s5901_s12 + $0xa0] sm:$0xff]   ;;  %v384_v17 = vld [vmem:[%s5901_s12 + $0xb0] sm:$0xff]   ;;  %v386_v18 = vld [vmem:[%s5901_s12 + $0xb8] sm:$0xff]  }
  0x41   : > { %5136 = vmatpush3.bf16.msra.mxu0 %v5521_v22  ;;  %v388_v19 = vld [vmem:[%s5901_s12 + $0xc0] sm:$0xff]   ;;  %v390_v22 = vld [vmem:[%s5901_s12 + $0xc8] sm:$0xff]  }
  0x42   : > { %5137 = vmatprep.subr.bf16.mxu0 %v5522_v25 }
  0x43   : > { %1402 = vperm.xlu1 %5514, %v428_v23   ;;  %1390 = vperm.xlu0 %5513, %v427_v24  }
  0x45   : > { %5138 = vmatpush3.bf16.msra.mxu0 %v5522_v25 }
  0x47   : > { %1426 = vperm.xlu1 %5514, %v430_v28   ;;  %1414 = vperm.xlu0 %5513, %v429_v29   ;;  %v5734_v29 = vmov 839922192  }
  0x48   : > { %5140 = vmatmul.mubr.bf16.vlgmr.msra.gmra.mxu0 %v342_v26 }
  0x49   : > { %5143 = vmatprep.mubr.bf16.mxu0 %v344_v27 }
  0x4b   : > { %1450 = vperm.xlu1 %5514, %v432_v30   ;;  %1438 = vperm.xlu0 %5513, %v431_v31   ;;  %v1034_v30 = vunpack.c.l.s4 %v5734_v29  ;;  %v1036_v31 = vlaneseq }
  0x4f   : > { %1042 = vperm.xlu1 %5514, %v398_v32   ;;  %1030 = vperm.xlu0 %5513, %v397_v35   ;;  %v1037_v35 = vshrl.u32 %v1036_v31, 7 }
  0x50   : > { %5144 = vmatmul.mubr.bf16.gmra.mxu0 %v346_v33 }
  0x51   : > { %5147 = vmatprep.mubr.bf16.mxu0 %v348_v34  ;;  %v1035_v34 = vunpack.c.0.s8 %v1034_v30 }
  0x53   : > { %1066 = vperm.xlu1 %5514, %v400_v36   ;;  %1054 = vperm.xlu0 %5513, %v399_v37  }
  0x57   : > { %1474 = vperm.xlu1 %5514, %v434_v38   ;;  %1462 = vperm.xlu0 %5513, %v433_v41   ;;  %v6091_v38 = vsub.s32 %v1035_v34, %v1037_v35 }
  0x58   : > { %5148 = vmatmul.mubr.bf16.gmra.mxu0 %v350_v39 }
  0x59   : > { %5151 = vmatprep.mubr.bf16.mxu0 %v352_v40 }
  0x5b   : > { %1090 = vperm.xlu1 %5514, %v402_v42   ;;  %1078 = vperm.xlu0 %5513, %v401_v43  }
  0x5f   : > { %1498 = vperm.xlu1 %5514, %v436_v46   ;;  %1486 = vperm.xlu0 %5513, %v435_v47  }
  0x60   : > { %5152 = vmatmul.mubr.bf16.gmra.mxu0 %v354_v44 }
  0x61   : > { %5155 = vmatprep.mubr.bf16.mxu0 %v356_v45 }
  0x63   : > { %1114 = vperm.xlu1 %5514, %v404_v48   ;;  %1102 = vperm.xlu0 %5513, %v403_v49  }
  0x67   : > { %1522 = vperm.xlu1 %5514, %v438_v52   ;;  %1510 = vperm.xlu0 %5513, %v437_v53  }
  0x68   : > { %5156 = vmatmul.mubr.bf16.gmra.mxu0 %v358_v50 }
  0x69   : > { %5159 = vmatprep.mubr.bf16.mxu0 %v360_v51  ;;  %v5549_v51 = vld [vmem:[%s5901_s12 + $0xd0] sm:$0xff]  }
  0x6b   : > { %1138 = vperm.xlu1 %5514, %v406_v54   ;;  %1126 = vperm.xlu0 %5513, %v405_v55   ;;  %v5550_v54 = vld [vmem:[%s5901_s12 + $0xd8] ss:$0 sps:$4 sm:$0xff]  }
  0x6f   : > { %1546 = vperm.xlu1 %5514, %v440_v58   ;;  %1534 = vperm.xlu0 %5513, %v439_v59  }
  0x70   : > { %5160 = vmatmul.mubr.bf16.gmra.mxu0 %v362_v56 }
  0x71   : > { %5163 = vmatprep.mubr.bf16.mxu0 %v364_v57 }
  0x73   : > { %1162 = vperm.xlu1 %5514, %v408_v60   ;;  %1150 = vperm.xlu0 %5513, %v407_v61  }
  0x77   : > { %1570 = vperm.xlu1 %5514, %v442_v0   ;;  %1558 = vperm.xlu0 %5513, %v441_v1  }
  0x78   : > { %5164 = vmatmul.mubr.bf16.gmra.mxu0 %v366_v62 }
  0x79   : > { %5167 = vmatprep.mubr.bf16.mxu0 %v368_v63 }
  0x7b   : > { %1186 = vperm.xlu1 %5514, %v410_v2   ;;  %1174 = vperm.xlu0 %5513, %v409_v3  }
  0x7f   : > { %1594 = vperm.xlu1 %5514, %v444_v6   ;;  %1582 = vperm.xlu0 %5513, %v443_v7  }
  0x80   : > { %5168 = vmatmul.mubr.bf16.gmra.mxu0 %v370_v4 }
  0x81   : > { %5171 = vmatprep.mubr.bf16.mxu0 %v372_v5 }
  0x83   : > { %1210 = vperm.xlu1 %5514, %v412_v8   ;;  %1198 = vperm.xlu0 %5513, %v411_v9  }
  0x87   : > { %1618 = vperm.xlu1 %5514, %v446_v12   ;;  %1606 = vperm.xlu0 %5513, %v445_v13  }
  0x88   : > { %5172 = vmatmul.mubr.bf16.gmra.mxu0 %v374_v10 }
  0x89   : > { %5175 = vmatprep.mubr.bf16.mxu0 %v376_v11 }
  0x90   : > { %5176 = vmatmul.mubr.bf16.gmra.mxu0 %v378_v14 }
  0x91   : > { %5179 = vmatprep.mubr.bf16.mxu0 %v380_v15 }
  0x98   : > { %5180 = vmatmul.mubr.bf16.gmra.mxu0 %v382_v16 }
  0x99   : > { %5183 = vmatprep.mubr.bf16.mxu0 %v384_v17 }
  0xa0   : > { %5184 = vmatmul.mubr.bf16.gmra.mxu0 %v386_v18 }
  0xa1   : > { %5187 = vmatprep.mubr.bf16.mxu0 %v388_v19 }
  0xa2   : > { %v6066_v20 = vpop.permute.xlu1 %1246  ;;  %v6068_v21 = vpop.permute.xlu0 %1222 }
  0xa6   : > { %v6071_v23 = vpop.permute.xlu1 %1258  ;;  %v6073_v24 = vpop.permute.xlu0 %1234 }
  0xa8   : > { %5188 = vmatmul.mubr.bf16.gmra.mxu0 %v390_v22 }
  0xa9   : > { %5191 = vmatprep.mubr.bf16.mxu0 %v5549_v51 }
  0xaa   : > { %v6075_v25 = vpop.permute.xlu1 %1282  ;;  %v6077_v26 = vpop.permute.xlu0 %1270 }
  0xae   : > { %v6079_v27 = vpop.permute.xlu1 %1306  ;;  %v6081_v28 = vpop.permute.xlu0 %1294 }
  0xb0   : > { %5192 = vmatmul.mubr.bf16.gmra.mxu0 %v5550_v54 }
  0xb2   : > { %v6083_v32 = vpop.permute.xlu1 %1330  ;;  %v6085_v33 = vpop.permute.xlu0 %1318 }
  0xb6   : > { %v6087_v36 = vpop.permute.xlu1 %1354  ;;  %v6089_v37 = vpop.permute.xlu0 %1342 }
  0xba   : > { %v1379_v39 = vpop.permute.xlu1 %1378  ;;  %v1367_v40 = vpop.permute.xlu0 %1366 }
  0xbb   : > { %v1387_v41 = vrot.slane %v1379_v39, %v6091_v38  ;;  %v1375_v42 = vrot.slane %v1367_v40, %v6091_v38  ;;  %v5551_v40 = vld [vmem:[%s7498_s3 + $0x28] sm:$0xff]  }
  0xbc   : > { %5195 = vmatprep.subr.bf16.mxu0 %v5551_v40  ;;  %5427 = vmatprep.subr.bf16.mxu1 %v5551_v40 }
  0xbd   : > { %v6095_v43 = vcombine.low %v1375_v42, %v1387_v41  ;;  %5196 = vmatpush3.bf16.msra.mxu0 %v5551_v40  ;;  %5433 = vmatpush3.bf16.msra.mxu1 %v5551_v40  ;;  %v5552_v41 = vld [vmem:[%s7498_s3 + $0x20] sm:$0xff]  }
  0xbe   : > { %v1403_v44 = vpop.permute.xlu1 %1402  ;;  %v1391_v45 = vpop.permute.xlu0 %1390  ;;  %5197 = vmatprep.subr.bf16.mxu0 %v5552_v41  ;;  %5428 = vmatprep.subr.bf16.mxu1 %v5552_v41 }
  0xbf   : > { %v1411_v46 = vrot.slane %v1403_v44, %v6091_v38  ;;  %v1399_v47 = vrot.slane %v1391_v45, %v6091_v38  ;;  %v6154_v44 = vld [vmem:[%s7500_s5] ss:$0 sm:$0xff] }
  0xc1   : > { %v6099_v48 = vcombine.low %v1399_v47, %v1411_v46  ;;  %5198 = vmatpush3.bf16.msra.mxu0 %v5552_v41  ;;  %5434 = vmatpush3.bf16.msra.mxu1 %v5552_v41  ;;  %v5553_v46 = vld [vmem:[%s7498_s3 + $0x18] sm:$0xff]  }
  0xc2   : > { %v1427_v49 = vpop.permute.xlu1 %1426  ;;  %v1415_v50 = vpop.permute.xlu0 %1414  ;;  %5199 = vmatprep.subr.bf16.mxu0 %v5553_v46  ;;  %5429 = vmatprep.subr.bf16.mxu1 %v5553_v46 }
  0xc3   : > { %v1435_v52 = vrot.slane %v1427_v49, %v6091_v38  ;;  %v1423_v53 = vrot.slane %v1415_v50, %v6091_v38 }
  0xc5   : > { %v6105_v55 = vcombine.low %v1423_v53, %v1435_v52  ;;  %5200 = vmatpush3.bf16.msra.mxu0 %v5553_v46  ;;  %5435 = vmatpush3.bf16.msra.mxu1 %v5553_v46 }
  0xc6   : > { %v1451_v56 = vpop.permute.xlu1 %1450  ;;  %v1439_v57 = vpop.permute.xlu0 %1438 }
  0xc7   : > { %v1459_v58 = vrot.slane %v1451_v56, %v6091_v38  ;;  %v1447_v59 = vrot.slane %v1439_v57, %v6091_v38  ;;  %v5554_v57 = vld [vmem:[%s7498_s3 + $0x10] sm:$0xff]  }
  0xc8   : > { %5201 = vmatprep.subr.bf16.mxu0 %v5554_v57  ;;  %5430 = vmatprep.subr.bf16.mxu1 %v5554_v57 }
  0xc9   : > { %v6109_v60 = vcombine.low %v1447_v59, %v1459_v58  ;;  %5202 = vmatpush3.bf16.msra.mxu0 %v5554_v57  ;;  %5436 = vmatpush3.bf16.msra.mxu1 %v5554_v57 }
  0xca   : > { %v6111_v61 = vpop.permute.xlu1 %1042  ;;  %v6113_v62 = vpop.permute.xlu0 %1030 }
  0xcb   : > { %v1051_v54 = vrot.slane %v6111_v61, %v6091_v38  ;;  %v1039_v58 = vrot.slane %v6113_v62, %v6091_v38  ;;  %v5555_v62 = vld [vmem:[%s7498_s3 + $0x8] sm:$0xff]  }
  0xcc   : > { %5203 = vmatprep.subr.bf16.mxu0 %v5555_v62  ;;  %5431 = vmatprep.subr.bf16.mxu1 %v5555_v62 }
  0xcd   : > { %5204 = vmatpush3.bf16.msra.mxu0 %v5555_v62  ;;  %5437 = vmatpush3.bf16.msra.mxu1 %v5555_v62 }
  0xce   : > { %v6115_v63 = vpop.permute.xlu1 %1066  ;;  %v1055_v0 = vpop.permute.xlu0 %1054 }
  0xcf   : > { %v1075_v49 = vrot.slane %v6115_v63, %v6091_v38  ;;  %v1063_v51 = vrot.slane %v1055_v0, %v6091_v38 }
  0xd2   : > { %v1475_v1 = vpop.permute.xlu1 %1474  ;;  %v1463_v2 = vpop.permute.xlu0 %1462 }
  0xd3   : > { %v1483_v3 = vrot.slane %v1475_v1, %v6091_v38  ;;  %v1471_v4 = vrot.slane %v1463_v2, %v6091_v38  ;;  %v4607_v2 = vcombine.low %v1063_v51, %v1075_v49 }
  0xd5   : > { %v6119_v5 = vcombine.low %v1471_v4, %v1483_v3 }
  0xd6   : > { %v6121_v6 = vpop.permute.xlu1 %1090  ;;  %v6123_v7 = vpop.permute.xlu0 %1078 }
  0xda   : > { %v1499_v8 = vpop.permute.xlu1 %1498  ;;  %v1487_v9 = vpop.permute.xlu0 %1486 }
  0xdb   : > { %v1507_v10 = vrot.slane %v1499_v8, %v6091_v38  ;;  %v1495_v11 = vrot.slane %v1487_v9, %v6091_v38 }
  0xdd   : > { %v6127_v12 = vcombine.low %v1495_v11, %v1507_v10  ;;  %v4606_v10 = vcombine.low %v1039_v58, %v1051_v54 }
  0xde   : > { %v6129_v13 = vpop.permute.xlu1 %1114  ;;  %v6131_v14 = vpop.permute.xlu0 %1102 }
  0xe2   : > { %v1523_v15 = vpop.permute.xlu1 %1522  ;;  %v1511_v16 = vpop.permute.xlu0 %1510 }
  0xe3   : > { %v1531_v17 = vrot.slane %v1523_v15, %v6091_v38  ;;  %v1519_v18 = vrot.slane %v1511_v16, %v6091_v38  ;;  %v1123_v16 = vrot.slane %v6129_v13, %v6091_v38  ;;  %v1087_v13 = vrot.slane %v6123_v7, %v6091_v38 }
  0xe5   : > { %v6135_v19 = vcombine.low %v1519_v18, %v1531_v17  ;;  %v1111_v17 = vrot.slane %v6131_v14, %v6091_v38  ;;  %v5556_v14 = vld [vmem:[%s7498_s3] sm:$0xff]  }
  0xe6   : > { %v6137_v22 = vpop.permute.xlu1 %1138  ;;  %v6139_v29 = vpop.permute.xlu0 %1126  ;;  %5205 = vmatprep.subr.bf16.mxu0 %v5556_v14  ;;  %5432 = vmatprep.subr.bf16.mxu1 %v5556_v14 }
  0xe7   : > { %v4609_v49 = vcombine.low %v1111_v17, %v1123_v16  ;;  %5206 = vmatpush3.bf16.msra.mxu0 %v5556_v14  ;;  %5438 = vmatpush3.bf16.msra.mxu1 %v5556_v14 }
  0xea   : > { %v1547_v30 = vpop.permute.xlu1 %1546  ;;  %v1535_v31 = vpop.permute.xlu0 %1534 }
  0xeb   : > { %v1555_v34 = vrot.slane %v1547_v30, %v6091_v38  ;;  %v1543_v35 = vrot.slane %v1535_v31, %v6091_v38 }
  0xed   : > { %v6143_v39 = vcombine.low %v1543_v35, %v1555_v34  ;;  %v1099_v35 = vrot.slane %v6121_v6, %v6091_v38 }
 0x108   : > { %v5141_v42 = vpop.f32.mrf.mxu0 }
 0x109   : > { %v732_v47 = vadd.f32 %v5141_v42, %v6154_v44 }
 0x10a   : > { %v723_v45 = vpop.f32.mrf.mxu0 }
 0x10b   : > { %v724_v52 = vadd.f32 %v6154_v44, %v723_v45  ;;  %v947_v59 = vmax.f32 %v732_v47, 0.0 }
 0x10c   : > { %v5142_v50 = vpop.f32.mrf.mxu0 }
 0x10d   : > { %v735_v53 = vadd.f32 %v5142_v50, %v6154_v44  ;;  %v945_v3 = vmax.f32 %v724_v52, 0.0 }
 0x10e   : > { %v726_v56 = vpop.f32.mrf.mxu0 }
 0x10f   : > { %v948_v63 = vmax.f32 %v735_v53, 0.0  ;;  %v727_v0 = vadd.f32 %v6154_v44, %v726_v56 }
 0x110   : > { %v5145_v1 = vpop.f32.mrf.mxu0 }
 0x111   : > { %v1001_v4 = vpack.c.bf16 %v948_v63, %v947_v59  ;;  %v946_v8 = vmax.f32 %v727_v0, 0.0  ;;  %v748_v61 = vadd.f32 %v5145_v1, %v6154_v44  ;;  %v4608_v59 = vcombine.low %v1087_v13, %v1099_v35 }
 0x112   : > { %v739_v9 = vpop.f32.mrf.mxu0 }
 0x113   : > { %v6177_v11 = vmul.bf16 %v4607_v2, %v1001_v4  ;;  %v1000_v15 = vpack.c.bf16 %v946_v8, %v945_v3  ;;  %v740_v31 = vadd.f32 %v6154_v44, %v739_v9  ;;  %v951_v40 = vmax.f32 %v748_v61, 0.0 }
 0x114   : > { %v5146_v18 = vpop.f32.mrf.mxu0  ;;  %v1147_v61 = vrot.slane %v6137_v22, %v6091_v38  ;;  %v1135_v9 = vrot.slane %v6139_v29, %v6091_v38 }
 0x115   : > { %v6183_v30 = vmul.bf16 %v4606_v10, %v1000_v15  ;;  %v751_v34 = vadd.f32 %v5146_v18, %v6154_v44  ;;  %v2187_v47 = vrot.slane %v6177_v11, 1  ;;  %v1891_v7 = vshll.u32 %v6177_v11, 16 }
 0x116   : > { %v742_v41 = vpop.f32.mrf.mxu0  ;;  %v949_v51 = vmax.f32 %v740_v31, 0.0  ;;  %v1895_v14 = vshrl.u32 %v6177_v11, 16 }
 0x117   : > { %v952_v42 = vmax.f32 %v751_v34, 0.0  ;;  %v743_v45 = vadd.f32 %v6154_v44, %v742_v41  ;;  %v2186_v46 = vrot.slane %v6183_v30, 1  ;;  %v1886_v6 = vshll.u32 %v6183_v30, 16 }
 0x118   : > { %v5149_v50 = vpop.f32.mrf.mxu0  ;;  %v1884_v57 = vshrl.u32 %v6183_v30, 16  ;;  %v1893_v3 = vrot.slane %v1891_v7, 1  ;;  %v1151_v7 = vpop.permute.xlu0 %1150 }
 0x119   : > { %v1003_v52 = vpack.c.bf16 %v952_v42, %v951_v40  ;;  %v950_v53 = vmax.f32 %v743_v45, 0.0  ;;  %v2188_v54 = vsel %vm2185_vm0, %v2186_v46, %v2187_v47  ;;  %v1888_v58 = vrot.slane %v1886_v6, 1  ;;  %v1163_v46 = vpop.permute.xlu1 %1162 }
 0x11a   : > { %v755_v56 = vpop.f32.mrf.mxu0  ;;  %2241 = vrot.lane.b32.xlu0 %v2188_v54, %s5735_s14  ;;  %v764_v13 = vadd.f32 %v5149_v50, %v6154_v44  ;;  %v4610_v45 = vcombine.low %v1135_v9, %v1147_v61  ;;  %v1897_v50 = vor.u32 %v1895_v14, %v1893_v3 }
 0x11b   : > { %v6202_v63 = vmul.bf16 %v4609_v49, %v1003_v52  ;;  %v1002_v0 = vpack.c.bf16 %v950_v53, %v949_v51  ;;  %v1889_v2 = vor.u32 %v1888_v58, %v1884_v57  ;;  %v756_v8 = vadd.f32 %v6154_v44, %v755_v56 }
 0x11c   : > { %v5150_v1 = vpop.f32.mrf.mxu0  ;;  %v1159_v56 = vrot.slane %v1151_v7, %v6091_v38  ;;  %v955_v58 = vmax.f32 %v764_v13, 0.0  ;;  %v1255_v13 = vrot.slane %v6066_v20, %v6091_v38  ;;  %v1243_v20 = vrot.slane %v6073_v24, %v6091_v38 }
 0x11d   : > { %v6204_v4 = vmul.bf16 %v4608_v59, %v1002_v0  ;;  %v1894_v10 = vsel %vm1882_vm1, %v1889_v2, %v1893_v3  ;;  %v2191_v17 = vrot.slane %v6202_v63, 1  ;;  %v767_v31 = vadd.f32 %v5150_v1, %v6154_v44 }
 0x11e   : > { %v758_v62 = vpop.f32.mrf.mxu0  ;;  %2103 = vrot.lane.b32.xlu1 %v1894_v10, %s5736_s16  ;;  %v953_v34 = vmax.f32 %v756_v8, 0.0  ;;  %v1907_v54 = vshll.u32 %v6202_v63, 16 }
 0x11f   : > { %v759_v15 = vadd.f32 %v6154_v44, %v758_v62  ;;  %v2189_v16 = vrot.slane %v6204_v4, 1  ;;  %v1899_v18 = vshll.u32 %v6204_v4, 16  ;;  %v956_v51 = vmax.f32 %v767_v31, 0.0 }
 0x120   : > { %v5153_v22 = vpop.f32.mrf.mxu0  ;;  %v1903_v53 = vshrl.u32 %v6204_v4, 16  ;;  %v1909_v62 = vrot.slane %v1907_v54, 1 }
 0x121   : > { %v954_v35 = vmax.f32 %v759_v15, 0.0  ;;  %v2192_v29 = vsel %vm2185_vm0, %v2189_v16, %v2191_v17  ;;  %v2190_v41 = vsel %vm2185_vm0, %v2187_v47, %v2189_v16  ;;  %v1901_v42 = vrot.slane %v1899_v18, 1 }
 0x122   : > { %v6220_v40 = vpop.f32.mrf.mxu0  ;;  %2245 = vrot.lane.b32.xlu0 %v2192_v29, %s5735_s14  ;;  %v780_v6 = vadd.f32 %v5153_v22, %v6154_v44  ;;  %2243 = vrot.lane.b32.xlu1 %v2190_v41, %s5735_s14  ;;  %v1171_v47 = vrot.slane %v1163_v46, %v6091_v38  ;;  %v1005_v61 = vpack.c.bf16 %v956_v51, %v955_v58 }
 0x123   : > { %v1004_v49 = vpack.c.bf16 %v954_v35, %v953_v34  ;;  %v1902_v1 = vsel %vm1882_vm1, %v1897_v50, %v1901_v42  ;;  %v1905_v2 = vor.u32 %v1903_v53, %v1901_v42  ;;  %v1267_v41 = vrot.slane %v6071_v23, %v6091_v38 }
 0x124   : > { %v5154_v52 = vpop.f32.mrf.mxu0  ;;  %v959_v8 = vmax.f32 %v780_v6, 0.0  ;;  %v4611_v15 = vcombine.low %v1159_v56, %v1171_v47  ;;  %v1911_v6 = vshrl.u32 %v6202_v63, 16 }
 0x125   : > { %v783_v57 = vadd.f32 %v5154_v52, %v6154_v44  ;;  %v6232_v59 = vmul.bf16 %v4610_v45, %v1004_v49  ;;  %v1910_v18 = vsel %vm1882_vm1, %v1905_v2, %v1909_v62  ;;  %v1231_v45 = vrot.slane %v6068_v21, %v6091_v38 }
 0x126   : > { %v6234_v0 = vpop.f32.mrf.mxu0  ;;  %2105 = vrot.lane.b32.xlu1 %v1902_v1, %s5736_s16  ;;  %v6245_v35 = vmul.bf16 %v4611_v15, %v1005_v61  ;;  %v1913_v53 = vor.u32 %v1911_v6, %v1909_v62  ;;  %v4615_v47 = vcombine.low %v1255_v13, %v1267_v41  ;;  %v1303_v62 = vrot.slane %v6081_v28, %v6091_v38 }
 0x127   : > { %v960_v3 = vmax.f32 %v783_v57, 0.0  ;;  %v2193_v31 = vrot.slane %v6232_v59, 1  ;;  %v1915_v22 = vshll.u32 %v6232_v59, 16  ;;  %v1919_v21 = vshrl.u32 %v6232_v59, 16 }
 0x128   : > { %v5157_v9 = vpop.f32.mrf.mxu0  ;;  %v1923_v54 = vshll.u32 %v6245_v35, 16  ;;  %v1279_v13 = vrot.slane %v6077_v26, %v6091_v38 }
 0x129   : > { %v6238_v10 = vpack.c.bf16 %v960_v3, %v959_v8  ;;  %v796_v34 = vadd.f32 %v5157_v9, %v6154_v44  ;;  %v2194_v49 = vsel %vm2185_vm0, %v2191_v17, %v2193_v31  ;;  %v1917_v7 = vrot.slane %v1915_v22, 1 }
 0x12a   : > { %v787_v16 = vpop.f32.mrf.mxu0  ;;  %2107 = vrot.lane.b32.xlu1 %v1910_v18, %s5736_s16  ;;  %v4614_v8 = vcombine.low %v1231_v45, %v1243_v20  ;;  %v1315_v9 = vrot.slane %v6079_v27, %v6091_v38  ;;  %v1291_v18 = vrot.slane %v6075_v25, %v6091_v38 }
 0x12b   : > { %v788_v14 = vadd.f32 %v6154_v44, %v787_v16  ;;  %v963_v51 = vmax.f32 %v796_v34, 0.0  ;;  %v1918_v24 = vsel %vm1882_vm1, %v1913_v53, %v1917_v7  ;;  %v1921_v2 = vor.u32 %v1919_v21, %v1917_v7 }
 0x12c   : > { %v5158_v29 = vpop.f32.mrf.mxu0  ;;  %v6274_v16 = vrot.slane %v1923_v54, 1  ;;  %v4616_v54 = vcombine.low %v1279_v13, %v1291_v18 }
 0x12d   : > { %v799_v42 = vadd.f32 %v5158_v29, %v6154_v44  ;;  %v961_v17 = vmax.f32 %v788_v14, 0.0 }
 0x12e   : > { %v790_v46 = vpop.f32.mrf.mxu0  ;;  %2247 = vrot.lane.b32.xlu1 %v2194_v49, %s5735_s14  ;;  %v1926_v28 = vsel %vm1882_vm1, %v1921_v2, %v6274_v16  ;;  %v4617_v49 = vcombine.low %v1303_v62, %v1315_v9  ;;  %v1339_v2 = vrot.slane %v6083_v32, %v6091_v38  ;;  %v1327_v62 = vrot.slane %v6085_v33, %v6091_v38 }
 0x12f   : > { %v964_v23 = vmax.f32 %v799_v42, 0.0  ;;  %v791_v52 = vadd.f32 %v6154_v44, %v790_v46 }
 0x130   : > { %v5161_v50 = vpop.f32.mrf.mxu0 }
 0x131   : > { %v1009_v56 = vpack.c.bf16 %v964_v23, %v963_v51  ;;  %v962_v57 = vmax.f32 %v791_v52, 0.0  ;;  %v812_v58 = vadd.f32 %v5161_v50, %v6154_v44 }
 0x132   : > { %v803_v1 = vpop.f32.mrf.mxu0  ;;  %2109 = vrot.lane.b32.xlu1 %v1918_v24, %s5736_s16 }
 0x133   : > { %v6267_v3 = vmul.bf16 %v4615_v47, %v1009_v56  ;;  %v1008_v61 = vpack.c.bf16 %v962_v57, %v961_v17  ;;  %v804_v34 = vadd.f32 %v6154_v44, %v803_v1  ;;  %v967_v41 = vmax.f32 %v812_v58, 0.0 }
 0x134   : > { %v5162_v15 = vpop.f32.mrf.mxu0  ;;  %v1363_v56 = vrot.slane %v6087_v36, %v6091_v38  ;;  %v1351_v57 = vrot.slane %v6089_v37, %v6091_v38 }
 0x135   : > { %v6278_v22 = vmul.bf16 %v4614_v8, %v1008_v61  ;;  %v815_v29 = vadd.f32 %v5162_v15, %v6154_v44  ;;  %v2203_v14 = vrot.slane %v6267_v3, 1  ;;  %v1955_v26 = vshll.u32 %v6267_v3, 16 }
 0x136   : > { %v806_v27 = vpop.f32.mrf.mxu0  ;;  %2111 = vrot.lane.b32.xlu1 %v1926_v28, %s5736_s16  ;;  %v965_v7 = vmax.f32 %v804_v34, 0.0  ;;  %v1959_v33 = vshrl.u32 %v6267_v3, 16 }
 0x137   : > { %v968_v42 = vmax.f32 %v815_v29, 0.0  ;;  %v807_v45 = vadd.f32 %v6154_v44, %v806_v27  ;;  %v2201_v25 = vrot.slane %v6278_v22, 1  ;;  %v1947_v46 = vshll.u32 %v6278_v22, 16 }
 0x138   : > { %v5165_v6 = vpop.f32.mrf.mxu0  ;;  %v1951_v21 = vshrl.u32 %v6278_v22, 16  ;;  %v1957_v24 = vrot.slane %v1955_v26, 1 }
 0x139   : > { %v1011_v20 = vpack.c.bf16 %v968_v42, %v967_v41  ;;  %v966_v51 = vmax.f32 %v807_v45, 0.0  ;;  %v2204_v23 = vsel %vm2185_vm0, %v2201_v25, %v2203_v14  ;;  %v828_v52 = vadd.f32 %v5165_v6, %v6154_v44  ;;  %v6324_v6 = vpop.permute.xlu1 %1570 }
 0x13a   : > { %v819_v50 = vpop.f32.mrf.mxu0  ;;  %2257 = vrot.lane.b32.xlu0 %v2204_v23, %s5735_s14  ;;  %v6297_v53 = vrot.slane %v1947_v46, 1  ;;  %v4619_v41 = vcombine.low %v1351_v57, %v1363_v56 }
 0x13b   : > { %v6300_v47 = vmul.bf16 %v4617_v49, %v1011_v20  ;;  %v1010_v17 = vpack.c.bf16 %v966_v51, %v965_v7  ;;  %v820_v61 = vadd.f32 %v6154_v44, %v819_v50  ;;  %v971_v36 = vmax.f32 %v828_v52, 0.0  ;;  %v6329_v50 = vpop.permute.xlu0 %1558 }
 0x13c   : > { %v5166_v58 = vpop.f32.mrf.mxu0  ;;  %v1953_v1 = vor.u32 %v1951_v21, %v6297_v53  ;;  %v4618_v52 = vcombine.low %v1327_v62, %v1339_v2 }
 0x13d   : > { %v6309_v8 = vmul.bf16 %v4616_v54, %v1010_v17  ;;  %v831_v9 = vadd.f32 %v5166_v58, %v6154_v44  ;;  %v2207_v18 = vrot.slane %v6300_v47, 1  ;;  %v1971_v28 = vshll.u32 %v6300_v47, 16 }
 0x13e   : > { %v822_v15 = vpop.f32.mrf.mxu0  ;;  %v1958_v37 = vsel %vm1882_vm1, %v1953_v1, %v1957_v24  ;;  %v969_v42 = vmax.f32 %v820_v61, 0.0  ;;  %v775_v17 = vadd.f32 %v6154_v44, %v6234_v0  ;;  %v772_v1 = vadd.f32 %v6154_v44, %v6220_v40 }
 0x13f   : > { %v972_v34 = vmax.f32 %v831_v9, 0.0  ;;  %v823_v29 = vadd.f32 %v6154_v44, %v822_v15  ;;  %2119 = vrot.lane.b32.xlu0 %v1958_v37, %s5736_s16  ;;  %v2205_v32 = vrot.slane %v6309_v8, 1  ;;  %v1963_v13 = vshll.u32 %v6309_v8, 16 }
 0x140   : > { %v5169_v27 = vpop.f32.mrf.mxu0  ;;  %v1967_v23 = vshrl.u32 %v6309_v8, 16  ;;  %v1973_v58 = vrot.slane %v1971_v28, 1  ;;  %v1975_v28 = vshrl.u32 %v6300_v47, 16 }
 0x141   : > { %v1013_v45 = vpack.c.bf16 %v972_v34, %v971_v36  ;;  %v970_v46 = vmax.f32 %v823_v29, 0.0  ;;  %v2208_v49 = vsel %vm2185_vm0, %v2205_v32, %v2207_v18  ;;  %v844_v26 = vadd.f32 %v5169_v27, %v6154_v44 }
 0x142   : > { %v835_v7 = vpop.f32.mrf.mxu0  ;;  %v2206_v20 = vsel %vm2185_vm0, %v2203_v14, %v2205_v32  ;;  %v1965_v51 = vrot.slane %v1963_v13, 1  ;;  %v1961_v14 = vor.u32 %v1959_v33, %v1957_v24  ;;  %v1187_v32 = vpop.permute.xlu1 %1186  ;;  %v958_v13 = vmax.f32 %v775_v17, 0.0 }
 0x143   : > { %v6331_v21 = vmul.bf16 %v4619_v41, %v1013_v45  ;;  %v1012_v54 = vpack.c.bf16 %v970_v46, %v969_v42  ;;  %2261 = vrot.lane.b32.xlu0 %v2208_v49, %s5735_s14  ;;  %2259 = vrot.lane.b32.xlu1 %v2206_v20, %s5735_s14  ;;  %v836_v61 = vadd.f32 %v6154_v44, %v835_v7  ;;  %v975_v62 = vmax.f32 %v844_v26, 0.0  ;;  %v1175_v33 = vpop.permute.xlu0 %1174 }
 0x144   : > { %v5170_v56 = vpop.f32.mrf.mxu0  ;;  %v1969_v57 = vor.u32 %v1967_v23, %v1965_v51  ;;  %v1966_v37 = vsel %vm1882_vm1, %v1961_v14, %v1965_v51 }
 0x145   : > { %v6339_v2 = vmul.bf16 %v4618_v52, %v1012_v54  ;;  %v847_v9 = vadd.f32 %v5170_v56, %v6154_v44  ;;  %v2211_v0 = vrot.slane %v6331_v21, 1  ;;  %v1987_v27 = vshll.u32 %v6331_v21, 16 }
 0x146   : > { %v838_v36 = vpop.f32.mrf.mxu0  ;;  %v1974_v15 = vsel %vm1882_vm1, %v1969_v57, %v1973_v58  ;;  %v973_v42 = vmax.f32 %v836_v61, 0.0  ;;  %v1195_v52 = vrot.slane %v1187_v32, %v6091_v38  ;;  %v957_v54 = vmax.f32 %v772_v1, 0.0 }
 0x147   : > { %v976_v34 = vmax.f32 %v847_v9, 0.0  ;;  %v839_v24 = vadd.f32 %v6154_v44, %v838_v36  ;;  %2123 = vrot.lane.b32.xlu0 %v1974_v15, %s5736_s16  ;;  %2121 = vrot.lane.b32.xlu1 %v1966_v37, %s5736_s16  ;;  %v2209_v40 = vrot.slane %v6339_v2, 1  ;;  %v1979_v29 = vshll.u32 %v6339_v2, 16 }
 0x148   : > { %v5173_v41 = vpop.f32.mrf.mxu0  ;;  %v1983_v23 = vshrl.u32 %v6339_v2, 16  ;;  %v1183_v57 = vrot.slane %v1175_v33, %v6091_v38  ;;  %v1989_v9 = vrot.slane %v1987_v27, 1 }
 0x149   : > { %v1015_v45 = vpack.c.bf16 %v976_v34, %v975_v62  ;;  %v974_v46 = vmax.f32 %v839_v24, 0.0  ;;  %v2212_v49 = vsel %vm2185_vm0, %v2209_v40, %v2211_v0  ;;  %v860_v26 = vadd.f32 %v5173_v41, %v6154_v44 }
 0x14a   : > { %v851_v7 = vpop.f32.mrf.mxu0  ;;  %v2210_v20 = vsel %vm2185_vm0, %v2207_v18, %v2209_v40  ;;  %v1981_v51 = vrot.slane %v1979_v29, 1  ;;  %v1977_v18 = vor.u32 %v1975_v28, %v1973_v58  ;;  %v1006_v62 = vpack.c.bf16 %v958_v13, %v957_v54  ;;  %v6378_v28 = vpop.permute.xlu1 %1594 }
 0x14b   : > { %v6359_v17 = vmul.bf16 %v6099_v48, %v1015_v45  ;;  %v1014_v56 = vpack.c.bf16 %v974_v46, %v973_v42  ;;  %2265 = vrot.lane.b32.xlu0 %v2212_v49, %s5735_s14  ;;  %2263 = vrot.lane.b32.xlu1 %v2210_v20, %s5735_s14  ;;  %v852_v1 = vadd.f32 %v6154_v44, %v851_v7  ;;  %v979_v15 = vmax.f32 %v860_v26, 0.0 }
 0x14c   : > { %v5174_v14 = vpop.f32.mrf.mxu0  ;;  %v1985_v61 = vor.u32 %v1983_v23, %v1981_v51  ;;  %v1982_v24 = vsel %vm1882_vm1, %v1977_v18, %v1981_v51  ;;  %v4612_v13 = vcombine.low %v1183_v57, %v1195_v52  ;;  %v1991_v51 = vshrl.u32 %v6331_v21, 16  ;;  %v6392_v18 = vpop.permute.xlu0 %1582 }
 0x14d   : > { %v6365_v36 = vmul.bf16 %v6095_v43, %v1014_v56  ;;  %v863_v48 = vadd.f32 %v5174_v14, %v6154_v44  ;;  %v2215_v40 = vrot.slane %v6359_v17, 1  ;;  %v2003_v27 = vshll.u32 %v6359_v17, 16 }
 0x14e   : > { %v854_v37 = vpop.f32.mrf.mxu0  ;;  %v1990_v34 = vsel %vm1882_vm1, %v1985_v61, %v1989_v9  ;;  %v977_v33 = vmax.f32 %v852_v1, 0.0  ;;  %v6384_v23 = vmul.bf16 %v4612_v13, %v1006_v62  ;;  %v1993_v61 = vor.u32 %v1991_v51, %v1989_v9 }
 0x14f   : > { %v980_v29 = vmax.f32 %v863_v48, 0.0  ;;  %v855_v32 = vadd.f32 %v6154_v44, %v854_v37  ;;  %2127 = vrot.lane.b32.xlu0 %v1990_v34, %s5736_s16  ;;  %2125 = vrot.lane.b32.xlu1 %v1982_v24, %s5736_s16  ;;  %v2213_v43 = vrot.slane %v6365_v36, 1  ;;  %v1995_v58 = vshll.u32 %v6365_v36, 16  ;;  %v6401_v34 = vpop.permute.xlu1 %1210 }
 0x150   : > { %v5177_v41 = vpop.f32.mrf.mxu0  ;;  %v1999_v20 = vshrl.u32 %v6365_v36, 16 }
 0x151   : > { %v1017_v42 = vpack.c.bf16 %v980_v29, %v979_v15  ;;  %v978_v45 = vmax.f32 %v855_v32, 0.0  ;;  %v2216_v46 = vsel %vm2185_vm0, %v2213_v43, %v2215_v40  ;;  %v2214_v26 = vsel %vm2185_vm0, %v2211_v0, %v2213_v43 }
 0x152   : > { %v867_v49 = vpop.f32.mrf.mxu0  ;;  %v1997_v7 = vrot.slane %v1995_v58, 1  ;;  %v876_v56 = vadd.f32 %v5177_v41, %v6154_v44  ;;  %v2005_v0 = vrot.slane %v2003_v27, 1  ;;  %v1579_v32 = vrot.slane %v6324_v6, %v6091_v38 }
 0x153   : > { %v6387_v52 = vmul.bf16 %v6109_v60, %v1017_v42  ;;  %v1016_v54 = vpack.c.bf16 %v978_v45, %v977_v33  ;;  %2269 = vrot.lane.b32.xlu0 %v2216_v46, %s5735_s14  ;;  %2267 = vrot.lane.b32.xlu1 %v2214_v26, %s5735_s14  ;;  %v868_v62 = vadd.f32 %v6154_v44, %v867_v49  ;;  %v1931_v41 = vshll.u32 %v6384_v23, 16 }
 0x154   : > { %v5178_v57 = vpop.f32.mrf.mxu0  ;;  %v2001_v14 = vor.u32 %v1999_v20, %v1997_v7  ;;  %v1998_v37 = vsel %vm1882_vm1, %v1993_v61, %v1997_v7  ;;  %v983_v43 = vmax.f32 %v876_v56, 0.0  ;;  %v2007_v45 = vshrl.u32 %v6359_v17, 16  ;;  %v1199_v20 = vpop.permute.xlu0 %1198 }
 0x155   : > { %v6395_v1 = vmul.bf16 %v6105_v55, %v1016_v54  ;;  %v879_v60 = vadd.f32 %v5178_v57, %v6154_v44  ;;  %v2219_v9 = vrot.slane %v6387_v52, 1  ;;  %v981_v27 = vmax.f32 %v868_v62, 0.0 }
 0x156   : > { %v870_v48 = vpop.f32.mrf.mxu0  ;;  %v2006_v15 = vsel %vm1882_vm1, %v2001_v14, %v2005_v0  ;;  %v1567_v46 = vrot.slane %v6329_v50, %v6091_v38  ;;  %v1219_v49 = vrot.slane %v6401_v34, %v6091_v38  ;;  %v2195_v56 = vrot.slane %v6245_v35, 1 }
 0x157   : > { %v871_v24 = vadd.f32 %v6154_v44, %v870_v48  ;;  %2131 = vrot.lane.b32.xlu0 %v2006_v15, %s5736_s16  ;;  %2129 = vrot.lane.b32.xlu1 %v1998_v37, %s5736_s16  ;;  %v2217_v55 = vrot.slane %v6395_v1, 1  ;;  %v2011_v29 = vshll.u32 %v6395_v1, 16  ;;  %v984_v58 = vmax.f32 %v879_v60, 0.0 }
 0x158   : > { %v5181_v13 = vpop.f32.mrf.mxu0  ;;  %v2009_v57 = vor.u32 %v2007_v45, %v2005_v0  ;;  %v2015_v62 = vshrl.u32 %v6395_v1, 16  ;;  %v1927_v15 = vshrl.u32 %v6245_v35, 16  ;;  %v6433_v37 = vrot.slane %v1931_v41, 1 }
 0x159   : > { %v982_v33 = vmax.f32 %v871_v24, 0.0  ;;  %v2220_v42 = vsel %vm2185_vm0, %v2217_v55, %v2219_v9  ;;  %v2218_v26 = vsel %vm2185_vm0, %v2215_v40, %v2217_v55  ;;  %v2013_v7 = vrot.slane %v2011_v29, 1 }
 0x15a   : > { %v883_v6 = vpop.f32.mrf.mxu0  ;;  %v1019_v14 = vpack.c.bf16 %v984_v58, %v983_v43  ;;  %v892_v50 = vadd.f32 %v5181_v13, %v6154_v44  ;;  %v2019_v40 = vshll.u32 %v6387_v52, 16  ;;  %v1207_v34 = vrot.slane %v1199_v20, %v6091_v38 }
 0x15b   : > { %v1018_v51 = vpack.c.bf16 %v982_v33, %v981_v27  ;;  %v884_v54 = vadd.f32 %v6154_v44, %v883_v6  ;;  %2273 = vrot.lane.b32.xlu0 %v2220_v42, %s5735_s14  ;;  %2271 = vrot.lane.b32.xlu1 %v2218_v26, %s5735_s14  ;;  %v2196_v24 = vsel %vm2185_vm0, %v2193_v31, %v2195_v56 }
 0x15c   : > { %v5182_v61 = vpop.f32.mrf.mxu0  ;;  %v2014_v55 = vsel %vm1882_vm1, %v2009_v57, %v2013_v7  ;;  %v2017_v29 = vor.u32 %v2015_v62, %v2013_v7  ;;  %v1929_v58 = vor.u32 %v1927_v15, %v6274_v16  ;;  %v6448_v41 = vmul.bf16 %v6127_v12, %v1019_v14 }
 0x15d   : > { %v6429_v60 = vmul.bf16 %v6119_v5, %v1018_v51  ;;  %v895_v48 = vadd.f32 %v5182_v61, %v6154_v44  ;;  %v985_v5 = vmax.f32 %v884_v54, 0.0  ;;  %v987_v27 = vmax.f32 %v892_v50, 0.0 }
 0x15e   : > { %v886_v0 = vpop.f32.mrf.mxu0  ;;  %v2021_v42 = vrot.slane %v2019_v40, 1  ;;  %v4628_v45 = vcombine.low %v1567_v46, %v1579_v32  ;;  %v1603_v6 = vrot.slane %v6378_v28, %v6091_v38  ;;  %v1934_v7 = vsel %vm1882_vm1, %v1929_v58, %v6433_v37 }
 0x15f   : > { %v887_v43 = vadd.f32 %v6154_v44, %v886_v0  ;;  %2249 = vrot.lane.b32.xlu0 %v2196_v24, %s5735_s14  ;;  %2133 = vrot.lane.b32.xlu1 %v2014_v55, %s5736_s16  ;;  %v2027_v13 = vshll.u32 %v6429_v60, 16  ;;  %v988_v33 = vmax.f32 %v895_v48, 0.0  ;;  %v2221_v51 = vrot.slane %v6429_v60, 1 }
 0x160   : > { %v5185_v31 = vpop.f32.mrf.mxu0  ;;  %v2022_v16 = vsel %vm1882_vm1, %v2017_v29, %v2021_v42  ;;  %v2023_v12 = vshrl.u32 %v6387_v52, 16  ;;  %v4613_v57 = vcombine.low %v1207_v34, %v1219_v49  ;;  %v2035_v62 = vshll.u32 %v6448_v41, 16 }
 0x161   : > { %v986_v26 = vmax.f32 %v887_v43, 0.0  ;;  %v2029_v54 = vrot.slane %v2027_v13, 1  ;;  %v1021_v28 = vpack.c.bf16 %v988_v33, %v987_v27  ;;  %v908_v32 = vadd.f32 %v5185_v31, %v6154_v44  ;;  %v1619_v43 = vpop.permute.xlu1 %1618 }
 0x162   : > { %v899_v20 = vpop.f32.mrf.mxu0  ;;  %v2025_v61 = vor.u32 %v2023_v12, %v2021_v42  ;;  %v1591_v40 = vrot.slane %v6392_v18, %v6091_v38  ;;  %v2197_v15 = vrot.slane %v6384_v23, 1  ;;  %v6470_v34 = vmul.bf16 %v4613_v57, %v6238_v10 }
 0x163   : > { %v1020_v14 = vpack.c.bf16 %v986_v26, %v985_v5  ;;  %v900_v50 = vadd.f32 %v6154_v44, %v899_v20  ;;  %2135 = vrot.lane.b32.xlu0 %v2022_v16, %s5736_s16  ;;  %2113 = vrot.lane.b32.xlu1 %v1934_v7, %s5736_s16  ;;  %v2222_v24 = vsel %vm2185_vm0, %v2219_v9, %v2221_v51  ;;  %v2223_v29 = vrot.slane %v6448_v41, 1  ;;  %v1607_v20 = vpop.permute.xlu0 %1606 }
 0x164   : > { %v5186_v46 = vpop.f32.mrf.mxu0  ;;  %v2030_v55 = vsel %vm1882_vm1, %v2025_v61, %v2029_v54  ;;  %v2031_v5 = vshrl.u32 %v6429_v60, 16  ;;  %v6483_v58 = vmul.bf16 %v6143_v39, %v1021_v28  ;;  %v991_v9 = vmax.f32 %v908_v32, 0.0 }
 0x165   : > { %v6465_v48 = vmul.bf16 %v6135_v19, %v1020_v14  ;;  %v911_v49 = vadd.f32 %v5186_v46, %v6154_v44  ;;  %v989_v18 = vmax.f32 %v900_v50, 0.0  ;;  %v2037_v33 = vrot.slane %v2035_v62, 1 }
 0x166   : > { %v902_v0 = vpop.f32.mrf.mxu0  ;;  %v4629_v31 = vcombine.low %v1591_v40, %v1603_v6  ;;  %v2198_v7 = vsel %vm2185_vm0, %v2195_v56, %v2197_v15  ;;  %v2224_v12 = vsel %vm2185_vm0, %v2221_v51, %v2223_v29  ;;  %v2033_v39 = vor.u32 %v2031_v5, %v2029_v54 }
 0x167   : > { %v903_v19 = vadd.f32 %v6154_v44, %v902_v0  ;;  %2275 = vrot.lane.b32.xlu0 %v2222_v24, %s5735_s14  ;;  %2137 = vrot.lane.b32.xlu1 %v2030_v55, %s5736_s16  ;;  %v2043_v10 = vshll.u32 %v6465_v48, 16  ;;  %v992_v13 = vmax.f32 %v911_v49, 0.0  ;;  %v2039_v57 = vshrl.u32 %v6448_v41, 16  ;;  %v6507_v24 = vld [vmem:[%s7498_s3 + $0x58] sm:$0xff]  }
 0x168   : > { %v5189_v27 = vpop.f32.mrf.mxu0  ;;  %v1627_v50 = vrot.slane %v1619_v43, %v6091_v38  ;;  %v1939_v32 = vshll.u32 %v6470_v34, 16  ;;  %v1935_v51 = vshrl.u32 %v6384_v23, 16  ;;  %v2051_v54 = vshll.u32 %v6483_v58, 16  ;;  %5255 = vmatprep.subr.bf16.mxu1 %v6507_v24 }
 0x169   : > { %v990_v42 = vmax.f32 %v903_v19, 0.0  ;;  %v924_v26 = vadd.f32 %v5189_v27, %v6154_v44  ;;  %v2045_v14 = vrot.slane %v2043_v10, 1  ;;  %v1023_v56 = vpack.c.bf16 %v992_v13, %v991_v9 }
 0x16a   : > { %v915_v16 = vpop.f32.mrf.mxu0  ;;  %v2041_v61 = vor.u32 %v2039_v57, %v2037_v33  ;;  %v1615_v62 = vrot.slane %v1607_v20, %v6091_v38  ;;  %v2225_v5 = vrot.slane %v6465_v48, 1  ;;  %v1937_v10 = vor.u32 %v1935_v51, %v6433_v37 }
 0x16b   : > { %v1022_v6 = vpack.c.bf16 %v990_v42, %v989_v18  ;;  %v916_v28 = vadd.f32 %v6154_v44, %v915_v16  ;;  %2277 = vrot.lane.b32.xlu0 %v2224_v12, %s5735_s14  ;;  %2251 = vrot.lane.b32.xlu1 %v2198_v7, %s5735_s14  ;;  %v995_v49 = vmax.f32 %v924_v26, 0.0  ;;  %v2038_v18 = vsel %vm1882_vm1, %v2033_v39, %v2037_v33  ;;  %v6528_v12 = vld [vmem:[%s7498_s3 + $0x88] sm:$0xff]  }
 0x16c   : > { %v5190_v46 = vpop.f32.mrf.mxu0  ;;  %v2046_v19 = vsel %vm1882_vm1, %v2041_v61, %v2045_v14  ;;  %v6517_v27 = vmul.bf16 %v4629_v31, %v1023_v56  ;;  %v1941_v42 = vrot.slane %v1939_v32, 1  ;;  %v2053_v33 = vrot.slane %v2051_v54, 1  ;;  %5315 = vmatprep.subr.bf16.mxu0 %v6528_v12 }
 0x16d   : > { %v6501_v40 = vmul.bf16 %v4628_v45, %v1022_v6  ;;  %v927_v0 = vadd.f32 %v5190_v46, %v6154_v44  ;;  %v993_v43 = vmax.f32 %v916_v28, 0.0  ;;  %v2226_v37 = vsel %vm2185_vm0, %v2223_v29, %v2225_v5 }
 0x16e   : > { %v918_v55 = vpop.f32.mrf.mxu0  ;;  %v1942_v20 = vsel %vm1882_vm1, %v1937_v10, %v1941_v42  ;;  %v4630_v31 = vcombine.low %v1615_v62, %v1627_v50  ;;  %v2227_v57 = vrot.slane %v6483_v58, 1  ;;  %v2047_v29 = vshrl.u32 %v6465_v48, 16 }
 0x16f   : > { %v996_v45 = vmax.f32 %v927_v0, 0.0  ;;  %v919_v9 = vadd.f32 %v6154_v44, %v918_v55  ;;  %2139 = vrot.lane.b32.xlu0 %v2038_v18, %s5736_s16  ;;  %2141 = vrot.lane.b32.xlu1 %v2046_v19, %s5736_s16  ;;  %v2059_v13 = vshll.u32 %v6501_v40, 16  ;;  %v2055_v44 = vshrl.u32 %v6483_v58, 16 }
 0x170   : > { %v2067_v28 = vshll.u32 %v6517_v27, 16  ;;  %v1943_v56 = vshrl.u32 %v6470_v34, 16  ;;  %v2228_v50 = vsel %vm2185_vm0, %v2225_v5, %v2227_v57  ;;  %v2049_v61 = vor.u32 %v2047_v29, %v2045_v14 }
 0x171   : > { %v6520_v26 = vpack.c.bf16 %v996_v45, %v995_v49  ;;  %v994_v7 = vmax.f32 %v919_v9, 0.0  ;;  %v2061_v16 = vrot.slane %v2059_v13, 1  ;;  %v2057_v6 = vor.u32 %v2055_v44, %v2053_v33 }
 0x172   : > { %v1945_v51 = vor.u32 %v1943_v56, %v1941_v42  ;;  %v2069_v62 = vrot.slane %v2067_v28, 1  ;;  %v2054_v0 = vsel %vm1882_vm1, %v2049_v61, %v2053_v33  ;;  %v2229_v55 = vrot.slane %v6501_v40, 1  ;;  %v448_v33 = vld [vmem:[%s7496_s1 + $0xcc] sm:$0xf] }
 0x173   : > { %v1024_v39 = vpack.c.bf16 %v994_v7, %v993_v43  ;;  %2279 = vrot.lane.b32.xlu0 %v2226_v37, %s5735_s14  ;;  %2115 = vrot.lane.b32.xlu1 %v1942_v20, %s5736_s16  ;;  %v2062_v46 = vsel %vm1882_vm1, %v2057_v6, %v2061_v16  ;;  %v2071_v18 = vshrl.u32 %v6517_v27, 16  ;;  %v2199_v43 = vrot.slane %v6470_v34, 1  ;;  %v6570_v7 = vpop.f32.mrf.mxu0 }
 0x174   : > { %v1950_v49 = vsel %vm1882_vm1, %v1945_v51, %v6297_v53  ;;  %v2230_v5 = vsel %vm2185_vm0, %v2227_v57, %v2229_v55  ;;  %v2231_v53 = vrot.slane %v6517_v27, 1  ;;  %v2063_v45 = vshrl.u32 %v6501_v40, 16  ;;  %v447_v57 = vld [vmem:[%s7496_s1 + $0xc8] sm:$0xf] }
 0x175   : > { %v6536_v32 = vmul.bf16 %v4630_v31, %v1024_v39  ;;  %v2073_v14 = vor.u32 %v2071_v18, %v2069_v62  ;;  %v2202_v13 = vsel %vm2185_vm0, %v2199_v43, %v2201_v25  ;;  %v6574_v44 = vpop.f32.mrf.mxu0  ;;  %v450_v25 = vld [vmem:[%s7496_s1 + $0xd4] sm:$0xf]  ;;  %v2200_v39 = vsel %vm2185_vm0, %v2197_v15, %v2199_v43  ;;  %v449_v15 = vld [vmem:[%s7496_s1 + $0xd0] sm:$0xf]  ;;  %v5567_v43 = vld [vmem:[%s7498_s3 + $0x68] sm:$0xff]  }
 0x176   : > { %v2232_v9 = vsel %vm2185_vm0, %v2229_v55, %v2231_v53  ;;  %v2065_v42 = vor.u32 %v2063_v45, %v2061_v16 }
 0x177   : > { %2281 = vrot.lane.b32.xlu0 %v2228_v50, %s5735_s14  ;;  %2145 = vrot.lane.b32.xlu1 %v2062_v46, %s5736_s16  ;;  %v2075_v54 = vshll.u32 %v6536_v32, 16  ;;  %v2233_v20 = vrot.slane %v6536_v32, 1  ;;  %v5194_v16 = vpop.f32.mrf.mxu0  ;;  %v451_v46 = vld [vmem:[%s7496_s1 + $0xd8] sm:$0xf] }
 0x178   : > { %v2070_v37 = vsel %vm1882_vm1, %v2065_v42, %v2069_v62 }
 0x179   : > { %v6549_v19 = vrot.slane %v2075_v54, 1  ;;  %v2234_v31 = vsel %vm2185_vm0, %v2231_v53, %v2233_v20 }
 0x17b   : > { %2143 = vrot.lane.b32.xlu0 %v2054_v0, %s5736_s16  ;;  %2117 = vrot.lane.b32.xlu1 %v1950_v49, %s5736_s16  ;;  %v2078_v10 = vsel %vm1882_vm1, %v2073_v14, %v6549_v19 }
 0x17f   : > { %2283 = vrot.lane.b32.xlu0 %v2230_v5, %s5735_s14  ;;  %2149 = vrot.lane.b32.xlu1 %v2078_v10, %s5736_s16  ;;  %v5565_v5 = vld [vmem:[%s7498_s3 + $0x70] sm:$0xff]  }
 0x183   : > { %2285 = vrot.lane.b32.xlu0 %v2232_v9, %s5735_s14  ;;  %2255 = vrot.lane.b32.xlu1 %v2202_v13, %s5735_s14  ;;  %v5568_v9 = vld [vmem:[%s7498_s3 + $0x60] sm:$0xff]  }
 0x187   : > { %2147 = vrot.lane.b32.xlu0 %v2070_v37, %s5736_s16  ;;  %1642 = vperm.xlu1 %5514, %v448_v33  }
 0x18b   : > { %2287 = vrot.lane.b32.xlu0 %v2234_v31, %s5735_s14  ;;  %1666 = vperm.xlu1 %5514, %v450_v25  }
 0x18c   : > { %v2242_v29 = vpop.permute.xlu0 %2241 }
 0x18f   : > { %2253 = vrot.lane.b32.xlu0 %v2200_v39, %s5735_s14 }
 0x190   : > { %v2104_v6 = vpop.permute.xlu1 %2103 }
 0x191   : > { %v2297_v28 = vsel %vm2295_vm2, %v6183_v30, %v2104_v6  ;;  %v5561_v30 = vld [vmem:[%s7498_s3 + $0x80] sm:$0xff]  }
 0x192   : > { %v2352_v56 = vsel %vm2350_vm3, %v2297_v28, %v2242_v29 }
 0x193   : > { %1630 = vperm.xlu0 %5513, %v447_v57   ;;  %5207 = vmatprep.mubr.msk.bf16.mxu0 %vm2460_vm4, %v2352_v56 }
 0x194   : > { %v2244_v50 = vpop.permute.xlu1 %2243  ;;  %v2246_v49 = vpop.permute.xlu0 %2245 }
 0x197   : > { %1654 = vperm.xlu0 %5513, %v449_v15  }
 0x198   : > { %v2106_v61 = vpop.permute.xlu1 %2105 }
 0x199   : > { %v2299_v51 = vsel %vm2295_vm2, %v6177_v11, %v2106_v61  ;;  %v5563_v11 = vld [vmem:[%s7498_s3 + $0x78] sm:$0xff]  }
 0x19a   : > { %v2354_v54 = vsel %vm2350_vm3, %v2299_v51, %v2244_v50  ;;  %v5562_v51 = vld [vmem:[%s7498_s3 + $0x40] sm:$0xff]  }
 0x19b   : > { %1678 = vperm.xlu0 %5513, %v451_v46   ;;  %5208 = vmatmul.mubr.msk.bf16.vlgmr.msra.gmra.mxu0 %vm2460_vm4, %v2354_v54  ;;  %v2773_v18 = vrot.slane %v2354_v54, 4 }
 0x19c   : > { %v2108_v62 = vpop.permute.xlu1 %2107  ;;  %5316 = vmatpush3.bf16.msra.mxu0 %v6528_v12 }
 0x19d   : > { %v2301_v0 = vsel %vm2295_vm2, %v6204_v4, %v2108_v62  ;;  %5317 = vmatprep.subr.bf16.mxu0 %v5561_v30 }
 0x19e   : > { %v6615_v55 = vsel %vm2350_vm3, %v2301_v0, %v2246_v49 }
 0x19f   : > { %5211 = vmatprep.mubr.msk.bf16.mxu0 %vm2460_vm4, %v6615_v55  ;;  %v2774_v14 = vrot.slane %v6615_v55, 4  ;;  %v5596_v55 = vld [vmem:[%s7500_s5] ss:$0 sm:$0xff] }
 0x1a0   : > { %v2248_v12 = vpop.permute.xlu1 %2247  ;;  %5318 = vmatpush3.bf16.msra.mxu0 %v5561_v30 }
 0x1a1   : > { %5319 = vmatprep.subr.bf16.mxu0 %v5563_v11  ;;  %v6623_v4 = vsel %vm2772_vm5, %v2773_v18, %v2774_v14  ;;  %v5566_v18 = vld [vmem:[%s7498_s3 + $0x30] sm:$0xff]  }
 0x1a4   : > { %v2110_v10 = vpop.permute.xlu1 %2109  ;;  %5320 = vmatpush3.bf16.msra.mxu0 %v5563_v11 }
 0x1a5   : > { %v2303_v53 = vsel %vm2295_vm2, %v6202_v63, %v2110_v10  ;;  %5321 = vmatprep.subr.bf16.mxu0 %v5565_v5 }
 0x1a6   : > { %v6634_v45 = vsel %vm2350_vm3, %v2303_v53, %v2248_v12 }
 0x1a7   : > { %5212 = vmatmul.mubr.msk.bf16.gmra.mxu0 %vm2460_vm4, %v6634_v45 }
 0x1a8   : > { %5322 = vmatpush3.bf16.msra.mxu0 %v5565_v5  ;;  %v2112_v63 = vpop.permute.xlu1 %2111 }
 0x1a9   : > { %5323 = vmatprep.subr.bf16.mxu0 %v5567_v43 }
 0x1ac   : > { %v2258_v13 = vpop.permute.xlu0 %2257  ;;  %5324 = vmatpush3.bf16.msra.mxu0 %v5567_v43 }
 0x1ad   : > { %5325 = vmatprep.subr.bf16.mxu0 %v5568_v9 }
 0x1b0   : > { %5326 = vmatpush3.bf16.msra.mxu0 %v5568_v9 }
 0x1b1   : > { %v2120_v42 = vpop.permute.xlu0 %2119 }
 0x1b2   : > { %v2313_v33 = vsel %vm2295_vm2, %v6278_v22, %v2120_v42  ;;  %v5558_v22 = vld [vmem:[%s7498_s3 + $0x50] sm:$0xff]  }
 0x1b3   : > { %v6644_v37 = vsel %vm2350_vm3, %v2313_v33, %v2258_v13 }
 0x1b4   : > { %5223 = vmatprep.mubr.msk.bf16.mxu1 %vm2460_vm4, %v6644_v37 }
 0x1b5   : > { %v2262_v25 = vpop.permute.xlu0 %2261  ;;  %v2260_v16 = vpop.permute.xlu1 %2259 }
 0x1b9   : > { %v2124_v31 = vpop.permute.xlu0 %2123  ;;  %v2122_v39 = vpop.permute.xlu1 %2121 }
 0x1ba   : > { %v2317_v57 = vsel %vm2295_vm2, %v6309_v8, %v2124_v31  ;;  %v2315_v6 = vsel %vm2295_vm2, %v6267_v3, %v2122_v39  ;;  %v5560_v3 = vld [vmem:[%s7498_s3 + $0x48] sm:$0xff]  }
 0x1bb   : > { %v6656_v29 = vsel %vm2350_vm3, %v2315_v6, %v2260_v16  ;;  %v6659_v28 = vsel %vm2350_vm3, %v2317_v57, %v2262_v25 }
 0x1bc   : > { %5224 = vmatmul.mubr.msk.bf16.vlgmr.msra.gmra.mxu1 %vm2460_vm4, %v6656_v29 }
 0x1bd   : > { %v2266_v56 = vpop.permute.xlu0 %2265  ;;  %5227 = vmatprep.mubr.msk.bf16.mxu1 %vm2460_vm4, %v6659_v28  ;;  %v2264_v8 = vpop.permute.xlu1 %2263  ;;  %5256 = vmatpush3.bf16.msra.mxu1 %v6507_v24 }
 0x1be   : > { %5257 = vmatprep.subr.bf16.mxu1 %v5558_v22 }
 0x1c1   : > { %v2128_v15 = vpop.permute.xlu0 %2127  ;;  %v2126_v50 = vpop.permute.xlu1 %2125  ;;  %5258 = vmatpush3.bf16.msra.mxu1 %v5558_v22 }
 0x1c2   : > { %v2321_v46 = vsel %vm2295_vm2, %v6339_v2, %v2128_v15  ;;  %v2319_v61 = vsel %vm2295_vm2, %v6300_v47, %v2126_v50  ;;  %5259 = vmatprep.subr.bf16.mxu1 %v5560_v3  ;;  %v5564_v47 = vld [vmem:[%s7498_s3 + $0x38] sm:$0xff]  }
 0x1c3   : > { %v6677_v24 = vsel %vm2350_vm3, %v2319_v61, %v2264_v8  ;;  %v6680_v30 = vsel %vm2350_vm3, %v2321_v46, %v2266_v56 }
 0x1c4   : > { %5228 = vmatmul.mubr.msk.bf16.gmra.mxu1 %vm2460_vm4, %v6677_v24 }
 0x1c5   : > { %v2270_v54 = vpop.permute.xlu0 %2269  ;;  %5231 = vmatprep.mubr.msk.bf16.mxu1 %vm2460_vm4, %v6680_v30  ;;  %v2268_v2 = vpop.permute.xlu1 %2267  ;;  %5260 = vmatpush3.bf16.msra.mxu1 %v5560_v3 }
 0x1c6   : > { %5261 = vmatprep.subr.bf16.mxu1 %v5562_v51 }
 0x1c9   : > { %v2132_v62 = vpop.permute.xlu0 %2131  ;;  %v2130_v49 = vpop.permute.xlu1 %2129  ;;  %5262 = vmatpush3.bf16.msra.mxu1 %v5562_v51 }
 0x1ca   : > { %v2325_v0 = vsel %vm2295_vm2, %v6365_v36, %v2132_v62  ;;  %v2323_v11 = vsel %vm2295_vm2, %v6331_v21, %v2130_v49  ;;  %5263 = vmatprep.subr.bf16.mxu1 %v5564_v47  ;;  %v2305_v21 = vsel %vm2295_vm2, %v6232_v59, %v2112_v63 }
 0x1cb   : > { %v6697_v12 = vsel %vm2350_vm3, %v2323_v11, %v2268_v2  ;;  %v6700_v5 = vsel %vm2350_vm3, %v2325_v0, %v2270_v54 }
 0x1cc   : > { %5232 = vmatmul.mubr.msk.bf16.gmra.mxu1 %vm2460_vm4, %v6697_v12 }
 0x1cd   : > { %v2274_v10 = vpop.permute.xlu0 %2273  ;;  %5235 = vmatprep.mubr.msk.bf16.mxu1 %vm2460_vm4, %v6700_v5  ;;  %v2272_v36 = vpop.permute.xlu1 %2271  ;;  %5264 = vmatpush3.bf16.msra.mxu1 %v5564_v47 }
 0x1ce   : > { %5265 = vmatprep.subr.bf16.mxu1 %v5566_v18 }
 0x1d1   : > { %v2250_v53 = vpop.permute.xlu0 %2249  ;;  %v2134_v43 = vpop.permute.xlu1 %2133  ;;  %5266 = vmatpush3.bf16.msra.mxu1 %v5566_v18 }
 0x1d2   : > { %v6709_v9 = vsel %vm2350_vm3, %v2305_v21, %v2250_v53  ;;  %v2327_v13 = vsel %vm2295_vm2, %v6359_v17, %v2134_v43 }
 0x1d3   : > { %5215 = vmatprep.mubr.msk.bf16.mxu0 %vm2460_vm4, %v6709_v9  ;;  %v6716_v42 = vsel %vm2350_vm3, %v2327_v13, %v2272_v36  ;;  %v2776_v13 = vrot.slane %v6634_v45, 4 }
 0x1d4   : > { %5236 = vmatmul.mubr.msk.bf16.gmra.mxu1 %vm2460_vm4, %v6716_v42 }
 0x1d5   : > { %v2136_v33 = vpop.permute.xlu0 %2135  ;;  %v2114_v59 = vpop.permute.xlu1 %2113 }
 0x1d6   : > { %v2329_v63 = vsel %vm2295_vm2, %v6395_v1, %v2136_v33  ;;  %v2307_v1 = vsel %vm2295_vm2, %v6245_v35, %v2114_v59  ;;  %v2778_v59 = vrot.slane %v6709_v9, 4 }
 0x1d7   : > { %v6723_v25 = vsel %vm2350_vm3, %v2329_v63, %v2274_v10 }
 0x1d8   : > { %5239 = vmatprep.mubr.msk.bf16.mxu1 %vm2460_vm4, %v6723_v25 }
 0x1d9   : > { %v2276_v17 = vpop.permute.xlu0 %2275  ;;  %v2138_v16 = vpop.permute.xlu1 %2137 }
 0x1da   : > { %v2331_v31 = vsel %vm2295_vm2, %v6387_v52, %v2138_v16  ;;  %v934_v16 = vpop.f32.mrf.mxu0 }
 0x1db   : > { %v6730_v39 = vsel %vm2350_vm3, %v2331_v31, %v2276_v17 }
 0x1dc   : > { %5240 = vmatmul.mubr.msk.bf16.gmra.mxu1 %vm2460_vm4, %v6730_v39 }
 0x1dd   : > { %v2278_v57 = vpop.permute.xlu0 %2277  ;;  %v2252_v6 = vpop.permute.xlu1 %2251 }
 0x1de   : > { %v6737_v22 = vsel %vm2350_vm3, %v2307_v1, %v2252_v6 }
 0x1df   : > { %5216 = vmatmul.mubr.msk.bf16.gmra.mxu0 %vm2460_vm4, %v6737_v22 }
 0x1e1   : > { %v2140_v56 = vpop.permute.xlu0 %2139  ;;  %v2142_v8 = vpop.permute.xlu1 %2141 }
 0x1e2   : > { %v2333_v52 = vsel %vm2295_vm2, %v6429_v60, %v2140_v56  ;;  %v2335_v35 = vsel %vm2295_vm2, %v6448_v41, %v2142_v8 }
 0x1e3   : > { %v6744_v3 = vsel %vm2350_vm3, %v2333_v52, %v2278_v57  ;;  %v940_v52 = vadd.f32 %v5596_v55, %v6570_v7  ;;  %v2079_v7 = vshrl.u32 %v6536_v32, 16 }
 0x1e4   : > { %5243 = vmatprep.mubr.msk.bf16.mxu1 %vm2460_vm4, %v6744_v3 }
 0x1e5   : > { %v2280_v15 = vpop.permute.xlu0 %2279  ;;  %v2116_v46 = vpop.permute.xlu1 %2115 }
 0x1e6   : > { %v6751_v50 = vsel %vm2350_vm3, %v2335_v35, %v2280_v15 }
 0x1e7   : > { %5244 = vmatmul.mubr.msk.bf16.gmra.mxu1 %vm2460_vm4, %v6751_v50 }
 0x1e9   : > { %v2282_v61 = vpop.permute.xlu0 %2281  ;;  %v2146_v51 = vpop.permute.xlu1 %2145 }
 0x1ea   : > { %v2339_v41 = vsel %vm2295_vm2, %v6483_v58, %v2146_v51 }
 0x1ed   : > { %v2144_v60 = vpop.permute.xlu0 %2143  ;;  %v2118_v49 = vpop.permute.xlu1 %2117 }
 0x1ee   : > { %v2337_v54 = vsel %vm2295_vm2, %v6465_v48, %v2144_v60 }
 0x1ef   : > { %v6758_v2 = vsel %vm2350_vm3, %v2337_v54, %v2282_v61  ;;  %v2786_v54 = vrot.slane %v6644_v37, 4 }
 0x1f0   : > { %5247 = vmatprep.mubr.msk.bf16.mxu1 %vm2460_vm4, %v6758_v2 }
 0x1f1   : > { %v2284_v47 = vpop.permute.xlu0 %2283  ;;  %v2150_v48 = vpop.permute.xlu1 %2149 }
 0x1f2   : > { %v6765_v62 = vsel %vm2350_vm3, %v2339_v41, %v2284_v47  ;;  %v2343_v58 = vsel %vm2295_vm2, %v6517_v27, %v2150_v48  ;;  %v2311_v27 = vsel %vm2295_vm2, %v6470_v34, %v2118_v49  ;;  %v2779_v34 = vsel %vm2772_vm5, %v2776_v13, %v2778_v59 }
 0x1f3   : > { %5248 = vmatmul.mubr.msk.bf16.gmra.mxu1 %vm2460_vm4, %v6765_v62  ;;  %v999_v41 = vmax.f32 %v940_v52, 0.0 }
 0x1f5   : > { %v2286_v0 = vpop.permute.xlu0 %2285  ;;  %v2256_v53 = vpop.permute.xlu1 %2255 }
 0x1f6   : > { %v2366_v63 = vsel %vm2350_vm3, %v2311_v27, %v2256_v53 }
 0x1f9   : > { %v2148_v11 = vpop.permute.xlu0 %2147 }
 0x1fa   : > { %v2341_v18 = vsel %vm2295_vm2, %v6501_v40, %v2148_v11  ;;  %v2309_v40 = vsel %vm2295_vm2, %v6384_v23, %v2116_v46  ;;  %v2777_v23 = vsel %vm2772_vm5, %v2774_v14, %v2776_v13  ;;  %v932_v14 = vadd.f32 %v5596_v55, %v6574_v44 }
 0x1fb   : > { %v6772_v10 = vsel %vm2350_vm3, %v2341_v18, %v2286_v0  ;;  %v1027_v13 = vpack.c.bf16 %v999_v41, %v999_v41  ;;  %v2810_v41 = vrot.slane %v6758_v2, 4 }
 0x1fc   : > { %5251 = vmatprep.mubr.msk.bf16.mxu1 %vm2460_vm4, %v6772_v10  ;;  %v997_v44 = vmax.f32 %v932_v14, 0.0 }
 0x1fd   : > { %v2288_v36 = vpop.permute.xlu0 %2287 }
 0x1fe   : > { %v6779_v21 = vsel %vm2350_vm3, %v2343_v58, %v2288_v36  ;;  %v2081_v58 = vor.u32 %v2079_v7, %v6549_v19  ;;  %v2812_v7 = vrot.slane %v6765_v62, 4 }
 0x1ff   : > { %5252 = vmatmul.mubr.msk.bf16.gmra.mxu1 %vm2460_vm4, %v6779_v21 }
 0x200   : > { %5267 = vmatprep.mubr.msk.bf16.mxu1 %vm2460_vm4, %v6623_v4  ;;  %v2780_v4 = vrot.slane %v6737_v22, 4 }
 0x201   : > { %v2254_v43 = vpop.permute.xlu0 %2253 }
 0x202   : > { %v2364_v33 = vsel %vm2350_vm3, %v2309_v40, %v2254_v43  ;;  %v1643_v17 = vpop.permute.xlu1 %1642  ;;  %v2781_v57 = vsel %vm2772_vm5, %v2778_v59, %v2780_v4  ;;  %v2788_v59 = vrot.slane %v6656_v29, 4 }
 0x203   : > { %5219 = vmatprep.mubr.msk.bf16.mxu0 %vm2460_vm4, %v2364_v33  ;;  %v2782_v31 = vrot.slane %v2364_v33, 4  ;;  %v1651_v6 = vrot.slane %v1643_v17, %v6091_v38 }
 0x204   : > { %5220 = vmatmul.mubr.msk.bf16.gmra.mxu0 %vm2460_vm4, %v2366_v63 }
 0x205   : > { %5327 = vmatprep.mubr.msk.bf16.mxu0 %vm2460_vm4, %v6634_v45  ;;  %v935_v45 = vadd.f32 %v5596_v55, %v934_v16 }
 0x206   : > { %v1667_v8 = vpop.permute.xlu1 %1666 }
 0x207   : > { %5268 = vmatmul.mubr.msk.bf16.vlgmr.msra.gmra.mxu1 %vm2460_vm4, %v2777_v23  ;;  %v998_v35 = vmax.f32 %v935_v45, 0.0  ;;  %v1675_v61 = vrot.slane %v1667_v8, %v6091_v38  ;;  %v2789_v45 = vsel %vm2772_vm5, %v2786_v54, %v2788_v59 }
 0x208   : > { %5271 = vmatprep.mubr.msk.bf16.mxu1 %vm2460_vm4, %v2779_v34 }
 0x209   : > { %v1026_v47 = vpack.c.bf16 %v998_v35, %v997_v44  ;;  %v2796_v44 = vrot.slane %v6697_v12, 4  ;;  %v2798_v35 = vrot.slane %v6700_v5, 4 }
 0x20c   : > { %5328 = vmatmul.mubr.msk.bf16.vlgmr.msra.gmra.mxu0 %vm2460_vm4, %v6709_v9  ;;  %v2783_v9 = vsel %vm2772_vm5, %v2780_v4, %v2782_v31 }
 0x20d   : > { %5331 = vmatprep.mubr.msk.bf16.mxu0 %vm2460_vm4, %v6737_v22  ;;  %v2784_v22 = vrot.slane %v2366_v63, 4 }
 0x20e   : > { %v1631_v1 = vpop.permute.xlu0 %1630 }
 0x20f   : > { %v1639_v56 = vrot.slane %v1631_v1, %v6091_v38  ;;  %5272 = vmatmul.mubr.msk.bf16.gmra.mxu1 %vm2460_vm4, %v2781_v57  ;;  %v2787_v18 = vsel %vm2772_vm5, %v2784_v22, %v2786_v54  ;;  %v2808_v54 = vrot.slane %v6751_v50, 4 }
 0x210   : > { %5275 = vmatprep.mubr.msk.bf16.mxu1 %vm2460_vm4, %v2783_v9  ;;  %v2794_v9 = vrot.slane %v6680_v30, 4 }
 0x211   : > { %v4631_v15 = vcombine.low %v1639_v56, %v1651_v6  ;;  %v2792_v56 = vrot.slane %v6677_v24, 4 }
 0x212   : > { %v1655_v46 = vpop.permute.xlu0 %1654 }
 0x213   : > { %v6821_v60 = vmul.bf16 %v4631_v15, %v6520_v26  ;;  %v1663_v51 = vrot.slane %v1655_v46, %v6091_v38  ;;  %v2785_v26 = vsel %vm2772_vm5, %v2782_v31, %v2784_v22  ;;  %v2795_v8 = vsel %vm2772_vm5, %v2792_v56, %v2794_v9 }
 0x214   : > { %5332 = vmatmul.mubr.msk.bf16.gmra.mxu0 %vm2460_vm4, %v2364_v33  ;;  %v2799_v15 = vsel %vm2772_vm5, %v2796_v44, %v2798_v35  ;;  %v2800_v22 = vrot.slane %v6716_v42, 4  ;;  %v2802_v46 = vrot.slane %v6723_v25, 4 }
 0x215   : > { %v4632_v49 = vcombine.low %v1663_v51, %v1675_v61  ;;  %5335 = vmatprep.mubr.msk.bf16.mxu0 %vm2460_vm4, %v2366_v63  ;;  %v2235_v0 = vrot.slane %v6821_v60, 1  ;;  %v2083_v11 = vshll.u32 %v6821_v60, 16  ;;  %v2804_v61 = vrot.slane %v6730_v39, 4 }
 0x216   : > { %v1679_v48 = vpop.permute.xlu0 %1678  ;;  %v2806_v51 = vrot.slane %v6744_v3, 4 }
 0x217   : > { %v6833_v36 = vmul.bf16 %v4632_v49, %v1026_v47  ;;  %v1687_v53 = vrot.slane %v1679_v48, %v6091_v38  ;;  %5276 = vmatmul.mubr.msk.bf16.gmra.mxu1 %vm2460_vm4, %v2785_v26  ;;  %v2236_v40 = vsel %vm2185_vm0, %v2233_v20, %v2235_v0  ;;  %v2085_v43 = vrot.slane %v2083_v11, 1 }
 0x218   : > { %5279 = vmatprep.mubr.msk.bf16.mxu1 %vm2460_vm4, %v2787_v18  ;;  %2289 = vrot.lane.b32.xlu0 %v2236_v40, %s5735_s14  ;;  %v2087_v38 = vshrl.u32 %v6821_v60, 16  ;;  %v2790_v20 = vrot.slane %v6659_v28, 4  ;;  %v2814_v47 = vrot.slane %v6772_v10, 4  ;;  %v2816_v49 = vrot.slane %v6779_v21, 4 }
 0x219   : > { %v4633_v27 = vcombine.low %v1687_v53, %v1687_v53  ;;  %v2086_v33 = vsel %vm1882_vm1, %v2081_v58, %v2085_v43  ;;  %v2237_v19 = vrot.slane %v6833_v36, 1  ;;  %v2091_v63 = vshll.u32 %v6833_v36, 16 }
 0x21a   : > { %2151 = vrot.lane.b32.xlu1 %v2086_v33, %s5736_s16  ;;  %v2089_v4 = vor.u32 %v2087_v38, %v2085_v43  ;;  %v2095_v55 = vshrl.u32 %v6833_v36, 16  ;;  %v2793_v52 = vsel %vm2772_vm5, %v2790_v20, %v2792_v56 }
 0x21b   : > { %v1881_v23 = vmul.bf16 %v4633_v27, %v1027_v13  ;;  %v2238_v34 = vsel %vm2185_vm0, %v2235_v0, %v2237_v19  ;;  %v2093_v17 = vrot.slane %v2091_v63, 1  ;;  %v2817_v0 = vsel %vm2772_vm5, %v2814_v47, %v2816_v49 }
 0x21c   : > { %5336 = vmatmul.mubr.msk.bf16.gmra.mxu0 %vm2460_vm4, %v6644_v37  ;;  %2291 = vrot.lane.b32.xlu0 %v2238_v34, %s5735_s14  ;;  %v2791_v37 = vsel %vm2772_vm5, %v2788_v59, %v2790_v20 }
 0x21d   : > { %v2099_v16 = vshll.u32 %v1881_v23, 16  ;;  %v2239_v31 = vrot.slane %v1881_v23, 1  ;;  %5339 = vmatprep.mubr.msk.bf16.mxu0 %vm2460_vm4, %v6656_v29  ;;  %v2094_v14 = vsel %vm1882_vm1, %v2089_v4, %v2093_v17  ;;  %v2097_v6 = vor.u32 %v2095_v55, %v2093_v17 }
 0x21e   : > { %2153 = vrot.lane.b32.xlu1 %v2094_v14, %s5736_s16 }
 0x21f   : > { %v2101_v1 = vrot.slane %v2099_v16, 1  ;;  %5280 = vmatmul.mubr.msk.bf16.gmra.mxu1 %vm2460_vm4, %v2789_v45  ;;  %v2240_v57 = vsel %vm2185_vm0, %v2237_v19, %v2239_v31 }
 0x220   : > { %5283 = vmatprep.mubr.msk.bf16.mxu1 %vm2460_vm4, %v2791_v37  ;;  %2293 = vrot.lane.b32.xlu0 %v2240_v57, %s5735_s14 }
 0x221   : > { %v2102_v29 = vsel %vm1882_vm1, %v2097_v6, %v2101_v1 }
 0x222   : > { %2155 = vrot.lane.b32.xlu1 %v2102_v29, %s5736_s16  ;;  %s7441_s16 = scalar_lea.hbm %s7503_s8, %s4875_s25 }
 0x224   : > { %5340 = vmatmul.mubr.msk.bf16.gmra.mxu0 %vm2460_vm4, %v6659_v28  ;;  %v2797_v28 = vsel %vm2772_vm5, %v2794_v9, %v2796_v44 }
 0x225   : > { %5343 = vmatprep.mubr.msk.bf16.mxu0 %vm2460_vm4, %v6677_v24  ;;  %v5569_v24 = vld [vmem:[#allocation2 + $0x8] sm:$0xff]  }
 0x226   : > { %5375 = vmatprep.subr.bf16.mxu1 %v5569_v24 }
 0x227   : > { %5284 = vmatmul.mubr.msk.bf16.gmra.mxu1 %vm2460_vm4, %v2793_v52 }
 0x228   : > { %5287 = vmatprep.mubr.msk.bf16.mxu1 %vm2460_vm4, %v2795_v8  ;;  %5376 = vmatpush3.bf16.msra.mxu1 %v5569_v24 }
 0x22c   : > { %5344 = vmatmul.mubr.msk.bf16.gmra.mxu0 %vm2460_vm4, %v6680_v30  ;;  %v2801_v30 = vsel %vm2772_vm5, %v2798_v35, %v2800_v22 }
 0x22d   : > { %5347 = vmatprep.mubr.msk.bf16.mxu0 %vm2460_vm4, %v6697_v12  ;;  %v2803_v12 = vsel %vm2772_vm5, %v2800_v22, %v2802_v46 }
 0x22f   : > { %5288 = vmatmul.mubr.msk.bf16.gmra.mxu1 %vm2460_vm4, %v2797_v28 }
 0x230   : > { %5291 = vmatprep.mubr.msk.bf16.mxu1 %vm2460_vm4, %v2799_v15 }
 0x234   : > { %5348 = vmatmul.mubr.msk.bf16.gmra.mxu0 %vm2460_vm4, %v6700_v5  ;;  %v2805_v5 = vsel %vm2772_vm5, %v2802_v46, %v2804_v61 }
 0x235   : > { %5351 = vmatprep.mubr.msk.bf16.mxu0 %vm2460_vm4, %v6716_v42  ;;  %v2807_v42 = vsel %vm2772_vm5, %v2804_v61, %v2806_v51 }
 0x237   : > { %5292 = vmatmul.mubr.msk.bf16.gmra.mxu1 %vm2460_vm4, %v2801_v30 }
 0x238   : > { %5295 = vmatprep.mubr.msk.bf16.mxu1 %vm2460_vm4, %v2803_v12 }
 0x23c   : > { %5352 = vmatmul.mubr.msk.bf16.gmra.mxu0 %vm2460_vm4, %v6723_v25  ;;  %v2809_v25 = vsel %vm2772_vm5, %v2806_v51, %v2808_v54 }
 0x23d   : > { %5355 = vmatprep.mubr.msk.bf16.mxu0 %vm2460_vm4, %v6730_v39  ;;  %v2811_v39 = vsel %vm2772_vm5, %v2808_v54, %v2810_v41 }
 0x23f   : > { %5296 = vmatmul.mubr.msk.bf16.gmra.mxu1 %vm2460_vm4, %v2805_v5 }
 0x240   : > { %5299 = vmatprep.mubr.msk.bf16.mxu1 %vm2460_vm4, %v2807_v42 }
 0x244   : > { %5356 = vmatmul.mubr.msk.bf16.gmra.mxu0 %vm2460_vm4, %v6744_v3  ;;  %v2813_v3 = vsel %vm2772_vm5, %v2810_v41, %v2812_v7 }
 0x245   : > { %5359 = vmatprep.mubr.msk.bf16.mxu0 %vm2460_vm4, %v6751_v50  ;;  %v2815_v50 = vsel %vm2772_vm5, %v2812_v7, %v2814_v47 }
 0x247   : > { %5300 = vmatmul.mubr.msk.bf16.gmra.mxu1 %vm2460_vm4, %v2809_v25 }
 0x248   : > { %5303 = vmatprep.mubr.msk.bf16.mxu1 %vm2460_vm4, %v2811_v39 }
 0x24c   : > { %5360 = vmatmul.mubr.msk.bf16.gmra.mxu0 %vm2460_vm4, %v6758_v2  ;;  %v5570_v2 = vld [vmem:[#allocation2] sm:$0xff]  }
 0x24d   : > { %5363 = vmatprep.mubr.msk.bf16.mxu0 %vm2460_vm4, %v6765_v62  ;;  %5377 = vmatprep.subr.bf16.mxu1 %v5570_v2 }
 0x24e   : > { %5378 = vmatpush3.bf16.msra.mxu1 %v5570_v2 }
 0x24f   : > { %5304 = vmatmul.mubr.msk.bf16.gmra.mxu1 %vm2460_vm4, %v2813_v3 }
 0x250   : > { %5307 = vmatprep.mubr.msk.bf16.mxu1 %vm2460_vm4, %v2815_v50 }
 0x254   : > { %5364 = vmatmul.mubr.msk.bf16.gmra.mxu0 %vm2460_vm4, %v6772_v10 }
 0x255   : > { %5367 = vmatprep.mubr.msk.bf16.mxu0 %vm2460_vm4, %v6779_v21 }
 0x257   : > { %5308 = vmatmul.mubr.msk.bf16.gmra.mxu1 %vm2460_vm4, %v2817_v0 }
 0x25b   : > { %v5209_v37 = vpop.f32.mrf.mxu0 }
 0x25d   : > { %v2543_v29 = vpop.f32.mrf.mxu0 }
 0x25f   : > { %v5210_v9 = vpop.f32.mrf.mxu0 }
 0x261   : > { %v2546_v8 = vpop.f32.mrf.mxu0 }
 0x267   : > { %v5213_v35 = vpop.f32.mrf.mxu0 }
 0x269   : > { %v2559_v24 = vpop.f32.mrf.mxu0 }
 0x26b   : > { %v5214_v22 = vpop.f32.mrf.mxu0 }
 0x26d   : > { %v2562_v12 = vpop.f32.mrf.mxu0 }
 0x27c   : > { %v6933_v62 = vpop.f32.mrf.mxu1 }
 0x27e   : > { %v6935_v11 = vpop.f32.mrf.mxu1 }
 0x280   : > { %v6937_v48 = vpop.f32.mrf.mxu1 }
 0x282   : > { %v6939_v26 = vpop.f32.mrf.mxu1 }
 0x284   : > { %v6941_v18 = vpop.f32.mrf.mxu1 }
 0x286   : > { %v6943_v10 = vpop.f32.mrf.mxu1 }
 0x288   : > { %v6945_v21 = vpop.f32.mrf.mxu1 }
 0x28a   : > { %v6947_v58 = vpop.f32.mrf.mxu1  ;;  %v2290_v53 = vpop.permute.xlu0 %2289 }
 0x28c   : > { %v6949_v40 = vpop.f32.mrf.mxu1  ;;  %v2152_v43 = vpop.permute.xlu1 %2151 }
 0x28d   : > { %v2345_v13 = vsel %vm2295_vm2, %v6536_v32, %v2152_v43 }
 0x28e   : > { %v2400_v27 = vsel %vm2350_vm3, %v2345_v13, %v2290_v53  ;;  %v6954_v33 = vpop.f32.mrf.mxu1  ;;  %v2292_v59 = vpop.permute.xlu0 %2291  ;;  %v7032_v13 = vld [vmem:[%s7501_s6] ss:$0 sm:$0xff] }
 0x28f   : > { %v2818_v19 = vrot.slane %v2400_v27, 4  ;;  %5368 = vmatmul.mubr.msk.bf16.gmra.mxu0 %vm2460_vm4, %v2400_v27 }
 0x290   : > { %v6957_v38 = vpop.f32.mrf.mxu1  ;;  %v2154_v63 = vpop.permute.xlu1 %2153 }
 0x291   : > { %v2819_v20 = vsel %vm2772_vm5, %v2816_v49, %v2818_v19  ;;  %v2347_v23 = vsel %vm2295_vm2, %v6821_v60, %v2154_v63  ;;  %v2555_v63 = vadd.f32 %v5210_v9, %v7032_v13 }
 0x292   : > { %v6962_v34 = vpop.f32.mrf.mxu1  ;;  %5311 = vmatprep.mubr.msk.bf16.mxu1 %vm2460_vm4, %v2819_v20  ;;  %v2402_v32 = vsel %vm2350_vm3, %v2347_v23, %v2292_v59  ;;  %v2294_v31 = vpop.permute.xlu0 %2293  ;;  %v2544_v59 = vadd.f32 %v7032_v13, %v2543_v29  ;;  %v2552_v23 = vadd.f32 %v5209_v37, %v7032_v13  ;;  %v2560_v37 = vadd.f32 %v7032_v13, %v2559_v24 }
 0x293   : > { %v2820_v4 = vrot.slane %v2402_v32, 4  ;;  %5371 = vmatprep.mubr.msk.bf16.mxu0 %vm2460_vm4, %v2402_v32 }
 0x294   : > { %v6967_v17 = vpop.f32.mrf.mxu1  ;;  %v2156_v16 = vpop.permute.xlu1 %2155 }
 0x295   : > { %v2349_v55 = vsel %vm2295_vm2, %v6833_v36, %v2156_v16  ;;  %v2821_v60 = vsel %vm2772_vm5, %v2818_v19, %v2820_v4  ;;  %v2547_v4 = vadd.f32 %v7032_v13, %v2546_v8 }
 0x296   : > { %v6971_v14 = vpop.f32.mrf.mxu1  ;;  %v2404_v45 = vsel %vm2350_vm3, %v2349_v55, %v2294_v31  ;;  %5312 = vmatmul.mubr.msk.bf16.gmra.mxu1 %vm2460_vm4, %v2821_v60 }
 0x297   : > { %5372 = vmatmul.mubr.msk.bf16.gmra.mxu0 %vm2460_vm4, %v2404_v45 }
 0x298   : > { %v6977_v1 = vpop.f32.mrf.mxu1 }
 0x29a   : > { %v6979_v57 = vpop.f32.mrf.mxu1 }
 0x29c   : > { %v6981_v6 = vpop.f32.mrf.mxu1 }
 0x29e   : > { %v6983_v56 = vpop.f32.mrf.mxu1 }
 0x29f   : > { %v7001_v51 = vpop.f32.mrf.mxu0 }
 0x2a0   : > { %v6985_v36 = vpop.f32.mrf.mxu1 }
 0x2a1   : > { %v7005_v42 = vpop.f32.mrf.mxu0 }
 0x2a2   : > { %v6987_v52 = vpop.f32.mrf.mxu1 }
 0x2a3   : > { %v7009_v41 = vpop.f32.mrf.mxu0 }
 0x2a5   : > { %v7015_v7 = vpop.f32.mrf.mxu0 }
 0x2a7   : > { %v6989_v44 = vpop.f32.mrf.mxu1 }
 0x2a9   : > { %v6991_v28 = vpop.f32.mrf.mxu1 }
 0x2ab   : > { %v6993_v15 = vpop.f32.mrf.mxu1 }
 0x2ad   : > { %v6995_v46 = vpop.f32.mrf.mxu1 }
 0x2ae   : > { %7508 = vst [vmem:[#allocation8_spill] sm:$0xff] %v6995_v46  ;;  %v2571_v46 = vadd.f32 %v5214_v22, %v7032_v13 }
 0x2b3   : > { %v6997_v30 = vpop.f32.mrf.mxu1 }
 0x2b4   : > { %7509 = vst [vmem:[#allocation9_spill] sm:$0xff] %v6997_v30 }
 0x2b5   : > { %v6999_v61 = vpop.f32.mrf.mxu1 }
 0x2b6   : > { %7510 = vst [vmem:[#allocation10_spill] sm:$0xff] %v6999_v61 }
 0x2b7   : > { %v7003_v5 = vpop.f32.mrf.mxu1 }
 0x2b8   : > { %7511 = vst [vmem:[#allocation11_spill] sm:$0xff] %v7003_v5 }
 0x2b9   : > { %v7007_v54 = vpop.f32.mrf.mxu1 }
 0x2ba   : > { %7512 = vst [vmem:[#allocation12_spill] sm:$0xff] %v7007_v54 }
 0x2bf   : > { %v7011_v25 = vpop.f32.mrf.mxu1 }
 0x2c0   : > { %7513 = vst [vmem:[#allocation13_spill] sm:$0xff] %v7011_v25 }
 0x2c1   : > { %v7013_v39 = vpop.f32.mrf.mxu1 }
 0x2c2   : > { %7514 = vst [vmem:[#allocation14_spill] sm:$0xff] %v7013_v39 }
 0x2c3   : > { %v7017_v47 = vpop.f32.mrf.mxu1 }
 0x2c4   : > { %7515 = vst [vmem:[#allocation15_spill] sm:$0xff] %v7017_v47  ;;  %v7019_v3 = vpop.f32.mrf.mxu0 }
 0x2c5   : > { %v7021_v50 = vpop.f32.mrf.mxu1 }
 0x2c6   : > { %7516 = vst [vmem:[#allocation16_spill] sm:$0xff] %v7021_v50  ;;  %v7023_v49 = vpop.f32.mrf.mxu0 }
 0x2c7   : > { %v5269_v2 = vpop.f32.mrf.mxu1 }
 0x2c8   : > { %v7025_v0 = vpop.f32.mrf.mxu0  ;;  %v3157_v60 = vadd.f32 %v5269_v2, %v2552_v23  ;;  %v2568_v2 = vadd.f32 %v5213_v35, %v7032_v13 }
 0x2c9   : > { %v2964_v53 = vpop.f32.mrf.mxu1 }
 0x2ca   : > { %v7027_v43 = vpop.f32.mrf.mxu0  ;;  %v3155_v16 = vadd.f32 %v2964_v53, %v2544_v59 }
 0x2cb   : > { %v5270_v27 = vpop.f32.mrf.mxu1 }
 0x2cc   : > { %v5329_v19 = vpop.f32.mrf.mxu0  ;;  %v3158_v31 = vadd.f32 %v5270_v27, %v2555_v63 }
 0x2cd   : > { %v2967_v20 = vpop.f32.mrf.mxu1  ;;  %v3485_v54 = vadd.f32 %v5329_v19, %v3157_v60 }
 0x2ce   : > { %v3292_v32 = vpop.f32.mrf.mxu0  ;;  %v3156_v50 = vadd.f32 %v2967_v20, %v2547_v4  ;;  %v2563_v20 = vadd.f32 %v7032_v13, %v2562_v12 }
 0x2cf   : > { %v5273_v55 = vpop.f32.mrf.mxu1  ;;  %v3483_v47 = vadd.f32 %v3292_v32, %v3155_v16  ;;  %v3533_v59 = vmax.f32 %v3485_v54, 0.0 }
 0x2d0   : > { %v5330_v45 = vpop.f32.mrf.mxu0 }
 0x2d1   : > { %v3486_v39 = vadd.f32 %v5330_v45, %v3158_v31  ;;  %v2980_v25 = vpop.f32.mrf.mxu1  ;;  %v3531_v8 = vmax.f32 %v3483_v47, 0.0 }
 0x2d2   : > { %v3295_v5 = vpop.f32.mrf.mxu0  ;;  %v3159_v23 = vadd.f32 %v2980_v25, %v2560_v37 }
 0x2d3   : > { %v3484_v29 = vadd.f32 %v3295_v5, %v3156_v50  ;;  %v5274_v61 = vpop.f32.mrf.mxu1  ;;  %v3534_v9 = vmax.f32 %v3486_v39, 0.0  ;;  %v3161_v50 = vadd.f32 %v5273_v55, %v2568_v2 }
 0x2d4   : > { %v5333_v30 = vpop.f32.mrf.mxu0  ;;  %v3162_v32 = vadd.f32 %v5274_v61, %v2571_v46  ;;  %v2576_v46 = vadd.f32 %v7032_v13, %v7005_v42  ;;  %v2587_v61 = vadd.f32 %v7009_v41, %v7032_v13 }
 0x2d5   : > { %v3532_v53 = vmax.f32 %v3484_v29, 0.0  ;;  %v2983_v27 = vpop.f32.mrf.mxu1  ;;  %v3580_v39 = vpack.c.bf16 %v3534_v9, %v3533_v59  ;;  %v3489_v47 = vadd.f32 %v5333_v30, %v3161_v50  ;;  %v2584_v9 = vadd.f32 %v7001_v51, %v7032_v13 }
 0x2d6   : > { %v3308_v63 = vpop.f32.mrf.mxu0  ;;  %v3160_v16 = vadd.f32 %v2983_v27, %v2563_v20 }
 0x2d7   : > { %v3579_v19 = vpack.c.bf16 %v3532_v53, %v3531_v8  ;;  %v5277_v5 = vpop.f32.mrf.mxu1  ;;  %v3487_v24 = vadd.f32 %v3308_v63, %v3159_v23  ;;  %v3537_v30 = vmax.f32 %v3489_v47, 0.0  ;;  %v2579_v8 = vadd.f32 %v7032_v13, %v7015_v7 }
 0x2d8   : > { %v5334_v4 = vpop.f32.mrf.mxu0  ;;  %v3165_v63 = vadd.f32 %v5277_v5, %v2584_v9  ;;  %v2603_v5 = vadd.f32 %v7025_v0, %v7032_v13 }
 0x2d9   : > { %v3490_v31 = vadd.f32 %v5334_v4, %v3162_v32  ;;  %v2996_v22 = vpop.f32.mrf.mxu1  ;;  %5379 = vmatprep.mubr.msk.bf16.mxu1 %vm2295_vm2, %v3579_v19  ;;  %v3535_v55 = vmax.f32 %v3487_v24, 0.0  ;;  %v2592_v24 = vadd.f32 %v7032_v13, %v7023_v49 }
 0x2da   : > { %v3311_v60 = vpop.f32.mrf.mxu0  ;;  %5380 = vmatmul.mubr.msk.bf16.vlgmr.msra.gmra.mxu1 %vm2295_vm2, %v3580_v39  ;;  %v3163_v53 = vadd.f32 %v2996_v22, %v2576_v46 }
 0x2db   : > { %v3488_v35 = vadd.f32 %v3311_v60, %v3160_v16  ;;  %v5278_v54 = vpop.f32.mrf.mxu1  ;;  %v3538_v12 = vmax.f32 %v3490_v31, 0.0  ;;  %v2600_v60 = vadd.f32 %v7019_v3, %v7032_v13 }
 0x2dc   : > { %v5337_v25 = vpop.f32.mrf.mxu0  ;;  %v3166_v2 = vadd.f32 %v5278_v54, %v2587_v61 }
 0x2dd   : > { %v3536_v45 = vmax.f32 %v3488_v35, 0.0  ;;  %v2999_v29 = vpop.f32.mrf.mxu1  ;;  %v3582_v42 = vpack.c.bf16 %v3538_v12, %v3537_v30  ;;  %v3493_v50 = vadd.f32 %v5337_v25, %v3165_v63  ;;  %v2595_v12 = vadd.f32 %v7032_v13, %v7027_v43 }
 0x2de   : > { %v3324_v37 = vpop.f32.mrf.mxu0  ;;  %v3164_v23 = vadd.f32 %v2999_v29, %v2579_v8  ;;  %v2616_v43 = vadd.f32 %v6933_v62, %v7032_v13 }
 0x2df   : > { %v3581_v27 = vpack.c.bf16 %v3536_v45, %v3535_v55  ;;  %v5281_v59 = vpop.f32.mrf.mxu1  ;;  %v3491_v41 = vadd.f32 %v3324_v37, %v3163_v53  ;;  %v3541_v35 = vmax.f32 %v3493_v50, 0.0 }
 0x2e0   : > { %v5338_v20 = vpop.f32.mrf.mxu0  ;;  %v3169_v45 = vadd.f32 %v5281_v59, %v2600_v60 }
 0x2e1   : > { %v3494_v19 = vadd.f32 %v5338_v20, %v3166_v2  ;;  %v3012_v32 = vpop.f32.mrf.mxu1  ;;  %5383 = vmatprep.mubr.msk.bf16.mxu1 %vm2295_vm2, %v3581_v27  ;;  %v3539_v31 = vmax.f32 %v3491_v41, 0.0  ;;  %v2608_v2 = vadd.f32 %v7032_v13, %v6935_v11 }
 0x2e2   : > { %v3327_v51 = vpop.f32.mrf.mxu0  ;;  %5384 = vmatmul.mubr.msk.bf16.gmra.mxu1 %vm2295_vm2, %v3582_v42  ;;  %v3167_v25 = vadd.f32 %v3012_v32, %v2592_v24  ;;  %v2619_v42 = vadd.f32 %v6937_v48, %v7032_v13  ;;  %v2611_v32 = vadd.f32 %v7032_v13, %v6939_v26  ;;  %v2632_v26 = vadd.f32 %v6941_v18, %v7032_v13 }
 0x2e3   : > { %v3492_v39 = vadd.f32 %v3327_v51, %v3164_v23  ;;  %v5282_v4 = vpop.f32.mrf.mxu1  ;;  %v3542_v7 = vmax.f32 %v3494_v19, 0.0 }
 0x2e4   : > { %v5341_v16 = vpop.f32.mrf.mxu0  ;;  %v3170_v61 = vadd.f32 %v5282_v4, %v2603_v5 }
 0x2e5   : > { %v3540_v22 = vmax.f32 %v3492_v39, 0.0  ;;  %v3015_v47 = vpop.f32.mrf.mxu1  ;;  %v3584_v49 = vpack.c.bf16 %v3542_v7, %v3541_v35  ;;  %v3497_v8 = vadd.f32 %v5341_v16, %v3169_v45 }
 0x2e6   : > { %v3340_v54 = vpop.f32.mrf.mxu0  ;;  %v3168_v9 = vadd.f32 %v3015_v47, %v2595_v12 }
 0x2e7   : > { %v3583_v46 = vpack.c.bf16 %v3540_v22, %v3539_v31  ;;  %v5285_v55 = vpop.f32.mrf.mxu1  ;;  %v3495_v0 = vadd.f32 %v3340_v54, %v3167_v25  ;;  %v3545_v50 = vmax.f32 %v3497_v8, 0.0  ;;  %v2624_v25 = vadd.f32 %v7032_v13, %v6943_v10 }
 0x2e8   : > { %v5342_v29 = vpop.f32.mrf.mxu0  ;;  %v3173_v23 = vadd.f32 %v5285_v55, %v2616_v43 }
 0x2e9   : > { %v3498_v30 = vadd.f32 %v5342_v29, %v3170_v61  ;;  %v3028_v37 = vpop.f32.mrf.mxu1  ;;  %5387 = vmatprep.mubr.msk.bf16.mxu1 %vm2295_vm2, %v3583_v46  ;;  %v3543_v20 = vmax.f32 %v3495_v0, 0.0  ;;  %v2635_v46 = vadd.f32 %v6945_v21, %v7032_v13  ;;  %v2627_v0 = vadd.f32 %v7032_v13, %v6947_v58 }
 0x2ea   : > { %v3343_v3 = vpop.f32.mrf.mxu0  ;;  %5388 = vmatmul.mubr.msk.bf16.gmra.mxu1 %vm2295_vm2, %v3584_v49  ;;  %v3171_v62 = vadd.f32 %v3028_v37, %v2608_v2 }
 0x2eb   : > { %v3496_v53 = vadd.f32 %v3343_v3, %v3168_v9  ;;  %v5286_v27 = vpop.f32.mrf.mxu1  ;;  %v3546_v59 = vmax.f32 %v3498_v30, 0.0 }
 0x2ec   : > { %v5345_v63 = vpop.f32.mrf.mxu0  ;;  %v3174_v4 = vadd.f32 %v5286_v27, %v2619_v42 }
 0x2ed   : > { %v3544_v41 = vmax.f32 %v3496_v53, 0.0  ;;  %v3031_v19 = vpop.f32.mrf.mxu1  ;;  %v3501_v7 = vadd.f32 %v5345_v63, %v3173_v23  ;;  %v3586_v11 = vpack.c.bf16 %v3546_v59, %v3545_v50  ;;  %v2648_v63 = vadd.f32 %v6949_v40, %v7032_v13 }
 0x2ee   : > { %v3356_v51 = vpop.f32.mrf.mxu0  ;;  %v3172_v5 = vadd.f32 %v3031_v19, %v2611_v32  ;;  %v2651_v19 = vadd.f32 %v6957_v38, %v7032_v13 }
 0x2ef   : > { %v3585_v39 = vpack.c.bf16 %v3544_v41, %v3543_v20  ;;  %v5289_v16 = vpop.f32.mrf.mxu1  ;;  %v3499_v31 = vadd.f32 %v3356_v51, %v3171_v62  ;;  %v3549_v60 = vmax.f32 %v3501_v7, 0.0  ;;  %v2640_v41 = vadd.f32 %v7032_v13, %v6954_v33 }
 0x2f0   : > { %v5346_v24 = vpop.f32.mrf.mxu0  ;;  %v3177_v45 = vadd.f32 %v5289_v16, %v2632_v26  ;;  %v2643_v7 = vadd.f32 %v7032_v13, %v6962_v34 }
 0x2f1   : > { %v3502_v22 = vadd.f32 %v5346_v24, %v3174_v4  ;;  %v3044_v48 = vpop.f32.mrf.mxu1  ;;  %5391 = vmatprep.mubr.msk.bf16.mxu1 %vm2295_vm2, %v3585_v39  ;;  %v3547_v55 = vmax.f32 %v3499_v31, 0.0 }
 0x2f2   : > { %v3359_v47 = vpop.f32.mrf.mxu0  ;;  %5392 = vmatmul.mubr.msk.bf16.gmra.mxu1 %vm2295_vm2, %v3586_v11  ;;  %v3175_v30 = vadd.f32 %v3044_v48, %v2624_v25  ;;  %v2656_v25 = vadd.f32 %v7032_v13, %v6971_v14 }
 0x2f3   : > { %v3550_v35 = vmax.f32 %v3502_v22, 0.0  ;;  %v3500_v54 = vadd.f32 %v3359_v47, %v3172_v5  ;;  %v5290_v12 = vpop.f32.mrf.mxu1 }
 0x2f4   : > { %v5349_v61 = vpop.f32.mrf.mxu0  ;;  %v3178_v8 = vadd.f32 %v5290_v12, %v2635_v46  ;;  %v2667_v46 = vadd.f32 %v6977_v1, %v7032_v13 }
 0x2f5   : > { %v3588_v49 = vpack.c.bf16 %v3550_v35, %v3549_v60  ;;  %v3548_v29 = vmax.f32 %v3500_v54, 0.0  ;;  %v3047_v9 = vpop.f32.mrf.mxu1  ;;  %v3505_v3 = vadd.f32 %v5349_v61, %v3177_v45  ;;  %v2664_v60 = vadd.f32 %v6967_v17, %v7032_v13 }
 0x2f6   : > { %v3372_v18 = vpop.f32.mrf.mxu0  ;;  %v3176_v10 = vadd.f32 %v3047_v9, %v2627_v0  ;;  %v2659_v0 = vadd.f32 %v7032_v13, %v6979_v57 }
 0x2f7   : > { %v3587_v37 = vpack.c.bf16 %v3548_v29, %v3547_v55  ;;  %v5293_v43 = vpop.f32.mrf.mxu1  ;;  %v3503_v27 = vadd.f32 %v3372_v18, %v3175_v30  ;;  %v3553_v58 = vmax.f32 %v3505_v3, 0.0 }
 0x2f8   : > { %v5350_v53 = vpop.f32.mrf.mxu0  ;;  %v3181_v51 = vadd.f32 %v5293_v43, %v2648_v63 }
 0x2f9   : > { %v3506_v2 = vadd.f32 %v5350_v53, %v3178_v8  ;;  %v3060_v21 = vpop.f32.mrf.mxu1  ;;  %5395 = vmatprep.mubr.msk.bf16.mxu1 %vm2295_vm2, %v3587_v37  ;;  %v3551_v50 = vmax.f32 %v3503_v27, 0.0 }
 0x2fa   : > { %v3375_v59 = vpop.f32.mrf.mxu0  ;;  %5396 = vmatmul.mubr.msk.bf16.gmra.mxu1 %vm2295_vm2, %v3588_v49  ;;  %v3179_v16 = vadd.f32 %v3060_v21, %v2640_v41 }
 0x2fb   : > { %v3554_v42 = vmax.f32 %v3506_v2, 0.0  ;;  %v3504_v20 = vadd.f32 %v3375_v59, %v3176_v10  ;;  %v5294_v23 = vpop.f32.mrf.mxu1  ;;  %v2680_v2 = vadd.f32 %v6981_v6, %v7032_v13 }
 0x2fc   : > { %v5353_v32 = vpop.f32.mrf.mxu0  ;;  %v3182_v24 = vadd.f32 %v5294_v23, %v2651_v19 }
 0x2fd   : > { %v3590_v62 = vpack.c.bf16 %v3554_v42, %v3553_v58  ;;  %v3552_v39 = vmax.f32 %v3504_v20, 0.0  ;;  %v3063_v4 = vpop.f32.mrf.mxu1  ;;  %v3509_v5 = vadd.f32 %v5353_v32, %v3181_v51  ;;  %v2672_v58 = vadd.f32 %v7032_v13, %v6983_v56 }
 0x2fe   : > { %v3388_v40 = vpop.f32.mrf.mxu0  ;;  %v3180_v33 = vadd.f32 %v3063_v4, %v2643_v7  ;;  %v2683_v42 = vadd.f32 %v6985_v36, %v7032_v13  ;;  %v2675_v51 = vadd.f32 %v7032_v13, %v6987_v52  ;;  %v2696_v52 = vadd.f32 %v6989_v44, %v7032_v13 }
 0x2ff   : > { %v3589_v11 = vpack.c.bf16 %v3552_v39, %v3551_v50  ;;  %v5297_v31 = vpop.f32.mrf.mxu1  ;;  %v3507_v48 = vadd.f32 %v3388_v40, %v3179_v16  ;;  %v3557_v34 = vmax.f32 %v3509_v5, 0.0 }
 0x300   : > { %v5354_v22 = vpop.f32.mrf.mxu0  ;;  %v3185_v45 = vadd.f32 %v5297_v31, %v2664_v60 }
 0x301   : > { %v3510_v47 = vadd.f32 %v5354_v22, %v3182_v24  ;;  %v3076_v38 = vpop.f32.mrf.mxu1  ;;  %5399 = vmatprep.mubr.msk.bf16.mxu1 %vm2295_vm2, %v3589_v11  ;;  %v3555_v55 = vmax.f32 %v3507_v48, 0.0 }
 0x302   : > { %v3391_v26 = vpop.f32.mrf.mxu0  ;;  %5400 = vmatmul.mubr.msk.bf16.gmra.mxu1 %vm2295_vm2, %v3590_v62  ;;  %v3183_v18 = vadd.f32 %v3076_v38, %v2656_v25 }
 0x303   : > { %v3558_v35 = vmax.f32 %v3510_v47, 0.0  ;;  %v3508_v54 = vadd.f32 %v3391_v26, %v3180_v33  ;;  %v5298_v12 = vpop.f32.mrf.mxu1  ;;  %v5597_v47 = vld [vmem:[%s5901_s12 + $0x8] sm:$0xff]   ;;  %v7118_v26 = vld [vmem:[%s5901_s12 + $0x10] sm:$0xff]  }
 0x304   : > { %v5357_v61 = vpop.f32.mrf.mxu0  ;;  %v3186_v37 = vadd.f32 %v5298_v12, %v2667_v46  ;;  %v3923_v38 = vunpack.c.h.bf16 %v5597_v47  ;;  %v3924_v60 = vunpack.c.l.bf16 %v7118_v26 }
 0x305   : > { %v3592_v49 = vpack.c.bf16 %v3558_v35, %v3557_v34  ;;  %v3556_v29 = vmax.f32 %v3508_v54, 0.0  ;;  %v3079_v9 = vpop.f32.mrf.mxu1  ;;  %v3513_v8 = vadd.f32 %v5357_v61, %v3185_v45  ;;  %v2688_v34 = vadd.f32 %v7032_v13, %v6991_v28  ;;  %v7517_v61 = vld [vmem:[#allocation8_spill] sm:$0xff] }
 0x306   : > { %v3404_v17 = vpop.f32.mrf.mxu0  ;;  %v3184_v14 = vadd.f32 %v3079_v9, %v2659_v0  ;;  %v2699_v35 = vadd.f32 %v6993_v15, %v7032_v13  ;;  %v4022_v28 = vrot.slane %v3923_v38, 1 }
 0x307   : > { %v3591_v30 = vpack.c.bf16 %v3556_v29, %v3555_v55  ;;  %v5301_v3 = vpop.f32.mrf.mxu1  ;;  %v3511_v53 = vadd.f32 %v3404_v17, %v3183_v18  ;;  %v3561_v57 = vmax.f32 %v3513_v8, 0.0  ;;  %v2691_v55 = vadd.f32 %v7032_v13, %v7517_v61  ;;  %v5609_v61 = vld [vmem:[%s5901_s12 + $0x68] sm:$0xff]  }
 0x308   : > { %v5358_v43 = vpop.f32.mrf.mxu0  ;;  %v3189_v41 = vadd.f32 %v5301_v3, %v2680_v2 }
 0x309   : > { %v3514_v10 = vadd.f32 %v5358_v43, %v3186_v37  ;;  %v3092_v1 = vpop.f32.mrf.mxu1  ;;  %5403 = vmatprep.mubr.msk.bf16.mxu1 %vm2295_vm2, %v3591_v30  ;;  %v3559_v23 = vmax.f32 %v3511_v53, 0.0  ;;  %v7127_v30 = vrot.slane %v3924_v60, 1  ;;  %v7185_v60 = vld [vmem:[%s5901_s12 + $0x48] sm:$0xff]  }
 0x30a   : > { %v3407_v27 = vpop.f32.mrf.mxu0  ;;  %5404 = vmatmul.mubr.msk.bf16.gmra.mxu1 %vm2295_vm2, %v3592_v49  ;;  %v3187_v62 = vadd.f32 %v3092_v1, %v2672_v58 }
 0x30b   : > { %v3562_v21 = vmax.f32 %v3514_v10, 0.0  ;;  %v3512_v59 = vadd.f32 %v3407_v27, %v3184_v14  ;;  %v5302_v63 = vpop.f32.mrf.mxu1  ;;  %v5599_v10 = vld [vmem:[%s5901_s12 + $0x20] sm:$0xff]   ;;  %v7133_v27 = vld [vmem:[%s5901_s12 + $0x28] sm:$0xff]  }
 0x30c   : > { %v5361_v20 = vpop.f32.mrf.mxu0  ;;  %v3190_v4 = vadd.f32 %v5302_v63, %v2683_v42  ;;  %v3929_v1 = vunpack.c.h.bf16 %v5599_v10  ;;  %v3930_v2 = vunpack.c.l.bf16 %v7133_v27  ;;  %v7138_v63 = vsel %vm2185_vm0, %v4022_v28, %v7127_v30 }
 0x30d   : > { %v3594_v19 = vpack.c.bf16 %v3562_v21, %v3561_v57  ;;  %v3560_v32 = vmax.f32 %v3512_v59, 0.0  ;;  %v3095_v50 = vpop.f32.mrf.mxu1  ;;  %v3517_v7 = vadd.f32 %v5361_v20, %v3189_v41  ;;  %v3928_v58 = vunpack.c.l.bf16 %v5599_v10  ;;  %v7141_v20 = vld [vmem:[%s5901_s12 + $0x18] sm:$0xff]  }
 0x30e   : > { %v3420_v6 = vpop.f32.mrf.mxu0  ;;  %v3188_v16 = vadd.f32 %v3095_v50, %v2675_v51  ;;  %v4033_v41 = vrot.slane %v3929_v1, 1  ;;  %v7151_v51 = vld [vmem:[%s5901_s12 + $0x30] sm:$0xff]   ;;  %v3947_v28 = vunpack.c.h.bf16 %v5609_v61 }
 0x30f   : > { %v3593_v39 = vpack.c.bf16 %v3560_v32, %v3559_v23  ;;  %v5305_v40 = vpop.f32.mrf.mxu1  ;;  %v3515_v36 = vadd.f32 %v3420_v6, %v3187_v62  ;;  %v3565_v31 = vmax.f32 %v3517_v7, 0.0  ;;  %v3927_v23 = vunpack.c.h.bf16 %v7141_v20  ;;  %v5603_v62 = vld [vmem:[%s5901_s12 + $0x38] sm:$0xff]  }
 0x310   : > { %v5362_v56 = vpop.f32.mrf.mxu0  ;;  %v3193_v25 = vadd.f32 %v5305_v40, %v2696_v52  ;;  %v4031_v32 = vrot.slane %v3928_v58, 1  ;;  %v3933_v6 = vunpack.c.h.bf16 %v7151_v51 }
 0x311   : > { %v3518_v11 = vadd.f32 %v5362_v56, %v3190_v4  ;;  %v3108_v24 = vpop.f32.mrf.mxu1  ;;  %5407 = vmatprep.mubr.msk.bf16.mxu1 %vm2295_vm2, %v3593_v39  ;;  %v3563_v12 = vmax.f32 %v3515_v36, 0.0  ;;  %v7148_v50 = vrot.slane %v3927_v23, 1  ;;  %v3934_v39 = vunpack.c.l.bf16 %v5603_v62 }
 0x312   : > { %v3423_v5 = vpop.f32.mrf.mxu0  ;;  %5408 = vmatmul.mubr.msk.bf16.gmra.mxu1 %vm2295_vm2, %v3594_v19  ;;  %v3191_v29 = vadd.f32 %v3108_v24, %v2688_v34  ;;  %v7144_v19 = vrot.slane %v3930_v2, 1  ;;  %v7163_v40 = vrot.slane %v3933_v6, 1  ;;  %v3935_v36 = vunpack.c.h.bf16 %v5603_v62  ;;  %v7518_v2 = vld [vmem:[#allocation9_spill] sm:$0xff] }
 0x313   : > { %v3566_v22 = vmax.f32 %v3518_v11, 0.0  ;;  %v3516_v33 = vadd.f32 %v3423_v5, %v3188_v16  ;;  %v5306_v48 = vpop.f32.mrf.mxu1  ;;  %v7161_v7 = vsel %vm2185_vm0, %v7148_v50, %v4031_v32  ;;  %v4043_v56 = vrot.slane %v3934_v39, 1  ;;  %v7170_v11 = vld [vmem:[%s5901_s12 + $0x40] sm:$0xff]   ;;  %v7233_v62 = vld [vmem:[%s5901_s12 + $0x78] sm:$0xff]  }
 0x314   : > { %v5365_v54 = vpop.f32.mrf.mxu0  ;;  %v3194_v0 = vadd.f32 %v5306_v48, %v2699_v35  ;;  %v7157_v4 = vsel %vm2185_vm0, %v4033_v41, %v7144_v19  ;;  %v3936_v24 = vunpack.c.l.bf16 %v7170_v11  ;;  %v4045_v5 = vrot.slane %v3935_v36, 1  ;;  %v7520_v41 = vld [vmem:[#allocation11_spill] sm:$0xff] }
 0x315   : > { %v3596_v44 = vpack.c.bf16 %v3566_v22, %v3565_v31  ;;  %v3564_v46 = vmax.f32 %v3516_v33, 0.0  ;;  %v3111_v45 = vpop.f32.mrf.mxu1  ;;  %v3521_v17 = vadd.f32 %v5365_v54, %v3193_v25  ;;  %v7167_v16 = vsel %vm2185_vm0, %v7163_v40, %v4043_v56  ;;  %v5605_v31 = vld [vmem:[%s5901_s12 + $0x50] sm:$0xff]   ;;  %v7177_v33 = vld [vmem:[%s5901_s12 + $0x58] sm:$0xff]  }
 0x316   : > { %v3436_v49 = vpop.f32.mrf.mxu0  ;;  %v3192_v15 = vadd.f32 %v3111_v45, %v2691_v55  ;;  %v7173_v52 = vrot.slane %v3936_v24, 1  ;;  %v3941_v22 = vunpack.c.h.bf16 %v5605_v31  ;;  %v3942_v48 = vunpack.c.l.bf16 %v7177_v33 }
 0x317   : > { %v3595_v9 = vpack.c.bf16 %v3564_v46, %v3563_v12  ;;  %v3519_v37 = vadd.f32 %v3436_v49, %v3191_v29  ;;  %v3569_v43 = vmax.f32 %v3521_v17, 0.0  ;;  %v3940_v47 = vunpack.c.l.bf16 %v5605_v31  ;;  %v7521_v31 = vld [vmem:[#allocation12_spill] sm:$0xff] }
 0x318   : > { %v5366_v18 = vpop.f32.mrf.mxu0  ;;  %v7182_v38 = vsel %vm2185_vm0, %v4045_v5, %v7173_v52  ;;  %v3939_v34 = vunpack.c.h.bf16 %v7185_v60  ;;  %v4057_v35 = vrot.slane %v3941_v22, 1  ;;  %v7188_v54 = vrot.slane %v3942_v48, 1 }
 0x319   : > { %v3522_v8 = vadd.f32 %v5366_v18, %v3194_v0  ;;  %5411 = vmatprep.mubr.msk.bf16.mxu1 %vm2295_vm2, %v3595_v9  ;;  %v3567_v57 = vmax.f32 %v3519_v37, 0.0  ;;  %v4055_v12 = vrot.slane %v3940_v47, 1  ;;  %v3946_v55 = vunpack.c.l.bf16 %v5609_v61  ;;  %v5309_v0 = vpop.f32.mrf.mxu1  ;;  %v7212_v18 = vld [vmem:[%s5901_s12 + $0x70] sm:$0xff]  }
 0x31a   : > { %v3439_v3 = vpop.f32.mrf.mxu0  ;;  %5412 = vmatmul.mubr.msk.bf16.gmra.mxu1 %vm2295_vm2, %v3596_v44  ;;  %v7190_v25 = vrot.slane %v3939_v34, 1  ;;  %v7193_v44 = vld [vmem:[%s5901_s12 + $0x60] sm:$0xff]   ;;  %v7199_v45 = vsel %vm2185_vm0, %v4057_v35, %v7188_v54  ;;  %v2715_v32 = vadd.f32 %v7520_v41, %v7032_v13  ;;  %v3951_v39 = vunpack.c.h.bf16 %v7233_v62 }
 0x31b   : > { %v3570_v14 = vmax.f32 %v3522_v8, 0.0  ;;  %v3520_v53 = vadd.f32 %v3439_v3, %v3192_v15  ;;  %v3945_v46 = vunpack.c.h.bf16 %v7193_v44  ;;  %v4067_v9 = vrot.slane %v3946_v55, 1  ;;  %v3124_v37 = vpop.f32.mrf.mxu1 }
 0x31c   : > { %v7203_v49 = vsel %vm2185_vm0, %v7190_v25, %v4055_v12  ;;  %v3948_v15 = vunpack.c.l.bf16 %v7212_v18  ;;  %v4069_v8 = vrot.slane %v3947_v28, 1  ;;  %v2707_v22 = vadd.f32 %v7032_v13, %v7521_v31 }
 0x31d   : > { %v3598_v21 = vpack.c.bf16 %v3570_v14, %v3569_v43  ;;  %v3568_v59 = vmax.f32 %v3520_v53, 0.0  ;;  %v7205_v29 = vrot.slane %v3945_v46, 1  ;;  %v5611_v43 = vld [vmem:[%s5901_s12 + $0x80] sm:$0xff]   ;;  %v7219_v53 = vld [vmem:[%s5901_s12 + $0x88] sm:$0xff]   ;;  %v5310_v1 = vpop.f32.mrf.mxu1 }
 0x31e   : > { %v7215_v3 = vrot.slane %v3948_v15, 1  ;;  %v3953_v14 = vunpack.c.h.bf16 %v5611_v43  ;;  %v3954_v10 = vunpack.c.l.bf16 %v7219_v53  ;;  %v3198_v47 = vadd.f32 %v5310_v1, %v2715_v32  ;;  %v5615_v15 = vld [vmem:[%s5901_s12 + $0x98] sm:$0xff]  }
 0x31f   : > { %v3597_v42 = vpack.c.bf16 %v3568_v59, %v3567_v57  ;;  %v7209_v17 = vsel %vm2185_vm0, %v7205_v29, %v4067_v9  ;;  %v2712_v57 = vadd.f32 %v7518_v2, %v7032_v13  ;;  %v3127_v24 = vpop.f32.mrf.mxu1  ;;  %v7240_v9 = vrot.slane %v3951_v39, 1 }
 0x320   : > { %v7226_v58 = vsel %vm2185_vm0, %v4069_v8, %v7215_v3  ;;  %v4081_v56 = vrot.slane %v3953_v14, 1  ;;  %v7236_v36 = vrot.slane %v3954_v10, 1  ;;  %v3196_v46 = vadd.f32 %v3127_v24, %v2707_v22  ;;  %v7524_v22 = vld [vmem:[#allocation15_spill] sm:$0xff] }
 0x321   : > { %5415 = vmatprep.mubr.msk.bf16.mxu1 %vm2295_vm2, %v3597_v42  ;;  %v7519_v42 = vld [vmem:[#allocation10_spill] sm:$0xff]  ;;  %v3197_v6 = vadd.f32 %v5309_v0, %v2712_v57  ;;  %v7243_v0 = vld [vmem:[%s5901_s12 + $0x90] sm:$0xff]   ;;  %v3958_v8 = vunpack.c.l.bf16 %v5615_v15 }
 0x322   : > { %5416 = vmatmul.mubr.msk.bf16.gmra.mxu1 %vm2295_vm2, %v3598_v21  ;;  %v3952_v21 = vunpack.c.l.bf16 %v5611_v43  ;;  %v2704_v23 = vadd.f32 %v7032_v13, %v7519_v42  ;;  %v3957_v28 = vunpack.c.h.bf16 %v7243_v0  ;;  %v7249_v14 = vsel %vm2185_vm0, %v4081_v56, %v7236_v36 }
 0x324   : > { %v3195_v48 = vadd.f32 %v3124_v37, %v2704_v23  ;;  %v4079_v35 = vrot.slane %v3952_v21, 1  ;;  %v7522_v37 = vld [vmem:[#allocation13_spill] sm:$0xff]  ;;  %v7523_v21 = vld [vmem:[#allocation14_spill] sm:$0xff]  ;;  %v7259_v24 = vrot.slane %v3957_v28, 1 }
 0x325   : > { %v2728_v10 = vadd.f32 %v7522_v37, %v7032_v13 }
 0x326   : > { %v7257_v23 = vsel %vm2185_vm0, %v7240_v9, %v4079_v35 }
 0x34f   : > { %v5369_v59 = vpop.f32.mrf.mxu0 }
 0x350   : > { %v3525_v34 = vadd.f32 %v5369_v59, %v3197_v6  ;;  %v2720_v59 = vadd.f32 %v7032_v13, %v7523_v21  ;;  %v3959_v21 = vunpack.c.h.bf16 %v5615_v15 }
 0x351   : > { %v3452_v5 = vpop.f32.mrf.mxu0 }
 0x352   : > { %v3523_v61 = vadd.f32 %v3452_v5, %v3195_v48  ;;  %v3573_v1 = vmax.f32 %v3525_v34, 0.0  ;;  %v4091_v5 = vrot.slane %v3958_v8, 1  ;;  %v2731_v48 = vadd.f32 %v7524_v22, %v7032_v13 }
 0x353   : > { %v5370_v12 = vpop.f32.mrf.mxu0 }
 0x354   : > { %v3526_v55 = vadd.f32 %v5370_v12, %v3198_v47  ;;  %v3571_v41 = vmax.f32 %v3523_v61, 0.0  ;;  %v7269_v8 = vsel %vm2185_vm0, %v7259_v24, %v4091_v5 }
 0x355   : > { %v3455_v43 = vpop.f32.mrf.mxu0 }
 0x356   : > { %v3574_v2 = vmax.f32 %v3526_v55, 0.0  ;;  %v3524_v57 = vadd.f32 %v3455_v43, %v3196_v46  ;;  %v5313_v42 = vpop.f32.mrf.mxu1  ;;  %v7525_v55 = vld [vmem:[#allocation16_spill] sm:$0xff] }
 0x357   : > { %v3201_v39 = vadd.f32 %v5313_v42, %v2728_v10  ;;  %v5373_v56 = vpop.f32.mrf.mxu0  ;;  %v2723_v35 = vadd.f32 %v7032_v13, %v7525_v55  ;;  %v3926_v55 = vunpack.c.l.bf16 %v7141_v20 }
 0x358   : > { %v3600_v32 = vpack.c.bf16 %v3574_v2, %v3573_v1  ;;  %v3572_v6 = vmax.f32 %v3524_v57, 0.0  ;;  %v3140_v31 = vpop.f32.mrf.mxu1 }
 0x359   : > { %v3199_v34 = vadd.f32 %v3140_v31, %v2720_v59  ;;  %v3468_v12 = vpop.f32.mrf.mxu0  ;;  %v3529_v61 = vadd.f32 %v5373_v56, %v3201_v39  ;;  %v7272_v59 = vld [vmem:[%s5901_s12 + $0xa0] sm:$0xff]   ;;  %v4093_v31 = vrot.slane %v3959_v21, 1  ;;  %v3931_v21 = vunpack.c.h.bf16 %v7133_v27 }
 0x35a   : > { %v3599_v47 = vpack.c.bf16 %v3572_v6, %v3571_v41  ;;  %v5314_v46 = vpop.f32.mrf.mxu1  ;;  %v3960_v13 = vunpack.c.l.bf16 %v7272_v59 }
 0x35b   : > { %v3202_v43 = vadd.f32 %v5314_v46, %v2731_v48  ;;  %v5374_v37 = vpop.f32.mrf.mxu0  ;;  %v3527_v10 = vadd.f32 %v3468_v12, %v3199_v34  ;;  %v3577_v42 = vmax.f32 %v3529_v61, 0.0  ;;  %v5617_v48 = vld [vmem:[%s5901_s12 + $0xb0] sm:$0xff]   ;;  %v7285_v34 = vld [vmem:[%s5901_s12 + $0xb8] sm:$0xff]   ;;  %v3925_v46 = vunpack.c.h.bf16 %v7118_v26 }
 0x35c   : > { %5419 = vmatprep.mubr.msk.bf16.mxu1 %vm2295_vm2, %v3599_v47  ;;  %v3143_v28 = vpop.f32.mrf.mxu1  ;;  %v7275_v5 = vrot.slane %v3960_v13, 1  ;;  %v3965_v47 = vunpack.c.h.bf16 %v5617_v48  ;;  %v3966_v12 = vunpack.c.l.bf16 %v7285_v34 }
 0x35d   : > { %5420 = vmatmul.mubr.msk.bf16.gmra.mxu1 %vm2295_vm2, %v3600_v32  ;;  %v3530_v1 = vadd.f32 %v5374_v37, %v3202_v43  ;;  %v3200_v2 = vadd.f32 %v3143_v28, %v2723_v35  ;;  %v3471_v57 = vpop.f32.mrf.mxu0  ;;  %v3575_v39 = vmax.f32 %v3527_v10, 0.0  ;;  %v3964_v35 = vunpack.c.l.bf16 %v5617_v48  ;;  %v7295_v28 = vld [vmem:[%s7502_s7] ss:$0 sm:$0xff] }
 0x35e   : > { %v7281_v15 = vsel %vm2185_vm0, %v4093_v31, %v7275_v5  ;;  %v4105_v61 = vrot.slane %v3965_v47, 1  ;;  %v7290_v43 = vrot.slane %v3966_v12, 1  ;;  %v4025_v10 = vrot.slane %v3925_v46, 1 }
 0x35f   : > { %v3578_v41 = vmax.f32 %v3530_v1, 0.0  ;;  %v3528_v6 = vadd.f32 %v3471_v57, %v3200_v2  ;;  %v7298_v1 = vld [vmem:[%s5901_s12 + $0xa8] sm:$0xff]   ;;  %v4027_v57 = vrot.slane %v3926_v55, 1  ;;  %v4103_v13 = vrot.slane %v3964_v35, 1 }
 0x360   : > { %v3963_v26 = vunpack.c.h.bf16 %v7298_v1  ;;  %v4026_v27 = vsel %vm2185_vm0, %v7127_v30, %v4025_v10  ;;  %v4037_v46 = vrot.slane %v3931_v21, 1 }
 0x361   : > { %v3602_v32 = vpack.c.bf16 %v3578_v41, %v3577_v42  ;;  %v3576_v56 = vmax.f32 %v3528_v6, 0.0  ;;  %v7305_v41 = vsel %vm2185_vm0, %v4105_v61, %v7290_v43  ;;  %v4030_v55 = vsel %vm2185_vm0, %v4027_v57, %v7148_v50 }
 0x362   : > { %v7307_v6 = vrot.slane %v3963_v26, 1  ;;  %v4038_v57 = vsel %vm2185_vm0, %v7144_v19, %v4037_v46 }
 0x363   : > { %v3601_v22 = vpack.c.bf16 %v3576_v56, %v3575_v39  ;;  %v7310_v39 = vld [vmem:[%s5901_s12 + $0xc0] sm:$0xff]   ;;  %v5621_v56 = vld [vmem:[%s5901_s12 + $0xc8] sm:$0xff]   ;;  %s4567_s12 = sshll.u32 %s325_s20, 7 }
 0x364   : > { %v3970_v31 = vunpack.c.l.bf16 %v5621_v56  ;;  %v7324_v61 = vsel %vm2185_vm0, %v7307_v6, %v4103_v13  ;;  %s7338_s24 = scalar_lea.vmem [#allocation5], %s4567_s12  ;;  %s5654_s12 = scalar_lea.vmem %s5653_s22, 4096 }
 0x365   : > { %5423 = vmatprep.mubr.msk.bf16.mxu1 %vm2295_vm2, %v3601_v22  ;;  %s4471_s26 = sshll.u32 %s7338_s24, 4  ;;  %s7443_s26 = int_to_ptr.vmem [resolvable:$true] %s4471_s26 }
 0x366   : > { %5424 = vmatmul.mubr.msk.bf16.gmra.mxu1 %vm2295_vm2, %v3602_v32  ;;  %v3969_v32 = vunpack.c.h.bf16 %v7310_v39  ;;  %s5648_s19 = scalar_lea.vmem %s7443_s26, 2048  ;;  %p5655_p0 = scmp.lt.s32.totalorder %s7443_s26, %s5653_s22 }
 0x367   : > { %p5649_p10 = scmp.ne.s32.totalorder %s7443_s26, %s5648_s19  ;;  %p5656_p1 = scmp.lt.s32.totalorder %s5654_s12, %s5648_s19 }
 0x368   : > { %v7329_v10 = vrot.slane %v3969_v32, 1  ;;  %v3932_v32 = vunpack.c.l.bf16 %v7151_v51 }
 0x369   : > { %p5650_p11 = pnand %p5649_p10, %p5824_p4  ;;  %p5657_p2 = por %p5656_p1, %p5655_p0 }
 0x36b   : > { %p5651_p13 = pneg %p5650_p11 }
 0x36d   : > { %p5658_p3 = pnand %p5657_p2, %p5651_p13 }
 0x39a   : > { %v5381_v37 = vpop.f32.mrf.mxu1 }
 0x39c   : > { %v3732_v2 = vpop.f32.mrf.mxu1 }
 0x39d   : > { %v3733_v20 = vadd.f32 %v7295_v28, %v3732_v2 }
 0x39e   : > { %v5382_v42 = vpop.f32.mrf.mxu1 }
 0x39f   : > { %v4167_v48 = vadd.f32 %v7138_v63, %v3733_v20  ;;  %v3744_v47 = vadd.f32 %v5382_v42, %v7295_v28  ;;  %v4115_v63 = vrot.slane %v3970_v31, 1 }
 0x3a0   : > { %v3735_v22 = vpop.f32.mrf.mxu1 }
 0x3a1   : > { %v3736_v12 = vadd.f32 %v7295_v28, %v3735_v22  ;;  %v4215_v2 = vmax.f32 %v4167_v48, 0.0  ;;  %v4170_v20 = vadd.f32 %v4030_v55, %v3744_v47  ;;  %v7343_v19 = vsel %vm2185_vm0, %v7329_v10, %v4115_v63 }
 0x3a2   : > { %v5385_v35 = vpop.f32.mrf.mxu1 }
 0x3a3   : > { %v4168_v37 = vadd.f32 %v4026_v27, %v3736_v12  ;;  %v3757_v30 = vadd.f32 %v5385_v35, %v7295_v28  ;;  %v4218_v12 = vmax.f32 %v4170_v20, 0.0  ;;  %v4039_v35 = vrot.slane %v3932_v32, 1 }
 0x3a4   : > { %v3748_v26 = vpop.f32.mrf.mxu1 }
 0x3a5   : > { %v4216_v21 = vmax.f32 %v4168_v37, 0.0  ;;  %v3749_v42 = vadd.f32 %v7295_v28, %v3748_v26  ;;  %v4173_v56 = vadd.f32 %v7157_v4, %v3757_v30 }
 0x3a6   : > { %v5386_v50 = vpop.f32.mrf.mxu1 }
 0x3a7   : > { %v4879_v13 = vpack.c.bf16 %v4216_v21, %v4215_v2  ;;  %v4171_v22 = vadd.f32 %v7161_v7, %v3749_v42  ;;  %v3760_v27 = vadd.f32 %v5386_v50, %v7295_v28  ;;  %v4221_v7 = vmax.f32 %v4173_v56, 0.0 }
 0x3a8   : > { %v3751_v31 = vpop.f32.mrf.mxu1  ;;  %v3937_v2 = vunpack.c.h.bf16 %v7170_v11  ;;  %v4042_v21 = vsel %vm2185_vm0, %v4039_v35, %v7163_v40  ;;  %v3938_v50 = vunpack.c.l.bf16 %v7185_v60 }
 0x3a9   : > { %4880 = vst [vmem:[%s7338_s24] sm:$0xff] %v4879_v13   ;;  %v4219_v48 = vmax.f32 %v4171_v22, 0.0  ;;  %v4174_v47 = vadd.f32 %v4038_v57, %v3760_v27 }
 0x3aa   : > { %v5389_v4 = vpop.f32.mrf.mxu1  ;;  %v4049_v56 = vrot.slane %v3937_v2, 1  ;;  %v4051_v11 = vrot.slane %v3938_v50, 1  ;;  %v3944_v50 = vunpack.c.l.bf16 %v7193_v44  ;;  %v3949_v44 = vunpack.c.h.bf16 %v7212_v18 }
 0x3ab   : > { %v4884_v46 = vpack.c.bf16 %v4219_v48, %v4218_v12  ;;  %v4222_v55 = vmax.f32 %v4174_v47, 0.0  ;;  %v3773_v30 = vadd.f32 %v5389_v4, %v7295_v28  ;;  %v3943_v12 = vunpack.c.h.bf16 %v7177_v33 }
 0x3ac   : > { %v3764_v51 = vpop.f32.mrf.mxu1 }
 0x3ad   : > { %4956 = vst [vmem:[%s7338_s24 + $0x8] sm:$0xff] %v4884_v46   ;;  %v4889_v37 = vpack.c.bf16 %v4222_v55, %v4221_v7  ;;  %v4177_v63 = vadd.f32 %v7167_v16, %v3773_v30  ;;  %v4050_v16 = vsel %vm2185_vm0, %v7173_v52, %v4049_v56  ;;  %v4061_v46 = vrot.slane %v3943_v12, 1 }
 0x3ae   : > { %v5390_v26 = vpop.f32.mrf.mxu1  ;;  %v4054_v55 = vsel %vm2185_vm0, %v4051_v11, %v7190_v25  ;;  %v4063_v11 = vrot.slane %v3944_v50, 1 }
 0x3af   : > { %4957 = vst [vmem:[%s7338_s24 + $0x10] sm:$0xff] %v4889_v37   ;;  %v4225_v27 = vmax.f32 %v4177_v63, 0.0 }
 0x3b0   : > { %v3767_v20 = vpop.f32.mrf.mxu1 }
 0x3b1   : > { %v3768_v42 = vadd.f32 %v7295_v28, %v3767_v20  ;;  %v4062_v20 = vsel %vm2185_vm0, %v7188_v54, %v4061_v46 }
 0x3b2   : > { %v5393_v57 = vpop.f32.mrf.mxu1 }
 0x3b3   : > { %v4176_v13 = vadd.f32 %v4042_v21, %v3768_v42 }
 0x3b4   : > { %v3780_v22 = vpop.f32.mrf.mxu1 }
 0x3b5   : > { %v4224_v32 = vmax.f32 %v4176_v13, 0.0  ;;  %v3781_v31 = vadd.f32 %v7295_v28, %v3780_v22 }
 0x3b6   : > { %v5394_v48 = vpop.f32.mrf.mxu1 }
 0x3b7   : > { %v4894_v40 = vpack.c.bf16 %v4225_v27, %v4224_v32  ;;  %v4179_v60 = vadd.f32 %v7182_v38, %v3781_v31  ;;  %v3792_v4 = vadd.f32 %v5394_v48, %v7295_v28 }
 0x3b8   : > { %v3783_v47 = vpop.f32.mrf.mxu1 }
 0x3b9   : > { %4958 = vst [vmem:[%s7338_s24 + $0x18] sm:$0xff] %v4894_v40   ;;  %v3784_v7 = vadd.f32 %v7295_v28, %v3783_v47  ;;  %v4227_v30 = vmax.f32 %v4179_v60, 0.0  ;;  %v4182_v26 = vadd.f32 %v4054_v55, %v3792_v4  ;;  %v4066_v47 = vsel %vm2185_vm0, %v4063_v11, %v7205_v29 }
 0x3ba   : > { %v5397_v35 = vpop.f32.mrf.mxu1  ;;  %v3950_v4 = vunpack.c.l.bf16 %v7233_v62  ;;  %v4073_v55 = vrot.slane %v3949_v44, 1 }
 0x3bb   : > { %v4180_v51 = vadd.f32 %v4050_v16, %v3784_v7  ;;  %v3805_v33 = vadd.f32 %v5397_v35, %v7295_v28  ;;  %v4230_v13 = vmax.f32 %v4182_v26, 0.0 }
 0x3bc   : > { %v3796_v37 = vpop.f32.mrf.mxu1  ;;  %v4075_v18 = vrot.slane %v3950_v4, 1 }
 0x3bd   : > { %v4228_v52 = vmax.f32 %v4180_v51, 0.0  ;;  %v3797_v2 = vadd.f32 %v7295_v28, %v3796_v37  ;;  %v4185_v63 = vadd.f32 %v7199_v45, %v3805_v33 }
 0x3be   : > { %v5398_v38 = vpop.f32.mrf.mxu1 }
 0x3bf   : > { %v4899_v21 = vpack.c.bf16 %v4228_v52, %v4227_v30  ;;  %v4183_v25 = vadd.f32 %v7203_v49, %v3797_v2  ;;  %v3808_v42 = vadd.f32 %v5398_v38, %v7295_v28  ;;  %v4233_v32 = vmax.f32 %v4185_v63, 0.0 }
 0x3c0   : > { %v3799_v57 = vpop.f32.mrf.mxu1  ;;  %v3955_v30 = vunpack.c.h.bf16 %v7219_v53 }
 0x3c1   : > { %4959 = vst [vmem:[%s7338_s24 + $0x20] sm:$0xff] %v4899_v21   ;;  %v4231_v56 = vmax.f32 %v4183_v25, 0.0  ;;  %v4186_v22 = vadd.f32 %v4062_v20, %v3808_v42  ;;  %v4078_v21 = vsel %vm2185_vm0, %v4075_v18, %v7240_v9 }
 0x3c2   : > { %v5401_v27 = vpop.f32.mrf.mxu1  ;;  %v4085_v20 = vrot.slane %v3955_v30, 1 }
 0x3c3   : > { %v4904_v31 = vpack.c.bf16 %v4231_v56, %v4230_v13  ;;  %v4234_v54 = vmax.f32 %v4186_v22, 0.0  ;;  %v3821_v49 = vadd.f32 %v5401_v27, %v7295_v28 }
 0x3c4   : > { %v3812_v12 = vpop.f32.mrf.mxu1  ;;  %v4086_v56 = vsel %vm2185_vm0, %v7236_v36, %v4085_v20  ;;  %v3962_v20 = vunpack.c.l.bf16 %v7298_v1 }
 0x3c5   : > { %4960 = vst [vmem:[%s7338_s24 + $0x28] sm:$0xff] %v4904_v31   ;;  %v4909_v45 = vpack.c.bf16 %v4234_v54, %v4233_v32  ;;  %v4189_v16 = vadd.f32 %v7209_v17, %v3821_v49  ;;  %v4074_v17 = vsel %vm2185_vm0, %v7215_v3, %v4073_v55  ;;  %v3956_v31 = vunpack.c.l.bf16 %v7243_v0 }
 0x3c6   : > { %v5402_v48 = vpop.f32.mrf.mxu1  ;;  %v3961_v0 = vunpack.c.h.bf16 %v7272_v59 }
 0x3c7   : > { %4961 = vst [vmem:[%s7338_s24 + $0x30] sm:$0xff] %v4909_v45   ;;  %v4237_v51 = vmax.f32 %v4189_v16, 0.0 }
 0x3c8   : > { %v3815_v40 = vpop.f32.mrf.mxu1 }
 0x3c9   : > { %v3816_v60 = vadd.f32 %v7295_v28, %v3815_v40  ;;  %v4087_v40 = vrot.slane %v3956_v31, 1 }
 0x3ca   : > { %v5405_v7 = vpop.f32.mrf.mxu1 }
 0x3cb   : > { %v4188_v46 = vadd.f32 %v4066_v47, %v3816_v60  ;;  %v4090_v4 = vsel %vm2185_vm0, %v4087_v40, %v7259_v24 }
 0x3cc   : > { %v3828_v35 = vpop.f32.mrf.mxu1 }
 0x3cd   : > { %v4236_v33 = vmax.f32 %v4188_v46, 0.0  ;;  %v3829_v37 = vadd.f32 %v7295_v28, %v3828_v35 }
 0x3ce   : > { %v5406_v26 = vpop.f32.mrf.mxu1 }
 0x3cf   : > { %v4914_v29 = vpack.c.bf16 %v4237_v51, %v4236_v33  ;;  %v4191_v62 = vadd.f32 %v7226_v58, %v3829_v37  ;;  %v3840_v2 = vadd.f32 %v5406_v26, %v7295_v28  ;;  %v4097_v51 = vrot.slane %v3961_v0, 1 }
 0x3d0   : > { %v3831_v52 = vpop.f32.mrf.mxu1 }
 0x3d1   : > { %4962 = vst [vmem:[%s7338_s24 + $0x38] sm:$0xff] %v4914_v29   ;;  %v3832_v38 = vadd.f32 %v7295_v28, %v3831_v52  ;;  %v4239_v50 = vmax.f32 %v4191_v62, 0.0  ;;  %v4194_v57 = vadd.f32 %v4078_v21, %v3840_v2  ;;  %v4098_v52 = vsel %vm2185_vm0, %v7275_v5, %v4097_v51 }
 0x3d2   : > { %v5409_v63 = vpop.f32.mrf.mxu1  ;;  %v4099_v21 = vrot.slane %v3962_v20, 1 }
 0x3d3   : > { %v4192_v25 = vadd.f32 %v4074_v17, %v3832_v38  ;;  %v3853_v53 = vadd.f32 %v5409_v63, %v7295_v28  ;;  %v4242_v11 = vmax.f32 %v4194_v57, 0.0  ;;  %v3967_v63 = vunpack.c.h.bf16 %v7285_v34 }
 0x3d4   : > { %v3844_v42 = vpop.f32.mrf.mxu1  ;;  %v4102_v5 = vsel %vm2185_vm0, %v4099_v21, %v7307_v6 }
 0x3d5   : > { %v4240_v3 = vmax.f32 %v4192_v25, 0.0  ;;  %v3845_v13 = vadd.f32 %v7295_v28, %v3844_v42  ;;  %v4197_v27 = vadd.f32 %v7249_v14, %v3853_v53  ;;  %v4109_v53 = vrot.slane %v3967_v63, 1 }
 0x3d6   : > { %v5410_v58 = vpop.f32.mrf.mxu1 }
 0x3d7   : > { %v4919_v22 = vpack.c.bf16 %v4240_v3, %v4239_v50  ;;  %v4195_v9 = vadd.f32 %v7257_v23, %v3845_v13  ;;  %v3856_v32 = vadd.f32 %v5410_v58, %v7295_v28  ;;  %v4245_v48 = vmax.f32 %v4197_v27, 0.0 }
 0x3d8   : > { %v3847_v54 = vpop.f32.mrf.mxu1  ;;  %v4110_v1 = vsel %vm2185_vm0, %v7290_v43, %v4109_v53 }
 0x3d9   : > { %4963 = vst [vmem:[%s7338_s24 + $0x40] sm:$0xff] %v4919_v22   ;;  %v4243_v12 = vmax.f32 %v4195_v9, 0.0  ;;  %v4198_v45 = vadd.f32 %v4086_v56, %v3856_v32  ;;  %v3968_v32 = vunpack.c.l.bf16 %v7310_v39 }
 0x3da   : > { %v5413_v49 = vpop.f32.mrf.mxu1 }
 0x3db   : > { %v4924_v44 = vpack.c.bf16 %v4243_v12, %v4242_v11  ;;  %v4246_v36 = vmax.f32 %v4198_v45, 0.0  ;;  %v3869_v23 = vadd.f32 %v5413_v49, %v7295_v28 }
 0x3dc   : > { %v3860_v47 = vpop.f32.mrf.mxu1 }
 0x3dd   : > { %4964 = vst [vmem:[%s7338_s24 + $0x48] sm:$0xff] %v4924_v44   ;;  %v4929_v14 = vpack.c.bf16 %v4246_v36, %v4245_v48  ;;  %v4201_v7 = vadd.f32 %v7269_v8, %v3869_v23 }
 0x3de   : > { %v5414_v16 = vpop.f32.mrf.mxu1 }
 0x3df   : > { %4965 = vst [vmem:[%s7338_s24 + $0x50] sm:$0xff] %v4929_v14   ;;  %v4249_v37 = vmax.f32 %v4201_v7, 0.0 }
 0x3e0   : > { %v3863_v60 = vpop.f32.mrf.mxu1 }
 0x3e1   : > { %v3864_v46 = vadd.f32 %v7295_v28, %v3863_v60 }
 0x3e2   : > { %v5417_v55 = vpop.f32.mrf.mxu1 }
 0x3e3   : > { %v4200_v35 = vadd.f32 %v4090_v4, %v3864_v46 }
 0x3e4   : > { %v3876_v33 = vpop.f32.mrf.mxu1 }
 0x3e5   : > { %v4248_v18 = vmax.f32 %v4200_v35, 0.0  ;;  %v3877_v30 = vadd.f32 %v7295_v28, %v3876_v33 }
 0x3e6   : > { %v5418_v26 = vpop.f32.mrf.mxu1 }
 0x3e7   : > { %v4934_v59 = vpack.c.bf16 %v4249_v37, %v4248_v18  ;;  %v4203_v24 = vadd.f32 %v7281_v15, %v3877_v30  ;;  %v3888_v25 = vadd.f32 %v5418_v26, %v7295_v28 }
 0x3e8   : > { %v3879_v29 = vpop.f32.mrf.mxu1 }
 0x3e9   : > { %4966 = vst [vmem:[%s7338_s24 + $0x58] sm:$0xff] %v4934_v59   ;;  %v3880_v8 = vadd.f32 %v7295_v28, %v3879_v29  ;;  %v4251_v62 = vmax.f32 %v4203_v24, 0.0  ;;  %v4206_v57 = vadd.f32 %v4102_v5, %v3888_v25 }
 0x3eb   : > { %v4204_v17 = vadd.f32 %v4098_v52, %v3880_v8  ;;  %v4254_v22 = vmax.f32 %v4206_v57, 0.0 }
 0x3ed   : > { %v4252_v2 = vmax.f32 %v4204_v17, 0.0 }
 0x3ef   : > { %v4939_v38 = vpack.c.bf16 %v4252_v2, %v4251_v62 }
 0x3f1   : > { %4967 = vst [vmem:[%s7338_s24 + $0x60] sm:$0xff] %v4939_v38  }
 0x41d   : > { %v5421_v42 = vpop.f32.mrf.mxu1 }
 0x41e   : > { %v3901_v15 = vadd.f32 %v5421_v42, %v7295_v28 }
 0x41f   : > { %v3892_v50 = vpop.f32.mrf.mxu1 }
 0x420   : > { %v3893_v3 = vadd.f32 %v7295_v28, %v3892_v50  ;;  %v4209_v34 = vadd.f32 %v7305_v41, %v3901_v15  ;;  %v4111_v41 = vrot.slane %v3968_v32, 1 }
 0x421   : > { %v5422_v13 = vpop.f32.mrf.mxu1 }
 0x422   : > { %v4207_v58 = vadd.f32 %v7324_v61, %v3893_v3  ;;  %v3904_v56 = vadd.f32 %v5422_v13, %v7295_v28  ;;  %v4257_v31 = vmax.f32 %v4209_v34, 0.0  ;;  %v4114_v39 = vsel %vm2185_vm0, %v4111_v41, %v7329_v10 }
 0x423   : > { %v3895_v6 = vpop.f32.mrf.mxu1 }
 0x424   : > { %v4255_v27 = vmax.f32 %v4207_v58, 0.0  ;;  %v4210_v9 = vadd.f32 %v4110_v1, %v3904_v56 }
 0x426   : > { %v4944_v54 = vpack.c.bf16 %v4255_v27, %v4254_v22  ;;  %v4258_v11 = vmax.f32 %v4210_v9, 0.0  ;;  %v5425_v12 = vpop.f32.mrf.mxu1 }
 0x427   : > { %v3917_v61 = vadd.f32 %v5425_v12, %v7295_v28 }
 0x428   : > { %4968 = vst [vmem:[%s7338_s24 + $0x68] sm:$0xff] %v4944_v54   ;;  %v4949_v43 = vpack.c.bf16 %v4258_v11, %v4257_v31  ;;  %v3908_v45 = vpop.f32.mrf.mxu1 }
 0x429   : > { %v4213_v44 = vadd.f32 %v7343_v19, %v3917_v61 }
 0x42a   : > { %4969 = vst [vmem:[%s7338_s24 + $0x70] sm:$0xff] %v4949_v43   ;;  %v5426_v49 = vpop.f32.mrf.mxu1 }
 0x42b   : > { %v4261_v47 = vmax.f32 %v4213_v44, 0.0 }
 0x42c   : > { %v3911_v48 = vpop.f32.mrf.mxu1 }
 0x42d   : > { %v3912_v36 = vadd.f32 %v7295_v28, %v3911_v48 }
 0x42f   : > { %v4212_v40 = vadd.f32 %v4114_v39, %v3912_v36 }
 0x431   : > { %v4260_v14 = vmax.f32 %v4212_v40, 0.0 }
 0x433   : > { %v4954_v23 = vpack.c.bf16 %v4261_v47, %v4260_v14 }
 0x435   : > { %4970 = vst [vmem:[%s7338_s24 + $0x78] sm:$0xff] %v4954_v23  }
 0x436   : > { %5661 = shalt.err (!%p5658_p3)
}
 0x437   : > { %s5662_s20 = scalar_lea.hbm %s7441_s16, 2048  ;;  %s5666_s11 = scalar_lea.hbm %s7503_s8, 4096 }
 0x438   : > { %p5663_p5 = scmp.ne.s32.totalorder %s7441_s16, %s5662_s20  ;;  %p5667_p9 = scmp.lt.s32.totalorder %s7441_s16, %s7503_s8 }
 0x439   : > { %p5668_p12 = scmp.lt.s32.totalorder %s5666_s11, %s5662_s20 }
 0x43a   : > { %p5664_p6 = pnand %p5663_p5, %p5824_p4 }
 0x43b   : > { %p5669_p10 = por %p5668_p12, %p5667_p9 }
 0x43c   : > { %p5665_p7 = pneg %p5664_p6 }
 0x43e   : > { %p5670_p11 = pnand %p5669_p10, %p5665_p7 }
 0x440   : > { %5673 = shalt.err (!%p5670_p11)
}
 0x441   : > { %s5738_s19 = smov 4  }
 0x442   : > { %5444 = dma.vmem_to_hbm [thread:$0]  (%p5824_p4), %s7443_s26, 2048, %s7441_s16, %s7448_s21, %s5735_s14, %s5735_s14, %s5738_s19  }
 0x443 PF: > { %p5456_p13 = scmp.ge.s32.totalorder %s5728_s10, 2  ;;  %s4486_s22 = sand.u32 1, %s5708_s27  }
 0x444   : > { %s4487_s12 = scalar_lea.sflag [#allocation4], %s4486_s22 }
 0x445   : > { %p5451_p0 = pnand %p5456_p13, %p5831_p8 }
 0x447   : > { %p5452_p1 = pneg %p5451_p0 }
 0x449   : > { %5703 = dma.done.wait (%p5452_p1), %s4487_s12, 2048  }
 0x44a   : > { %5705 = vsyncadd (%p5452_p1), %s4487_s12, 4294965248  ;;  %s22_s10 = sadd.s32 1, %s5728_s10   ;;  %s7526_s27 = smov %s5712_s28 }
 0x44b   : > { %p19_p2 = scmp.ge.s32.totalorder %s22_s10, 4   ;;  %s7527_s28 = smov %s5716_s29 }
 0x44c   : > { %s7528_s29 = smov %s5837_s18  ;;  %s7529_s30 = smov %s5724_s9 }
 0x44d   : > { %s7530_s9 = smov %s7532_s13  ;;  %21 = sbr.rel (!%p19_p2) target bundleno = 5 (0x5), region = 111 }
 0x452   :  { %4492 = vsyncpa [#allocation3], 1 }
 0x453   :  { %4494 = vsyncpa [#allocation3 + $0x1], 1 }
 0x454   :  { %4495 = vsyncpa [#allocation4], 1 }
 0x455   :  { %4497 = vsyncpa [#allocation4 + $0x1], 1 }

// kernel: tpu_custom_call.1
= control target key start
LH: loop header
LB: loop body
LE: loop exit
PB: predicated region body
PF: predicated region fallthrough
CT: control target
= control target key end

     0   :  { %13 = vsyncpa [#allocation3], 0  ;;  %s7495_s0 = inlined_call_operand.vmem [shape: bf16[2,440,128], index: 0, kind: input, shape index: {}]   ;;  %s7496_s1 = inlined_call_operand.vmem [shape: bf16[440,1], index: 1, kind: input, shape index: {}]   ;;  %s7497_s2 = inlined_call_operand.vmem [shape: bf16[128,32], index: 2, kind: input, shape index: {}]   ;;  %s7498_s3 = inlined_call_operand.vmem [shape: bf16[3,96,32], index: 3, kind: input, shape index: {}]   ;;  %s7499_s4 = inlined_call_operand.hbm [shape: bf16[32,128], index: 4, kind: input, shape index: {}]   ;;  %s7500_s5 = inlined_call_operand.vmem [shape: f32[1,32], index: 5, kind: input, shape index: {}]   ;;  %s7501_s6 = inlined_call_operand.vmem [shape: f32[1,32], index: 6, kind: input, shape index: {}]   ;;  %s7502_s7 = inlined_call_operand.vmem [shape: f32[1,128], index: 7, kind: input, shape index: {}]   ;;  %s7503_s8 = inlined_call_operand.hbm [shape: bf16[2,16,16,128], index: 8, kind: output, shape index: {}]  }
   0x1   :  { %14 = vsyncpa [#allocation4], 0 }
   0x2   :  { %16 = vsyncpa [#allocation4 + $0x1], 0  ;;  %s5784_s27 = smov 0   ;;  %s5786_s28 = smov 0  }
   0x3   :  { %s5788_s29 = smov 0   ;;  %s5790_s30 = smov 0  }
   0x4   :  { %s5792_s9 = smov 0   ;;  %s5794_s10 = smov 0  }
   0x5 LB: > { %s4560_s11 = sadd.s32 4294967295, %s5728_s10   ;;  %s4561_s12 = sadd.s32 4294967294, %s5728_s10   ;;  %s5728_s10 = sphi %s5794_s10, %s22_s10   ;;  %s5724_s9 = sphi %s5792_s9, %s7530_s9   ;;  %s5720_s30 = sphi %s5790_s30, %s7529_s30   ;;  %s5716_s29 = sphi %s5788_s29, %s7528_s29   ;;  %s5712_s28 = sphi %s5786_s28, %s7527_s28   ;;  %s5708_s27 = sphi %s5784_s27, %s7526_s27  }
   0x6   : > { %s34_s13 = sadd.s32 1, %s5724_s9  ;;  %s216_s14 = sadd.s32 1, %s5716_s29 }
   0x7   : > { %p36_p0 = scmp.ge.s32.totalorder %s34_s13, 2  ;;  %p226_p1 = scmp.ne.s32.totalorder %s5716_s29, %s5712_s28 }
   0x8   : > { %p227_p2 = scmp.eq.s32.totalorder %s4560_s11, 1  ;;  %p232_p3 = scmp.ne.s32.totalorder %s5712_s28, %s5708_s27 }
   0x9   : > { %s7532_s13 = smov (%p36_p0, %s34_s13), 0  ;;  %p233_p5 = scmp.eq.s32.totalorder %s4561_s12, 1 }
   0xa   : > { %p5824_p4 = por %p227_p2, %p226_p1  ;;  %s211_s16 = ssub.s32 %s5724_s9, %s7532_s13 }
   0xb   : > { %p4562_p6 = scmp.ge.s32.totalorder %s5728_s10, 1  ;;  %p214_p7 = scmp.eq.s32.totalorder %s211_s16, 0 }
   0xc   : > { %p5831_p8 = por %p233_p5, %p232_p3  ;;  %p240_p9 = scmp.lt.s32.totalorder %s5728_s10, 3 }
   0xd   : > { %s5837_s18 = scalar_select %p214_p7, %s5716_s29, %s216_s14  }
   0xe   : > { %p5839_p10 = pnand %p4562_p6, %p240_p9  ;;  %p5843_p11 = scmp.eq.s32.totalorder %s4560_s11, 0 }
   0xf   : > { %s5730_s21 = smov [#allocation2]  }
  0x10   : > { %p5446_p12 = pneg %p5839_p10  ;;  %s261_s22 = sshll.u32 %s5730_s21, 4  ;;  %s262_s22 = int_to_ptr.vmem [resolvable:$true] %s261_s22 }
  0x11   : > { %s5633_s23 = scalar_lea.vmem %s262_s22, 256  ;;  %p5641_p5 = scmp.lt.s32.totalorder %s262_s22, %s262_s22 }
  0x12   : > { %p5447_p13 = pnand %p5843_p11, %p5446_p12  ;;  %p5634_p1 = scmp.ne.s32.totalorder %s262_s22, %s5633_s23 }
  0x13   : > { %p5642_p6 = scmp.lt.s32.totalorder %s5633_s23, %s5633_s23 }
  0x14   : > { %p5624_p0 = pneg %p5447_p13 }
  0x15   : > { %p5643_p7 = por %p5642_p6, %p5641_p5 }
  0x16   : > { %p5636_p2 = pnand %p5634_p1, %p5624_p0 }
  0x18   : > { %p5637_p3 = pneg %p5636_p2 }
  0x1a   : > { %p5644_p9 = pnand %p5643_p7, %p5637_p3 }
  0x1c   : > { %5647 = shalt.err (!%p5644_p9)
}
  0x1d   : > { %s5731_s24 = smov 64   ;;  %s5732_s25 = smov 4  }
  0x1e   : > { %5449 = dma.hbm_to_vmem [thread:$0]  (!%p5447_p13), %s7499_s4, 256, %s262_s22, [#allocation3], %s5731_s24, %s5731_s24, %s5732_s25  }
  0x1f   : > { %294 = sbr.rel (%p5839_p10) target bundleno = 1091 (0x443), region = 52 }
  0x24   : > { %5699 = dma.done.wait (%p5843_p11), [#allocation3], 256  }
  0x25   : > { %5701 = vsyncadd (%p5843_p11), [#allocation3], 4294967040  ;;  %v5733_v0 = vmov 0   ;;  %p328_p12 = scmp.lt.s32.totalorder %s5720_s30, 1  ;;  %v415_v1 = vld [vmem:[%s7496_s1 + $0x48] sm:$0xf] }
  0x26   : > { %5514 = vset.pattern.permute.xlu1 %v5733_v0  ;;  %5513 = vset.pattern.permute.xlu0 %v5733_v0  ;;  %v413_v2 = vld [vmem:[%s7496_s1 + $0x40] sm:$0xf]  ;;  %v5515_v3 = vld [vmem:[%s7497_s2 + $0x38] sm:$0xff]   ;;  %v416_v4 = vld [vmem:[%s7496_s1 + $0x4c] sm:$0xf]  ;;  %vm2185_vm0 = vcmask 1046528  }
  0x27   : > { %1246 = vperm.xlu1 %5514, %v415_v1   ;;  %1222 = vperm.xlu0 %5513, %v413_v2   ;;  %v414_v5 = vld [vmem:[%s7496_s1 + $0x44] sm:$0xf]  ;;  %v5516_v6 = vld [vmem:[%s7497_s2 + $0x30] sm:$0xff]   ;;  %s329_s12 = scalar_select %p328_p12, %s5720_s30, 1  ;;  %v5517_v9 = vld [vmem:[%s7497_s2 + $0x28] sm:$0xff]   ;;  %vm2295_vm2 = vcmask 261120  }
  0x28   : > { %5123 = vmatprep.subr.bf16.mxu0 %v5515_v3  ;;  %v418_v7 = vld [vmem:[%s7496_s1 + $0x54] sm:$0xf]  ;;  %v417_v8 = vld [vmem:[%s7496_s1 + $0x50] sm:$0xf]  ;;  %v420_v10 = vld [vmem:[%s7496_s1 + $0x5c] sm:$0xf] }
  0x29   : > { %5124 = vmatpush3.bf16.msra.mxu0 %v5515_v3  ;;  %s5439_s23 = smul.u32 220, %s329_s12  ;;  %v419_v11 = vld [vmem:[%s7496_s1 + $0x58] sm:$0xf]  ;;  %v5518_v12 = vld [vmem:[%s7497_s2 + $0x20] sm:$0xff]   ;;  %v424_v17 = vld [vmem:[%s7496_s1 + $0x6c] sm:$0xf] }
  0x2a   : > { %5125 = vmatprep.subr.bf16.mxu0 %v5516_v6  ;;  %v422_v13 = vld [vmem:[%s7496_s1 + $0x64] sm:$0xf]  ;;  %v421_v14 = vld [vmem:[%s7496_s1 + $0x60] sm:$0xf]  ;;  %v5519_v15 = vld [vmem:[%s7497_s2 + $0x18] sm:$0xff]   ;;  %s5735_s14 = smov 64  }
  0x2b   : > { %1258 = vperm.xlu1 %5514, %v416_v4   ;;  %1234 = vperm.xlu0 %5513, %v414_v5   ;;  %s5901_s12 = scalar_lea.vmem %s7495_s0, %s5439_s23  ;;  %v423_v18 = vld [vmem:[%s7496_s1 + $0x68] sm:$0xf]  ;;  %v5520_v19 = vld [vmem:[%s7497_s2 + $0x10] sm:$0xff]   ;;  %v428_v23 = vld [vmem:[%s7496_s1 + $0x7c] sm:$0xf]  ;;  %s5736_s16 = smov 32  }
  0x2c   : > { %v5523_v16 = vld [vmem:[%s5901_s12] sm:$0xff]   ;;  %v426_v20 = vld [vmem:[%s7496_s1 + $0x74] sm:$0xf]  ;;  %v425_v21 = vld [vmem:[%s7496_s1 + $0x70] sm:$0xf]  ;;  %vm2350_vm3 = vcmask 523264  }
  0x2d   : > { %5126 = vmatpush3.bf16.msra.mxu0 %v5516_v6  ;;  %5139 = vmatprep.mubr.bf16.mxu0 %v5523_v16  ;;  %v5521_v22 = vld [vmem:[%s7497_s2 + $0x8] sm:$0xff]   ;;  %v427_v24 = vld [vmem:[%s7496_s1 + $0x78] sm:$0xf]  ;;  %v5522_v25 = vld [vmem:[%s7497_s2] sm:$0xff]   ;;  %vm1882_vm1 = vsmask.f32 7424 }
  0x2e   : > { %5127 = vmatprep.subr.bf16.mxu0 %v5517_v9  ;;  %v342_v26 = vld [vmem:[%s5901_s12 + $0x8] sm:$0xff]   ;;  %v344_v27 = vld [vmem:[%s5901_s12 + $0x10] sm:$0xff]   ;;  %v430_v28 = vld [vmem:[%s7496_s1 + $0x84] sm:$0xf]  ;;  %vm2460_vm4 = vcmask 785408   ;;  %vm2772_vm5 = vcmask 1043456  }
  0x2f   : > { %1282 = vperm.xlu1 %5514, %v418_v7   ;;  %1270 = vperm.xlu0 %5513, %v417_v8   ;;  %v429_v29 = vld [vmem:[%s7496_s1 + $0x80] sm:$0xf]  ;;  %v432_v30 = vld [vmem:[%s7496_s1 + $0x8c] sm:$0xf]  ;;  %v431_v31 = vld [vmem:[%s7496_s1 + $0x88] sm:$0xf] }
  0x30   : > { %v398_v32 = vld [vmem:[%s7496_s1 + $0x4] sm:$0xf]  ;;  %v346_v33 = vld [vmem:[%s5901_s12 + $0x18] sm:$0xff]   ;;  %v397_v35 = vld [vmem:[%s7496_s1] sm:$0xf]  ;;  %s325_s20 = sand.u32 1, %s5712_s28  }
  0x31   : > { %5128 = vmatpush3.bf16.msra.mxu0 %v5517_v9  ;;  %v348_v34 = vld [vmem:[%s5901_s12 + $0x20] sm:$0xff]   ;;  %v400_v36 = vld [vmem:[%s7496_s1 + $0xc] sm:$0xf]  ;;  %v399_v37 = vld [vmem:[%s7496_s1 + $0x8] sm:$0xf]  ;;  %s4875_s25 = sshll.u32 %s5720_s30, 11 }
  0x32   : > { %5129 = vmatprep.subr.bf16.mxu0 %v5518_v12  ;;  %v434_v38 = vld [vmem:[%s7496_s1 + $0x94] sm:$0xf]  ;;  %v350_v39 = vld [vmem:[%s5901_s12 + $0x28] sm:$0xff]   ;;  %v433_v41 = vld [vmem:[%s7496_s1 + $0x90] sm:$0xf]  ;;  %s7448_s21 = scalar_lea.sflag [#allocation4], %s325_s20 }
  0x33   : > { %1306 = vperm.xlu1 %5514, %v420_v10   ;;  %1294 = vperm.xlu0 %5513, %v419_v11   ;;  %v352_v40 = vld [vmem:[%s5901_s12 + $0x30] sm:$0xff]   ;;  %v354_v44 = vld [vmem:[%s5901_s12 + $0x38] sm:$0xff]   ;;  %v356_v45 = vld [vmem:[%s5901_s12 + $0x40] sm:$0xff]   ;;  %s5737_s30 = smov [#allocation5]  }
  0x34   : > { %v402_v42 = vld [vmem:[%s7496_s1 + $0x14] sm:$0xf]  ;;  %v401_v43 = vld [vmem:[%s7496_s1 + $0x10] sm:$0xf]  ;;  %v436_v46 = vld [vmem:[%s7496_s1 + $0x9c] sm:$0xf] }
  0x35   : > { %5130 = vmatpush3.bf16.msra.mxu0 %v5518_v12  ;;  %v435_v47 = vld [vmem:[%s7496_s1 + $0x98] sm:$0xf]  ;;  %v404_v48 = vld [vmem:[%s7496_s1 + $0x1c] sm:$0xf]  ;;  %v358_v50 = vld [vmem:[%s5901_s12 + $0x48] sm:$0xff]   ;;  %s5652_s22 = sshll.u32 %s5737_s30, 4  ;;  %s5653_s22 = int_to_ptr.vmem [resolvable:$false] %s5652_s22 }
  0x36   : > { %5131 = vmatprep.subr.bf16.mxu0 %v5519_v15  ;;  %v403_v49 = vld [vmem:[%s7496_s1 + $0x18] sm:$0xf]  ;;  %v360_v51 = vld [vmem:[%s5901_s12 + $0x50] sm:$0xff]   ;;  %v438_v52 = vld [vmem:[%s7496_s1 + $0xa4] sm:$0xf] }
  0x37   : > { %1330 = vperm.xlu1 %5514, %v422_v13   ;;  %1318 = vperm.xlu0 %5513, %v421_v14   ;;  %v437_v53 = vld [vmem:[%s7496_s1 + $0xa0] sm:$0xf]  ;;  %v406_v54 = vld [vmem:[%s7496_s1 + $0x24] sm:$0xf]  ;;  %v362_v56 = vld [vmem:[%s5901_s12 + $0x58] sm:$0xff]  }
  0x38   : > { %v405_v55 = vld [vmem:[%s7496_s1 + $0x20] sm:$0xf]  ;;  %v440_v58 = vld [vmem:[%s7496_s1 + $0xac] sm:$0xf]  ;;  %v439_v59 = vld [vmem:[%s7496_s1 + $0xa8] sm:$0xf] }
  0x39   : > { %5132 = vmatpush3.bf16.msra.mxu0 %v5519_v15  ;;  %v364_v57 = vld [vmem:[%s5901_s12 + $0x60] sm:$0xff]   ;;  %v408_v60 = vld [vmem:[%s7496_s1 + $0x2c] sm:$0xf]  ;;  %v407_v61 = vld [vmem:[%s7496_s1 + $0x28] sm:$0xf] }
  0x3a   : > { %5133 = vmatprep.subr.bf16.mxu0 %v5520_v19  ;;  %v366_v62 = vld [vmem:[%s5901_s12 + $0x68] sm:$0xff]   ;;  %v368_v63 = vld [vmem:[%s5901_s12 + $0x70] sm:$0xff]   ;;  %v370_v4 = vld [vmem:[%s5901_s12 + $0x78] sm:$0xff]  }
  0x3b   : > { %1354 = vperm.xlu1 %5514, %v424_v17   ;;  %1342 = vperm.xlu0 %5513, %v423_v18   ;;  %v442_v0 = vld [vmem:[%s7496_s1 + $0xb4] sm:$0xf]  ;;  %v441_v1 = vld [vmem:[%s7496_s1 + $0xb0] sm:$0xf]  ;;  %v372_v5 = vld [vmem:[%s5901_s12 + $0x80] sm:$0xff]  }
  0x3c   : > { %v410_v2 = vld [vmem:[%s7496_s1 + $0x34] sm:$0xf]  ;;  %v409_v3 = vld [vmem:[%s7496_s1 + $0x30] sm:$0xf]  ;;  %v444_v6 = vld [vmem:[%s7496_s1 + $0xbc] sm:$0xf] }
  0x3d   : > { %5134 = vmatpush3.bf16.msra.mxu0 %v5520_v19  ;;  %v443_v7 = vld [vmem:[%s7496_s1 + $0xb8] sm:$0xf]  ;;  %v412_v8 = vld [vmem:[%s7496_s1 + $0x3c] sm:$0xf]  ;;  %v374_v10 = vld [vmem:[%s5901_s12 + $0x88] sm:$0xff]  }
  0x3e   : > { %5135 = vmatprep.subr.bf16.mxu0 %v5521_v22  ;;  %v411_v9 = vld [vmem:[%s7496_s1 + $0x38] sm:$0xf]  ;;  %v376_v11 = vld [vmem:[%s5901_s12 + $0x90] sm:$0xff]   ;;  %v446_v12 = vld [vmem:[%s7496_s1 + $0xc4] sm:$0xf] }
  0x3f   : > { %1378 = vperm.xlu1 %5514, %v426_v20   ;;  %1366 = vperm.xlu0 %5513, %v425_v21   ;;  %v445_v13 = vld [vmem:[%s7496_s1 + $0xc0] sm:$0xf]  ;;  %v378_v14 = vld [vmem:[%s5901_s12 + $0x98] sm:$0xff]   ;;  %v382_v16 = vld [vmem:[%s5901_s12 + $0xa8] sm:$0xff]  }
  0x40   : > { %v380_v15 = vld [vmem:[%s5901_s12 + $0xa0] sm:$0xff]   ;;  %v384_v17 = vld [vmem:[%s5901_s12 + $0xb0] sm:$0xff]   ;;  %v386_v18 = vld [vmem:[%s5901_s12 + $0xb8] sm:$0xff]  }
  0x41   : > { %5136 = vmatpush3.bf16.msra.mxu0 %v5521_v22  ;;  %v388_v19 = vld [vmem:[%s5901_s12 + $0xc0] sm:$0xff]   ;;  %v390_v22 = vld [vmem:[%s5901_s12 + $0xc8] sm:$0xff]  }
  0x42   : > { %5137 = vmatprep.subr.bf16.mxu0 %v5522_v25 }
  0x43   : > { %1402 = vperm.xlu1 %5514, %v428_v23   ;;  %1390 = vperm.xlu0 %5513, %v427_v24  }
  0x45   : > { %5138 = vmatpush3.bf16.msra.mxu0 %v5522_v25 }
  0x47   : > { %1426 = vperm.xlu1 %5514, %v430_v28   ;;  %1414 = vperm.xlu0 %5513, %v429_v29   ;;  %v5734_v29 = vmov 839922192  }
  0x48   : > { %5140 = vmatmul.mubr.bf16.vlgmr.msra.gmra.mxu0 %v342_v26 }
  0x49   : > { %5143 = vmatprep.mubr.bf16.mxu0 %v344_v27 }
  0x4b   : > { %1450 = vperm.xlu1 %5514, %v432_v30   ;;  %1438 = vperm.xlu0 %5513, %v431_v31   ;;  %v1034_v30 = vunpack.c.l.s4 %v5734_v29  ;;  %v1036_v31 = vlaneseq }
  0x4f   : > { %1042 = vperm.xlu1 %5514, %v398_v32   ;;  %1030 = vperm.xlu0 %5513, %v397_v35   ;;  %v1037_v35 = vshrl.u32 %v1036_v31, 7 }
  0x50   : > { %5144 = vmatmul.mubr.bf16.gmra.mxu0 %v346_v33 }
  0x51   : > { %5147 = vmatprep.mubr.bf16.mxu0 %v348_v34  ;;  %v1035_v34 = vunpack.c.0.s8 %v1034_v30 }
  0x53   : > { %1066 = vperm.xlu1 %5514, %v400_v36   ;;  %1054 = vperm.xlu0 %5513, %v399_v37  }
  0x57   : > { %1474 = vperm.xlu1 %5514, %v434_v38   ;;  %1462 = vperm.xlu0 %5513, %v433_v41   ;;  %v6091_v38 = vsub.s32 %v1035_v34, %v1037_v35 }
  0x58   : > { %5148 = vmatmul.mubr.bf16.gmra.mxu0 %v350_v39 }
  0x59   : > { %5151 = vmatprep.mubr.bf16.mxu0 %v352_v40 }
  0x5b   : > { %1090 = vperm.xlu1 %5514, %v402_v42   ;;  %1078 = vperm.xlu0 %5513, %v401_v43  }
  0x5f   : > { %1498 = vperm.xlu1 %5514, %v436_v46   ;;  %1486 = vperm.xlu0 %5513, %v435_v47  }
  0x60   : > { %5152 = vmatmul.mubr.bf16.gmra.mxu0 %v354_v44 }
  0x61   : > { %5155 = vmatprep.mubr.bf16.mxu0 %v356_v45 }
  0x63   : > { %1114 = vperm.xlu1 %5514, %v404_v48   ;;  %1102 = vperm.xlu0 %5513, %v403_v49  }
  0x67   : > { %1522 = vperm.xlu1 %5514, %v438_v52   ;;  %1510 = vperm.xlu0 %5513, %v437_v53  }
  0x68   : > { %5156 = vmatmul.mubr.bf16.gmra.mxu0 %v358_v50 }
  0x69   : > { %5159 = vmatprep.mubr.bf16.mxu0 %v360_v51  ;;  %v5549_v51 = vld [vmem:[%s5901_s12 + $0xd0] sm:$0xff]  }
  0x6b   : > { %1138 = vperm.xlu1 %5514, %v406_v54   ;;  %1126 = vperm.xlu0 %5513, %v405_v55   ;;  %v5550_v54 = vld [vmem:[%s5901_s12 + $0xd8] ss:$0 sps:$4 sm:$0xff]  }
  0x6f   : > { %1546 = vperm.xlu1 %5514, %v440_v58   ;;  %1534 = vperm.xlu0 %5513, %v439_v59  }
  0x70   : > { %5160 = vmatmul.mubr.bf16.gmra.mxu0 %v362_v56 }
  0x71   : > { %5163 = vmatprep.mubr.bf16.mxu0 %v364_v57 }
  0x73   : > { %1162 = vperm.xlu1 %5514, %v408_v60   ;;  %1150 = vperm.xlu0 %5513, %v407_v61  }
  0x77   : > { %1570 = vperm.xlu1 %5514, %v442_v0   ;;  %1558 = vperm.xlu0 %5513, %v441_v1  }
  0x78   : > { %5164 = vmatmul.mubr.bf16.gmra.mxu0 %v366_v62 }
  0x79   : > { %5167 = vmatprep.mubr.bf16.mxu0 %v368_v63 }
  0x7b   : > { %1186 = vperm.xlu1 %5514, %v410_v2   ;;  %1174 = vperm.xlu0 %5513, %v409_v3  }
  0x7f   : > { %1594 = vperm.xlu1 %5514, %v444_v6   ;;  %1582 = vperm.xlu0 %5513, %v443_v7  }
  0x80   : > { %5168 = vmatmul.mubr.bf16.gmra.mxu0 %v370_v4 }
  0x81   : > { %5171 = vmatprep.mubr.bf16.mxu0 %v372_v5 }
  0x83   : > { %1210 = vperm.xlu1 %5514, %v412_v8   ;;  %1198 = vperm.xlu0 %5513, %v411_v9  }
  0x87   : > { %1618 = vperm.xlu1 %5514, %v446_v12   ;;  %1606 = vperm.xlu0 %5513, %v445_v13  }
  0x88   : > { %5172 = vmatmul.mubr.bf16.gmra.mxu0 %v374_v10 }
  0x89   : > { %5175 = vmatprep.mubr.bf16.mxu0 %v376_v11 }
  0x90   : > { %5176 = vmatmul.mubr.bf16.gmra.mxu0 %v378_v14 }
  0x91   : > { %5179 = vmatprep.mubr.bf16.mxu0 %v380_v15 }
  0x98   : > { %5180 = vmatmul.mubr.bf16.gmra.mxu0 %v382_v16 }
  0x99   : > { %5183 = vmatprep.mubr.bf16.mxu0 %v384_v17 }
  0xa0   : > { %5184 = vmatmul.mubr.bf16.gmra.mxu0 %v386_v18 }
  0xa1   : > { %5187 = vmatprep.mubr.bf16.mxu0 %v388_v19 }
  0xa2   : > { %v6066_v20 = vpop.permute.xlu1 %1246  ;;  %v6068_v21 = vpop.permute.xlu0 %1222 }
  0xa6   : > { %v6071_v23 = vpop.permute.xlu1 %1258  ;;  %v6073_v24 = vpop.permute.xlu0 %1234 }
  0xa8   : > { %5188 = vmatmul.mubr.bf16.gmra.mxu0 %v390_v22 }
  0xa9   : > { %5191 = vmatprep.mubr.bf16.mxu0 %v5549_v51 }
  0xaa   : > { %v6075_v25 = vpop.permute.xlu1 %1282  ;;  %v6077_v26 = vpop.permute.xlu0 %1270 }
  0xae   : > { %v6079_v27 = vpop.permute.xlu1 %1306  ;;  %v6081_v28 = vpop.permute.xlu0 %1294 }
  0xb0   : > { %5192 = vmatmul.mubr.bf16.gmra.mxu0 %v5550_v54 }
  0xb2   : > { %v6083_v32 = vpop.permute.xlu1 %1330  ;;  %v6085_v33 = vpop.permute.xlu0 %1318 }
  0xb6   : > { %v6087_v36 = vpop.permute.xlu1 %1354  ;;  %v6089_v37 = vpop.permute.xlu0 %1342 }
  0xba   : > { %v1379_v39 = vpop.permute.xlu1 %1378  ;;  %v1367_v40 = vpop.permute.xlu0 %1366 }
  0xbb   : > { %v1387_v41 = vrot.slane %v1379_v39, %v6091_v38  ;;  %v1375_v42 = vrot.slane %v1367_v40, %v6091_v38  ;;  %v5551_v40 = vld [vmem:[%s7498_s3 + $0x28] sm:$0xff]  }
  0xbc   : > { %5195 = vmatprep.subr.bf16.mxu0 %v5551_v40  ;;  %5427 = vmatprep.subr.bf16.mxu1 %v5551_v40 }
  0xbd   : > { %v6095_v43 = vcombine.low %v1375_v42, %v1387_v41  ;;  %5196 = vmatpush3.bf16.msra.mxu0 %v5551_v40  ;;  %5433 = vmatpush3.bf16.msra.mxu1 %v5551_v40  ;;  %v5552_v41 = vld [vmem:[%s7498_s3 + $0x20] sm:$0xff]  }
  0xbe   : > { %v1403_v44 = vpop.permute.xlu1 %1402  ;;  %v1391_v45 = vpop.permute.xlu0 %1390  ;;  %5197 = vmatprep.subr.bf16.mxu0 %v5552_v41  ;;  %5428 = vmatprep.subr.bf16.mxu1 %v5552_v41 }
  0xbf   : > { %v1411_v46 = vrot.slane %v1403_v44, %v6091_v38  ;;  %v1399_v47 = vrot.slane %v1391_v45, %v6091_v38  ;;  %v6154_v44 = vld [vmem:[%s7500_s5] ss:$0 sm:$0xff] }
  0xc1   : > { %v6099_v48 = vcombine.low %v1399_v47, %v1411_v46  ;;  %5198 = vmatpush3.bf16.msra.mxu0 %v5552_v41  ;;  %5434 = vmatpush3.bf16.msra.mxu1 %v5552_v41  ;;  %v5553_v46 = vld [vmem:[%s7498_s3 + $0x18] sm:$0xff]  }
  0xc2   : > { %v1427_v49 = vpop.permute.xlu1 %1426  ;;  %v1415_v50 = vpop.permute.xlu0 %1414  ;;  %5199 = vmatprep.subr.bf16.mxu0 %v5553_v46  ;;  %5429 = vmatprep.subr.bf16.mxu1 %v5553_v46 }
  0xc3   : > { %v1435_v52 = vrot.slane %v1427_v49, %v6091_v38  ;;  %v1423_v53 = vrot.slane %v1415_v50, %v6091_v38 }
  0xc5   : > { %v6105_v55 = vcombine.low %v1423_v53, %v1435_v52  ;;  %5200 = vmatpush3.bf16.msra.mxu0 %v5553_v46  ;;  %5435 = vmatpush3.bf16.msra.mxu1 %v5553_v46 }
  0xc6   : > { %v1451_v56 = vpop.permute.xlu1 %1450  ;;  %v1439_v57 = vpop.permute.xlu0 %1438 }
  0xc7   : > { %v1459_v58 = vrot.slane %v1451_v56, %v6091_v38  ;;  %v1447_v59 = vrot.slane %v1439_v57, %v6091_v38  ;;  %v5554_v57 = vld [vmem:[%s7498_s3 + $0x10] sm:$0xff]  }
  0xc8   : > { %5201 = vmatprep.subr.bf16.mxu0 %v5554_v57  ;;  %5430 = vmatprep.subr.bf16.mxu1 %v5554_v57 }
  0xc9   : > { %v6109_v60 = vcombine.low %v1447_v59, %v1459_v58  ;;  %5202 = vmatpush3.bf16.msra.mxu0 %v5554_v57  ;;  %5436 = vmatpush3.bf16.msra.mxu1 %v5554_v57 }
  0xca   : > { %v6111_v61 = vpop.permute.xlu1 %1042  ;;  %v6113_v62 = vpop.permute.xlu0 %1030 }
  0xcb   : > { %v1051_v54 = vrot.slane %v6111_v61, %v6091_v38  ;;  %v1039_v58 = vrot.slane %v6113_v62, %v6091_v38  ;;  %v5555_v62 = vld [vmem:[%s7498_s3 + $0x8] sm:$0xff]  }
  0xcc   : > { %5203 = vmatprep.subr.bf16.mxu0 %v5555_v62  ;;  %5431 = vmatprep.subr.bf16.mxu1 %v5555_v62 }
  0xcd   : > { %5204 = vmatpush3.bf16.msra.mxu0 %v5555_v62  ;;  %5437 = vmatpush3.bf16.msra.mxu1 %v5555_v62 }
  0xce   : > { %v6115_v63 = vpop.permute.xlu1 %1066  ;;  %v1055_v0 = vpop.permute.xlu0 %1054 }
  0xcf   : > { %v1075_v49 = vrot.slane %v6115_v63, %v6091_v38  ;;  %v1063_v51 = vrot.slane %v1055_v0, %v6091_v38 }
  0xd2   : > { %v1475_v1 = vpop.permute.xlu1 %1474  ;;  %v1463_v2 = vpop.permute.xlu0 %1462 }
  0xd3   : > { %v1483_v3 = vrot.slane %v1475_v1, %v6091_v38  ;;  %v1471_v4 = vrot.slane %v1463_v2, %v6091_v38  ;;  %v4607_v2 = vcombine.low %v1063_v51, %v1075_v49 }
  0xd5   : > { %v6119_v5 = vcombine.low %v1471_v4, %v1483_v3 }
  0xd6   : > { %v6121_v6 = vpop.permute.xlu1 %1090  ;;  %v6123_v7 = vpop.permute.xlu0 %1078 }
  0xda   : > { %v1499_v8 = vpop.permute.xlu1 %1498  ;;  %v1487_v9 = vpop.permute.xlu0 %1486 }
  0xdb   : > { %v1507_v10 = vrot.slane %v1499_v8, %v6091_v38  ;;  %v1495_v11 = vrot.slane %v1487_v9, %v6091_v38 }
  0xdd   : > { %v6127_v12 = vcombine.low %v1495_v11, %v1507_v10  ;;  %v4606_v10 = vcombine.low %v1039_v58, %v1051_v54 }
  0xde   : > { %v6129_v13 = vpop.permute.xlu1 %1114  ;;  %v6131_v14 = vpop.permute.xlu0 %1102 }
  0xe2   : > { %v1523_v15 = vpop.permute.xlu1 %1522  ;;  %v1511_v16 = vpop.permute.xlu0 %1510 }
  0xe3   : > { %v1531_v17 = vrot.slane %v1523_v15, %v6091_v38  ;;  %v1519_v18 = vrot.slane %v1511_v16, %v6091_v38  ;;  %v1123_v16 = vrot.slane %v6129_v13, %v6091_v38  ;;  %v1087_v13 = vrot.slane %v6123_v7, %v6091_v38 }
  0xe5   : > { %v6135_v19 = vcombine.low %v1519_v18, %v1531_v17  ;;  %v1111_v17 = vrot.slane %v6131_v14, %v6091_v38  ;;  %v5556_v14 = vld [vmem:[%s7498_s3] sm:$0xff]  }
  0xe6   : > { %v6137_v22 = vpop.permute.xlu1 %1138  ;;  %v6139_v29 = vpop.permute.xlu0 %1126  ;;  %5205 = vmatprep.subr.bf16.mxu0 %v5556_v14  ;;  %5432 = vmatprep.subr.bf16.mxu1 %v5556_v14 }
  0xe7   : > { %v4609_v49 = vcombine.low %v1111_v17, %v1123_v16  ;;  %5206 = vmatpush3.bf16.msra.mxu0 %v5556_v14  ;;  %5438 = vmatpush3.bf16.msra.mxu1 %v5556_v14 }
  0xea   : > { %v1547_v30 = vpop.permute.xlu1 %1546  ;;  %v1535_v31 = vpop.permute.xlu0 %1534 }
  0xeb   : > { %v1555_v34 = vrot.slane %v1547_v30, %v6091_v38  ;;  %v1543_v35 = vrot.slane %v1535_v31, %v6091_v38 }
  0xed   : > { %v6143_v39 = vcombine.low %v1543_v35, %v1555_v34  ;;  %v1099_v35 = vrot.slane %v6121_v6, %v6091_v38 }
 0x108   : > { %v5141_v42 = vpop.f32.mrf.mxu0 }
 0x109   : > { %v732_v47 = vadd.f32 %v5141_v42, %v6154_v44 }
 0x10a   : > { %v723_v45 = vpop.f32.mrf.mxu0 }
 0x10b   : > { %v724_v52 = vadd.f32 %v6154_v44, %v723_v45  ;;  %v947_v59 = vmax.f32 %v732_v47, 0.0 }
 0x10c   : > { %v5142_v50 = vpop.f32.mrf.mxu0 }
 0x10d   : > { %v735_v53 = vadd.f32 %v5142_v50, %v6154_v44  ;;  %v945_v3 = vmax.f32 %v724_v52, 0.0 }
 0x10e   : > { %v726_v56 = vpop.f32.mrf.mxu0 }
 0x10f   : > { %v948_v63 = vmax.f32 %v735_v53, 0.0  ;;  %v727_v0 = vadd.f32 %v6154_v44, %v726_v56 }
 0x110   : > { %v5145_v1 = vpop.f32.mrf.mxu0 }
 0x111   : > { %v1001_v4 = vpack.c.bf16 %v948_v63, %v947_v59  ;;  %v946_v8 = vmax.f32 %v727_v0, 0.0  ;;  %v748_v61 = vadd.f32 %v5145_v1, %v6154_v44  ;;  %v4608_v59 = vcombine.low %v1087_v13, %v1099_v35 }
 0x112   : > { %v739_v9 = vpop.f32.mrf.mxu0 }
 0x113   : > { %v6177_v11 = vmul.bf16 %v4607_v2, %v1001_v4  ;;  %v1000_v15 = vpack.c.bf16 %v946_v8, %v945_v3  ;;  %v740_v31 = vadd.f32 %v6154_v44, %v739_v9  ;;  %v951_v40 = vmax.f32 %v748_v61, 0.0 }
 0x114   : > { %v5146_v18 = vpop.f32.mrf.mxu0  ;;  %v1147_v61 = vrot.slane %v6137_v22, %v6091_v38  ;;  %v1135_v9 = vrot.slane %v6139_v29, %v6091_v38 }
 0x115   : > { %v6183_v30 = vmul.bf16 %v4606_v10, %v1000_v15  ;;  %v751_v34 = vadd.f32 %v5146_v18, %v6154_v44  ;;  %v2187_v47 = vrot.slane %v6177_v11, 1  ;;  %v1891_v7 = vshll.u32 %v6177_v11, 16 }
 0x116   : > { %v742_v41 = vpop.f32.mrf.mxu0  ;;  %v949_v51 = vmax.f32 %v740_v31, 0.0  ;;  %v1895_v14 = vshrl.u32 %v6177_v11, 16 }
 0x117   : > { %v952_v42 = vmax.f32 %v751_v34, 0.0  ;;  %v743_v45 = vadd.f32 %v6154_v44, %v742_v41  ;;  %v2186_v46 = vrot.slane %v6183_v30, 1  ;;  %v1886_v6 = vshll.u32 %v6183_v30, 16 }
 0x118   : > { %v5149_v50 = vpop.f32.mrf.mxu0  ;;  %v1884_v57 = vshrl.u32 %v6183_v30, 16  ;;  %v1893_v3 = vrot.slane %v1891_v7, 1  ;;  %v1151_v7 = vpop.permute.xlu0 %1150 }
 0x119   : > { %v1003_v52 = vpack.c.bf16 %v952_v42, %v951_v40  ;;  %v950_v53 = vmax.f32 %v743_v45, 0.0  ;;  %v2188_v54 = vsel %vm2185_vm0, %v2186_v46, %v2187_v47  ;;  %v1888_v58 = vrot.slane %v1886_v6, 1  ;;  %v1163_v46 = vpop.permute.xlu1 %1162 }
 0x11a   : > { %v755_v56 = vpop.f32.mrf.mxu0  ;;  %2241 = vrot.lane.b32.xlu0 %v2188_v54, %s5735_s14  ;;  %v764_v13 = vadd.f32 %v5149_v50, %v6154_v44  ;;  %v4610_v45 = vcombine.low %v1135_v9, %v1147_v61  ;;  %v1897_v50 = vor.u32 %v1895_v14, %v1893_v3 }
 0x11b   : > { %v6202_v63 = vmul.bf16 %v4609_v49, %v1003_v52  ;;  %v1002_v0 = vpack.c.bf16 %v950_v53, %v949_v51  ;;  %v1889_v2 = vor.u32 %v1888_v58, %v1884_v57  ;;  %v756_v8 = vadd.f32 %v6154_v44, %v755_v56 }
 0x11c   : > { %v5150_v1 = vpop.f32.mrf.mxu0  ;;  %v1159_v56 = vrot.slane %v1151_v7, %v6091_v38  ;;  %v955_v58 = vmax.f32 %v764_v13, 0.0  ;;  %v1255_v13 = vrot.slane %v6066_v20, %v6091_v38  ;;  %v1243_v20 = vrot.slane %v6073_v24, %v6091_v38 }
 0x11d   : > { %v6204_v4 = vmul.bf16 %v4608_v59, %v1002_v0  ;;  %v1894_v10 = vsel %vm1882_vm1, %v1889_v2, %v1893_v3  ;;  %v2191_v17 = vrot.slane %v6202_v63, 1  ;;  %v767_v31 = vadd.f32 %v5150_v1, %v6154_v44 }
 0x11e   : > { %v758_v62 = vpop.f32.mrf.mxu0  ;;  %2103 = vrot.lane.b32.xlu1 %v1894_v10, %s5736_s16  ;;  %v953_v34 = vmax.f32 %v756_v8, 0.0  ;;  %v1907_v54 = vshll.u32 %v6202_v63, 16 }
 0x11f   : > { %v759_v15 = vadd.f32 %v6154_v44, %v758_v62  ;;  %v2189_v16 = vrot.slane %v6204_v4, 1  ;;  %v1899_v18 = vshll.u32 %v6204_v4, 16  ;;  %v956_v51 = vmax.f32 %v767_v31, 0.0 }
 0x120   : > { %v5153_v22 = vpop.f32.mrf.mxu0  ;;  %v1903_v53 = vshrl.u32 %v6204_v4, 16  ;;  %v1909_v62 = vrot.slane %v1907_v54, 1 }
 0x121   : > { %v954_v35 = vmax.f32 %v759_v15, 0.0  ;;  %v2192_v29 = vsel %vm2185_vm0, %v2189_v16, %v2191_v17  ;;  %v2190_v41 = vsel %vm2185_vm0, %v2187_v47, %v2189_v16  ;;  %v1901_v42 = vrot.slane %v1899_v18, 1 }
 0x122   : > { %v6220_v40 = vpop.f32.mrf.mxu0  ;;  %2245 = vrot.lane.b32.xlu0 %v2192_v29, %s5735_s14  ;;  %v780_v6 = vadd.f32 %v5153_v22, %v6154_v44  ;;  %2243 = vrot.lane.b32.xlu1 %v2190_v41, %s5735_s14  ;;  %v1171_v47 = vrot.slane %v1163_v46, %v6091_v38  ;;  %v1005_v61 = vpack.c.bf16 %v956_v51, %v955_v58 }
 0x123   : > { %v1004_v49 = vpack.c.bf16 %v954_v35, %v953_v34  ;;  %v1902_v1 = vsel %vm1882_vm1, %v1897_v50, %v1901_v42  ;;  %v1905_v2 = vor.u32 %v1903_v53, %v1901_v42  ;;  %v1267_v41 = vrot.slane %v6071_v23, %v6091_v38 }
 0x124   : > { %v5154_v52 = vpop.f32.mrf.mxu0  ;;  %v959_v8 = vmax.f32 %v780_v6, 0.0  ;;  %v4611_v15 = vcombine.low %v1159_v56, %v1171_v47  ;;  %v1911_v6 = vshrl.u32 %v6202_v63, 16 }
 0x125   : > { %v783_v57 = vadd.f32 %v5154_v52, %v6154_v44  ;;  %v6232_v59 = vmul.bf16 %v4610_v45, %v1004_v49  ;;  %v1910_v18 = vsel %vm1882_vm1, %v1905_v2, %v1909_v62  ;;  %v1231_v45 = vrot.slane %v6068_v21, %v6091_v38 }
 0x126   : > { %v6234_v0 = vpop.f32.mrf.mxu0  ;;  %2105 = vrot.lane.b32.xlu1 %v1902_v1, %s5736_s16  ;;  %v6245_v35 = vmul.bf16 %v4611_v15, %v1005_v61  ;;  %v1913_v53 = vor.u32 %v1911_v6, %v1909_v62  ;;  %v4615_v47 = vcombine.low %v1255_v13, %v1267_v41  ;;  %v1303_v62 = vrot.slane %v6081_v28, %v6091_v38 }
 0x127   : > { %v960_v3 = vmax.f32 %v783_v57, 0.0  ;;  %v2193_v31 = vrot.slane %v6232_v59, 1  ;;  %v1915_v22 = vshll.u32 %v6232_v59, 16  ;;  %v1919_v21 = vshrl.u32 %v6232_v59, 16 }
 0x128   : > { %v5157_v9 = vpop.f32.mrf.mxu0  ;;  %v1923_v54 = vshll.u32 %v6245_v35, 16  ;;  %v1279_v13 = vrot.slane %v6077_v26, %v6091_v38 }
 0x129   : > { %v6238_v10 = vpack.c.bf16 %v960_v3, %v959_v8  ;;  %v796_v34 = vadd.f32 %v5157_v9, %v6154_v44  ;;  %v2194_v49 = vsel %vm2185_vm0, %v2191_v17, %v2193_v31  ;;  %v1917_v7 = vrot.slane %v1915_v22, 1 }
 0x12a   : > { %v787_v16 = vpop.f32.mrf.mxu0  ;;  %2107 = vrot.lane.b32.xlu1 %v1910_v18, %s5736_s16  ;;  %v4614_v8 = vcombine.low %v1231_v45, %v1243_v20  ;;  %v1315_v9 = vrot.slane %v6079_v27, %v6091_v38  ;;  %v1291_v18 = vrot.slane %v6075_v25, %v6091_v38 }
 0x12b   : > { %v788_v14 = vadd.f32 %v6154_v44, %v787_v16  ;;  %v963_v51 = vmax.f32 %v796_v34, 0.0  ;;  %v1918_v24 = vsel %vm1882_vm1, %v1913_v53, %v1917_v7  ;;  %v1921_v2 = vor.u32 %v1919_v21, %v1917_v7 }
 0x12c   : > { %v5158_v29 = vpop.f32.mrf.mxu0  ;;  %v6274_v16 = vrot.slane %v1923_v54, 1  ;;  %v4616_v54 = vcombine.low %v1279_v13, %v1291_v18 }
 0x12d   : > { %v799_v42 = vadd.f32 %v5158_v29, %v6154_v44  ;;  %v961_v17 = vmax.f32 %v788_v14, 0.0 }
 0x12e   : > { %v790_v46 = vpop.f32.mrf.mxu0  ;;  %2247 = vrot.lane.b32.xlu1 %v2194_v49, %s5735_s14  ;;  %v1926_v28 = vsel %vm1882_vm1, %v1921_v2, %v6274_v16  ;;  %v4617_v49 = vcombine.low %v1303_v62, %v1315_v9  ;;  %v1339_v2 = vrot.slane %v6083_v32, %v6091_v38  ;;  %v1327_v62 = vrot.slane %v6085_v33, %v6091_v38 }
 0x12f   : > { %v964_v23 = vmax.f32 %v799_v42, 0.0  ;;  %v791_v52 = vadd.f32 %v6154_v44, %v790_v46 }
 0x130   : > { %v5161_v50 = vpop.f32.mrf.mxu0 }
 0x131   : > { %v1009_v56 = vpack.c.bf16 %v964_v23, %v963_v51  ;;  %v962_v57 = vmax.f32 %v791_v52, 0.0  ;;  %v812_v58 = vadd.f32 %v5161_v50, %v6154_v44 }
 0x132   : > { %v803_v1 = vpop.f32.mrf.mxu0  ;;  %2109 = vrot.lane.b32.xlu1 %v1918_v24, %s5736_s16 }
 0x133   : > { %v6267_v3 = vmul.bf16 %v4615_v47, %v1009_v56  ;;  %v1008_v61 = vpack.c.bf16 %v962_v57, %v961_v17  ;;  %v804_v34 = vadd.f32 %v6154_v44, %v803_v1  ;;  %v967_v41 = vmax.f32 %v812_v58, 0.0 }
 0x134   : > { %v5162_v15 = vpop.f32.mrf.mxu0  ;;  %v1363_v56 = vrot.slane %v6087_v36, %v6091_v38  ;;  %v1351_v57 = vrot.slane %v6089_v37, %v6091_v38 }
 0x135   : > { %v6278_v22 = vmul.bf16 %v4614_v8, %v1008_v61  ;;  %v815_v29 = vadd.f32 %v5162_v15, %v6154_v44  ;;  %v2203_v14 = vrot.slane %v6267_v3, 1  ;;  %v1955_v26 = vshll.u32 %v6267_v3, 16 }
 0x136   : > { %v806_v27 = vpop.f32.mrf.mxu0  ;;  %2111 = vrot.lane.b32.xlu1 %v1926_v28, %s5736_s16  ;;  %v965_v7 = vmax.f32 %v804_v34, 0.0  ;;  %v1959_v33 = vshrl.u32 %v6267_v3, 16 }
 0x137   : > { %v968_v42 = vmax.f32 %v815_v29, 0.0  ;;  %v807_v45 = vadd.f32 %v6154_v44, %v806_v27  ;;  %v2201_v25 = vrot.slane %v6278_v22, 1  ;;  %v1947_v46 = vshll.u32 %v6278_v22, 16 }
 0x138   : > { %v5165_v6 = vpop.f32.mrf.mxu0  ;;  %v1951_v21 = vshrl.u32 %v6278_v22, 16  ;;  %v1957_v24 = vrot.slane %v1955_v26, 1 }
 0x139   : > { %v1011_v20 = vpack.c.bf16 %v968_v42, %v967_v41  ;;  %v966_v51 = vmax.f32 %v807_v45, 0.0  ;;  %v2204_v23 = vsel %vm2185_vm0, %v2201_v25, %v2203_v14  ;;  %v828_v52 = vadd.f32 %v5165_v6, %v6154_v44  ;;  %v6324_v6 = vpop.permute.xlu1 %1570 }
 0x13a   : > { %v819_v50 = vpop.f32.mrf.mxu0  ;;  %2257 = vrot.lane.b32.xlu0 %v2204_v23, %s5735_s14  ;;  %v6297_v53 = vrot.slane %v1947_v46, 1  ;;  %v4619_v41 = vcombine.low %v1351_v57, %v1363_v56 }
 0x13b   : > { %v6300_v47 = vmul.bf16 %v4617_v49, %v1011_v20  ;;  %v1010_v17 = vpack.c.bf16 %v966_v51, %v965_v7  ;;  %v820_v61 = vadd.f32 %v6154_v44, %v819_v50  ;;  %v971_v36 = vmax.f32 %v828_v52, 0.0  ;;  %v6329_v50 = vpop.permute.xlu0 %1558 }
 0x13c   : > { %v5166_v58 = vpop.f32.mrf.mxu0  ;;  %v1953_v1 = vor.u32 %v1951_v21, %v6297_v53  ;;  %v4618_v52 = vcombine.low %v1327_v62, %v1339_v2 }
 0x13d   : > { %v6309_v8 = vmul.bf16 %v4616_v54, %v1010_v17  ;;  %v831_v9 = vadd.f32 %v5166_v58, %v6154_v44  ;;  %v2207_v18 = vrot.slane %v6300_v47, 1  ;;  %v1971_v28 = vshll.u32 %v6300_v47, 16 }
 0x13e   : > { %v822_v15 = vpop.f32.mrf.mxu0  ;;  %v1958_v37 = vsel %vm1882_vm1, %v1953_v1, %v1957_v24  ;;  %v969_v42 = vmax.f32 %v820_v61, 0.0  ;;  %v775_v17 = vadd.f32 %v6154_v44, %v6234_v0  ;;  %v772_v1 = vadd.f32 %v6154_v44, %v6220_v40 }
 0x13f   : > { %v972_v34 = vmax.f32 %v831_v9, 0.0  ;;  %v823_v29 = vadd.f32 %v6154_v44, %v822_v15  ;;  %2119 = vrot.lane.b32.xlu0 %v1958_v37, %s5736_s16  ;;  %v2205_v32 = vrot.slane %v6309_v8, 1  ;;  %v1963_v13 = vshll.u32 %v6309_v8, 16 }
 0x140   : > { %v5169_v27 = vpop.f32.mrf.mxu0  ;;  %v1967_v23 = vshrl.u32 %v6309_v8, 16  ;;  %v1973_v58 = vrot.slane %v1971_v28, 1  ;;  %v1975_v28 = vshrl.u32 %v6300_v47, 16 }
 0x141   : > { %v1013_v45 = vpack.c.bf16 %v972_v34, %v971_v36  ;;  %v970_v46 = vmax.f32 %v823_v29, 0.0  ;;  %v2208_v49 = vsel %vm2185_vm0, %v2205_v32, %v2207_v18  ;;  %v844_v26 = vadd.f32 %v5169_v27, %v6154_v44 }
 0x142   : > { %v835_v7 = vpop.f32.mrf.mxu0  ;;  %v2206_v20 = vsel %vm2185_vm0, %v2203_v14, %v2205_v32  ;;  %v1965_v51 = vrot.slane %v1963_v13, 1  ;;  %v1961_v14 = vor.u32 %v1959_v33, %v1957_v24  ;;  %v1187_v32 = vpop.permute.xlu1 %1186  ;;  %v958_v13 = vmax.f32 %v775_v17, 0.0 }
 0x143   : > { %v6331_v21 = vmul.bf16 %v4619_v41, %v1013_v45  ;;  %v1012_v54 = vpack.c.bf16 %v970_v46, %v969_v42  ;;  %2261 = vrot.lane.b32.xlu0 %v2208_v49, %s5735_s14  ;;  %2259 = vrot.lane.b32.xlu1 %v2206_v20, %s5735_s14  ;;  %v836_v61 = vadd.f32 %v6154_v44, %v835_v7  ;;  %v975_v62 = vmax.f32 %v844_v26, 0.0  ;;  %v1175_v33 = vpop.permute.xlu0 %1174 }
 0x144   : > { %v5170_v56 = vpop.f32.mrf.mxu0  ;;  %v1969_v57 = vor.u32 %v1967_v23, %v1965_v51  ;;  %v1966_v37 = vsel %vm1882_vm1, %v1961_v14, %v1965_v51 }
 0x145   : > { %v6339_v2 = vmul.bf16 %v4618_v52, %v1012_v54  ;;  %v847_v9 = vadd.f32 %v5170_v56, %v6154_v44  ;;  %v2211_v0 = vrot.slane %v6331_v21, 1  ;;  %v1987_v27 = vshll.u32 %v6331_v21, 16 }
 0x146   : > { %v838_v36 = vpop.f32.mrf.mxu0  ;;  %v1974_v15 = vsel %vm1882_vm1, %v1969_v57, %v1973_v58  ;;  %v973_v42 = vmax.f32 %v836_v61, 0.0  ;;  %v1195_v52 = vrot.slane %v1187_v32, %v6091_v38  ;;  %v957_v54 = vmax.f32 %v772_v1, 0.0 }
 0x147   : > { %v976_v34 = vmax.f32 %v847_v9, 0.0  ;;  %v839_v24 = vadd.f32 %v6154_v44, %v838_v36  ;;  %2123 = vrot.lane.b32.xlu0 %v1974_v15, %s5736_s16  ;;  %2121 = vrot.lane.b32.xlu1 %v1966_v37, %s5736_s16  ;;  %v2209_v40 = vrot.slane %v6339_v2, 1  ;;  %v1979_v29 = vshll.u32 %v6339_v2, 16 }
 0x148   : > { %v5173_v41 = vpop.f32.mrf.mxu0  ;;  %v1983_v23 = vshrl.u32 %v6339_v2, 16  ;;  %v1183_v57 = vrot.slane %v1175_v33, %v6091_v38  ;;  %v1989_v9 = vrot.slane %v1987_v27, 1 }
 0x149   : > { %v1015_v45 = vpack.c.bf16 %v976_v34, %v975_v62  ;;  %v974_v46 = vmax.f32 %v839_v24, 0.0  ;;  %v2212_v49 = vsel %vm2185_vm0, %v2209_v40, %v2211_v0  ;;  %v860_v26 = vadd.f32 %v5173_v41, %v6154_v44 }
 0x14a   : > { %v851_v7 = vpop.f32.mrf.mxu0  ;;  %v2210_v20 = vsel %vm2185_vm0, %v2207_v18, %v2209_v40  ;;  %v1981_v51 = vrot.slane %v1979_v29, 1  ;;  %v1977_v18 = vor.u32 %v1975_v28, %v1973_v58  ;;  %v1006_v62 = vpack.c.bf16 %v958_v13, %v957_v54  ;;  %v6378_v28 = vpop.permute.xlu1 %1594 }
 0x14b   : > { %v6359_v17 = vmul.bf16 %v6099_v48, %v1015_v45  ;;  %v1014_v56 = vpack.c.bf16 %v974_v46, %v973_v42  ;;  %2265 = vrot.lane.b32.xlu0 %v2212_v49, %s5735_s14  ;;  %2263 = vrot.lane.b32.xlu1 %v2210_v20, %s5735_s14  ;;  %v852_v1 = vadd.f32 %v6154_v44, %v851_v7  ;;  %v979_v15 = vmax.f32 %v860_v26, 0.0 }
 0x14c   : > { %v5174_v14 = vpop.f32.mrf.mxu0  ;;  %v1985_v61 = vor.u32 %v1983_v23, %v1981_v51  ;;  %v1982_v24 = vsel %vm1882_vm1, %v1977_v18, %v1981_v51  ;;  %v4612_v13 = vcombine.low %v1183_v57, %v1195_v52  ;;  %v1991_v51 = vshrl.u32 %v6331_v21, 16  ;;  %v6392_v18 = vpop.permute.xlu0 %1582 }
 0x14d   : > { %v6365_v36 = vmul.bf16 %v6095_v43, %v1014_v56  ;;  %v863_v48 = vadd.f32 %v5174_v14, %v6154_v44  ;;  %v2215_v40 = vrot.slane %v6359_v17, 1  ;;  %v2003_v27 = vshll.u32 %v6359_v17, 16 }
 0x14e   : > { %v854_v37 = vpop.f32.mrf.mxu0  ;;  %v1990_v34 = vsel %vm1882_vm1, %v1985_v61, %v1989_v9  ;;  %v977_v33 = vmax.f32 %v852_v1, 0.0  ;;  %v6384_v23 = vmul.bf16 %v4612_v13, %v1006_v62  ;;  %v1993_v61 = vor.u32 %v1991_v51, %v1989_v9 }
 0x14f   : > { %v980_v29 = vmax.f32 %v863_v48, 0.0  ;;  %v855_v32 = vadd.f32 %v6154_v44, %v854_v37  ;;  %2127 = vrot.lane.b32.xlu0 %v1990_v34, %s5736_s16  ;;  %2125 = vrot.lane.b32.xlu1 %v1982_v24, %s5736_s16  ;;  %v2213_v43 = vrot.slane %v6365_v36, 1  ;;  %v1995_v58 = vshll.u32 %v6365_v36, 16  ;;  %v6401_v34 = vpop.permute.xlu1 %1210 }
 0x150   : > { %v5177_v41 = vpop.f32.mrf.mxu0  ;;  %v1999_v20 = vshrl.u32 %v6365_v36, 16 }
 0x151   : > { %v1017_v42 = vpack.c.bf16 %v980_v29, %v979_v15  ;;  %v978_v45 = vmax.f32 %v855_v32, 0.0  ;;  %v2216_v46 = vsel %vm2185_vm0, %v2213_v43, %v2215_v40  ;;  %v2214_v26 = vsel %vm2185_vm0, %v2211_v0, %v2213_v43 }
 0x152   : > { %v867_v49 = vpop.f32.mrf.mxu0  ;;  %v1997_v7 = vrot.slane %v1995_v58, 1  ;;  %v876_v56 = vadd.f32 %v5177_v41, %v6154_v44  ;;  %v2005_v0 = vrot.slane %v2003_v27, 1  ;;  %v1579_v32 = vrot.slane %v6324_v6, %v6091_v38 }
 0x153   : > { %v6387_v52 = vmul.bf16 %v6109_v60, %v1017_v42  ;;  %v1016_v54 = vpack.c.bf16 %v978_v45, %v977_v33  ;;  %2269 = vrot.lane.b32.xlu0 %v2216_v46, %s5735_s14  ;;  %2267 = vrot.lane.b32.xlu1 %v2214_v26, %s5735_s14  ;;  %v868_v62 = vadd.f32 %v6154_v44, %v867_v49  ;;  %v1931_v41 = vshll.u32 %v6384_v23, 16 }
 0x154   : > { %v5178_v57 = vpop.f32.mrf.mxu0  ;;  %v2001_v14 = vor.u32 %v1999_v20, %v1997_v7  ;;  %v1998_v37 = vsel %vm1882_vm1, %v1993_v61, %v1997_v7  ;;  %v983_v43 = vmax.f32 %v876_v56, 0.0  ;;  %v2007_v45 = vshrl.u32 %v6359_v17, 16  ;;  %v1199_v20 = vpop.permute.xlu0 %1198 }
 0x155   : > { %v6395_v1 = vmul.bf16 %v6105_v55, %v1016_v54  ;;  %v879_v60 = vadd.f32 %v5178_v57, %v6154_v44  ;;  %v2219_v9 = vrot.slane %v6387_v52, 1  ;;  %v981_v27 = vmax.f32 %v868_v62, 0.0 }
 0x156   : > { %v870_v48 = vpop.f32.mrf.mxu0  ;;  %v2006_v15 = vsel %vm1882_vm1, %v2001_v14, %v2005_v0  ;;  %v1567_v46 = vrot.slane %v6329_v50, %v6091_v38  ;;  %v1219_v49 = vrot.slane %v6401_v34, %v6091_v38  ;;  %v2195_v56 = vrot.slane %v6245_v35, 1 }
 0x157   : > { %v871_v24 = vadd.f32 %v6154_v44, %v870_v48  ;;  %2131 = vrot.lane.b32.xlu0 %v2006_v15, %s5736_s16  ;;  %2129 = vrot.lane.b32.xlu1 %v1998_v37, %s5736_s16  ;;  %v2217_v55 = vrot.slane %v6395_v1, 1  ;;  %v2011_v29 = vshll.u32 %v6395_v1, 16  ;;  %v984_v58 = vmax.f32 %v879_v60, 0.0 }
 0x158   : > { %v5181_v13 = vpop.f32.mrf.mxu0  ;;  %v2009_v57 = vor.u32 %v2007_v45, %v2005_v0  ;;  %v2015_v62 = vshrl.u32 %v6395_v1, 16  ;;  %v1927_v15 = vshrl.u32 %v6245_v35, 16  ;;  %v6433_v37 = vrot.slane %v1931_v41, 1 }
 0x159   : > { %v982_v33 = vmax.f32 %v871_v24, 0.0  ;;  %v2220_v42 = vsel %vm2185_vm0, %v2217_v55, %v2219_v9  ;;  %v2218_v26 = vsel %vm2185_vm0, %v2215_v40, %v2217_v55  ;;  %v2013_v7 = vrot.slane %v2011_v29, 1 }
 0x15a   : > { %v883_v6 = vpop.f32.mrf.mxu0  ;;  %v1019_v14 = vpack.c.bf16 %v984_v58, %v983_v43  ;;  %v892_v50 = vadd.f32 %v5181_v13, %v6154_v44  ;;  %v2019_v40 = vshll.u32 %v6387_v52, 16  ;;  %v1207_v34 = vrot.slane %v1199_v20, %v6091_v38 }
 0x15b   : > { %v1018_v51 = vpack.c.bf16 %v982_v33, %v981_v27  ;;  %v884_v54 = vadd.f32 %v6154_v44, %v883_v6  ;;  %2273 = vrot.lane.b32.xlu0 %v2220_v42, %s5735_s14  ;;  %2271 = vrot.lane.b32.xlu1 %v2218_v26, %s5735_s14  ;;  %v2196_v24 = vsel %vm2185_vm0, %v2193_v31, %v2195_v56 }
 0x15c   : > { %v5182_v61 = vpop.f32.mrf.mxu0  ;;  %v2014_v55 = vsel %vm1882_vm1, %v2009_v57, %v2013_v7  ;;  %v2017_v29 = vor.u32 %v2015_v62, %v2013_v7  ;;  %v1929_v58 = vor.u32 %v1927_v15, %v6274_v16  ;;  %v6448_v41 = vmul.bf16 %v6127_v12, %v1019_v14 }
 0x15d   : > { %v6429_v60 = vmul.bf16 %v6119_v5, %v1018_v51  ;;  %v895_v48 = vadd.f32 %v5182_v61, %v6154_v44  ;;  %v985_v5 = vmax.f32 %v884_v54, 0.0  ;;  %v987_v27 = vmax.f32 %v892_v50, 0.0 }
 0x15e   : > { %v886_v0 = vpop.f32.mrf.mxu0  ;;  %v2021_v42 = vrot.slane %v2019_v40, 1  ;;  %v4628_v45 = vcombine.low %v1567_v46, %v1579_v32  ;;  %v1603_v6 = vrot.slane %v6378_v28, %v6091_v38  ;;  %v1934_v7 = vsel %vm1882_vm1, %v1929_v58, %v6433_v37 }
 0x15f   : > { %v887_v43 = vadd.f32 %v6154_v44, %v886_v0  ;;  %2249 = vrot.lane.b32.xlu0 %v2196_v24, %s5735_s14  ;;  %2133 = vrot.lane.b32.xlu1 %v2014_v55, %s5736_s16  ;;  %v2027_v13 = vshll.u32 %v6429_v60, 16  ;;  %v988_v33 = vmax.f32 %v895_v48, 0.0  ;;  %v2221_v51 = vrot.slane %v6429_v60, 1 }
 0x160   : > { %v5185_v31 = vpop.f32.mrf.mxu0  ;;  %v2022_v16 = vsel %vm1882_vm1, %v2017_v29, %v2021_v42  ;;  %v2023_v12 = vshrl.u32 %v6387_v52, 16  ;;  %v4613_v57 = vcombine.low %v1207_v34, %v1219_v49  ;;  %v2035_v62 = vshll.u32 %v6448_v41, 16 }
 0x161   : > { %v986_v26 = vmax.f32 %v887_v43, 0.0  ;;  %v2029_v54 = vrot.slane %v2027_v13, 1  ;;  %v1021_v28 = vpack.c.bf16 %v988_v33, %v987_v27  ;;  %v908_v32 = vadd.f32 %v5185_v31, %v6154_v44  ;;  %v1619_v43 = vpop.permute.xlu1 %1618 }
 0x162   : > { %v899_v20 = vpop.f32.mrf.mxu0  ;;  %v2025_v61 = vor.u32 %v2023_v12, %v2021_v42  ;;  %v1591_v40 = vrot.slane %v6392_v18, %v6091_v38  ;;  %v2197_v15 = vrot.slane %v6384_v23, 1  ;;  %v6470_v34 = vmul.bf16 %v4613_v57, %v6238_v10 }
 0x163   : > { %v1020_v14 = vpack.c.bf16 %v986_v26, %v985_v5  ;;  %v900_v50 = vadd.f32 %v6154_v44, %v899_v20  ;;  %2135 = vrot.lane.b32.xlu0 %v2022_v16, %s5736_s16  ;;  %2113 = vrot.lane.b32.xlu1 %v1934_v7, %s5736_s16  ;;  %v2222_v24 = vsel %vm2185_vm0, %v2219_v9, %v2221_v51  ;;  %v2223_v29 = vrot.slane %v6448_v41, 1  ;;  %v1607_v20 = vpop.permute.xlu0 %1606 }
 0x164   : > { %v5186_v46 = vpop.f32.mrf.mxu0  ;;  %v2030_v55 = vsel %vm1882_vm1, %v2025_v61, %v2029_v54  ;;  %v2031_v5 = vshrl.u32 %v6429_v60, 16  ;;  %v6483_v58 = vmul.bf16 %v6143_v39, %v1021_v28  ;;  %v991_v9 = vmax.f32 %v908_v32, 0.0 }
 0x165   : > { %v6465_v48 = vmul.bf16 %v6135_v19, %v1020_v14  ;;  %v911_v49 = vadd.f32 %v5186_v46, %v6154_v44  ;;  %v989_v18 = vmax.f32 %v900_v50, 0.0  ;;  %v2037_v33 = vrot.slane %v2035_v62, 1 }
 0x166   : > { %v902_v0 = vpop.f32.mrf.mxu0  ;;  %v4629_v31 = vcombine.low %v1591_v40, %v1603_v6  ;;  %v2198_v7 = vsel %vm2185_vm0, %v2195_v56, %v2197_v15  ;;  %v2224_v12 = vsel %vm2185_vm0, %v2221_v51, %v2223_v29  ;;  %v2033_v39 = vor.u32 %v2031_v5, %v2029_v54 }
 0x167   : > { %v903_v19 = vadd.f32 %v6154_v44, %v902_v0  ;;  %2275 = vrot.lane.b32.xlu0 %v2222_v24, %s5735_s14  ;;  %2137 = vrot.lane.b32.xlu1 %v2030_v55, %s5736_s16  ;;  %v2043_v10 = vshll.u32 %v6465_v48, 16  ;;  %v992_v13 = vmax.f32 %v911_v49, 0.0  ;;  %v2039_v57 = vshrl.u32 %v6448_v41, 16  ;;  %v6507_v24 = vld [vmem:[%s7498_s3 + $0x58] sm:$0xff]  }
 0x168   : > { %v5189_v27 = vpop.f32.mrf.mxu0  ;;  %v1627_v50 = vrot.slane %v1619_v43, %v6091_v38  ;;  %v1939_v32 = vshll.u32 %v6470_v34, 16  ;;  %v1935_v51 = vshrl.u32 %v6384_v23, 16  ;;  %v2051_v54 = vshll.u32 %v6483_v58, 16  ;;  %5255 = vmatprep.subr.bf16.mxu1 %v6507_v24 }
 0x169   : > { %v990_v42 = vmax.f32 %v903_v19, 0.0  ;;  %v924_v26 = vadd.f32 %v5189_v27, %v6154_v44  ;;  %v2045_v14 = vrot.slane %v2043_v10, 1  ;;  %v1023_v56 = vpack.c.bf16 %v992_v13, %v991_v9 }
 0x16a   : > { %v915_v16 = vpop.f32.mrf.mxu0  ;;  %v2041_v61 = vor.u32 %v2039_v57, %v2037_v33  ;;  %v1615_v62 = vrot.slane %v1607_v20, %v6091_v38  ;;  %v2225_v5 = vrot.slane %v6465_v48, 1  ;;  %v1937_v10 = vor.u32 %v1935_v51, %v6433_v37 }
 0x16b   : > { %v1022_v6 = vpack.c.bf16 %v990_v42, %v989_v18  ;;  %v916_v28 = vadd.f32 %v6154_v44, %v915_v16  ;;  %2277 = vrot.lane.b32.xlu0 %v2224_v12, %s5735_s14  ;;  %2251 = vrot.lane.b32.xlu1 %v2198_v7, %s5735_s14  ;;  %v995_v49 = vmax.f32 %v924_v26, 0.0  ;;  %v2038_v18 = vsel %vm1882_vm1, %v2033_v39, %v2037_v33  ;;  %v6528_v12 = vld [vmem:[%s7498_s3 + $0x88] sm:$0xff]  }
 0x16c   : > { %v5190_v46 = vpop.f32.mrf.mxu0  ;;  %v2046_v19 = vsel %vm1882_vm1, %v2041_v61, %v2045_v14  ;;  %v6517_v27 = vmul.bf16 %v4629_v31, %v1023_v56  ;;  %v1941_v42 = vrot.slane %v1939_v32, 1  ;;  %v2053_v33 = vrot.slane %v2051_v54, 1  ;;  %5315 = vmatprep.subr.bf16.mxu0 %v6528_v12 }
 0x16d   : > { %v6501_v40 = vmul.bf16 %v4628_v45, %v1022_v6  ;;  %v927_v0 = vadd.f32 %v5190_v46, %v6154_v44  ;;  %v993_v43 = vmax.f32 %v916_v28, 0.0  ;;  %v2226_v37 = vsel %vm2185_vm0, %v2223_v29, %v2225_v5 }
 0x16e   : > { %v918_v55 = vpop.f32.mrf.mxu0  ;;  %v1942_v20 = vsel %vm1882_vm1, %v1937_v10, %v1941_v42  ;;  %v4630_v31 = vcombine.low %v1615_v62, %v1627_v50  ;;  %v2227_v57 = vrot.slane %v6483_v58, 1  ;;  %v2047_v29 = vshrl.u32 %v6465_v48, 16 }
 0x16f   : > { %v996_v45 = vmax.f32 %v927_v0, 0.0  ;;  %v919_v9 = vadd.f32 %v6154_v44, %v918_v55  ;;  %2139 = vrot.lane.b32.xlu0 %v2038_v18, %s5736_s16  ;;  %2141 = vrot.lane.b32.xlu1 %v2046_v19, %s5736_s16  ;;  %v2059_v13 = vshll.u32 %v6501_v40, 16  ;;  %v2055_v44 = vshrl.u32 %v6483_v58, 16 }
 0x170   : > { %v2067_v28 = vshll.u32 %v6517_v27, 16  ;;  %v1943_v56 = vshrl.u32 %v6470_v34, 16  ;;  %v2228_v50 = vsel %vm2185_vm0, %v2225_v5, %v2227_v57  ;;  %v2049_v61 = vor.u32 %v2047_v29, %v2045_v14 }
 0x171   : > { %v6520_v26 = vpack.c.bf16 %v996_v45, %v995_v49  ;;  %v994_v7 = vmax.f32 %v919_v9, 0.0  ;;  %v2061_v16 = vrot.slane %v2059_v13, 1  ;;  %v2057_v6 = vor.u32 %v2055_v44, %v2053_v33 }
 0x172   : > { %v1945_v51 = vor.u32 %v1943_v56, %v1941_v42  ;;  %v2069_v62 = vrot.slane %v2067_v28, 1  ;;  %v2054_v0 = vsel %vm1882_vm1, %v2049_v61, %v2053_v33  ;;  %v2229_v55 = vrot.slane %v6501_v40, 1  ;;  %v448_v33 = vld [vmem:[%s7496_s1 + $0xcc] sm:$0xf] }
 0x173   : > { %v1024_v39 = vpack.c.bf16 %v994_v7, %v993_v43  ;;  %2279 = vrot.lane.b32.xlu0 %v2226_v37, %s5735_s14  ;;  %2115 = vrot.lane.b32.xlu1 %v1942_v20, %s5736_s16  ;;  %v2062_v46 = vsel %vm1882_vm1, %v2057_v6, %v2061_v16  ;;  %v2071_v18 = vshrl.u32 %v6517_v27, 16  ;;  %v2199_v43 = vrot.slane %v6470_v34, 1  ;;  %v6570_v7 = vpop.f32.mrf.mxu0 }
 0x174   : > { %v1950_v49 = vsel %vm1882_vm1, %v1945_v51, %v6297_v53  ;;  %v2230_v5 = vsel %vm2185_vm0, %v2227_v57, %v2229_v55  ;;  %v2231_v53 = vrot.slane %v6517_v27, 1  ;;  %v2063_v45 = vshrl.u32 %v6501_v40, 16  ;;  %v447_v57 = vld [vmem:[%s7496_s1 + $0xc8] sm:$0xf] }
 0x175   : > { %v6536_v32 = vmul.bf16 %v4630_v31, %v1024_v39  ;;  %v2073_v14 = vor.u32 %v2071_v18, %v2069_v62  ;;  %v2202_v13 = vsel %vm2185_vm0, %v2199_v43, %v2201_v25  ;;  %v6574_v44 = vpop.f32.mrf.mxu0  ;;  %v450_v25 = vld [vmem:[%s7496_s1 + $0xd4] sm:$0xf]  ;;  %v2200_v39 = vsel %vm2185_vm0, %v2197_v15, %v2199_v43  ;;  %v449_v15 = vld [vmem:[%s7496_s1 + $0xd0] sm:$0xf]  ;;  %v5567_v43 = vld [vmem:[%s7498_s3 + $0x68] sm:$0xff]  }
 0x176   : > { %v2232_v9 = vsel %vm2185_vm0, %v2229_v55, %v2231_v53  ;;  %v2065_v42 = vor.u32 %v2063_v45, %v2061_v16 }
 0x177   : > { %2281 = vrot.lane.b32.xlu0 %v2228_v50, %s5735_s14  ;;  %2145 = vrot.lane.b32.xlu1 %v2062_v46, %s5736_s16  ;;  %v2075_v54 = vshll.u32 %v6536_v32, 16  ;;  %v2233_v20 = vrot.slane %v6536_v32, 1  ;;  %v5194_v16 = vpop.f32.mrf.mxu0  ;;  %v451_v46 = vld [vmem:[%s7496_s1 + $0xd8] sm:$0xf] }
 0x178   : > { %v2070_v37 = vsel %vm1882_vm1, %v2065_v42, %v2069_v62 }
 0x179   : > { %v6549_v19 = vrot.slane %v2075_v54, 1  ;;  %v2234_v31 = vsel %vm2185_vm0, %v2231_v53, %v2233_v20 }
 0x17b   : > { %2143 = vrot.lane.b32.xlu0 %v2054_v0, %s5736_s16  ;;  %2117 = vrot.lane.b32.xlu1 %v1950_v49, %s5736_s16  ;;  %v2078_v10 = vsel %vm1882_vm1, %v2073_v14, %v6549_v19 }
 0x17f   : > { %2283 = vrot.lane.b32.xlu0 %v2230_v5, %s5735_s14  ;;  %2149 = vrot.lane.b32.xlu1 %v2078_v10, %s5736_s16  ;;  %v5565_v5 = vld [vmem:[%s7498_s3 + $0x70] sm:$0xff]  }
 0x183   : > { %2285 = vrot.lane.b32.xlu0 %v2232_v9, %s5735_s14  ;;  %2255 = vrot.lane.b32.xlu1 %v2202_v13, %s5735_s14  ;;  %v5568_v9 = vld [vmem:[%s7498_s3 + $0x60] sm:$0xff]  }
 0x187   : > { %2147 = vrot.lane.b32.xlu0 %v2070_v37, %s5736_s16  ;;  %1642 = vperm.xlu1 %5514, %v448_v33  }
 0x18b   : > { %2287 = vrot.lane.b32.xlu0 %v2234_v31, %s5735_s14  ;;  %1666 = vperm.xlu1 %5514, %v450_v25  }
 0x18c   : > { %v2242_v29 = vpop.permute.xlu0 %2241 }
 0x18f   : > { %2253 = vrot.lane.b32.xlu0 %v2200_v39, %s5735_s14 }
 0x190   : > { %v2104_v6 = vpop.permute.xlu1 %2103 }
 0x191   : > { %v2297_v28 = vsel %vm2295_vm2, %v6183_v30, %v2104_v6  ;;  %v5561_v30 = vld [vmem:[%s7498_s3 + $0x80] sm:$0xff]  }
 0x192   : > { %v2352_v56 = vsel %vm2350_vm3, %v2297_v28, %v2242_v29 }
 0x193   : > { %1630 = vperm.xlu0 %5513, %v447_v57   ;;  %5207 = vmatprep.mubr.msk.bf16.mxu0 %vm2460_vm4, %v2352_v56 }
 0x194   : > { %v2244_v50 = vpop.permute.xlu1 %2243  ;;  %v2246_v49 = vpop.permute.xlu0 %2245 }
 0x197   : > { %1654 = vperm.xlu0 %5513, %v449_v15  }
 0x198   : > { %v2106_v61 = vpop.permute.xlu1 %2105 }
 0x199   : > { %v2299_v51 = vsel %vm2295_vm2, %v6177_v11, %v2106_v61  ;;  %v5563_v11 = vld [vmem:[%s7498_s3 + $0x78] sm:$0xff]  }
 0x19a   : > { %v2354_v54 = vsel %vm2350_vm3, %v2299_v51, %v2244_v50  ;;  %v5562_v51 = vld [vmem:[%s7498_s3 + $0x40] sm:$0xff]  }
 0x19b   : > { %1678 = vperm.xlu0 %5513, %v451_v46   ;;  %5208 = vmatmul.mubr.msk.bf16.vlgmr.msra.gmra.mxu0 %vm2460_vm4, %v2354_v54  ;;  %v2773_v18 = vrot.slane %v2354_v54, 4 }
 0x19c   : > { %v2108_v62 = vpop.permute.xlu1 %2107  ;;  %5316 = vmatpush3.bf16.msra.mxu0 %v6528_v12 }
 0x19d   : > { %v2301_v0 = vsel %vm2295_vm2, %v6204_v4, %v2108_v62  ;;  %5317 = vmatprep.subr.bf16.mxu0 %v5561_v30 }
 0x19e   : > { %v6615_v55 = vsel %vm2350_vm3, %v2301_v0, %v2246_v49 }
 0x19f   : > { %5211 = vmatprep.mubr.msk.bf16.mxu0 %vm2460_vm4, %v6615_v55  ;;  %v2774_v14 = vrot.slane %v6615_v55, 4  ;;  %v5596_v55 = vld [vmem:[%s7500_s5] ss:$0 sm:$0xff] }
 0x1a0   : > { %v2248_v12 = vpop.permute.xlu1 %2247  ;;  %5318 = vmatpush3.bf16.msra.mxu0 %v5561_v30 }
 0x1a1   : > { %5319 = vmatprep.subr.bf16.mxu0 %v5563_v11  ;;  %v6623_v4 = vsel %vm2772_vm5, %v2773_v18, %v2774_v14  ;;  %v5566_v18 = vld [vmem:[%s7498_s3 + $0x30] sm:$0xff]  }
 0x1a4   : > { %v2110_v10 = vpop.permute.xlu1 %2109  ;;  %5320 = vmatpush3.bf16.msra.mxu0 %v5563_v11 }
 0x1a5   : > { %v2303_v53 = vsel %vm2295_vm2, %v6202_v63, %v2110_v10  ;;  %5321 = vmatprep.subr.bf16.mxu0 %v5565_v5 }
 0x1a6   : > { %v6634_v45 = vsel %vm2350_vm3, %v2303_v53, %v2248_v12 }
 0x1a7   : > { %5212 = vmatmul.mubr.msk.bf16.gmra.mxu0 %vm2460_vm4, %v6634_v45 }
 0x1a8   : > { %5322 = vmatpush3.bf16.msra.mxu0 %v5565_v5  ;;  %v2112_v63 = vpop.permute.xlu1 %2111 }
 0x1a9   : > { %5323 = vmatprep.subr.bf16.mxu0 %v5567_v43 }
 0x1ac   : > { %v2258_v13 = vpop.permute.xlu0 %2257  ;;  %5324 = vmatpush3.bf16.msra.mxu0 %v5567_v43 }
 0x1ad   : > { %5325 = vmatprep.subr.bf16.mxu0 %v5568_v9 }
 0x1b0   : > { %5326 = vmatpush3.bf16.msra.mxu0 %v5568_v9 }
 0x1b1   : > { %v2120_v42 = vpop.permute.xlu0 %2119 }
 0x1b2   : > { %v2313_v33 = vsel %vm2295_vm2, %v6278_v22, %v2120_v42  ;;  %v5558_v22 = vld [vmem:[%s7498_s3 + $0x50] sm:$0xff]  }
 0x1b3   : > { %v6644_v37 = vsel %vm2350_vm3, %v2313_v33, %v2258_v13 }
 0x1b4   : > { %5223 = vmatprep.mubr.msk.bf16.mxu1 %vm2460_vm4, %v6644_v37 }
 0x1b5   : > { %v2262_v25 = vpop.permute.xlu0 %2261  ;;  %v2260_v16 = vpop.permute.xlu1 %2259 }
 0x1b9   : > { %v2124_v31 = vpop.permute.xlu0 %2123  ;;  %v2122_v39 = vpop.permute.xlu1 %2121 }
 0x1ba   : > { %v2317_v57 = vsel %vm2295_vm2, %v6309_v8, %v2124_v31  ;;  %v2315_v6 = vsel %vm2295_vm2, %v6267_v3, %v2122_v39  ;;  %v5560_v3 = vld [vmem:[%s7498_s3 + $0x48] sm:$0xff]  }
 0x1bb   : > { %v6656_v29 = vsel %vm2350_vm3, %v2315_v6, %v2260_v16  ;;  %v6659_v28 = vsel %vm2350_vm3, %v2317_v57, %v2262_v25 }
 0x1bc   : > { %5224 = vmatmul.mubr.msk.bf16.vlgmr.msra.gmra.mxu1 %vm2460_vm4, %v6656_v29 }
 0x1bd   : > { %v2266_v56 = vpop.permute.xlu0 %2265  ;;  %5227 = vmatprep.mubr.msk.bf16.mxu1 %vm2460_vm4, %v6659_v28  ;;  %v2264_v8 = vpop.permute.xlu1 %2263  ;;  %5256 = vmatpush3.bf16.msra.mxu1 %v6507_v24 }
 0x1be   : > { %5257 = vmatprep.subr.bf16.mxu1 %v5558_v22 }
 0x1c1   : > { %v2128_v15 = vpop.permute.xlu0 %2127  ;;  %v2126_v50 = vpop.permute.xlu1 %2125  ;;  %5258 = vmatpush3.bf16.msra.mxu1 %v5558_v22 }
 0x1c2   : > { %v2321_v46 = vsel %vm2295_vm2, %v6339_v2, %v2128_v15  ;;  %v2319_v61 = vsel %vm2295_vm2, %v6300_v47, %v2126_v50  ;;  %5259 = vmatprep.subr.bf16.mxu1 %v5560_v3  ;;  %v5564_v47 = vld [vmem:[%s7498_s3 + $0x38] sm:$0xff]  }
 0x1c3   : > { %v6677_v24 = vsel %vm2350_vm3, %v2319_v61, %v2264_v8  ;;  %v6680_v30 = vsel %vm2350_vm3, %v2321_v46, %v2266_v56 }
 0x1c4   : > { %5228 = vmatmul.mubr.msk.bf16.gmra.mxu1 %vm2460_vm4, %v6677_v24 }
 0x1c5   : > { %v2270_v54 = vpop.permute.xlu0 %2269  ;;  %5231 = vmatprep.mubr.msk.bf16.mxu1 %vm2460_vm4, %v6680_v30  ;;  %v2268_v2 = vpop.permute.xlu1 %2267  ;;  %5260 = vmatpush3.bf16.msra.mxu1 %v5560_v3 }
 0x1c6   : > { %5261 = vmatprep.subr.bf16.mxu1 %v5562_v51 }
 0x1c9   : > { %v2132_v62 = vpop.permute.xlu0 %2131  ;;  %v2130_v49 = vpop.permute.xlu1 %2129  ;;  %5262 = vmatpush3.bf16.msra.mxu1 %v5562_v51 }
 0x1ca   : > { %v2325_v0 = vsel %vm2295_vm2, %v6365_v36, %v2132_v62  ;;  %v2323_v11 = vsel %vm2295_vm2, %v6331_v21, %v2130_v49  ;;  %5263 = vmatprep.subr.bf16.mxu1 %v5564_v47  ;;  %v2305_v21 = vsel %vm2295_vm2, %v6232_v59, %v2112_v63 }
 0x1cb   : > { %v6697_v12 = vsel %vm2350_vm3, %v2323_v11, %v2268_v2  ;;  %v6700_v5 = vsel %vm2350_vm3, %v2325_v0, %v2270_v54 }
 0x1cc   : > { %5232 = vmatmul.mubr.msk.bf16.gmra.mxu1 %vm2460_vm4, %v6697_v12 }
 0x1cd   : > { %v2274_v10 = vpop.permute.xlu0 %2273  ;;  %5235 = vmatprep.mubr.msk.bf16.mxu1 %vm2460_vm4, %v6700_v5  ;;  %v2272_v36 = vpop.permute.xlu1 %2271  ;;  %5264 = vmatpush3.bf16.msra.mxu1 %v5564_v47 }
 0x1ce   : > { %5265 = vmatprep.subr.bf16.mxu1 %v5566_v18 }
 0x1d1   : > { %v2250_v53 = vpop.permute.xlu0 %2249  ;;  %v2134_v43 = vpop.permute.xlu1 %2133  ;;  %5266 = vmatpush3.bf16.msra.mxu1 %v5566_v18 }
 0x1d2   : > { %v6709_v9 = vsel %vm2350_vm3, %v2305_v21, %v2250_v53  ;;  %v2327_v13 = vsel %vm2295_vm2, %v6359_v17, %v2134_v43 }
 0x1d3   : > { %5215 = vmatprep.mubr.msk.bf16.mxu0 %vm2460_vm4, %v6709_v9  ;;  %v6716_v42 = vsel %vm2350_vm3, %v2327_v13, %v2272_v36  ;;  %v2776_v13 = vrot.slane %v6634_v45, 4 }
 0x1d4   : > { %5236 = vmatmul.mubr.msk.bf16.gmra.mxu1 %vm2460_vm4, %v6716_v42 }
 0x1d5   : > { %v2136_v33 = vpop.permute.xlu0 %2135  ;;  %v2114_v59 = vpop.permute.xlu1 %2113 }
 0x1d6   : > { %v2329_v63 = vsel %vm2295_vm2, %v6395_v1, %v2136_v33  ;;  %v2307_v1 = vsel %vm2295_vm2, %v6245_v35, %v2114_v59  ;;  %v2778_v59 = vrot.slane %v6709_v9, 4 }
 0x1d7   : > { %v6723_v25 = vsel %vm2350_vm3, %v2329_v63, %v2274_v10 }
 0x1d8   : > { %5239 = vmatprep.mubr.msk.bf16.mxu1 %vm2460_vm4, %v6723_v25 }
 0x1d9   : > { %v2276_v17 = vpop.permute.xlu0 %2275  ;;  %v2138_v16 = vpop.permute.xlu1 %2137 }
 0x1da   : > { %v2331_v31 = vsel %vm2295_vm2, %v6387_v52, %v2138_v16  ;;  %v934_v16 = vpop.f32.mrf.mxu0 }
 0x1db   : > { %v6730_v39 = vsel %vm2350_vm3, %v2331_v31, %v2276_v17 }
 0x1dc   : > { %5240 = vmatmul.mubr.msk.bf16.gmra.mxu1 %vm2460_vm4, %v6730_v39 }
 0x1dd   : > { %v2278_v57 = vpop.permute.xlu0 %2277  ;;  %v2252_v6 = vpop.permute.xlu1 %2251 }
 0x1de   : > { %v6737_v22 = vsel %vm2350_vm3, %v2307_v1, %v2252_v6 }
 0x1df   : > { %5216 = vmatmul.mubr.msk.bf16.gmra.mxu0 %vm2460_vm4, %v6737_v22 }
 0x1e1   : > { %v2140_v56 = vpop.permute.xlu0 %2139  ;;  %v2142_v8 = vpop.permute.xlu1 %2141 }
 0x1e2   : > { %v2333_v52 = vsel %vm2295_vm2, %v6429_v60, %v2140_v56  ;;  %v2335_v35 = vsel %vm2295_vm2, %v6448_v41, %v2142_v8 }
 0x1e3   : > { %v6744_v3 = vsel %vm2350_vm3, %v2333_v52, %v2278_v57  ;;  %v940_v52 = vadd.f32 %v5596_v55, %v6570_v7  ;;  %v2079_v7 = vshrl.u32 %v6536_v32, 16 }
 0x1e4   : > { %5243 = vmatprep.mubr.msk.bf16.mxu1 %vm2460_vm4, %v6744_v3 }
 0x1e5   : > { %v2280_v15 = vpop.permute.xlu0 %2279  ;;  %v2116_v46 = vpop.permute.xlu1 %2115 }
 0x1e6   : > { %v6751_v50 = vsel %vm2350_vm3, %v2335_v35, %v2280_v15 }
 0x1e7   : > { %5244 = vmatmul.mubr.msk.bf16.gmra.mxu1 %vm2460_vm4, %v6751_v50 }
 0x1e9   : > { %v2282_v61 = vpop.permute.xlu0 %2281  ;;  %v2146_v51 = vpop.permute.xlu1 %2145 }
 0x1ea   : > { %v2339_v41 = vsel %vm2295_vm2, %v6483_v58, %v2146_v51 }
 0x1ed   : > { %v2144_v60 = vpop.permute.xlu0 %2143  ;;  %v2118_v49 = vpop.permute.xlu1 %2117 }
 0x1ee   : > { %v2337_v54 = vsel %vm2295_vm2, %v6465_v48, %v2144_v60 }
 0x1ef   : > { %v6758_v2 = vsel %vm2350_vm3, %v2337_v54, %v2282_v61  ;;  %v2786_v54 = vrot.slane %v6644_v37, 4 }
 0x1f0   : > { %5247 = vmatprep.mubr.msk.bf16.mxu1 %vm2460_vm4, %v6758_v2 }
 0x1f1   : > { %v2284_v47 = vpop.permute.xlu0 %2283  ;;  %v2150_v48 = vpop.permute.xlu1 %2149 }
 0x1f2   : > { %v6765_v62 = vsel %vm2350_vm3, %v2339_v41, %v2284_v47  ;;  %v2343_v58 = vsel %vm2295_vm2, %v6517_v27, %v2150_v48  ;;  %v2311_v27 = vsel %vm2295_vm2, %v6470_v34, %v2118_v49  ;;  %v2779_v34 = vsel %vm2772_vm5, %v2776_v13, %v2778_v59 }
 0x1f3   : > { %5248 = vmatmul.mubr.msk.bf16.gmra.mxu1 %vm2460_vm4, %v6765_v62  ;;  %v999_v41 = vmax.f32 %v940_v52, 0.0 }
 0x1f5   : > { %v2286_v0 = vpop.permute.xlu0 %2285  ;;  %v2256_v53 = vpop.permute.xlu1 %2255 }
 0x1f6   : > { %v2366_v63 = vsel %vm2350_vm3, %v2311_v27, %v2256_v53 }
 0x1f9   : > { %v2148_v11 = vpop.permute.xlu0 %2147 }
 0x1fa   : > { %v2341_v18 = vsel %vm2295_vm2, %v6501_v40, %v2148_v11  ;;  %v2309_v40 = vsel %vm2295_vm2, %v6384_v23, %v2116_v46  ;;  %v2777_v23 = vsel %vm2772_vm5, %v2774_v14, %v2776_v13  ;;  %v932_v14 = vadd.f32 %v5596_v55, %v6574_v44 }
 0x1fb   : > { %v6772_v10 = vsel %vm2350_vm3, %v2341_v18, %v2286_v0  ;;  %v1027_v13 = vpack.c.bf16 %v999_v41, %v999_v41  ;;  %v2810_v41 = vrot.slane %v6758_v2, 4 }
 0x1fc   : > { %5251 = vmatprep.mubr.msk.bf16.mxu1 %vm2460_vm4, %v6772_v10  ;;  %v997_v44 = vmax.f32 %v932_v14, 0.0 }
 0x1fd   : > { %v2288_v36 = vpop.permute.xlu0 %2287 }
 0x1fe   : > { %v6779_v21 = vsel %vm2350_vm3, %v2343_v58, %v2288_v36  ;;  %v2081_v58 = vor.u32 %v2079_v7, %v6549_v19  ;;  %v2812_v7 = vrot.slane %v6765_v62, 4 }
 0x1ff   : > { %5252 = vmatmul.mubr.msk.bf16.gmra.mxu1 %vm2460_vm4, %v6779_v21 }
 0x200   : > { %5267 = vmatprep.mubr.msk.bf16.mxu1 %vm2460_vm4, %v6623_v4  ;;  %v2780_v4 = vrot.slane %v6737_v22, 4 }
 0x201   : > { %v2254_v43 = vpop.permute.xlu0 %2253 }
 0x202   : > { %v2364_v33 = vsel %vm2350_vm3, %v2309_v40, %v2254_v43  ;;  %v1643_v17 = vpop.permute.xlu1 %1642  ;;  %v2781_v57 = vsel %vm2772_vm5, %v2778_v59, %v2780_v4  ;;  %v2788_v59 = vrot.slane %v6656_v29, 4 }
 0x203   : > { %5219 = vmatprep.mubr.msk.bf16.mxu0 %vm2460_vm4, %v2364_v33  ;;  %v2782_v31 = vrot.slane %v2364_v33, 4  ;;  %v1651_v6 = vrot.slane %v1643_v17, %v6091_v38 }
 0x204   : > { %5220 = vmatmul.mubr.msk.bf16.gmra.mxu0 %vm2460_vm4, %v2366_v63 }
 0x205   : > { %5327 = vmatprep.mubr.msk.bf16.mxu0 %vm2460_vm4, %v6634_v45  ;;  %v935_v45 = vadd.f32 %v5596_v55, %v934_v16 }
 0x206   : > { %v1667_v8 = vpop.permute.xlu1 %1666 }
 0x207   : > { %5268 = vmatmul.mubr.msk.bf16.vlgmr.msra.gmra.mxu1 %vm2460_vm4, %v2777_v23  ;;  %v998_v35 = vmax.f32 %v935_v45, 0.0  ;;  %v1675_v61 = vrot.slane %v1667_v8, %v6091_v38  ;;  %v2789_v45 = vsel %vm2772_vm5, %v2786_v54, %v2788_v59 }
 0x208   : > { %5271 = vmatprep.mubr.msk.bf16.mxu1 %vm2460_vm4, %v2779_v34 }
 0x209   : > { %v1026_v47 = vpack.c.bf16 %v998_v35, %v997_v44  ;;  %v2796_v44 = vrot.slane %v6697_v12, 4  ;;  %v2798_v35 = vrot.slane %v6700_v5, 4 }
 0x20c   : > { %5328 = vmatmul.mubr.msk.bf16.vlgmr.msra.gmra.mxu0 %vm2460_vm4, %v6709_v9  ;;  %v2783_v9 = vsel %vm2772_vm5, %v2780_v4, %v2782_v31 }
 0x20d   : > { %5331 = vmatprep.mubr.msk.bf16.mxu0 %vm2460_vm4, %v6737_v22  ;;  %v2784_v22 = vrot.slane %v2366_v63, 4 }
 0x20e   : > { %v1631_v1 = vpop.permute.xlu0 %1630 }
 0x20f   : > { %v1639_v56 = vrot.slane %v1631_v1, %v6091_v38  ;;  %5272 = vmatmul.mubr.msk.bf16.gmra.mxu1 %vm2460_vm4, %v2781_v57  ;;  %v2787_v18 = vsel %vm2772_vm5, %v2784_v22, %v2786_v54  ;;  %v2808_v54 = vrot.slane %v6751_v50, 4 }
 0x210   : > { %5275 = vmatprep.mubr.msk.bf16.mxu1 %vm2460_vm4, %v2783_v9  ;;  %v2794_v9 = vrot.slane %v6680_v30, 4 }
 0x211   : > { %v4631_v15 = vcombine.low %v1639_v56, %v1651_v6  ;;  %v2792_v56 = vrot.slane %v6677_v24, 4 }
 0x212   : > { %v1655_v46 = vpop.permute.xlu0 %1654 }
 0x213   : > { %v6821_v60 = vmul.bf16 %v4631_v15, %v6520_v26  ;;  %v1663_v51 = vrot.slane %v1655_v46, %v6091_v38  ;;  %v2785_v26 = vsel %vm2772_vm5, %v2782_v31, %v2784_v22  ;;  %v2795_v8 = vsel %vm2772_vm5, %v2792_v56, %v2794_v9 }
 0x214   : > { %5332 = vmatmul.mubr.msk.bf16.gmra.mxu0 %vm2460_vm4, %v2364_v33  ;;  %v2799_v15 = vsel %vm2772_vm5, %v2796_v44, %v2798_v35  ;;  %v2800_v22 = vrot.slane %v6716_v42, 4  ;;  %v2802_v46 = vrot.slane %v6723_v25, 4 }
 0x215   : > { %v4632_v49 = vcombine.low %v1663_v51, %v1675_v61  ;;  %5335 = vmatprep.mubr.msk.bf16.mxu0 %vm2460_vm4, %v2366_v63  ;;  %v2235_v0 = vrot.slane %v6821_v60, 1  ;;  %v2083_v11 = vshll.u32 %v6821_v60, 16  ;;  %v2804_v61 = vrot.slane %v6730_v39, 4 }
 0x216   : > { %v1679_v48 = vpop.permute.xlu0 %1678  ;;  %v2806_v51 = vrot.slane %v6744_v3, 4 }
 0x217   : > { %v6833_v36 = vmul.bf16 %v4632_v49, %v1026_v47  ;;  %v1687_v53 = vrot.slane %v1679_v48, %v6091_v38  ;;  %5276 = vmatmul.mubr.msk.bf16.gmra.mxu1 %vm2460_vm4, %v2785_v26  ;;  %v2236_v40 = vsel %vm2185_vm0, %v2233_v20, %v2235_v0  ;;  %v2085_v43 = vrot.slane %v2083_v11, 1 }
 0x218   : > { %5279 = vmatprep.mubr.msk.bf16.mxu1 %vm2460_vm4, %v2787_v18  ;;  %2289 = vrot.lane.b32.xlu0 %v2236_v40, %s5735_s14  ;;  %v2087_v38 = vshrl.u32 %v6821_v60, 16  ;;  %v2790_v20 = vrot.slane %v6659_v28, 4  ;;  %v2814_v47 = vrot.slane %v6772_v10, 4  ;;  %v2816_v49 = vrot.slane %v6779_v21, 4 }
 0x219   : > { %v4633_v27 = vcombine.low %v1687_v53, %v1687_v53  ;;  %v2086_v33 = vsel %vm1882_vm1, %v2081_v58, %v2085_v43  ;;  %v2237_v19 = vrot.slane %v6833_v36, 1  ;;  %v2091_v63 = vshll.u32 %v6833_v36, 16 }
 0x21a   : > { %2151 = vrot.lane.b32.xlu1 %v2086_v33, %s5736_s16  ;;  %v2089_v4 = vor.u32 %v2087_v38, %v2085_v43  ;;  %v2095_v55 = vshrl.u32 %v6833_v36, 16  ;;  %v2793_v52 = vsel %vm2772_vm5, %v2790_v20, %v2792_v56 }
 0x21b   : > { %v1881_v23 = vmul.bf16 %v4633_v27, %v1027_v13  ;;  %v2238_v34 = vsel %vm2185_vm0, %v2235_v0, %v2237_v19  ;;  %v2093_v17 = vrot.slane %v2091_v63, 1  ;;  %v2817_v0 = vsel %vm2772_vm5, %v2814_v47, %v2816_v49 }
 0x21c   : > { %5336 = vmatmul.mubr.msk.bf16.gmra.mxu0 %vm2460_vm4, %v6644_v37  ;;  %2291 = vrot.lane.b32.xlu0 %v2238_v34, %s5735_s14  ;;  %v2791_v37 = vsel %vm2772_vm5, %v2788_v59, %v2790_v20 }
 0x21d   : > { %v2099_v16 = vshll.u32 %v1881_v23, 16  ;;  %v2239_v31 = vrot.slane %v1881_v23, 1  ;;  %5339 = vmatprep.mubr.msk.bf16.mxu0 %vm2460_vm4, %v6656_v29  ;;  %v2094_v14 = vsel %vm1882_vm1, %v2089_v4, %v2093_v17  ;;  %v2097_v6 = vor.u32 %v2095_v55, %v2093_v17 }
 0x21e   : > { %2153 = vrot.lane.b32.xlu1 %v2094_v14, %s5736_s16 }
 0x21f   : > { %v2101_v1 = vrot.slane %v2099_v16, 1  ;;  %5280 = vmatmul.mubr.msk.bf16.gmra.mxu1 %vm2460_vm4, %v2789_v45  ;;  %v2240_v57 = vsel %vm2185_vm0, %v2237_v19, %v2239_v31 }
 0x220   : > { %5283 = vmatprep.mubr.msk.bf16.mxu1 %vm2460_vm4, %v2791_v37  ;;  %2293 = vrot.lane.b32.xlu0 %v2240_v57, %s5735_s14 }
 0x221   : > { %v2102_v29 = vsel %vm1882_vm1, %v2097_v6, %v2101_v1 }
 0x222   : > { %2155 = vrot.lane.b32.xlu1 %v2102_v29, %s5736_s16  ;;  %s7441_s16 = scalar_lea.hbm %s7503_s8, %s4875_s25 }
 0x224   : > { %5340 = vmatmul.mubr.msk.bf16.gmra.mxu0 %vm2460_vm4, %v6659_v28  ;;  %v2797_v28 = vsel %vm2772_vm5, %v2794_v9, %v2796_v44 }
 0x225   : > { %5343 = vmatprep.mubr.msk.bf16.mxu0 %vm2460_vm4, %v6677_v24  ;;  %v5569_v24 = vld [vmem:[#allocation2 + $0x8] sm:$0xff]  }
 0x226   : > { %5375 = vmatprep.subr.bf16.mxu1 %v5569_v24 }
 0x227   : > { %5284 = vmatmul.mubr.msk.bf16.gmra.mxu1 %vm2460_vm4, %v2793_v52 }
 0x228   : > { %5287 = vmatprep.mubr.msk.bf16.mxu1 %vm2460_vm4, %v2795_v8  ;;  %5376 = vmatpush3.bf16.msra.mxu1 %v5569_v24 }
 0x22c   : > { %5344 = vmatmul.mubr.msk.bf16.gmra.mxu0 %vm2460_vm4, %v6680_v30  ;;  %v2801_v30 = vsel %vm2772_vm5, %v2798_v35, %v2800_v22 }
 0x22d   : > { %5347 = vmatprep.mubr.msk.bf16.mxu0 %vm2460_vm4, %v6697_v12  ;;  %v2803_v12 = vsel %vm2772_vm5, %v2800_v22, %v2802_v46 }
 0x22f   : > { %5288 = vmatmul.mubr.msk.bf16.gmra.mxu1 %vm2460_vm4, %v2797_v28 }
 0x230   : > { %5291 = vmatprep.mubr.msk.bf16.mxu1 %vm2460_vm4, %v2799_v15 }
 0x234   : > { %5348 = vmatmul.mubr.msk.bf16.gmra.mxu0 %vm2460_vm4, %v6700_v5  ;;  %v2805_v5 = vsel %vm2772_vm5, %v2802_v46, %v2804_v61 }
 0x235   : > { %5351 = vmatprep.mubr.msk.bf16.mxu0 %vm2460_vm4, %v6716_v42  ;;  %v2807_v42 = vsel %vm2772_vm5, %v2804_v61, %v2806_v51 }
 0x237   : > { %5292 = vmatmul.mubr.msk.bf16.gmra.mxu1 %vm2460_vm4, %v2801_v30 }
 0x238   : > { %5295 = vmatprep.mubr.msk.bf16.mxu1 %vm2460_vm4, %v2803_v12 }
 0x23c   : > { %5352 = vmatmul.mubr.msk.bf16.gmra.mxu0 %vm2460_vm4, %v6723_v25  ;;  %v2809_v25 = vsel %vm2772_vm5, %v2806_v51, %v2808_v54 }
 0x23d   : > { %5355 = vmatprep.mubr.msk.bf16.mxu0 %vm2460_vm4, %v6730_v39  ;;  %v2811_v39 = vsel %vm2772_vm5, %v2808_v54, %v2810_v41 }
 0x23f   : > { %5296 = vmatmul.mubr.msk.bf16.gmra.mxu1 %vm2460_vm4, %v2805_v5 }
 0x240   : > { %5299 = vmatprep.mubr.msk.bf16.mxu1 %vm2460_vm4, %v2807_v42 }
 0x244   : > { %5356 = vmatmul.mubr.msk.bf16.gmra.mxu0 %vm2460_vm4, %v6744_v3  ;;  %v2813_v3 = vsel %vm2772_vm5, %v2810_v41, %v2812_v7 }
 0x245   : > { %5359 = vmatprep.mubr.msk.bf16.mxu0 %vm2460_vm4, %v6751_v50  ;;  %v2815_v50 = vsel %vm2772_vm5, %v2812_v7, %v2814_v47 }
 0x247   : > { %5300 = vmatmul.mubr.msk.bf16.gmra.mxu1 %vm2460_vm4, %v2809_v25 }
 0x248   : > { %5303 = vmatprep.mubr.msk.bf16.mxu1 %vm2460_vm4, %v2811_v39 }
 0x24c   : > { %5360 = vmatmul.mubr.msk.bf16.gmra.mxu0 %vm2460_vm4, %v6758_v2  ;;  %v5570_v2 = vld [vmem:[#allocation2] sm:$0xff]  }
 0x24d   : > { %5363 = vmatprep.mubr.msk.bf16.mxu0 %vm2460_vm4, %v6765_v62  ;;  %5377 = vmatprep.subr.bf16.mxu1 %v5570_v2 }
 0x24e   : > { %5378 = vmatpush3.bf16.msra.mxu1 %v5570_v2 }
 0x24f   : > { %5304 = vmatmul.mubr.msk.bf16.gmra.mxu1 %vm2460_vm4, %v2813_v3 }
 0x250   : > { %5307 = vmatprep.mubr.msk.bf16.mxu1 %vm2460_vm4, %v2815_v50 }
 0x254   : > { %5364 = vmatmul.mubr.msk.bf16.gmra.mxu0 %vm2460_vm4, %v6772_v10 }
 0x255   : > { %5367 = vmatprep.mubr.msk.bf16.mxu0 %vm2460_vm4, %v6779_v21 }
 0x257   : > { %5308 = vmatmul.mubr.msk.bf16.gmra.mxu1 %vm2460_vm4, %v2817_v0 }
 0x25b   : > { %v5209_v37 = vpop.f32.mrf.mxu0 }
 0x25d   : > { %v2543_v29 = vpop.f32.mrf.mxu0 }
 0x25f   : > { %v5210_v9 = vpop.f32.mrf.mxu0 }
 0x261   : > { %v2546_v8 = vpop.f32.mrf.mxu0 }
 0x267   : > { %v5213_v35 = vpop.f32.mrf.mxu0 }
 0x269   : > { %v2559_v24 = vpop.f32.mrf.mxu0 }
 0x26b   : > { %v5214_v22 = vpop.f32.mrf.mxu0 }
 0x26d   : > { %v2562_v12 = vpop.f32.mrf.mxu0 }
 0x27c   : > { %v6933_v62 = vpop.f32.mrf.mxu1 }
 0x27e   : > { %v6935_v11 = vpop.f32.mrf.mxu1 }
 0x280   : > { %v6937_v48 = vpop.f32.mrf.mxu1 }
 0x282   : > { %v6939_v26 = vpop.f32.mrf.mxu1 }
 0x284   : > { %v6941_v18 = vpop.f32.mrf.mxu1 }
 0x286   : > { %v6943_v10 = vpop.f32.mrf.mxu1 }
 0x288   : > { %v6945_v21 = vpop.f32.mrf.mxu1 }
 0x28a   : > { %v6947_v58 = vpop.f32.mrf.mxu1  ;;  %v2290_v53 = vpop.permute.xlu0 %2289 }
 0x28c   : > { %v6949_v40 = vpop.f32.mrf.mxu1  ;;  %v2152_v43 = vpop.permute.xlu1 %2151 }
 0x28d   : > { %v2345_v13 = vsel %vm2295_vm2, %v6536_v32, %v2152_v43 }
 0x28e   : > { %v2400_v27 = vsel %vm2350_vm3, %v2345_v13, %v2290_v53  ;;  %v6954_v33 = vpop.f32.mrf.mxu1  ;;  %v2292_v59 = vpop.permute.xlu0 %2291  ;;  %v7032_v13 = vld [vmem:[%s7501_s6] ss:$0 sm:$0xff] }
 0x28f   : > { %v2818_v19 = vrot.slane %v2400_v27, 4  ;;  %5368 = vmatmul.mubr.msk.bf16.gmra.mxu0 %vm2460_vm4, %v2400_v27 }
 0x290   : > { %v6957_v38 = vpop.f32.mrf.mxu1  ;;  %v2154_v63 = vpop.permute.xlu1 %2153 }
 0x291   : > { %v2819_v20 = vsel %vm2772_vm5, %v2816_v49, %v2818_v19  ;;  %v2347_v23 = vsel %vm2295_vm2, %v6821_v60, %v2154_v63  ;;  %v2555_v63 = vadd.f32 %v5210_v9, %v7032_v13 }
 0x292   : > { %v6962_v34 = vpop.f32.mrf.mxu1  ;;  %5311 = vmatprep.mubr.msk.bf16.mxu1 %vm2460_vm4, %v2819_v20  ;;  %v2402_v32 = vsel %vm2350_vm3, %v2347_v23, %v2292_v59  ;;  %v2294_v31 = vpop.permute.xlu0 %2293  ;;  %v2544_v59 = vadd.f32 %v7032_v13, %v2543_v29  ;;  %v2552_v23 = vadd.f32 %v5209_v37, %v7032_v13  ;;  %v2560_v37 = vadd.f32 %v7032_v13, %v2559_v24 }
 0x293   : > { %v2820_v4 = vrot.slane %v2402_v32, 4  ;;  %5371 = vmatprep.mubr.msk.bf16.mxu0 %vm2460_vm4, %v2402_v32 }
 0x294   : > { %v6967_v17 = vpop.f32.mrf.mxu1  ;;  %v2156_v16 = vpop.permute.xlu1 %2155 }
 0x295   : > { %v2349_v55 = vsel %vm2295_vm2, %v6833_v36, %v2156_v16  ;;  %v2821_v60 = vsel %vm2772_vm5, %v2818_v19, %v2820_v4  ;;  %v2547_v4 = vadd.f32 %v7032_v13, %v2546_v8 }
 0x296   : > { %v6971_v14 = vpop.f32.mrf.mxu1  ;;  %v2404_v45 = vsel %vm2350_vm3, %v2349_v55, %v2294_v31  ;;  %5312 = vmatmul.mubr.msk.bf16.gmra.mxu1 %vm2460_vm4, %v2821_v60 }
 0x297   : > { %5372 = vmatmul.mubr.msk.bf16.gmra.mxu0 %vm2460_vm4, %v2404_v45 }
 0x298   : > { %v6977_v1 = vpop.f32.mrf.mxu1 }
 0x29a   : > { %v6979_v57 = vpop.f32.mrf.mxu1 }
 0x29c   : > { %v6981_v6 = vpop.f32.mrf.mxu1 }
 0x29e   : > { %v6983_v56 = vpop.f32.mrf.mxu1 }
 0x29f   : > { %v7001_v51 = vpop.f32.mrf.mxu0 }
 0x2a0   : > { %v6985_v36 = vpop.f32.mrf.mxu1 }
 0x2a1   : > { %v7005_v42 = vpop.f32.mrf.mxu0 }
 0x2a2   : > { %v6987_v52 = vpop.f32.mrf.mxu1 }
 0x2a3   : > { %v7009_v41 = vpop.f32.mrf.mxu0 }
 0x2a5   : > { %v7015_v7 = vpop.f32.mrf.mxu0 }
 0x2a7   : > { %v6989_v44 = vpop.f32.mrf.mxu1 }
 0x2a9   : > { %v6991_v28 = vpop.f32.mrf.mxu1 }
 0x2ab   : > { %v6993_v15 = vpop.f32.mrf.mxu1 }
 0x2ad   : > { %v6995_v46 = vpop.f32.mrf.mxu1 }
 0x2ae   : > { %7508 = vst [vmem:[#allocation8_spill] sm:$0xff] %v6995_v46  ;;  %v2571_v46 = vadd.f32 %v5214_v22, %v7032_v13 }
 0x2b3   : > { %v6997_v30 = vpop.f32.mrf.mxu1 }
 0x2b4   : > { %7509 = vst [vmem:[#allocation9_spill] sm:$0xff] %v6997_v30 }
 0x2b5   : > { %v6999_v61 = vpop.f32.mrf.mxu1 }
 0x2b6   : > { %7510 = vst [vmem:[#allocation10_spill] sm:$0xff] %v6999_v61 }
 0x2b7   : > { %v7003_v5 = vpop.f32.mrf.mxu1 }
 0x2b8   : > { %7511 = vst [vmem:[#allocation11_spill] sm:$0xff] %v7003_v5 }
 0x2b9   : > { %v7007_v54 = vpop.f32.mrf.mxu1 }
 0x2ba   : > { %7512 = vst [vmem:[#allocation12_spill] sm:$0xff] %v7007_v54 }
 0x2bf   : > { %v7011_v25 = vpop.f32.mrf.mxu1 }
 0x2c0   : > { %7513 = vst [vmem:[#allocation13_spill] sm:$0xff] %v7011_v25 }
 0x2c1   : > { %v7013_v39 = vpop.f32.mrf.mxu1 }
 0x2c2   : > { %7514 = vst [vmem:[#allocation14_spill] sm:$0xff] %v7013_v39 }
 0x2c3   : > { %v7017_v47 = vpop.f32.mrf.mxu1 }
 0x2c4   : > { %7515 = vst [vmem:[#allocation15_spill] sm:$0xff] %v7017_v47  ;;  %v7019_v3 = vpop.f32.mrf.mxu0 }
 0x2c5   : > { %v7021_v50 = vpop.f32.mrf.mxu1 }
 0x2c6   : > { %7516 = vst [vmem:[#allocation16_spill] sm:$0xff] %v7021_v50  ;;  %v7023_v49 = vpop.f32.mrf.mxu0 }
 0x2c7   : > { %v5269_v2 = vpop.f32.mrf.mxu1 }
 0x2c8   : > { %v7025_v0 = vpop.f32.mrf.mxu0  ;;  %v3157_v60 = vadd.f32 %v5269_v2, %v2552_v23  ;;  %v2568_v2 = vadd.f32 %v5213_v35, %v7032_v13 }
 0x2c9   : > { %v2964_v53 = vpop.f32.mrf.mxu1 }
 0x2ca   : > { %v7027_v43 = vpop.f32.mrf.mxu0  ;;  %v3155_v16 = vadd.f32 %v2964_v53, %v2544_v59 }
 0x2cb   : > { %v5270_v27 = vpop.f32.mrf.mxu1 }
 0x2cc   : > { %v5329_v19 = vpop.f32.mrf.mxu0  ;;  %v3158_v31 = vadd.f32 %v5270_v27, %v2555_v63 }
 0x2cd   : > { %v2967_v20 = vpop.f32.mrf.mxu1  ;;  %v3485_v54 = vadd.f32 %v5329_v19, %v3157_v60 }
 0x2ce   : > { %v3292_v32 = vpop.f32.mrf.mxu0  ;;  %v3156_v50 = vadd.f32 %v2967_v20, %v2547_v4  ;;  %v2563_v20 = vadd.f32 %v7032_v13, %v2562_v12 }
 0x2cf   : > { %v5273_v55 = vpop.f32.mrf.mxu1  ;;  %v3483_v47 = vadd.f32 %v3292_v32, %v3155_v16  ;;  %v3533_v59 = vmax.f32 %v3485_v54, 0.0 }
 0x2d0   : > { %v5330_v45 = vpop.f32.mrf.mxu0 }
 0x2d1   : > { %v3486_v39 = vadd.f32 %v5330_v45, %v3158_v31  ;;  %v2980_v25 = vpop.f32.mrf.mxu1  ;;  %v3531_v8 = vmax.f32 %v3483_v47, 0.0 }
 0x2d2   : > { %v3295_v5 = vpop.f32.mrf.mxu0  ;;  %v3159_v23 = vadd.f32 %v2980_v25, %v2560_v37 }
 0x2d3   : > { %v3484_v29 = vadd.f32 %v3295_v5, %v3156_v50  ;;  %v5274_v61 = vpop.f32.mrf.mxu1  ;;  %v3534_v9 = vmax.f32 %v3486_v39, 0.0  ;;  %v3161_v50 = vadd.f32 %v5273_v55, %v2568_v2 }
 0x2d4   : > { %v5333_v30 = vpop.f32.mrf.mxu0  ;;  %v3162_v32 = vadd.f32 %v5274_v61, %v2571_v46  ;;  %v2576_v46 = vadd.f32 %v7032_v13, %v7005_v42  ;;  %v2587_v61 = vadd.f32 %v7009_v41, %v7032_v13 }
 0x2d5   : > { %v3532_v53 = vmax.f32 %v3484_v29, 0.0  ;;  %v2983_v27 = vpop.f32.mrf.mxu1  ;;  %v3580_v39 = vpack.c.bf16 %v3534_v9, %v3533_v59  ;;  %v3489_v47 = vadd.f32 %v5333_v30, %v3161_v50  ;;  %v2584_v9 = vadd.f32 %v7001_v51, %v7032_v13 }
 0x2d6   : > { %v3308_v63 = vpop.f32.mrf.mxu0  ;;  %v3160_v16 = vadd.f32 %v2983_v27, %v2563_v20 }
 0x2d7   : > { %v3579_v19 = vpack.c.bf16 %v3532_v53, %v3531_v8  ;;  %v5277_v5 = vpop.f32.mrf.mxu1  ;;  %v3487_v24 = vadd.f32 %v3308_v63, %v3159_v23  ;;  %v3537_v30 = vmax.f32 %v3489_v47, 0.0  ;;  %v2579_v8 = vadd.f32 %v7032_v13, %v7015_v7 }
 0x2d8   : > { %v5334_v4 = vpop.f32.mrf.mxu0  ;;  %v3165_v63 = vadd.f32 %v5277_v5, %v2584_v9  ;;  %v2603_v5 = vadd.f32 %v7025_v0, %v7032_v13 }
 0x2d9   : > { %v3490_v31 = vadd.f32 %v5334_v4, %v3162_v32  ;;  %v2996_v22 = vpop.f32.mrf.mxu1  ;;  %5379 = vmatprep.mubr.msk.bf16.mxu1 %vm2295_vm2, %v3579_v19  ;;  %v3535_v55 = vmax.f32 %v3487_v24, 0.0  ;;  %v2592_v24 = vadd.f32 %v7032_v13, %v7023_v49 }
 0x2da   : > { %v3311_v60 = vpop.f32.mrf.mxu0  ;;  %5380 = vmatmul.mubr.msk.bf16.vlgmr.msra.gmra.mxu1 %vm2295_vm2, %v3580_v39  ;;  %v3163_v53 = vadd.f32 %v2996_v22, %v2576_v46 }
 0x2db   : > { %v3488_v35 = vadd.f32 %v3311_v60, %v3160_v16  ;;  %v5278_v54 = vpop.f32.mrf.mxu1  ;;  %v3538_v12 = vmax.f32 %v3490_v31, 0.0  ;;  %v2600_v60 = vadd.f32 %v7019_v3, %v7032_v13 }
 0x2dc   : > { %v5337_v25 = vpop.f32.mrf.mxu0  ;;  %v3166_v2 = vadd.f32 %v5278_v54, %v2587_v61 }
 0x2dd   : > { %v3536_v45 = vmax.f32 %v3488_v35, 0.0  ;;  %v2999_v29 = vpop.f32.mrf.mxu1  ;;  %v3582_v42 = vpack.c.bf16 %v3538_v12, %v3537_v30  ;;  %v3493_v50 = vadd.f32 %v5337_v25, %v3165_v63  ;;  %v2595_v12 = vadd.f32 %v7032_v13, %v7027_v43 }
 0x2de   : > { %v3324_v37 = vpop.f32.mrf.mxu0  ;;  %v3164_v23 = vadd.f32 %v2999_v29, %v2579_v8  ;;  %v2616_v43 = vadd.f32 %v6933_v62, %v7032_v13 }
 0x2df   : > { %v3581_v27 = vpack.c.bf16 %v3536_v45, %v3535_v55  ;;  %v5281_v59 = vpop.f32.mrf.mxu1  ;;  %v3491_v41 = vadd.f32 %v3324_v37, %v3163_v53  ;;  %v3541_v35 = vmax.f32 %v3493_v50, 0.0 }
 0x2e0   : > { %v5338_v20 = vpop.f32.mrf.mxu0  ;;  %v3169_v45 = vadd.f32 %v5281_v59, %v2600_v60 }
 0x2e1   : > { %v3494_v19 = vadd.f32 %v5338_v20, %v3166_v2  ;;  %v3012_v32 = vpop.f32.mrf.mxu1  ;;  %5383 = vmatprep.mubr.msk.bf16.mxu1 %vm2295_vm2, %v3581_v27  ;;  %v3539_v31 = vmax.f32 %v3491_v41, 0.0  ;;  %v2608_v2 = vadd.f32 %v7032_v13, %v6935_v11 }
 0x2e2   : > { %v3327_v51 = vpop.f32.mrf.mxu0  ;;  %5384 = vmatmul.mubr.msk.bf16.gmra.mxu1 %vm2295_vm2, %v3582_v42  ;;  %v3167_v25 = vadd.f32 %v3012_v32, %v2592_v24  ;;  %v2619_v42 = vadd.f32 %v6937_v48, %v7032_v13  ;;  %v2611_v32 = vadd.f32 %v7032_v13, %v6939_v26  ;;  %v2632_v26 = vadd.f32 %v6941_v18, %v7032_v13 }
 0x2e3   : > { %v3492_v39 = vadd.f32 %v3327_v51, %v3164_v23  ;;  %v5282_v4 = vpop.f32.mrf.mxu1  ;;  %v3542_v7 = vmax.f32 %v3494_v19, 0.0 }
 0x2e4   : > { %v5341_v16 = vpop.f32.mrf.mxu0  ;;  %v3170_v61 = vadd.f32 %v5282_v4, %v2603_v5 }
 0x2e5   : > { %v3540_v22 = vmax.f32 %v3492_v39, 0.0  ;;  %v3015_v47 = vpop.f32.mrf.mxu1  ;;  %v3584_v49 = vpack.c.bf16 %v3542_v7, %v3541_v35  ;;  %v3497_v8 = vadd.f32 %v5341_v16, %v3169_v45 }
 0x2e6   : > { %v3340_v54 = vpop.f32.mrf.mxu0  ;;  %v3168_v9 = vadd.f32 %v3015_v47, %v2595_v12 }
 0x2e7   : > { %v3583_v46 = vpack.c.bf16 %v3540_v22, %v3539_v31  ;;  %v5285_v55 = vpop.f32.mrf.mxu1  ;;  %v3495_v0 = vadd.f32 %v3340_v54, %v3167_v25  ;;  %v3545_v50 = vmax.f32 %v3497_v8, 0.0  ;;  %v2624_v25 = vadd.f32 %v7032_v13, %v6943_v10 }
 0x2e8   : > { %v5342_v29 = vpop.f32.mrf.mxu0  ;;  %v3173_v23 = vadd.f32 %v5285_v55, %v2616_v43 }
 0x2e9   : > { %v3498_v30 = vadd.f32 %v5342_v29, %v3170_v61  ;;  %v3028_v37 = vpop.f32.mrf.mxu1  ;;  %5387 = vmatprep.mubr.msk.bf16.mxu1 %vm2295_vm2, %v3583_v46  ;;  %v3543_v20 = vmax.f32 %v3495_v0, 0.0  ;;  %v2635_v46 = vadd.f32 %v6945_v21, %v7032_v13  ;;  %v2627_v0 = vadd.f32 %v7032_v13, %v6947_v58 }
 0x2ea   : > { %v3343_v3 = vpop.f32.mrf.mxu0  ;;  %5388 = vmatmul.mubr.msk.bf16.gmra.mxu1 %vm2295_vm2, %v3584_v49  ;;  %v3171_v62 = vadd.f32 %v3028_v37, %v2608_v2 }
 0x2eb   : > { %v3496_v53 = vadd.f32 %v3343_v3, %v3168_v9  ;;  %v5286_v27 = vpop.f32.mrf.mxu1  ;;  %v3546_v59 = vmax.f32 %v3498_v30, 0.0 }
 0x2ec   : > { %v5345_v63 = vpop.f32.mrf.mxu0  ;;  %v3174_v4 = vadd.f32 %v5286_v27, %v2619_v42 }
 0x2ed   : > { %v3544_v41 = vmax.f32 %v3496_v53, 0.0  ;;  %v3031_v19 = vpop.f32.mrf.mxu1  ;;  %v3501_v7 = vadd.f32 %v5345_v63, %v3173_v23  ;;  %v3586_v11 = vpack.c.bf16 %v3546_v59, %v3545_v50  ;;  %v2648_v63 = vadd.f32 %v6949_v40, %v7032_v13 }
 0x2ee   : > { %v3356_v51 = vpop.f32.mrf.mxu0  ;;  %v3172_v5 = vadd.f32 %v3031_v19, %v2611_v32  ;;  %v2651_v19 = vadd.f32 %v6957_v38, %v7032_v13 }
 0x2ef   : > { %v3585_v39 = vpack.c.bf16 %v3544_v41, %v3543_v20  ;;  %v5289_v16 = vpop.f32.mrf.mxu1  ;;  %v3499_v31 = vadd.f32 %v3356_v51, %v3171_v62  ;;  %v3549_v60 = vmax.f32 %v3501_v7, 0.0  ;;  %v2640_v41 = vadd.f32 %v7032_v13, %v6954_v33 }
 0x2f0   : > { %v5346_v24 = vpop.f32.mrf.mxu0  ;;  %v3177_v45 = vadd.f32 %v5289_v16, %v2632_v26  ;;  %v2643_v7 = vadd.f32 %v7032_v13, %v6962_v34 }
 0x2f1   : > { %v3502_v22 = vadd.f32 %v5346_v24, %v3174_v4  ;;  %v3044_v48 = vpop.f32.mrf.mxu1  ;;  %5391 = vmatprep.mubr.msk.bf16.mxu1 %vm2295_vm2, %v3585_v39  ;;  %v3547_v55 = vmax.f32 %v3499_v31, 0.0 }
 0x2f2   : > { %v3359_v47 = vpop.f32.mrf.mxu0  ;;  %5392 = vmatmul.mubr.msk.bf16.gmra.mxu1 %vm2295_vm2, %v3586_v11  ;;  %v3175_v30 = vadd.f32 %v3044_v48, %v2624_v25  ;;  %v2656_v25 = vadd.f32 %v7032_v13, %v6971_v14 }
 0x2f3   : > { %v3550_v35 = vmax.f32 %v3502_v22, 0.0  ;;  %v3500_v54 = vadd.f32 %v3359_v47, %v3172_v5  ;;  %v5290_v12 = vpop.f32.mrf.mxu1 }
 0x2f4   : > { %v5349_v61 = vpop.f32.mrf.mxu0  ;;  %v3178_v8 = vadd.f32 %v5290_v12, %v2635_v46  ;;  %v2667_v46 = vadd.f32 %v6977_v1, %v7032_v13 }
 0x2f5   : > { %v3588_v49 = vpack.c.bf16 %v3550_v35, %v3549_v60  ;;  %v3548_v29 = vmax.f32 %v3500_v54, 0.0  ;;  %v3047_v9 = vpop.f32.mrf.mxu1  ;;  %v3505_v3 = vadd.f32 %v5349_v61, %v3177_v45  ;;  %v2664_v60 = vadd.f32 %v6967_v17, %v7032_v13 }
 0x2f6   : > { %v3372_v18 = vpop.f32.mrf.mxu0  ;;  %v3176_v10 = vadd.f32 %v3047_v9, %v2627_v0  ;;  %v2659_v0 = vadd.f32 %v7032_v13, %v6979_v57 }
 0x2f7   : > { %v3587_v37 = vpack.c.bf16 %v3548_v29, %v3547_v55  ;;  %v5293_v43 = vpop.f32.mrf.mxu1  ;;  %v3503_v27 = vadd.f32 %v3372_v18, %v3175_v30  ;;  %v3553_v58 = vmax.f32 %v3505_v3, 0.0 }
 0x2f8   : > { %v5350_v53 = vpop.f32.mrf.mxu0  ;;  %v3181_v51 = vadd.f32 %v5293_v43, %v2648_v63 }
 0x2f9   : > { %v3506_v2 = vadd.f32 %v5350_v53, %v3178_v8  ;;  %v3060_v21 = vpop.f32.mrf.mxu1  ;;  %5395 = vmatprep.mubr.msk.bf16.mxu1 %vm2295_vm2, %v3587_v37  ;;  %v3551_v50 = vmax.f32 %v3503_v27, 0.0 }
 0x2fa   : > { %v3375_v59 = vpop.f32.mrf.mxu0  ;;  %5396 = vmatmul.mubr.msk.bf16.gmra.mxu1 %vm2295_vm2, %v3588_v49  ;;  %v3179_v16 = vadd.f32 %v3060_v21, %v2640_v41 }
 0x2fb   : > { %v3554_v42 = vmax.f32 %v3506_v2, 0.0  ;;  %v3504_v20 = vadd.f32 %v3375_v59, %v3176_v10  ;;  %v5294_v23 = vpop.f32.mrf.mxu1  ;;  %v2680_v2 = vadd.f32 %v6981_v6, %v7032_v13 }
 0x2fc   : > { %v5353_v32 = vpop.f32.mrf.mxu0  ;;  %v3182_v24 = vadd.f32 %v5294_v23, %v2651_v19 }
 0x2fd   : > { %v3590_v62 = vpack.c.bf16 %v3554_v42, %v3553_v58  ;;  %v3552_v39 = vmax.f32 %v3504_v20, 0.0  ;;  %v3063_v4 = vpop.f32.mrf.mxu1  ;;  %v3509_v5 = vadd.f32 %v5353_v32, %v3181_v51  ;;  %v2672_v58 = vadd.f32 %v7032_v13, %v6983_v56 }
 0x2fe   : > { %v3388_v40 = vpop.f32.mrf.mxu0  ;;  %v3180_v33 = vadd.f32 %v3063_v4, %v2643_v7  ;;  %v2683_v42 = vadd.f32 %v6985_v36, %v7032_v13  ;;  %v2675_v51 = vadd.f32 %v7032_v13, %v6987_v52  ;;  %v2696_v52 = vadd.f32 %v6989_v44, %v7032_v13 }
 0x2ff   : > { %v3589_v11 = vpack.c.bf16 %v3552_v39, %v3551_v50  ;;  %v5297_v31 = vpop.f32.mrf.mxu1  ;;  %v3507_v48 = vadd.f32 %v3388_v40, %v3179_v16  ;;  %v3557_v34 = vmax.f32 %v3509_v5, 0.0 }
 0x300   : > { %v5354_v22 = vpop.f32.mrf.mxu0  ;;  %v3185_v45 = vadd.f32 %v5297_v31, %v2664_v60 }
 0x301   : > { %v3510_v47 = vadd.f32 %v5354_v22, %v3182_v24  ;;  %v3076_v38 = vpop.f32.mrf.mxu1  ;;  %5399 = vmatprep.mubr.msk.bf16.mxu1 %vm2295_vm2, %v3589_v11  ;;  %v3555_v55 = vmax.f32 %v3507_v48, 0.0 }
 0x302   : > { %v3391_v26 = vpop.f32.mrf.mxu0  ;;  %5400 = vmatmul.mubr.msk.bf16.gmra.mxu1 %vm2295_vm2, %v3590_v62  ;;  %v3183_v18 = vadd.f32 %v3076_v38, %v2656_v25 }
 0x303   : > { %v3558_v35 = vmax.f32 %v3510_v47, 0.0  ;;  %v3508_v54 = vadd.f32 %v3391_v26, %v3180_v33  ;;  %v5298_v12 = vpop.f32.mrf.mxu1  ;;  %v5597_v47 = vld [vmem:[%s5901_s12 + $0x8] sm:$0xff]   ;;  %v7118_v26 = vld [vmem:[%s5901_s12 + $0x10] sm:$0xff]  }
 0x304   : > { %v5357_v61 = vpop.f32.mrf.mxu0  ;;  %v3186_v37 = vadd.f32 %v5298_v12, %v2667_v46  ;;  %v3923_v38 = vunpack.c.h.bf16 %v5597_v47  ;;  %v3924_v60 = vunpack.c.l.bf16 %v7118_v26 }
 0x305   : > { %v3592_v49 = vpack.c.bf16 %v3558_v35, %v3557_v34  ;;  %v3556_v29 = vmax.f32 %v3508_v54, 0.0  ;;  %v3079_v9 = vpop.f32.mrf.mxu1  ;;  %v3513_v8 = vadd.f32 %v5357_v61, %v3185_v45  ;;  %v2688_v34 = vadd.f32 %v7032_v13, %v6991_v28  ;;  %v7517_v61 = vld [vmem:[#allocation8_spill] sm:$0xff] }
 0x306   : > { %v3404_v17 = vpop.f32.mrf.mxu0  ;;  %v3184_v14 = vadd.f32 %v3079_v9, %v2659_v0  ;;  %v2699_v35 = vadd.f32 %v6993_v15, %v7032_v13  ;;  %v4022_v28 = vrot.slane %v3923_v38, 1 }
 0x307   : > { %v3591_v30 = vpack.c.bf16 %v3556_v29, %v3555_v55  ;;  %v5301_v3 = vpop.f32.mrf.mxu1  ;;  %v3511_v53 = vadd.f32 %v3404_v17, %v3183_v18  ;;  %v3561_v57 = vmax.f32 %v3513_v8, 0.0  ;;  %v2691_v55 = vadd.f32 %v7032_v13, %v7517_v61  ;;  %v5609_v61 = vld [vmem:[%s5901_s12 + $0x68] sm:$0xff]  }
 0x308   : > { %v5358_v43 = vpop.f32.mrf.mxu0  ;;  %v3189_v41 = vadd.f32 %v5301_v3, %v2680_v2 }
 0x309   : > { %v3514_v10 = vadd.f32 %v5358_v43, %v3186_v37  ;;  %v3092_v1 = vpop.f32.mrf.mxu1  ;;  %5403 = vmatprep.mubr.msk.bf16.mxu1 %vm2295_vm2, %v3591_v30  ;;  %v3559_v23 = vmax.f32 %v3511_v53, 0.0  ;;  %v7127_v30 = vrot.slane %v3924_v60, 1  ;;  %v7185_v60 = vld [vmem:[%s5901_s12 + $0x48] sm:$0xff]  }
 0x30a   : > { %v3407_v27 = vpop.f32.mrf.mxu0  ;;  %5404 = vmatmul.mubr.msk.bf16.gmra.mxu1 %vm2295_vm2, %v3592_v49  ;;  %v3187_v62 = vadd.f32 %v3092_v1, %v2672_v58 }
 0x30b   : > { %v3562_v21 = vmax.f32 %v3514_v10, 0.0  ;;  %v3512_v59 = vadd.f32 %v3407_v27, %v3184_v14  ;;  %v5302_v63 = vpop.f32.mrf.mxu1  ;;  %v5599_v10 = vld [vmem:[%s5901_s12 + $0x20] sm:$0xff]   ;;  %v7133_v27 = vld [vmem:[%s5901_s12 + $0x28] sm:$0xff]  }
 0x30c   : > { %v5361_v20 = vpop.f32.mrf.mxu0  ;;  %v3190_v4 = vadd.f32 %v5302_v63, %v2683_v42  ;;  %v3929_v1 = vunpack.c.h.bf16 %v5599_v10  ;;  %v3930_v2 = vunpack.c.l.bf16 %v7133_v27  ;;  %v7138_v63 = vsel %vm2185_vm0, %v4022_v28, %v7127_v30 }
 0x30d   : > { %v3594_v19 = vpack.c.bf16 %v3562_v21, %v3561_v57  ;;  %v3560_v32 = vmax.f32 %v3512_v59, 0.0  ;;  %v3095_v50 = vpop.f32.mrf.mxu1  ;;  %v3517_v7 = vadd.f32 %v5361_v20, %v3189_v41  ;;  %v3928_v58 = vunpack.c.l.bf16 %v5599_v10  ;;  %v7141_v20 = vld [vmem:[%s5901_s12 + $0x18] sm:$0xff]  }
 0x30e   : > { %v3420_v6 = vpop.f32.mrf.mxu0  ;;  %v3188_v16 = vadd.f32 %v3095_v50, %v2675_v51  ;;  %v4033_v41 = vrot.slane %v3929_v1, 1  ;;  %v7151_v51 = vld [vmem:[%s5901_s12 + $0x30] sm:$0xff]   ;;  %v3947_v28 = vunpack.c.h.bf16 %v5609_v61 }
 0x30f   : > { %v3593_v39 = vpack.c.bf16 %v3560_v32, %v3559_v23  ;;  %v5305_v40 = vpop.f32.mrf.mxu1  ;;  %v3515_v36 = vadd.f32 %v3420_v6, %v3187_v62  ;;  %v3565_v31 = vmax.f32 %v3517_v7, 0.0  ;;  %v3927_v23 = vunpack.c.h.bf16 %v7141_v20  ;;  %v5603_v62 = vld [vmem:[%s5901_s12 + $0x38] sm:$0xff]  }
 0x310   : > { %v5362_v56 = vpop.f32.mrf.mxu0  ;;  %v3193_v25 = vadd.f32 %v5305_v40, %v2696_v52  ;;  %v4031_v32 = vrot.slane %v3928_v58, 1  ;;  %v3933_v6 = vunpack.c.h.bf16 %v7151_v51 }
 0x311   : > { %v3518_v11 = vadd.f32 %v5362_v56, %v3190_v4  ;;  %v3108_v24 = vpop.f32.mrf.mxu1  ;;  %5407 = vmatprep.mubr.msk.bf16.mxu1 %vm2295_vm2, %v3593_v39  ;;  %v3563_v12 = vmax.f32 %v3515_v36, 0.0  ;;  %v7148_v50 = vrot.slane %v3927_v23, 1  ;;  %v3934_v39 = vunpack.c.l.bf16 %v5603_v62 }
 0x312   : > { %v3423_v5 = vpop.f32.mrf.mxu0  ;;  %5408 = vmatmul.mubr.msk.bf16.gmra.mxu1 %vm2295_vm2, %v3594_v19  ;;  %v3191_v29 = vadd.f32 %v3108_v24, %v2688_v34  ;;  %v7144_v19 = vrot.slane %v3930_v2, 1  ;;  %v7163_v40 = vrot.slane %v3933_v6, 1  ;;  %v3935_v36 = vunpack.c.h.bf16 %v5603_v62  ;;  %v7518_v2 = vld [vmem:[#allocation9_spill] sm:$0xff] }
 0x313   : > { %v3566_v22 = vmax.f32 %v3518_v11, 0.0  ;;  %v3516_v33 = vadd.f32 %v3423_v5, %v3188_v16  ;;  %v5306_v48 = vpop.f32.mrf.mxu1  ;;  %v7161_v7 = vsel %vm2185_vm0, %v7148_v50, %v4031_v32  ;;  %v4043_v56 = vrot.slane %v3934_v39, 1  ;;  %v7170_v11 = vld [vmem:[%s5901_s12 + $0x40] sm:$0xff]   ;;  %v7233_v62 = vld [vmem:[%s5901_s12 + $0x78] sm:$0xff]  }
 0x314   : > { %v5365_v54 = vpop.f32.mrf.mxu0  ;;  %v3194_v0 = vadd.f32 %v5306_v48, %v2699_v35  ;;  %v7157_v4 = vsel %vm2185_vm0, %v4033_v41, %v7144_v19  ;;  %v3936_v24 = vunpack.c.l.bf16 %v7170_v11  ;;  %v4045_v5 = vrot.slane %v3935_v36, 1  ;;  %v7520_v41 = vld [vmem:[#allocation11_spill] sm:$0xff] }
 0x315   : > { %v3596_v44 = vpack.c.bf16 %v3566_v22, %v3565_v31  ;;  %v3564_v46 = vmax.f32 %v3516_v33, 0.0  ;;  %v3111_v45 = vpop.f32.mrf.mxu1  ;;  %v3521_v17 = vadd.f32 %v5365_v54, %v3193_v25  ;;  %v7167_v16 = vsel %vm2185_vm0, %v7163_v40, %v4043_v56  ;;  %v5605_v31 = vld [vmem:[%s5901_s12 + $0x50] sm:$0xff]   ;;  %v7177_v33 = vld [vmem:[%s5901_s12 + $0x58] sm:$0xff]  }
 0x316   : > { %v3436_v49 = vpop.f32.mrf.mxu0  ;;  %v3192_v15 = vadd.f32 %v3111_v45, %v2691_v55  ;;  %v7173_v52 = vrot.slane %v3936_v24, 1  ;;  %v3941_v22 = vunpack.c.h.bf16 %v5605_v31  ;;  %v3942_v48 = vunpack.c.l.bf16 %v7177_v33 }
 0x317   : > { %v3595_v9 = vpack.c.bf16 %v3564_v46, %v3563_v12  ;;  %v3519_v37 = vadd.f32 %v3436_v49, %v3191_v29  ;;  %v3569_v43 = vmax.f32 %v3521_v17, 0.0  ;;  %v3940_v47 = vunpack.c.l.bf16 %v5605_v31  ;;  %v7521_v31 = vld [vmem:[#allocation12_spill] sm:$0xff] }
 0x318   : > { %v5366_v18 = vpop.f32.mrf.mxu0  ;;  %v7182_v38 = vsel %vm2185_vm0, %v4045_v5, %v7173_v52  ;;  %v3939_v34 = vunpack.c.h.bf16 %v7185_v60  ;;  %v4057_v35 = vrot.slane %v3941_v22, 1  ;;  %v7188_v54 = vrot.slane %v3942_v48, 1 }
 0x319   : > { %v3522_v8 = vadd.f32 %v5366_v18, %v3194_v0  ;;  %5411 = vmatprep.mubr.msk.bf16.mxu1 %vm2295_vm2, %v3595_v9  ;;  %v3567_v57 = vmax.f32 %v3519_v37, 0.0  ;;  %v4055_v12 = vrot.slane %v3940_v47, 1  ;;  %v3946_v55 = vunpack.c.l.bf16 %v5609_v61  ;;  %v5309_v0 = vpop.f32.mrf.mxu1  ;;  %v7212_v18 = vld [vmem:[%s5901_s12 + $0x70] sm:$0xff]  }
 0x31a   : > { %v3439_v3 = vpop.f32.mrf.mxu0  ;;  %5412 = vmatmul.mubr.msk.bf16.gmra.mxu1 %vm2295_vm2, %v3596_v44  ;;  %v7190_v25 = vrot.slane %v3939_v34, 1  ;;  %v7193_v44 = vld [vmem:[%s5901_s12 + $0x60] sm:$0xff]   ;;  %v7199_v45 = vsel %vm2185_vm0, %v4057_v35, %v7188_v54  ;;  %v2715_v32 = vadd.f32 %v7520_v41, %v7032_v13  ;;  %v3951_v39 = vunpack.c.h.bf16 %v7233_v62 }
 0x31b   : > { %v3570_v14 = vmax.f32 %v3522_v8, 0.0  ;;  %v3520_v53 = vadd.f32 %v3439_v3, %v3192_v15  ;;  %v3945_v46 = vunpack.c.h.bf16 %v7193_v44  ;;  %v4067_v9 = vrot.slane %v3946_v55, 1  ;;  %v3124_v37 = vpop.f32.mrf.mxu1 }
 0x31c   : > { %v7203_v49 = vsel %vm2185_vm0, %v7190_v25, %v4055_v12  ;;  %v3948_v15 = vunpack.c.l.bf16 %v7212_v18  ;;  %v4069_v8 = vrot.slane %v3947_v28, 1  ;;  %v2707_v22 = vadd.f32 %v7032_v13, %v7521_v31 }
 0x31d   : > { %v3598_v21 = vpack.c.bf16 %v3570_v14, %v3569_v43  ;;  %v3568_v59 = vmax.f32 %v3520_v53, 0.0  ;;  %v7205_v29 = vrot.slane %v3945_v46, 1  ;;  %v5611_v43 = vld [vmem:[%s5901_s12 + $0x80] sm:$0xff]   ;;  %v7219_v53 = vld [vmem:[%s5901_s12 + $0x88] sm:$0xff]   ;;  %v5310_v1 = vpop.f32.mrf.mxu1 }
 0x31e   : > { %v7215_v3 = vrot.slane %v3948_v15, 1  ;;  %v3953_v14 = vunpack.c.h.bf16 %v5611_v43  ;;  %v3954_v10 = vunpack.c.l.bf16 %v7219_v53  ;;  %v3198_v47 = vadd.f32 %v5310_v1, %v2715_v32  ;;  %v5615_v15 = vld [vmem:[%s5901_s12 + $0x98] sm:$0xff]  }
 0x31f   : > { %v3597_v42 = vpack.c.bf16 %v3568_v59, %v3567_v57  ;;  %v7209_v17 = vsel %vm2185_vm0, %v7205_v29, %v4067_v9  ;;  %v2712_v57 = vadd.f32 %v7518_v2, %v7032_v13  ;;  %v3127_v24 = vpop.f32.mrf.mxu1  ;;  %v7240_v9 = vrot.slane %v3951_v39, 1 }
 0x320   : > { %v7226_v58 = vsel %vm2185_vm0, %v4069_v8, %v7215_v3  ;;  %v4081_v56 = vrot.slane %v3953_v14, 1  ;;  %v7236_v36 = vrot.slane %v3954_v10, 1  ;;  %v3196_v46 = vadd.f32 %v3127_v24, %v2707_v22  ;;  %v7524_v22 = vld [vmem:[#allocation15_spill] sm:$0xff] }
 0x321   : > { %5415 = vmatprep.mubr.msk.bf16.mxu1 %vm2295_vm2, %v3597_v42  ;;  %v7519_v42 = vld [vmem:[#allocation10_spill] sm:$0xff]  ;;  %v3197_v6 = vadd.f32 %v5309_v0, %v2712_v57  ;;  %v7243_v0 = vld [vmem:[%s5901_s12 + $0x90] sm:$0xff]   ;;  %v3958_v8 = vunpack.c.l.bf16 %v5615_v15 }
 0x322   : > { %5416 = vmatmul.mubr.msk.bf16.gmra.mxu1 %vm2295_vm2, %v3598_v21  ;;  %v3952_v21 = vunpack.c.l.bf16 %v5611_v43  ;;  %v2704_v23 = vadd.f32 %v7032_v13, %v7519_v42  ;;  %v3957_v28 = vunpack.c.h.bf16 %v7243_v0  ;;  %v7249_v14 = vsel %vm2185_vm0, %v4081_v56, %v7236_v36 }
 0x324   : > { %v3195_v48 = vadd.f32 %v3124_v37, %v2704_v23  ;;  %v4079_v35 = vrot.slane %v3952_v21, 1  ;;  %v7522_v37 = vld [vmem:[#allocation13_spill] sm:$0xff]  ;;  %v7523_v21 = vld [vmem:[#allocation14_spill] sm:$0xff]  ;;  %v7259_v24 = vrot.slane %v3957_v28, 1 }
 0x325   : > { %v2728_v10 = vadd.f32 %v7522_v37, %v7032_v13 }
 0x326   : > { %v7257_v23 = vsel %vm2185_vm0, %v7240_v9, %v4079_v35 }
 0x34f   : > { %v5369_v59 = vpop.f32.mrf.mxu0 }
 0x350   : > { %v3525_v34 = vadd.f32 %v5369_v59, %v3197_v6  ;;  %v2720_v59 = vadd.f32 %v7032_v13, %v7523_v21  ;;  %v3959_v21 = vunpack.c.h.bf16 %v5615_v15 }
 0x351   : > { %v3452_v5 = vpop.f32.mrf.mxu0 }
 0x352   : > { %v3523_v61 = vadd.f32 %v3452_v5, %v3195_v48  ;;  %v3573_v1 = vmax.f32 %v3525_v34, 0.0  ;;  %v4091_v5 = vrot.slane %v3958_v8, 1  ;;  %v2731_v48 = vadd.f32 %v7524_v22, %v7032_v13 }
 0x353   : > { %v5370_v12 = vpop.f32.mrf.mxu0 }
 0x354   : > { %v3526_v55 = vadd.f32 %v5370_v12, %v3198_v47  ;;  %v3571_v41 = vmax.f32 %v3523_v61, 0.0  ;;  %v7269_v8 = vsel %vm2185_vm0, %v7259_v24, %v4091_v5 }
 0x355   : > { %v3455_v43 = vpop.f32.mrf.mxu0 }
 0x356   : > { %v3574_v2 = vmax.f32 %v3526_v55, 0.0  ;;  %v3524_v57 = vadd.f32 %v3455_v43, %v3196_v46  ;;  %v5313_v42 = vpop.f32.mrf.mxu1  ;;  %v7525_v55 = vld [vmem:[#allocation16_spill] sm:$0xff] }
 0x357   : > { %v3201_v39 = vadd.f32 %v5313_v42, %v2728_v10  ;;  %v5373_v56 = vpop.f32.mrf.mxu0  ;;  %v2723_v35 = vadd.f32 %v7032_v13, %v7525_v55  ;;  %v3926_v55 = vunpack.c.l.bf16 %v7141_v20 }
 0x358   : > { %v3600_v32 = vpack.c.bf16 %v3574_v2, %v3573_v1  ;;  %v3572_v6 = vmax.f32 %v3524_v57, 0.0  ;;  %v3140_v31 = vpop.f32.mrf.mxu1 }
 0x359   : > { %v3199_v34 = vadd.f32 %v3140_v31, %v2720_v59  ;;  %v3468_v12 = vpop.f32.mrf.mxu0  ;;  %v3529_v61 = vadd.f32 %v5373_v56, %v3201_v39  ;;  %v7272_v59 = vld [vmem:[%s5901_s12 + $0xa0] sm:$0xff]   ;;  %v4093_v31 = vrot.slane %v3959_v21, 1  ;;  %v3931_v21 = vunpack.c.h.bf16 %v7133_v27 }
 0x35a   : > { %v3599_v47 = vpack.c.bf16 %v3572_v6, %v3571_v41  ;;  %v5314_v46 = vpop.f32.mrf.mxu1  ;;  %v3960_v13 = vunpack.c.l.bf16 %v7272_v59 }
 0x35b   : > { %v3202_v43 = vadd.f32 %v5314_v46, %v2731_v48  ;;  %v5374_v37 = vpop.f32.mrf.mxu0  ;;  %v3527_v10 = vadd.f32 %v3468_v12, %v3199_v34  ;;  %v3577_v42 = vmax.f32 %v3529_v61, 0.0  ;;  %v5617_v48 = vld [vmem:[%s5901_s12 + $0xb0] sm:$0xff]   ;;  %v7285_v34 = vld [vmem:[%s5901_s12 + $0xb8] sm:$0xff]   ;;  %v3925_v46 = vunpack.c.h.bf16 %v7118_v26 }
 0x35c   : > { %5419 = vmatprep.mubr.msk.bf16.mxu1 %vm2295_vm2, %v3599_v47  ;;  %v3143_v28 = vpop.f32.mrf.mxu1  ;;  %v7275_v5 = vrot.slane %v3960_v13, 1  ;;  %v3965_v47 = vunpack.c.h.bf16 %v5617_v48  ;;  %v3966_v12 = vunpack.c.l.bf16 %v7285_v34 }
 0x35d   : > { %5420 = vmatmul.mubr.msk.bf16.gmra.mxu1 %vm2295_vm2, %v3600_v32  ;;  %v3530_v1 = vadd.f32 %v5374_v37, %v3202_v43  ;;  %v3200_v2 = vadd.f32 %v3143_v28, %v2723_v35  ;;  %v3471_v57 = vpop.f32.mrf.mxu0  ;;  %v3575_v39 = vmax.f32 %v3527_v10, 0.0  ;;  %v3964_v35 = vunpack.c.l.bf16 %v5617_v48  ;;  %v7295_v28 = vld [vmem:[%s7502_s7] ss:$0 sm:$0xff] }
 0x35e   : > { %v7281_v15 = vsel %vm2185_vm0, %v4093_v31, %v7275_v5  ;;  %v4105_v61 = vrot.slane %v3965_v47, 1  ;;  %v7290_v43 = vrot.slane %v3966_v12, 1  ;;  %v4025_v10 = vrot.slane %v3925_v46, 1 }
 0x35f   : > { %v3578_v41 = vmax.f32 %v3530_v1, 0.0  ;;  %v3528_v6 = vadd.f32 %v3471_v57, %v3200_v2  ;;  %v7298_v1 = vld [vmem:[%s5901_s12 + $0xa8] sm:$0xff]   ;;  %v4027_v57 = vrot.slane %v3926_v55, 1  ;;  %v4103_v13 = vrot.slane %v3964_v35, 1 }
 0x360   : > { %v3963_v26 = vunpack.c.h.bf16 %v7298_v1  ;;  %v4026_v27 = vsel %vm2185_vm0, %v7127_v30, %v4025_v10  ;;  %v4037_v46 = vrot.slane %v3931_v21, 1 }
 0x361   : > { %v3602_v32 = vpack.c.bf16 %v3578_v41, %v3577_v42  ;;  %v3576_v56 = vmax.f32 %v3528_v6, 0.0  ;;  %v7305_v41 = vsel %vm2185_vm0, %v4105_v61, %v7290_v43  ;;  %v4030_v55 = vsel %vm2185_vm0, %v4027_v57, %v7148_v50 }
 0x362   : > { %v7307_v6 = vrot.slane %v3963_v26, 1  ;;  %v4038_v57 = vsel %vm2185_vm0, %v7144_v19, %v4037_v46 }
 0x363   : > { %v3601_v22 = vpack.c.bf16 %v3576_v56, %v3575_v39  ;;  %v7310_v39 = vld [vmem:[%s5901_s12 + $0xc0] sm:$0xff]   ;;  %v5621_v56 = vld [vmem:[%s5901_s12 + $0xc8] sm:$0xff]   ;;  %s4567_s12 = sshll.u32 %s325_s20, 7 }
 0x364   : > { %v3970_v31 = vunpack.c.l.bf16 %v5621_v56  ;;  %v7324_v61 = vsel %vm2185_vm0, %v7307_v6, %v4103_v13  ;;  %s7338_s24 = scalar_lea.vmem [#allocation5], %s4567_s12  ;;  %s5654_s12 = scalar_lea.vmem %s5653_s22, 4096 }
 0x365   : > { %5423 = vmatprep.mubr.msk.bf16.mxu1 %vm2295_vm2, %v3601_v22  ;;  %s4471_s26 = sshll.u32 %s7338_s24, 4  ;;  %s7443_s26 = int_to_ptr.vmem [resolvable:$true] %s4471_s26 }
 0x366   : > { %5424 = vmatmul.mubr.msk.bf16.gmra.mxu1 %vm2295_vm2, %v3602_v32  ;;  %v3969_v32 = vunpack.c.h.bf16 %v7310_v39  ;;  %s5648_s19 = scalar_lea.vmem %s7443_s26, 2048  ;;  %p5655_p0 = scmp.lt.s32.totalorder %s7443_s26, %s5653_s22 }
 0x367   : > { %p5649_p10 = scmp.ne.s32.totalorder %s7443_s26, %s5648_s19  ;;  %p5656_p1 = scmp.lt.s32.totalorder %s5654_s12, %s5648_s19 }
 0x368   : > { %v7329_v10 = vrot.slane %v3969_v32, 1  ;;  %v3932_v32 = vunpack.c.l.bf16 %v7151_v51 }
 0x369   : > { %p5650_p11 = pnand %p5649_p10, %p5824_p4  ;;  %p5657_p2 = por %p5656_p1, %p5655_p0 }
 0x36b   : > { %p5651_p13 = pneg %p5650_p11 }
 0x36d   : > { %p5658_p3 = pnand %p5657_p2, %p5651_p13 }
 0x39a   : > { %v5381_v37 = vpop.f32.mrf.mxu1 }
 0x39c   : > { %v3732_v2 = vpop.f32.mrf.mxu1 }
 0x39d   : > { %v3733_v20 = vadd.f32 %v7295_v28, %v3732_v2 }
 0x39e   : > { %v5382_v42 = vpop.f32.mrf.mxu1 }
 0x39f   : > { %v4167_v48 = vadd.f32 %v7138_v63, %v3733_v20  ;;  %v3744_v47 = vadd.f32 %v5382_v42, %v7295_v28  ;;  %v4115_v63 = vrot.slane %v3970_v31, 1 }
 0x3a0   : > { %v3735_v22 = vpop.f32.mrf.mxu1 }
 0x3a1   : > { %v3736_v12 = vadd.f32 %v7295_v28, %v3735_v22  ;;  %v4215_v2 = vmax.f32 %v4167_v48, 0.0  ;;  %v4170_v20 = vadd.f32 %v4030_v55, %v3744_v47  ;;  %v7343_v19 = vsel %vm2185_vm0, %v7329_v10, %v4115_v63 }
 0x3a2   : > { %v5385_v35 = vpop.f32.mrf.mxu1 }
 0x3a3   : > { %v4168_v37 = vadd.f32 %v4026_v27, %v3736_v12  ;;  %v3757_v30 = vadd.f32 %v5385_v35, %v7295_v28  ;;  %v4218_v12 = vmax.f32 %v4170_v20, 0.0  ;;  %v4039_v35 = vrot.slane %v3932_v32, 1 }
 0x3a4   : > { %v3748_v26 = vpop.f32.mrf.mxu1 }
 0x3a5   : > { %v4216_v21 = vmax.f32 %v4168_v37, 0.0  ;;  %v3749_v42 = vadd.f32 %v7295_v28, %v3748_v26  ;;  %v4173_v56 = vadd.f32 %v7157_v4, %v3757_v30 }
 0x3a6   : > { %v5386_v50 = vpop.f32.mrf.mxu1 }
 0x3a7   : > { %v4879_v13 = vpack.c.bf16 %v4216_v21, %v4215_v2  ;;  %v4171_v22 = vadd.f32 %v7161_v7, %v3749_v42  ;;  %v3760_v27 = vadd.f32 %v5386_v50, %v7295_v28  ;;  %v4221_v7 = vmax.f32 %v4173_v56, 0.0 }
 0x3a8   : > { %v3751_v31 = vpop.f32.mrf.mxu1  ;;  %v3937_v2 = vunpack.c.h.bf16 %v7170_v11  ;;  %v4042_v21 = vsel %vm2185_vm0, %v4039_v35, %v7163_v40  ;;  %v3938_v50 = vunpack.c.l.bf16 %v7185_v60 }
 0x3a9   : > { %4880 = vst [vmem:[%s7338_s24] sm:$0xff] %v4879_v13   ;;  %v4219_v48 = vmax.f32 %v4171_v22, 0.0  ;;  %v4174_v47 = vadd.f32 %v4038_v57, %v3760_v27 }
 0x3aa   : > { %v5389_v4 = vpop.f32.mrf.mxu1  ;;  %v4049_v56 = vrot.slane %v3937_v2, 1  ;;  %v4051_v11 = vrot.slane %v3938_v50, 1  ;;  %v3944_v50 = vunpack.c.l.bf16 %v7193_v44  ;;  %v3949_v44 = vunpack.c.h.bf16 %v7212_v18 }
 0x3ab   : > { %v4884_v46 = vpack.c.bf16 %v4219_v48, %v4218_v12  ;;  %v4222_v55 = vmax.f32 %v4174_v47, 0.0  ;;  %v3773_v30 = vadd.f32 %v5389_v4, %v7295_v28  ;;  %v3943_v12 = vunpack.c.h.bf16 %v7177_v33 }
 0x3ac   : > { %v3764_v51 = vpop.f32.mrf.mxu1 }
 0x3ad   : > { %4956 = vst [vmem:[%s7338_s24 + $0x8] sm:$0xff] %v4884_v46   ;;  %v4889_v37 = vpack.c.bf16 %v4222_v55, %v4221_v7  ;;  %v4177_v63 = vadd.f32 %v7167_v16, %v3773_v30  ;;  %v4050_v16 = vsel %vm2185_vm0, %v7173_v52, %v4049_v56  ;;  %v4061_v46 = vrot.slane %v3943_v12, 1 }
 0x3ae   : > { %v5390_v26 = vpop.f32.mrf.mxu1  ;;  %v4054_v55 = vsel %vm2185_vm0, %v4051_v11, %v7190_v25  ;;  %v4063_v11 = vrot.slane %v3944_v50, 1 }
 0x3af   : > { %4957 = vst [vmem:[%s7338_s24 + $0x10] sm:$0xff] %v4889_v37   ;;  %v4225_v27 = vmax.f32 %v4177_v63, 0.0 }
 0x3b0   : > { %v3767_v20 = vpop.f32.mrf.mxu1 }
 0x3b1   : > { %v3768_v42 = vadd.f32 %v7295_v28, %v3767_v20  ;;  %v4062_v20 = vsel %vm2185_vm0, %v7188_v54, %v4061_v46 }
 0x3b2   : > { %v5393_v57 = vpop.f32.mrf.mxu1 }
 0x3b3   : > { %v4176_v13 = vadd.f32 %v4042_v21, %v3768_v42 }
 0x3b4   : > { %v3780_v22 = vpop.f32.mrf.mxu1 }
 0x3b5   : > { %v4224_v32 = vmax.f32 %v4176_v13, 0.0  ;;  %v3781_v31 = vadd.f32 %v7295_v28, %v3780_v22 }
 0x3b6   : > { %v5394_v48 = vpop.f32.mrf.mxu1 }
 0x3b7   : > { %v4894_v40 = vpack.c.bf16 %v4225_v27, %v4224_v32  ;;  %v4179_v60 = vadd.f32 %v7182_v38, %v3781_v31  ;;  %v3792_v4 = vadd.f32 %v5394_v48, %v7295_v28 }
 0x3b8   : > { %v3783_v47 = vpop.f32.mrf.mxu1 }
 0x3b9   : > { %4958 = vst [vmem:[%s7338_s24 + $0x18] sm:$0xff] %v4894_v40   ;;  %v3784_v7 = vadd.f32 %v7295_v28, %v3783_v47  ;;  %v4227_v30 = vmax.f32 %v4179_v60, 0.0  ;;  %v4182_v26 = vadd.f32 %v4054_v55, %v3792_v4  ;;  %v4066_v47 = vsel %vm2185_vm0, %v4063_v11, %v7205_v29 }
 0x3ba   : > { %v5397_v35 = vpop.f32.mrf.mxu1  ;;  %v3950_v4 = vunpack.c.l.bf16 %v7233_v62  ;;  %v4073_v55 = vrot.slane %v3949_v44, 1 }
 0x3bb   : > { %v4180_v51 = vadd.f32 %v4050_v16, %v3784_v7  ;;  %v3805_v33 = vadd.f32 %v5397_v35, %v7295_v28  ;;  %v4230_v13 = vmax.f32 %v4182_v26, 0.0 }
 0x3bc   : > { %v3796_v37 = vpop.f32.mrf.mxu1  ;;  %v4075_v18 = vrot.slane %v3950_v4, 1 }
 0x3bd   : > { %v4228_v52 = vmax.f32 %v4180_v51, 0.0  ;;  %v3797_v2 = vadd.f32 %v7295_v28, %v3796_v37  ;;  %v4185_v63 = vadd.f32 %v7199_v45, %v3805_v33 }
 0x3be   : > { %v5398_v38 = vpop.f32.mrf.mxu1 }
 0x3bf   : > { %v4899_v21 = vpack.c.bf16 %v4228_v52, %v4227_v30  ;;  %v4183_v25 = vadd.f32 %v7203_v49, %v3797_v2  ;;  %v3808_v42 = vadd.f32 %v5398_v38, %v7295_v28  ;;  %v4233_v32 = vmax.f32 %v4185_v63, 0.0 }
 0x3c0   : > { %v3799_v57 = vpop.f32.mrf.mxu1  ;;  %v3955_v30 = vunpack.c.h.bf16 %v7219_v53 }
 0x3c1   : > { %4959 = vst [vmem:[%s7338_s24 + $0x20] sm:$0xff] %v4899_v21   ;;  %v4231_v56 = vmax.f32 %v4183_v25, 0.0  ;;  %v4186_v22 = vadd.f32 %v4062_v20, %v3808_v42  ;;  %v4078_v21 = vsel %vm2185_vm0, %v4075_v18, %v7240_v9 }
 0x3c2   : > { %v5401_v27 = vpop.f32.mrf.mxu1  ;;  %v4085_v20 = vrot.slane %v3955_v30, 1 }
 0x3c3   : > { %v4904_v31 = vpack.c.bf16 %v4231_v56, %v4230_v13  ;;  %v4234_v54 = vmax.f32 %v4186_v22, 0.0  ;;  %v3821_v49 = vadd.f32 %v5401_v27, %v7295_v28 }
 0x3c4   : > { %v3812_v12 = vpop.f32.mrf.mxu1  ;;  %v4086_v56 = vsel %vm2185_vm0, %v7236_v36, %v4085_v20  ;;  %v3962_v20 = vunpack.c.l.bf16 %v7298_v1 }
 0x3c5   : > { %4960 = vst [vmem:[%s7338_s24 + $0x28] sm:$0xff] %v4904_v31   ;;  %v4909_v45 = vpack.c.bf16 %v4234_v54, %v4233_v32  ;;  %v4189_v16 = vadd.f32 %v7209_v17, %v3821_v49  ;;  %v4074_v17 = vsel %vm2185_vm0, %v7215_v3, %v4073_v55  ;;  %v3956_v31 = vunpack.c.l.bf16 %v7243_v0 }
 0x3c6   : > { %v5402_v48 = vpop.f32.mrf.mxu1  ;;  %v3961_v0 = vunpack.c.h.bf16 %v7272_v59 }
 0x3c7   : > { %4961 = vst [vmem:[%s7338_s24 + $0x30] sm:$0xff] %v4909_v45   ;;  %v4237_v51 = vmax.f32 %v4189_v16, 0.0 }
 0x3c8   : > { %v3815_v40 = vpop.f32.mrf.mxu1 }
 0x3c9   : > { %v3816_v60 = vadd.f32 %v7295_v28, %v3815_v40  ;;  %v4087_v40 = vrot.slane %v3956_v31, 1 }
 0x3ca   : > { %v5405_v7 = vpop.f32.mrf.mxu1 }
 0x3cb   : > { %v4188_v46 = vadd.f32 %v4066_v47, %v3816_v60  ;;  %v4090_v4 = vsel %vm2185_vm0, %v4087_v40, %v7259_v24 }
 0x3cc   : > { %v3828_v35 = vpop.f32.mrf.mxu1 }
 0x3cd   : > { %v4236_v33 = vmax.f32 %v4188_v46, 0.0  ;;  %v3829_v37 = vadd.f32 %v7295_v28, %v3828_v35 }
 0x3ce   : > { %v5406_v26 = vpop.f32.mrf.mxu1 }
 0x3cf   : > { %v4914_v29 = vpack.c.bf16 %v4237_v51, %v4236_v33  ;;  %v4191_v62 = vadd.f32 %v7226_v58, %v3829_v37  ;;  %v3840_v2 = vadd.f32 %v5406_v26, %v7295_v28  ;;  %v4097_v51 = vrot.slane %v3961_v0, 1 }
 0x3d0   : > { %v3831_v52 = vpop.f32.mrf.mxu1 }
 0x3d1   : > { %4962 = vst [vmem:[%s7338_s24 + $0x38] sm:$0xff] %v4914_v29   ;;  %v3832_v38 = vadd.f32 %v7295_v28, %v3831_v52  ;;  %v4239_v50 = vmax.f32 %v4191_v62, 0.0  ;;  %v4194_v57 = vadd.f32 %v4078_v21, %v3840_v2  ;;  %v4098_v52 = vsel %vm2185_vm0, %v7275_v5, %v4097_v51 }
 0x3d2   : > { %v5409_v63 = vpop.f32.mrf.mxu1  ;;  %v4099_v21 = vrot.slane %v3962_v20, 1 }
 0x3d3   : > { %v4192_v25 = vadd.f32 %v4074_v17, %v3832_v38  ;;  %v3853_v53 = vadd.f32 %v5409_v63, %v7295_v28  ;;  %v4242_v11 = vmax.f32 %v4194_v57, 0.0  ;;  %v3967_v63 = vunpack.c.h.bf16 %v7285_v34 }
 0x3d4   : > { %v3844_v42 = vpop.f32.mrf.mxu1  ;;  %v4102_v5 = vsel %vm2185_vm0, %v4099_v21, %v7307_v6 }
 0x3d5   : > { %v4240_v3 = vmax.f32 %v4192_v25, 0.0  ;;  %v3845_v13 = vadd.f32 %v7295_v28, %v3844_v42  ;;  %v4197_v27 = vadd.f32 %v7249_v14, %v3853_v53  ;;  %v4109_v53 = vrot.slane %v3967_v63, 1 }
 0x3d6   : > { %v5410_v58 = vpop.f32.mrf.mxu1 }
 0x3d7   : > { %v4919_v22 = vpack.c.bf16 %v4240_v3, %v4239_v50  ;;  %v4195_v9 = vadd.f32 %v7257_v23, %v3845_v13  ;;  %v3856_v32 = vadd.f32 %v5410_v58, %v7295_v28  ;;  %v4245_v48 = vmax.f32 %v4197_v27, 0.0 }
 0x3d8   : > { %v3847_v54 = vpop.f32.mrf.mxu1  ;;  %v4110_v1 = vsel %vm2185_vm0, %v7290_v43, %v4109_v53 }
 0x3d9   : > { %4963 = vst [vmem:[%s7338_s24 + $0x40] sm:$0xff] %v4919_v22   ;;  %v4243_v12 = vmax.f32 %v4195_v9, 0.0  ;;  %v4198_v45 = vadd.f32 %v4086_v56, %v3856_v32  ;;  %v3968_v32 = vunpack.c.l.bf16 %v7310_v39 }
 0x3da   : > { %v5413_v49 = vpop.f32.mrf.mxu1 }
 0x3db   : > { %v4924_v44 = vpack.c.bf16 %v4243_v12, %v4242_v11  ;;  %v4246_v36 = vmax.f32 %v4198_v45, 0.0  ;;  %v3869_v23 = vadd.f32 %v5413_v49, %v7295_v28 }
 0x3dc   : > { %v3860_v47 = vpop.f32.mrf.mxu1 }
 0x3dd   : > { %4964 = vst [vmem:[%s7338_s24 + $0x48] sm:$0xff] %v4924_v44   ;;  %v4929_v14 = vpack.c.bf16 %v4246_v36, %v4245_v48  ;;  %v4201_v7 = vadd.f32 %v7269_v8, %v3869_v23 }
 0x3de   : > { %v5414_v16 = vpop.f32.mrf.mxu1 }
 0x3df   : > { %4965 = vst [vmem:[%s7338_s24 + $0x50] sm:$0xff] %v4929_v14   ;;  %v4249_v37 = vmax.f32 %v4201_v7, 0.0 }
 0x3e0   : > { %v3863_v60 = vpop.f32.mrf.mxu1 }
 0x3e1   : > { %v3864_v46 = vadd.f32 %v7295_v28, %v3863_v60 }
 0x3e2   : > { %v5417_v55 = vpop.f32.mrf.mxu1 }
 0x3e3   : > { %v4200_v35 = vadd.f32 %v4090_v4, %v3864_v46 }
 0x3e4   : > { %v3876_v33 = vpop.f32.mrf.mxu1 }
 0x3e5   : > { %v4248_v18 = vmax.f32 %v4200_v35, 0.0  ;;  %v3877_v30 = vadd.f32 %v7295_v28, %v3876_v33 }
 0x3e6   : > { %v5418_v26 = vpop.f32.mrf.mxu1 }
 0x3e7   : > { %v4934_v59 = vpack.c.bf16 %v4249_v37, %v4248_v18  ;;  %v4203_v24 = vadd.f32 %v7281_v15, %v3877_v30  ;;  %v3888_v25 = vadd.f32 %v5418_v26, %v7295_v28 }
 0x3e8   : > { %v3879_v29 = vpop.f32.mrf.mxu1 }
 0x3e9   : > { %4966 = vst [vmem:[%s7338_s24 + $0x58] sm:$0xff] %v4934_v59   ;;  %v3880_v8 = vadd.f32 %v7295_v28, %v3879_v29  ;;  %v4251_v62 = vmax.f32 %v4203_v24, 0.0  ;;  %v4206_v57 = vadd.f32 %v4102_v5, %v3888_v25 }
 0x3eb   : > { %v4204_v17 = vadd.f32 %v4098_v52, %v3880_v8  ;;  %v4254_v22 = vmax.f32 %v4206_v57, 0.0 }
 0x3ed   : > { %v4252_v2 = vmax.f32 %v4204_v17, 0.0 }
 0x3ef   : > { %v4939_v38 = vpack.c.bf16 %v4252_v2, %v4251_v62 }
 0x3f1   : > { %4967 = vst [vmem:[%s7338_s24 + $0x60] sm:$0xff] %v4939_v38  }
 0x41d   : > { %v5421_v42 = vpop.f32.mrf.mxu1 }
 0x41e   : > { %v3901_v15 = vadd.f32 %v5421_v42, %v7295_v28 }
 0x41f   : > { %v3892_v50 = vpop.f32.mrf.mxu1 }
 0x420   : > { %v3893_v3 = vadd.f32 %v7295_v28, %v3892_v50  ;;  %v4209_v34 = vadd.f32 %v7305_v41, %v3901_v15  ;;  %v4111_v41 = vrot.slane %v3968_v32, 1 }
 0x421   : > { %v5422_v13 = vpop.f32.mrf.mxu1 }
 0x422   : > { %v4207_v58 = vadd.f32 %v7324_v61, %v3893_v3  ;;  %v3904_v56 = vadd.f32 %v5422_v13, %v7295_v28  ;;  %v4257_v31 = vmax.f32 %v4209_v34, 0.0  ;;  %v4114_v39 = vsel %vm2185_vm0, %v4111_v41, %v7329_v10 }
 0x423   : > { %v3895_v6 = vpop.f32.mrf.mxu1 }
 0x424   : > { %v4255_v27 = vmax.f32 %v4207_v58, 0.0  ;;  %v4210_v9 = vadd.f32 %v4110_v1, %v3904_v56 }
 0x426   : > { %v4944_v54 = vpack.c.bf16 %v4255_v27, %v4254_v22  ;;  %v4258_v11 = vmax.f32 %v4210_v9, 0.0  ;;  %v5425_v12 = vpop.f32.mrf.mxu1 }
 0x427   : > { %v3917_v61 = vadd.f32 %v5425_v12, %v7295_v28 }
 0x428   : > { %4968 = vst [vmem:[%s7338_s24 + $0x68] sm:$0xff] %v4944_v54   ;;  %v4949_v43 = vpack.c.bf16 %v4258_v11, %v4257_v31  ;;  %v3908_v45 = vpop.f32.mrf.mxu1 }
 0x429   : > { %v4213_v44 = vadd.f32 %v7343_v19, %v3917_v61 }
 0x42a   : > { %4969 = vst [vmem:[%s7338_s24 + $0x70] sm:$0xff] %v4949_v43   ;;  %v5426_v49 = vpop.f32.mrf.mxu1 }
 0x42b   : > { %v4261_v47 = vmax.f32 %v4213_v44, 0.0 }
 0x42c   : > { %v3911_v48 = vpop.f32.mrf.mxu1 }
 0x42d   : > { %v3912_v36 = vadd.f32 %v7295_v28, %v3911_v48 }
 0x42f   : > { %v4212_v40 = vadd.f32 %v4114_v39, %v3912_v36 }
 0x431   : > { %v4260_v14 = vmax.f32 %v4212_v40, 0.0 }
 0x433   : > { %v4954_v23 = vpack.c.bf16 %v4261_v47, %v4260_v14 }
 0x435   : > { %4970 = vst [vmem:[%s7338_s24 + $0x78] sm:$0xff] %v4954_v23  }
 0x436   : > { %5661 = shalt.err (!%p5658_p3)
}
 0x437   : > { %s5662_s20 = scalar_lea.hbm %s7441_s16, 2048  ;;  %s5666_s11 = scalar_lea.hbm %s7503_s8, 4096 }
 0x438   : > { %p5663_p5 = scmp.ne.s32.totalorder %s7441_s16, %s5662_s20  ;;  %p5667_p9 = scmp.lt.s32.totalorder %s7441_s16, %s7503_s8 }
 0x439   : > { %p5668_p12 = scmp.lt.s32.totalorder %s5666_s11, %s5662_s20 }
 0x43a   : > { %p5664_p6 = pnand %p5663_p5, %p5824_p4 }
 0x43b   : > { %p5669_p10 = por %p5668_p12, %p5667_p9 }
 0x43c   : > { %p5665_p7 = pneg %p5664_p6 }
 0x43e   : > { %p5670_p11 = pnand %p5669_p10, %p5665_p7 }
 0x440   : > { %5673 = shalt.err (!%p5670_p11)
}
 0x441   : > { %s5738_s19 = smov 4  }
 0x442   : > { %5444 = dma.vmem_to_hbm [thread:$0]  (%p5824_p4), %s7443_s26, 2048, %s7441_s16, %s7448_s21, %s5735_s14, %s5735_s14, %s5738_s19  }
 0x443 PF: > { %p5456_p13 = scmp.ge.s32.totalorder %s5728_s10, 2  ;;  %s4486_s22 = sand.u32 1, %s5708_s27  }
 0x444   : > { %s4487_s12 = scalar_lea.sflag [#allocation4], %s4486_s22 }
 0x445   : > { %p5451_p0 = pnand %p5456_p13, %p5831_p8 }
 0x447   : > { %p5452_p1 = pneg %p5451_p0 }
 0x449   : > { %5703 = dma.done.wait (%p5452_p1), %s4487_s12, 2048  }
 0x44a   : > { %5705 = vsyncadd (%p5452_p1), %s4487_s12, 4294965248  ;;  %s22_s10 = sadd.s32 1, %s5728_s10   ;;  %s7526_s27 = smov %s5712_s28 }
 0x44b   : > { %p19_p2 = scmp.ge.s32.totalorder %s22_s10, 4   ;;  %s7527_s28 = smov %s5716_s29 }
 0x44c   : > { %s7528_s29 = smov %s5837_s18  ;;  %s7529_s30 = smov %s5724_s9 }
 0x44d   : > { %s7530_s9 = smov %s7532_s13  ;;  %21 = sbr.rel (!%p19_p2) target bundleno = 5 (0x5), region = 111 }
 0x452   :  { %4492 = vsyncpa [#allocation3], 1 }
 0x453   :  { %4494 = vsyncpa [#allocation3 + $0x1], 1 }
 0x454   :  { %4495 = vsyncpa [#allocation4], 1 }
 0x455   :  { %4497 = vsyncpa [#allocation4 + $0x1], 1 }

</bundles_post_ra>
